<compile_context>
chip_gen: v7x
topology: tpu7x:2x2x1
jax: 0.10.0
libtpu: 0.0.40
codegen_flags: <defaults>
</compile_context>

<pallas_src>
import functools

import jax
import jax.numpy as jnp
from jax import lax
from jax.experimental import pallas as pl
from jax.experimental.pallas import tpu as pltpu

# Top halo rows are padded to a full sublane tile so interior stores at row
# offset _TOP are aligned (H=16 is a multiple of 8).  Only the bottom/left/
# right halos are sized exactly to the conv padding.
_TOP = 8


def _multi_tc() -> bool:
    """True on chips where a 'parallel' grid axis is split across 2 TensorCores."""
    try:
        kind = jax.devices()[0].device_kind.lower()
    except Exception:
        return False
    return any(t in kind for t in ("v7", "v4", "v5p"))


def _conv_planes(src_ref, wb_ref, w_off, b_off, cin, cout, k, H, W):
    """Direct 'same' conv (stride 1) on zero-padded VMEM planes.

    src_ref: VMEM ref (cin, _TOP+H+p, W+2p); interior at [_TOP:_TOP+H, p:p+W],
             halo rows/cols are zero.
    wb_ref:  flat f32 SMEM ref holding all weights/biases; w_off/b_off are
             static offsets of this layer's OIHW weights / bias.
    Returns `cout` pre-activation (H, W) f32 accumulators.

    Loop order: each shifted patch is materialized once and reused for every
    output channel (all cout accumulators stay live in vregs).
    """
    p = (k - 1) // 2
    accs = [jnp.full((H, W), wb_ref[b_off + co], dtype=jnp.float32)
            for co in range(cout)]
    for ci in range(cin):
        for di in range(k):
            for dj in range(k):
                r0 = _TOP + di - p
                patch = src_ref[ci, r0:r0 + H, dj:dj + W]
                tap = (ci * k + di) * k + dj
                for co in range(cout):
                    accs[co] = accs[co] + wb_ref[w_off + co * cin * k * k + tap] * patch
    return accs


def _net_grow_kernel(wb_ref, x_ref, o_ref, xp_ref, a1_ref, a2_ref,
                     *, H, W, r, c1, c2, c3, nb, offs):
    (w1o, b1o, w2o, b2o, w3o, b3o) = offs

    # Zero the padded scratch planes ONCE per grid step.  Interiors are fully
    # overwritten per batch element below; halos are never written and stay
    # zero across the per-step batch loop.  (Do NOT hoist behind
    # pl.when(program_id(0)==0): unsafe with the parallel grid on v7x.)
    xp_ref[...] = jnp.zeros_like(xp_ref)
    a1_ref[...] = jnp.zeros_like(a1_ref)
    a2_ref[...] = jnp.zeros_like(a2_ref)

    # Pixel-shuffle placement matrices (hoisted out of the batch loop).
    #   U[b][x, X] = 1 iff X == r*x + b   (scatter columns x -> r*x+b)
    #   V[a][Y, y] = 1 iff Y == r*y + a   (scatter rows    y -> r*y+a)
    # so  sum_{a,b} V[a] @ sigmoid(conv3_{a*r+b}) @ U[b]  is exactly
    # PixelShuffle(sigmoid(conv3)).  Tiny matmuls -> otherwise-idle MXU.
    ix = lax.broadcasted_iota(jnp.int32, (W, r * W), 0)
    iX = lax.broadcasted_iota(jnp.int32, (W, r * W), 1)
    U = [(iX == r * ix + b).astype(jnp.float32) for b in range(r)]
    iY = lax.broadcasted_iota(jnp.int32, (r * H, H), 0)
    iy = lax.broadcasted_iota(jnp.int32, (r * H, H), 1)
    V = [(iY == r * iy + a).astype(jnp.float32) for a in range(r)]

    for n in range(nb):  # static unrolled loop over this step's batch chunk
        # In-kernel "same" padding: interior at sublane offset _TOP (aligned
        # full-sublane store), lane offset = conv pad.
        xp_ref[0, _TOP:_TOP + H, 2:2 + W] = x_ref[n, 0, :, :]

        # conv1: 1 -> c1, 5x5, pad 2, tanh -> 1-padded scratch for conv2.
        accs = _conv_planes(xp_ref, wb_ref, w1o, b1o, 1, c1, 5, H, W)
        for co in range(c1):
            a1_ref[co, _TOP:_TOP + H, 1:1 + W] = jnp.tanh(accs[co])

        # conv2: c1 -> c2, 3x3, pad 1, tanh -> 1-padded scratch for conv3.
        accs = _conv_planes(a1_ref, wb_ref, w2o, b2o, c1, c2, 3, H, W)
        for co in range(c2):
            a2_ref[co, _TOP:_TOP + H, 1:1 + W] = jnp.tanh(accs[co])

        # conv3: c2 -> c3 (= r^2), 3x3, pad 1, sigmoid + in-kernel PixelShuffle.
        accs = _conv_planes(a2_ref, wb_ref, w3o, b3o, c2, c3, 3, H, W)
        out = jnp.zeros((r * H, r * W), jnp.float32)
        for a in range(r):
            row_blk = jnp.zeros((H, r * W), jnp.float32)
            for b in range(r):
                row_blk = row_blk + jnp.dot(
                    jax.nn.sigmoid(accs[a * r + b]), U[b],
                    preferred_element_type=jnp.float32)
            out = out + jnp.dot(V[a], row_blk, preferred_element_type=jnp.float32)
        o_ref[n, 0, :, :] = out


def pixel_shuffle(x, r):
    """PyTorch nn.PixelShuffle (used by the pure-JAX reference only)."""
    N, Crr, H, W = x.shape
    C = Crr // (r * r)
    x = x.reshape(N, C, r, r, H, W)
    x = jnp.transpose(x, (0, 1, 4, 2, 5, 3))   # N, C, H, r, W, r
    return x.reshape(N, C, H * r, W * r)


def net_grow_forward(x, params, upscale_factor):
    w1, b1, w2, b2, w3, b3 = params
    N, Cin, H, W = x.shape
    r = upscale_factor
    c1, c2, c3 = w1.shape[0], w2.shape[0], w3.shape[0]
    assert Cin == 1 and w1.shape[1] == 1, "Net_Grow.conv1 expects 1 input channel"
    assert c3 == r * r

    # Single flat f32 weight/bias operand (one SMEM DMA instead of six).
    parts = [w1.reshape(-1), b1, w2.reshape(-1), b2, w3.reshape(-1), b3]
    offs, o = [], 0
    for p_ in parts:
        offs.append(o)
        o += int(p_.size)
    offs = tuple(offs)
    wb = jnp.concatenate([p_.astype(jnp.float32) for p_ in parts])

    # One grid step for the whole batch on single-TC chips; 2 parallel steps
    # (one batch chunk per TensorCore) where the hardware can use them.
    G = 2 if (_multi_tc() and N >= 2 and N % 2 == 0) else 1
    NB = N // G

    kern = functools.partial(_net_grow_kernel, H=H, W=W, r=r,
                             c1=c1, c2=c2, c3=c3, nb=NB, offs=offs)

    return pl.pallas_call(
        kern,
        out_shape=jax.ShapeDtypeStruct((N, 1, H * r, W * r), jnp.float32),
        grid=(G,),
        in_specs=[
            pl.BlockSpec(memory_space=pltpu.MemorySpace.SMEM),        # flat weights
            pl.BlockSpec((NB, 1, H, W), lambda g: (g, 0, 0, 0)),      # input chunk
        ],
        out_specs=pl.BlockSpec((NB, 1, H * r, W * r), lambda g: (g, 0, 0, 0)),
        scratch_shapes=[
            pltpu.VMEM((1,  _TOP + H + 2, W + 4), jnp.float32),  # padded conv1 input
            pltpu.VMEM((c1, _TOP + H + 1, W + 2), jnp.float32),  # padded act1
            pltpu.VMEM((c2, _TOP + H + 1, W + 2), jnp.float32),  # padded act2
        ],
        compiler_params=pltpu.CompilerParams(
            dimension_semantics=("parallel",)),
    )(wb, x.astype(jnp.float32))


def init_params(key, upscale_factor):
    ks = jax.random.split(key, 6)
    r2 = upscale_factor ** 2
    scale = 0.1
    w1 = scale * jax.random.normal(ks[0], (2, 1, 5, 5), jnp.float32)
    b1 = scale * jax.random.normal(ks[1], (2,), jnp.float32)
    w2 = scale * jax.random.normal(ks[2], (3, 2, 3, 3), jnp.float32)
    b2 = scale * jax.random.normal(ks[3], (3,), jnp.float32)
    w3 = scale * jax.random.normal(ks[4], (r2, 3, 3, 3), jnp.float32)
    b3 = scale * jax.random.normal(ks[5], (r2,), jnp.float32)
    return (w1, b1, w2, b2, w3, b3)


def _ref_conv(x, w, b, pad):
    y = lax.conv_general_dilated(
        x, w, window_strides=(1, 1), padding=[(pad, pad), (pad, pad)],
        dimension_numbers=("NCHW", "OIHW", "NCHW"))
    return y + b[None, :, None, None]


def net_grow_reference(x, params, upscale_factor):
    w1, b1, w2, b2, w3, b3 = params
    x = jnp.tanh(_ref_conv(x, w1, b1, 2))
    x = jnp.tanh(_ref_conv(x, w2, b2, 1))
    x = _ref_conv(x, w3, b3, 1)
    return jax.nn.sigmoid(pixel_shuffle(x, upscale_factor))


if __name__ == "__main__":
    upscale_factor = 2
    key = jax.random.PRNGKey(0)
    k_params, k_x = jax.random.split(key)
    params = init_params(k_params, upscale_factor)

    # Input: N=2, C=1 (conv1 expects 1 channel), H=W=16.
    x = jax.random.normal(k_x, (2, 1, 16, 16), jnp.float32)

    fwd = jax.jit(functools.partial(net_grow_forward, upscale_factor=upscale_factor))
    out = jax.block_until_ready(fwd(x, params))

    ref = jax.block_until_ready(net_grow_reference(x, params, upscale_factor))
    assert out.shape == (2, 1, 32, 32), out.shape
    assert jnp.allclose(out, ref, rtol=1e-5, atol=1e-5), float(jnp.max(jnp.abs(out - ref)))

    print("KERNEL_OK")
</pallas_src>

<mosaic_0001>
module attributes {stable_mosaic.version = 11 : i64} {
  func.func @_net_grow_kernel(%arg0: i32, %arg1: memref<221xf32, #tpu.memory_space<smem>>, %arg2: memref<2x1x16x16xf32, #tpu.memory_space<vmem>>, %arg3: memref<2x1x32x32xf32, #tpu.memory_space<vmem>>, %arg4: memref<1x26x20xf32, #tpu.memory_space<vmem>>, %arg5: memref<2x25x18xf32, #tpu.memory_space<vmem>>, %arg6: memref<3x25x18xf32, #tpu.memory_space<vmem>>) attributes {dimension_semantics = [#tpu.dimension_semantics<parallel>], iteration_bounds = array<i64: 1>, scalar_prefetch = 0 : i64, scratch_operands = 3 : i64, tpu.core_type = #tpu.core_type<tc>, window_params = [{transform_indices = @transform_0, window_bounds = array<i64: 221>}, {transform_indices = @transform_1, window_bounds = array<i64: 2, 1, 16, 16>}, {transform_indices = @transform_2, window_bounds = array<i64: 2, 1, 32, 32>}]} {
    %cst = arith.constant 0.000000e+00 : f32
    %0 = vector.broadcast %cst : f32 to vector<1x26x20xf32>
    %c0 = arith.constant 0 : index
    %c0_0 = arith.constant 0 : index
    %c0_1 = arith.constant 0 : index
    %1 = vector.load %arg4[%c0, %c0_0, %c0_1] : memref<1x26x20xf32, #tpu.memory_space<vmem>>, vector<1x26x20xf32>
    tpu.vector_store %arg4[%c0, %c0_0, %c0_1], %0 {strides = array<i32>} : memref<1x26x20xf32, #tpu.memory_space<vmem>>, vector<1x26x20xf32>,
    %cst_2 = arith.constant 0.000000e+00 : f32
    %2 = vector.broadcast %cst_2 : f32 to vector<2x25x18xf32>
    %c0_3 = arith.constant 0 : index
    %c0_4 = arith.constant 0 : index
    %c0_5 = arith.constant 0 : index
    %3 = vector.load %arg5[%c0_3, %c0_4, %c0_5] : memref<2x25x18xf32, #tpu.memory_space<vmem>>, vector<2x25x18xf32>
    tpu.vector_store %arg5[%c0_3, %c0_4, %c0_5], %2 {strides = array<i32>} : memref<2x25x18xf32, #tpu.memory_space<vmem>>, vector<2x25x18xf32>,
    %cst_6 = arith.constant 0.000000e+00 : f32
    %4 = vector.broadcast %cst_6 : f32 to vector<3x25x18xf32>
    %c0_7 = arith.constant 0 : index
    %c0_8 = arith.constant 0 : index
    %c0_9 = arith.constant 0 : index
    %5 = vector.load %arg6[%c0_7, %c0_8, %c0_9] : memref<3x25x18xf32, #tpu.memory_space<vmem>>, vector<3x25x18xf32>
    tpu.vector_store %arg6[%c0_7, %c0_8, %c0_9], %4 {strides = array<i32>} : memref<3x25x18xf32, #tpu.memory_space<vmem>>, vector<3x25x18xf32>,
    %6 = tpu.iota {dimensions = array<i32: 0>} : vector<16x32xi32>
    %7 = tpu.iota {dimensions = array<i32: 1>} : vector<16x32xi32>
    %c2_i32 = arith.constant 2 : i32
    %8 = vector.broadcast %c2_i32 : i32 to vector<16x32xi32>
    %9 = arith.muli %8, %6 : vector<16x32xi32>
    %c0_i32 = arith.constant 0 : i32
    %10 = vector.broadcast %c0_i32 : i32 to vector<16x32xi32>
    %11 = arith.addi %9, %10 : vector<16x32xi32>
    %12 = arith.cmpi eq, %7, %11 : vector<16x32xi32>
    %13 = arith.extui %12 : vector<16x32xi1> to vector<16x32xi32>
    %14 = arith.sitofp %13 : vector<16x32xi32> to vector<16x32xf32>
    %c2_i32_10 = arith.constant 2 : i32
    %15 = vector.broadcast %c2_i32_10 : i32 to vector<16x32xi32>
    %16 = arith.muli %15, %6 : vector<16x32xi32>
    %c1_i32 = arith.constant 1 : i32
    %17 = vector.broadcast %c1_i32 : i32 to vector<16x32xi32>
    %18 = arith.addi %16, %17 : vector<16x32xi32>
    %19 = arith.cmpi eq, %7, %18 : vector<16x32xi32>
    %20 = arith.extui %19 : vector<16x32xi1> to vector<16x32xi32>
    %21 = arith.sitofp %20 : vector<16x32xi32> to vector<16x32xf32>
    %22 = tpu.iota {dimensions = array<i32: 0>} : vector<32x16xi32>
    %23 = tpu.iota {dimensions = array<i32: 1>} : vector<32x16xi32>
    %c2_i32_11 = arith.constant 2 : i32
    %24 = vector.broadcast %c2_i32_11 : i32 to vector<32x16xi32>
    %25 = arith.muli %24, %23 : vector<32x16xi32>
    %c0_i32_12 = arith.constant 0 : i32
    %26 = vector.broadcast %c0_i32_12 : i32 to vector<32x16xi32>
    %27 = arith.addi %25, %26 : vector<32x16xi32>
    %28 = arith.cmpi eq, %22, %27 : vector<32x16xi32>
    %29 = arith.extui %28 : vector<32x16xi1> to vector<32x16xi32>
    %30 = arith.sitofp %29 : vector<32x16xi32> to vector<32x16xf32>
    %c2_i32_13 = arith.constant 2 : i32
    %31 = vector.broadcast %c2_i32_13 : i32 to vector<32x16xi32>
    %32 = arith.muli %31, %23 : vector<32x16xi32>
    %c1_i32_14 = arith.constant 1 : i32
    %33 = vector.broadcast %c1_i32_14 : i32 to vector<32x16xi32>
    %34 = arith.addi %32, %33 : vector<32x16xi32>
    %35 = arith.cmpi eq, %22, %34 : vector<32x16xi32>
    %36 = arith.extui %35 : vector<32x16xi1> to vector<32x16xi32>
    %37 = arith.sitofp %36 : vector<32x16xi32> to vector<32x16xf32>
    %c0_15 = arith.constant 0 : index
    %c0_16 = arith.constant 0 : index
    %c0_17 = arith.constant 0 : index
    %c0_18 = arith.constant 0 : index
    %38 = vector.load %arg2[%c0_15, %c0_16, %c0_17, %c0_18] : memref<2x1x16x16xf32, #tpu.memory_space<vmem>>, vector<1x1x16x16xf32>
    %39 = vector.shape_cast %38 : vector<1x1x16x16xf32> to vector<16x16xf32>
    %c0_19 = arith.constant 0 : index
    %c8 = arith.constant 8 : index
    %c2 = arith.constant 2 : index
    %40 = vector.load %arg4[%c0_19, %c8, %c2] : memref<1x26x20xf32, #tpu.memory_space<vmem>>, vector<1x16x16xf32>
    %41 = vector.shape_cast %40 : vector<1x16x16xf32> to vector<16x16xf32>
    %42 = vector.shape_cast %39 : vector<16x16xf32> to vector<1x16x16xf32>
    tpu.vector_store %arg4[%c0_19, %c8, %c2], %42 {strides = array<i32>} : memref<1x26x20xf32, #tpu.memory_space<vmem>>, vector<1x16x16xf32>,
    %c50 = arith.constant 50 : index
    %43 = memref.load %arg1[%c50] : memref<221xf32, #tpu.memory_space<smem>>
    %44 = vector.broadcast %43 : f32 to vector<16x16xf32>
    %c51 = arith.constant 51 : index
    %45 = memref.load %arg1[%c51] : memref<221xf32, #tpu.memory_space<smem>>
    %46 = vector.broadcast %45 : f32 to vector<16x16xf32>
    %c0_20 = arith.constant 0 : index
    %c6 = arith.constant 6 : index
    %c0_21 = arith.constant 0 : index
    %47 = vector.load %arg4[%c0_20, %c6, %c0_21] : memref<1x26x20xf32, #tpu.memory_space<vmem>>, vector<1x16x16xf32>
    %48 = vector.shape_cast %47 : vector<1x16x16xf32> to vector<16x16xf32>
    %c0_22 = arith.constant 0 : index
    %49 = memref.load %arg1[%c0_22] : memref<221xf32, #tpu.memory_space<smem>>
    %50 = vector.broadcast %49 : f32 to vector<16x16xf32>
    %51 = arith.mulf %50, %48 : vector<16x16xf32>
    %52 = arith.addf %44, %51 : vector<16x16xf32>
    %c25 = arith.constant 25 : index
    %53 = memref.load %arg1[%c25] : memref<221xf32, #tpu.memory_space<smem>>
    %54 = vector.broadcast %53 : f32 to vector<16x16xf32>
    %55 = arith.mulf %54, %48 : vector<16x16xf32>
    %56 = arith.addf %46, %55 : vector<16x16xf32>
    %c0_23 = arith.constant 0 : index
    %c6_24 = arith.constant 6 : index
    %c1 = arith.constant 1 : index
    %57 = vector.load %arg4[%c0_23, %c6_24, %c1] : memref<1x26x20xf32, #tpu.memory_space<vmem>>, vector<1x16x16xf32>
    %58 = vector.shape_cast %57 : vector<1x16x16xf32> to vector<16x16xf32>
    %c1_25 = arith.constant 1 : index
    %59 = memref.load %arg1[%c1_25] : memref<221xf32, #tpu.memory_space<smem>>
    %60 = vector.broadcast %59 : f32 to vector<16x16xf32>
    %61 = arith.mulf %60, %58 : vector<16x16xf32>
    %62 = arith.addf %52, %61 : vector<16x16xf32>
    %c26 = arith.constant 26 : index
    %63 = memref.load %arg1[%c26] : memref<221xf32, #tpu.memory_space<smem>>
    %64 = vector.broadcast %63 : f32 to vector<16x16xf32>
    %65 = arith.mulf %64, %58 : vector<16x16xf32>
    %66 = arith.addf %56, %65 : vector<16x16xf32>
    %c0_26 = arith.constant 0 : index
    %c6_27 = arith.constant 6 : index
    %c2_28 = arith.constant 2 : index
    %67 = vector.load %arg4[%c0_26, %c6_27, %c2_28] : memref<1x26x20xf32, #tpu.memory_space<vmem>>, vector<1x16x16xf32>
    %68 = vector.shape_cast %67 : vector<1x16x16xf32> to vector<16x16xf32>
    %c2_29 = arith.constant 2 : index
    %69 = memref.load %arg1[%c2_29] : memref<221xf32, #tpu.memory_space<smem>>
    %70 = vector.broadcast %69 : f32 to vector<16x16xf32>
    %71 = arith.mulf %70, %68 : vector<16x16xf32>
    %72 = arith.addf %62, %71 : vector<16x16xf32>
    %c27 = arith.constant 27 : index
    %73 = memref.load %arg1[%c27] : memref<221xf32, #tpu.memory_space<smem>>
    %74 = vector.broadcast %73 : f32 to vector<16x16xf32>
    %75 = arith.mulf %74, %68 : vector<16x16xf32>
    %76 = arith.addf %66, %75 : vector<16x16xf32>
    %c0_30 = arith.constant 0 : index
    %c6_31 = arith.constant 6 : index
    %c3 = arith.constant 3 : index
    %77 = vector.load %arg4[%c0_30, %c6_31, %c3] : memref<1x26x20xf32, #tpu.memory_space<vmem>>, vector<1x16x16xf32>
    %78 = vector.shape_cast %77 : vector<1x16x16xf32> to vector<16x16xf32>
    %c3_32 = arith.constant 3 : index
    %79 = memref.load %arg1[%c3_32] : memref<221xf32, #tpu.memory_space<smem>>
    %80 = vector.broadcast %79 : f32 to vector<16x16xf32>
    %81 = arith.mulf %80, %78 : vector<16x16xf32>
    %82 = arith.addf %72, %81 : vector<16x16xf32>
    %c28 = arith.constant 28 : index
    %83 = memref.load %arg1[%c28] : memref<221xf32, #tpu.memory_space<smem>>
    %84 = vector.broadcast %83 : f32 to vector<16x16xf32>
    %85 = arith.mulf %84, %78 : vector<16x16xf32>
    %86 = arith.addf %76, %85 : vector<16x16xf32>
    %c0_33 = arith.constant 0 : index
    %c6_34 = arith.constant 6 : index
    %c4 = arith.constant 4 : index
    %87 = vector.load %arg4[%c0_33, %c6_34, %c4] : memref<1x26x20xf32, #tpu.memory_space<vmem>>, vector<1x16x16xf32>
    %88 = vector.shape_cast %87 : vector<1x16x16xf32> to vector<16x16xf32>
    %c4_35 = arith.constant 4 : index
    %89 = memref.load %arg1[%c4_35] : memref<221xf32, #tpu.memory_space<smem>>
    %90 = vector.broadcast %89 : f32 to vector<16x16xf32>
    %91 = arith.mulf %90, %88 : vector<16x16xf32>
    %92 = arith.addf %82, %91 : vector<16x16xf32>
    %c29 = arith.constant 29 : index
    %93 = memref.load %arg1[%c29] : memref<221xf32, #tpu.memory_space<smem>>
    %94 = vector.broadcast %93 : f32 to vector<16x16xf32>
    %95 = arith.mulf %94, %88 : vector<16x16xf32>
    %96 = arith.addf %86, %95 : vector<16x16xf32>
    %c0_36 = arith.constant 0 : index
    %c7 = arith.constant 7 : index
    %c0_37 = arith.constant 0 : index
    %97 = vector.load %arg4[%c0_36, %c7, %c0_37] : memref<1x26x20xf32, #tpu.memory_space<vmem>>, vector<1x16x16xf32>
    %98 = vector.shape_cast %97 : vector<1x16x16xf32> to vector<16x16xf32>
    %c5 = arith.constant 5 : index
    %99 = memref.load %arg1[%c5] : memref<221xf32, #tpu.memory_space<smem>>
    %100 = vector.broadcast %99 : f32 to vector<16x16xf32>
    %101 = arith.mulf %100, %98 : vector<16x16xf32>
    %102 = arith.addf %92, %101 : vector<16x16xf32>
    %c30 = arith.constant 30 : index
    %103 = memref.load %arg1[%c30] : memref<221xf32, #tpu.memory_space<smem>>
    %104 = vector.broadcast %103 : f32 to vector<16x16xf32>
    %105 = arith.mulf %104, %98 : vector<16x16xf32>
    %106 = arith.addf %96, %105 : vector<16x16xf32>
    %c0_38 = arith.constant 0 : index
    %c7_39 = arith.constant 7 : index
    %c1_40 = arith.constant 1 : index
    %107 = vector.load %arg4[%c0_38, %c7_39, %c1_40] : memref<1x26x20xf32, #tpu.memory_space<vmem>>, vector<1x16x16xf32>
    %108 = vector.shape_cast %107 : vector<1x16x16xf32> to vector<16x16xf32>
    %c6_41 = arith.constant 6 : index
    %109 = memref.load %arg1[%c6_41] : memref<221xf32, #tpu.memory_space<smem>>
    %110 = vector.broadcast %109 : f32 to vector<16x16xf32>
    %111 = arith.mulf %110, %108 : vector<16x16xf32>
    %112 = arith.addf %102, %111 : vector<16x16xf32>
    %c31 = arith.constant 31 : index
    %113 = memref.load %arg1[%c31] : memref<221xf32, #tpu.memory_space<smem>>
    %114 = vector.broadcast %113 : f32 to vector<16x16xf32>
    %115 = arith.mulf %114, %108 : vector<16x16xf32>
    %116 = arith.addf %106, %115 : vector<16x16xf32>
    %c0_42 = arith.constant 0 : index
    %c7_43 = arith.constant 7 : index
    %c2_44 = arith.constant 2 : index
    %117 = vector.load %arg4[%c0_42, %c7_43, %c2_44] : memref<1x26x20xf32, #tpu.memory_space<vmem>>, vector<1x16x16xf32>
    %118 = vector.shape_cast %117 : vector<1x16x16xf32> to vector<16x16xf32>
    %c7_45 = arith.constant 7 : index
    %119 = memref.load %arg1[%c7_45] : memref<221xf32, #tpu.memory_space<smem>>
    %120 = vector.broadcast %119 : f32 to vector<16x16xf32>
    %121 = arith.mulf %120, %118 : vector<16x16xf32>
    %122 = arith.addf %112, %121 : vector<16x16xf32>
    %c32 = arith.constant 32 : index
    %123 = memref.load %arg1[%c32] : memref<221xf32, #tpu.memory_space<smem>>
    %124 = vector.broadcast %123 : f32 to vector<16x16xf32>
    %125 = arith.mulf %124, %118 : vector<16x16xf32>
    %126 = arith.addf %116, %125 : vector<16x16xf32>
    %c0_46 = arith.constant 0 : index
    %c7_47 = arith.constant 7 : index
    %c3_48 = arith.constant 3 : index
    %127 = vector.load %arg4[%c0_46, %c7_47, %c3_48] : memref<1x26x20xf32, #tpu.memory_space<vmem>>, vector<1x16x16xf32>
    %128 = vector.shape_cast %127 : vector<1x16x16xf32> to vector<16x16xf32>
    %c8_49 = arith.constant 8 : index
    %129 = memref.load %arg1[%c8_49] : memref<221xf32, #tpu.memory_space<smem>>
    %130 = vector.broadcast %129 : f32 to vector<16x16xf32>
    %131 = arith.mulf %130, %128 : vector<16x16xf32>
    %132 = arith.addf %122, %131 : vector<16x16xf32>
    %c33 = arith.constant 33 : index
    %133 = memref.load %arg1[%c33] : memref<221xf32, #tpu.memory_space<smem>>
    %134 = vector.broadcast %133 : f32 to vector<16x16xf32>
    %135 = arith.mulf %134, %128 : vector<16x16xf32>
    %136 = arith.addf %126, %135 : vector<16x16xf32>
    %c0_50 = arith.constant 0 : index
    %c7_51 = arith.constant 7 : index
    %c4_52 = arith.constant 4 : index
    %137 = vector.load %arg4[%c0_50, %c7_51, %c4_52] : memref<1x26x20xf32, #tpu.memory_space<vmem>>, vector<1x16x16xf32>
    %138 = vector.shape_cast %137 : vector<1x16x16xf32> to vector<16x16xf32>
    %c9 = arith.constant 9 : index
    %139 = memref.load %arg1[%c9] : memref<221xf32, #tpu.memory_space<smem>>
    %140 = vector.broadcast %139 : f32 to vector<16x16xf32>
    %141 = arith.mulf %140, %138 : vector<16x16xf32>
    %142 = arith.addf %132, %141 : vector<16x16xf32>
    %c34 = arith.constant 34 : index
    %143 = memref.load %arg1[%c34] : memref<221xf32, #tpu.memory_space<smem>>
    %144 = vector.broadcast %143 : f32 to vector<16x16xf32>
    %145 = arith.mulf %144, %138 : vector<16x16xf32>
    %146 = arith.addf %136, %145 : vector<16x16xf32>
    %c0_53 = arith.constant 0 : index
    %c8_54 = arith.constant 8 : index
    %c0_55 = arith.constant 0 : index
    %147 = vector.load %arg4[%c0_53, %c8_54, %c0_55] : memref<1x26x20xf32, #tpu.memory_space<vmem>>, vector<1x16x16xf32>
    %148 = vector.shape_cast %147 : vector<1x16x16xf32> to vector<16x16xf32>
    %c10 = arith.constant 10 : index
    %149 = memref.load %arg1[%c10] : memref<221xf32, #tpu.memory_space<smem>>
    %150 = vector.broadcast %149 : f32 to vector<16x16xf32>
    %151 = arith.mulf %150, %148 : vector<16x16xf32>
    %152 = arith.addf %142, %151 : vector<16x16xf32>
    %c35 = arith.constant 35 : index
    %153 = memref.load %arg1[%c35] : memref<221xf32, #tpu.memory_space<smem>>
    %154 = vector.broadcast %153 : f32 to vector<16x16xf32>
    %155 = arith.mulf %154, %148 : vector<16x16xf32>
    %156 = arith.addf %146, %155 : vector<16x16xf32>
    %c0_56 = arith.constant 0 : index
    %c8_57 = arith.constant 8 : index
    %c1_58 = arith.constant 1 : index
    %157 = vector.load %arg4[%c0_56, %c8_57, %c1_58] : memref<1x26x20xf32, #tpu.memory_space<vmem>>, vector<1x16x16xf32>
    %158 = vector.shape_cast %157 : vector<1x16x16xf32> to vector<16x16xf32>
    %c11 = arith.constant 11 : index
    %159 = memref.load %arg1[%c11] : memref<221xf32, #tpu.memory_space<smem>>
    %160 = vector.broadcast %159 : f32 to vector<16x16xf32>
    %161 = arith.mulf %160, %158 : vector<16x16xf32>
    %162 = arith.addf %152, %161 : vector<16x16xf32>
    %c36 = arith.constant 36 : index
    %163 = memref.load %arg1[%c36] : memref<221xf32, #tpu.memory_space<smem>>
    %164 = vector.broadcast %163 : f32 to vector<16x16xf32>
    %165 = arith.mulf %164, %158 : vector<16x16xf32>
    %166 = arith.addf %156, %165 : vector<16x16xf32>
    %c0_59 = arith.constant 0 : index
    %c8_60 = arith.constant 8 : index
    %c2_61 = arith.constant 2 : index
    %167 = vector.load %arg4[%c0_59, %c8_60, %c2_61] : memref<1x26x20xf32, #tpu.memory_space<vmem>>, vector<1x16x16xf32>
    %168 = vector.shape_cast %167 : vector<1x16x16xf32> to vector<16x16xf32>
    %c12 = arith.constant 12 : index
    %169 = memref.load %arg1[%c12] : memref<221xf32, #tpu.memory_space<smem>>
    %170 = vector.broadcast %169 : f32 to vector<16x16xf32>
    %171 = arith.mulf %170, %168 : vector<16x16xf32>
    %172 = arith.addf %162, %171 : vector<16x16xf32>
    %c37 = arith.constant 37 : index
    %173 = memref.load %arg1[%c37] : memref<221xf32, #tpu.memory_space<smem>>
    %174 = vector.broadcast %173 : f32 to vector<16x16xf32>
    %175 = arith.mulf %174, %168 : vector<16x16xf32>
    %176 = arith.addf %166, %175 : vector<16x16xf32>
    %c0_62 = arith.constant 0 : index
    %c8_63 = arith.constant 8 : index
    %c3_64 = arith.constant 3 : index
    %177 = vector.load %arg4[%c0_62, %c8_63, %c3_64] : memref<1x26x20xf32, #tpu.memory_space<vmem>>, vector<1x16x16xf32>
    %178 = vector.shape_cast %177 : vector<1x16x16xf32> to vector<16x16xf32>
    %c13 = arith.constant 13 : index
    %179 = memref.load %arg1[%c13] : memref<221xf32, #tpu.memory_space<smem>>
    %180 = vector.broadcast %179 : f32 to vector<16x16xf32>
    %181 = arith.mulf %180, %178 : vector<16x16xf32>
    %182 = arith.addf %172, %181 : vector<16x16xf32>
    %c38 = arith.constant 38 : index
    %183 = memref.load %arg1[%c38] : memref<221xf32, #tpu.memory_space<smem>>
    %184 = vector.broadcast %183 : f32 to vector<16x16xf32>
    %185 = arith.mulf %184, %178 : vector<16x16xf32>
    %186 = arith.addf %176, %185 : vector<16x16xf32>
    %c0_65 = arith.constant 0 : index
    %c8_66 = arith.constant 8 : index
    %c4_67 = arith.constant 4 : index
    %187 = vector.load %arg4[%c0_65, %c8_66, %c4_67] : memref<1x26x20xf32, #tpu.memory_space<vmem>>, vector<1x16x16xf32>
    %188 = vector.shape_cast %187 : vector<1x16x16xf32> to vector<16x16xf32>
    %c14 = arith.constant 14 : index
    %189 = memref.load %arg1[%c14] : memref<221xf32, #tpu.memory_space<smem>>
    %190 = vector.broadcast %189 : f32 to vector<16x16xf32>
    %191 = arith.mulf %190, %188 : vector<16x16xf32>
    %192 = arith.addf %182, %191 : vector<16x16xf32>
    %c39 = arith.constant 39 : index
    %193 = memref.load %arg1[%c39] : memref<221xf32, #tpu.memory_space<smem>>
    %194 = vector.broadcast %193 : f32 to vector<16x16xf32>
    %195 = arith.mulf %194, %188 : vector<16x16xf32>
    %196 = arith.addf %186, %195 : vector<16x16xf32>
    %c0_68 = arith.constant 0 : index
    %c9_69 = arith.constant 9 : index
    %c0_70 = arith.constant 0 : index
    %197 = vector.load %arg4[%c0_68, %c9_69, %c0_70] : memref<1x26x20xf32, #tpu.memory_space<vmem>>, vector<1x16x16xf32>
    %198 = vector.shape_cast %197 : vector<1x16x16xf32> to vector<16x16xf32>
    %c15 = arith.constant 15 : index
    %199 = memref.load %arg1[%c15] : memref<221xf32, #tpu.memory_space<smem>>
    %200 = vector.broadcast %199 : f32 to vector<16x16xf32>
    %201 = arith.mulf %200, %198 : vector<16x16xf32>
    %202 = arith.addf %192, %201 : vector<16x16xf32>
    %c40 = arith.constant 40 : index
    %203 = memref.load %arg1[%c40] : memref<221xf32, #tpu.memory_space<smem>>
    %204 = vector.broadcast %203 : f32 to vector<16x16xf32>
    %205 = arith.mulf %204, %198 : vector<16x16xf32>
    %206 = arith.addf %196, %205 : vector<16x16xf32>
    %c0_71 = arith.constant 0 : index
    %c9_72 = arith.constant 9 : index
    %c1_73 = arith.constant 1 : index
    %207 = vector.load %arg4[%c0_71, %c9_72, %c1_73] : memref<1x26x20xf32, #tpu.memory_space<vmem>>, vector<1x16x16xf32>
    %208 = vector.shape_cast %207 : vector<1x16x16xf32> to vector<16x16xf32>
    %c16 = arith.constant 16 : index
    %209 = memref.load %arg1[%c16] : memref<221xf32, #tpu.memory_space<smem>>
    %210 = vector.broadcast %209 : f32 to vector<16x16xf32>
    %211 = arith.mulf %210, %208 : vector<16x16xf32>
    %212 = arith.addf %202, %211 : vector<16x16xf32>
    %c41 = arith.constant 41 : index
    %213 = memref.load %arg1[%c41] : memref<221xf32, #tpu.memory_space<smem>>
    %214 = vector.broadcast %213 : f32 to vector<16x16xf32>
    %215 = arith.mulf %214, %208 : vector<16x16xf32>
    %216 = arith.addf %206, %215 : vector<16x16xf32>
    %c0_74 = arith.constant 0 : index
    %c9_75 = arith.constant 9 : index
    %c2_76 = arith.constant 2 : index
    %217 = vector.load %arg4[%c0_74, %c9_75, %c2_76] : memref<1x26x20xf32, #tpu.memory_space<vmem>>, vector<1x16x16xf32>
    %218 = vector.shape_cast %217 : vector<1x16x16xf32> to vector<16x16xf32>
    %c17 = arith.constant 17 : index
    %219 = memref.load %arg1[%c17] : memref<221xf32, #tpu.memory_space<smem>>
    %220 = vector.broadcast %219 : f32 to vector<16x16xf32>
    %221 = arith.mulf %220, %218 : vector<16x16xf32>
    %222 = arith.addf %212, %221 : vector<16x16xf32>
    %c42 = arith.constant 42 : index
    %223 = memref.load %arg1[%c42] : memref<221xf32, #tpu.memory_space<smem>>
    %224 = vector.broadcast %223 : f32 to vector<16x16xf32>
    %225 = arith.mulf %224, %218 : vector<16x16xf32>
    %226 = arith.addf %216, %225 : vector<16x16xf32>
    %c0_77 = arith.constant 0 : index
    %c9_78 = arith.constant 9 : index
    %c3_79 = arith.constant 3 : index
    %227 = vector.load %arg4[%c0_77, %c9_78, %c3_79] : memref<1x26x20xf32, #tpu.memory_space<vmem>>, vector<1x16x16xf32>
    %228 = vector.shape_cast %227 : vector<1x16x16xf32> to vector<16x16xf32>
    %c18 = arith.constant 18 : index
    %229 = memref.load %arg1[%c18] : memref<221xf32, #tpu.memory_space<smem>>
    %230 = vector.broadcast %229 : f32 to vector<16x16xf32>
    %231 = arith.mulf %230, %228 : vector<16x16xf32>
    %232 = arith.addf %222, %231 : vector<16x16xf32>
    %c43 = arith.constant 43 : index
    %233 = memref.load %arg1[%c43] : memref<221xf32, #tpu.memory_space<smem>>
    %234 = vector.broadcast %233 : f32 to vector<16x16xf32>
    %235 = arith.mulf %234, %228 : vector<16x16xf32>
    %236 = arith.addf %226, %235 : vector<16x16xf32>
    %c0_80 = arith.constant 0 : index
    %c9_81 = arith.constant 9 : index
    %c4_82 = arith.constant 4 : index
    %237 = vector.load %arg4[%c0_80, %c9_81, %c4_82] : memref<1x26x20xf32, #tpu.memory_space<vmem>>, vector<1x16x16xf32>
    %238 = vector.shape_cast %237 : vector<1x16x16xf32> to vector<16x16xf32>
    %c19 = arith.constant 19 : index
    %239 = memref.load %arg1[%c19] : memref<221xf32, #tpu.memory_space<smem>>
    %240 = vector.broadcast %239 : f32 to vector<16x16xf32>
    %241 = arith.mulf %240, %238 : vector<16x16xf32>
    %242 = arith.addf %232, %241 : vector<16x16xf32>
    %c44 = arith.constant 44 : index
    %243 = memref.load %arg1[%c44] : memref<221xf32, #tpu.memory_space<smem>>
    %244 = vector.broadcast %243 : f32 to vector<16x16xf32>
    %245 = arith.mulf %244, %238 : vector<16x16xf32>
    %246 = arith.addf %236, %245 : vector<16x16xf32>
    %c0_83 = arith.constant 0 : index
    %c10_84 = arith.constant 10 : index
    %c0_85 = arith.constant 0 : index
    %247 = vector.load %arg4[%c0_83, %c10_84, %c0_85] : memref<1x26x20xf32, #tpu.memory_space<vmem>>, vector<1x16x16xf32>
    %248 = vector.shape_cast %247 : vector<1x16x16xf32> to vector<16x16xf32>
    %c20 = arith.constant 20 : index
    %249 = memref.load %arg1[%c20] : memref<221xf32, #tpu.memory_space<smem>>
    %250 = vector.broadcast %249 : f32 to vector<16x16xf32>
    %251 = arith.mulf %250, %248 : vector<16x16xf32>
    %252 = arith.addf %242, %251 : vector<16x16xf32>
    %c45 = arith.constant 45 : index
    %253 = memref.load %arg1[%c45] : memref<221xf32, #tpu.memory_space<smem>>
    %254 = vector.broadcast %253 : f32 to vector<16x16xf32>
    %255 = arith.mulf %254, %248 : vector<16x16xf32>
    %256 = arith.addf %246, %255 : vector<16x16xf32>
    %c0_86 = arith.constant 0 : index
    %c10_87 = arith.constant 10 : index
    %c1_88 = arith.constant 1 : index
    %257 = vector.load %arg4[%c0_86, %c10_87, %c1_88] : memref<1x26x20xf32, #tpu.memory_space<vmem>>, vector<1x16x16xf32>
    %258 = vector.shape_cast %257 : vector<1x16x16xf32> to vector<16x16xf32>
    %c21 = arith.constant 21 : index
    %259 = memref.load %arg1[%c21] : memref<221xf32, #tpu.memory_space<smem>>
    %260 = vector.broadcast %259 : f32 to vector<16x16xf32>
    %261 = arith.mulf %260, %258 : vector<16x16xf32>
    %262 = arith.addf %252, %261 : vector<16x16xf32>
    %c46 = arith.constant 46 : index
    %263 = memref.load %arg1[%c46] : memref<221xf32, #tpu.memory_space<smem>>
    %264 = vector.broadcast %263 : f32 to vector<16x16xf32>
    %265 = arith.mulf %264, %258 : vector<16x16xf32>
    %266 = arith.addf %256, %265 : vector<16x16xf32>
    %c0_89 = arith.constant 0 : index
    %c10_90 = arith.constant 10 : index
    %c2_91 = arith.constant 2 : index
    %267 = vector.load %arg4[%c0_89, %c10_90, %c2_91] : memref<1x26x20xf32, #tpu.memory_space<vmem>>, vector<1x16x16xf32>
    %268 = vector.shape_cast %267 : vector<1x16x16xf32> to vector<16x16xf32>
    %c22 = arith.constant 22 : index
    %269 = memref.load %arg1[%c22] : memref<221xf32, #tpu.memory_space<smem>>
    %270 = vector.broadcast %269 : f32 to vector<16x16xf32>
    %271 = arith.mulf %270, %268 : vector<16x16xf32>
    %272 = arith.addf %262, %271 : vector<16x16xf32>
    %c47 = arith.constant 47 : index
    %273 = memref.load %arg1[%c47] : memref<221xf32, #tpu.memory_space<smem>>
    %274 = vector.broadcast %273 : f32 to vector<16x16xf32>
    %275 = arith.mulf %274, %268 : vector<16x16xf32>
    %276 = arith.addf %266, %275 : vector<16x16xf32>
    %c0_92 = arith.constant 0 : index
    %c10_93 = arith.constant 10 : index
    %c3_94 = arith.constant 3 : index
    %277 = vector.load %arg4[%c0_92, %c10_93, %c3_94] : memref<1x26x20xf32, #tpu.memory_space<vmem>>, vector<1x16x16xf32>
    %278 = vector.shape_cast %277 : vector<1x16x16xf32> to vector<16x16xf32>
    %c23 = arith.constant 23 : index
    %279 = memref.load %arg1[%c23] : memref<221xf32, #tpu.memory_space<smem>>
    %280 = vector.broadcast %279 : f32 to vector<16x16xf32>
    %281 = arith.mulf %280, %278 : vector<16x16xf32>
    %282 = arith.addf %272, %281 : vector<16x16xf32>
    %c48 = arith.constant 48 : index
    %283 = memref.load %arg1[%c48] : memref<221xf32, #tpu.memory_space<smem>>
    %284 = vector.broadcast %283 : f32 to vector<16x16xf32>
    %285 = arith.mulf %284, %278 : vector<16x16xf32>
    %286 = arith.addf %276, %285 : vector<16x16xf32>
    %c0_95 = arith.constant 0 : index
    %c10_96 = arith.constant 10 : index
    %c4_97 = arith.constant 4 : index
    %287 = vector.load %arg4[%c0_95, %c10_96, %c4_97] : memref<1x26x20xf32, #tpu.memory_space<vmem>>, vector<1x16x16xf32>
    %288 = vector.shape_cast %287 : vector<1x16x16xf32> to vector<16x16xf32>
    %c24 = arith.constant 24 : index
    %289 = memref.load %arg1[%c24] : memref<221xf32, #tpu.memory_space<smem>>
    %290 = vector.broadcast %289 : f32 to vector<16x16xf32>
    %291 = arith.mulf %290, %288 : vector<16x16xf32>
    %292 = arith.addf %282, %291 : vector<16x16xf32>
    %c49 = arith.constant 49 : index
    %293 = memref.load %arg1[%c49] : memref<221xf32, #tpu.memory_space<smem>>
    %294 = vector.broadcast %293 : f32 to vector<16x16xf32>
    %295 = arith.mulf %294, %288 : vector<16x16xf32>
    %296 = arith.addf %286, %295 : vector<16x16xf32>
    %297 = math.tanh %292 : vector<16x16xf32>
    %c0_98 = arith.constant 0 : index
    %c8_99 = arith.constant 8 : index
    %c1_100 = arith.constant 1 : index
    %298 = vector.load %arg5[%c0_98, %c8_99, %c1_100] : memref<2x25x18xf32, #tpu.memory_space<vmem>>, vector<1x16x16xf32>
    %299 = vector.shape_cast %298 : vector<1x16x16xf32> to vector<16x16xf32>
    %300 = vector.shape_cast %297 : vector<16x16xf32> to vector<1x16x16xf32>
    tpu.vector_store %arg5[%c0_98, %c8_99, %c1_100], %300 {strides = array<i32>} : memref<2x25x18xf32, #tpu.memory_space<vmem>>, vector<1x16x16xf32>,
    %301 = math.tanh %296 : vector<16x16xf32>
    %c1_101 = arith.constant 1 : index
    %c8_102 = arith.constant 8 : index
    %c1_103 = arith.constant 1 : index
    %302 = vector.load %arg5[%c1_101, %c8_102, %c1_103] : memref<2x25x18xf32, #tpu.memory_space<vmem>>, vector<1x16x16xf32>
    %303 = vector.shape_cast %302 : vector<1x16x16xf32> to vector<16x16xf32>
    %304 = vector.shape_cast %301 : vector<16x16xf32> to vector<1x16x16xf32>
    tpu.vector_store %arg5[%c1_101, %c8_102, %c1_103], %304 {strides = array<i32>} : memref<2x25x18xf32, #tpu.memory_space<vmem>>, vector<1x16x16xf32>,
    %c106 = arith.constant 106 : index
    %305 = memref.load %arg1[%c106] : memref<221xf32, #tpu.memory_space<smem>>
    %306 = vector.broadcast %305 : f32 to vector<16x16xf32>
    %c107 = arith.constant 107 : index
    %307 = memref.load %arg1[%c107] : memref<221xf32, #tpu.memory_space<smem>>
    %308 = vector.broadcast %307 : f32 to vector<16x16xf32>
    %c108 = arith.constant 108 : index
    %309 = memref.load %arg1[%c108] : memref<221xf32, #tpu.memory_space<smem>>
    %310 = vector.broadcast %309 : f32 to vector<16x16xf32>
    %c0_104 = arith.constant 0 : index
    %c7_105 = arith.constant 7 : index
    %c0_106 = arith.constant 0 : index
    %311 = vector.load %arg5[%c0_104, %c7_105, %c0_106] : memref<2x25x18xf32, #tpu.memory_space<vmem>>, vector<1x16x16xf32>
    %312 = vector.shape_cast %311 : vector<1x16x16xf32> to vector<16x16xf32>
    %c52 = arith.constant 52 : index
    %313 = memref.load %arg1[%c52] : memref<221xf32, #tpu.memory_space<smem>>
    %314 = vector.broadcast %313 : f32 to vector<16x16xf32>
    %315 = arith.mulf %314, %312 : vector<16x16xf32>
    %316 = arith.addf %306, %315 : vector<16x16xf32>
    %c70 = arith.constant 70 : index
    %317 = memref.load %arg1[%c70] : memref<221xf32, #tpu.memory_space<smem>>
    %318 = vector.broadcast %317 : f32 to vector<16x16xf32>
    %319 = arith.mulf %318, %312 : vector<16x16xf32>
    %320 = arith.addf %308, %319 : vector<16x16xf32>
    %c88 = arith.constant 88 : index
    %321 = memref.load %arg1[%c88] : memref<221xf32, #tpu.memory_space<smem>>
    %322 = vector.broadcast %321 : f32 to vector<16x16xf32>
    %323 = arith.mulf %322, %312 : vector<16x16xf32>
    %324 = arith.addf %310, %323 : vector<16x16xf32>
    %c0_107 = arith.constant 0 : index
    %c7_108 = arith.constant 7 : index
    %c1_109 = arith.constant 1 : index
    %325 = vector.load %arg5[%c0_107, %c7_108, %c1_109] : memref<2x25x18xf32, #tpu.memory_space<vmem>>, vector<1x16x16xf32>
    %326 = vector.shape_cast %325 : vector<1x16x16xf32> to vector<16x16xf32>
    %c53 = arith.constant 53 : index
    %327 = memref.load %arg1[%c53] : memref<221xf32, #tpu.memory_space<smem>>
    %328 = vector.broadcast %327 : f32 to vector<16x16xf32>
    %329 = arith.mulf %328, %326 : vector<16x16xf32>
    %330 = arith.addf %316, %329 : vector<16x16xf32>
    %c71 = arith.constant 71 : index
    %331 = memref.load %arg1[%c71] : memref<221xf32, #tpu.memory_space<smem>>
    %332 = vector.broadcast %331 : f32 to vector<16x16xf32>
    %333 = arith.mulf %332, %326 : vector<16x16xf32>
    %334 = arith.addf %320, %333 : vector<16x16xf32>
    %c89 = arith.constant 89 : index
    %335 = memref.load %arg1[%c89] : memref<221xf32, #tpu.memory_space<smem>>
    %336 = vector.broadcast %335 : f32 to vector<16x16xf32>
    %337 = arith.mulf %336, %326 : vector<16x16xf32>
    %338 = arith.addf %324, %337 : vector<16x16xf32>
    %c0_110 = arith.constant 0 : index
    %c7_111 = arith.constant 7 : index
    %c2_112 = arith.constant 2 : index
    %339 = vector.load %arg5[%c0_110, %c7_111, %c2_112] : memref<2x25x18xf32, #tpu.memory_space<vmem>>, vector<1x16x16xf32>
    %340 = vector.shape_cast %339 : vector<1x16x16xf32> to vector<16x16xf32>
    %c54 = arith.constant 54 : index
    %341 = memref.load %arg1[%c54] : memref<221xf32, #tpu.memory_space<smem>>
    %342 = vector.broadcast %341 : f32 to vector<16x16xf32>
    %343 = arith.mulf %342, %340 : vector<16x16xf32>
    %344 = arith.addf %330, %343 : vector<16x16xf32>
    %c72 = arith.constant 72 : index
    %345 = memref.load %arg1[%c72] : memref<221xf32, #tpu.memory_space<smem>>
    %346 = vector.broadcast %345 : f32 to vector<16x16xf32>
    %347 = arith.mulf %346, %340 : vector<16x16xf32>
    %348 = arith.addf %334, %347 : vector<16x16xf32>
    %c90 = arith.constant 90 : index
    %349 = memref.load %arg1[%c90] : memref<221xf32, #tpu.memory_space<smem>>
    %350 = vector.broadcast %349 : f32 to vector<16x16xf32>
    %351 = arith.mulf %350, %340 : vector<16x16xf32>
    %352 = arith.addf %338, %351 : vector<16x16xf32>
    %c0_113 = arith.constant 0 : index
    %c8_114 = arith.constant 8 : index
    %c0_115 = arith.constant 0 : index
    %353 = vector.load %arg5[%c0_113, %c8_114, %c0_115] : memref<2x25x18xf32, #tpu.memory_space<vmem>>, vector<1x16x16xf32>
    %354 = vector.shape_cast %353 : vector<1x16x16xf32> to vector<16x16xf32>
    %c55 = arith.constant 55 : index
    %355 = memref.load %arg1[%c55] : memref<221xf32, #tpu.memory_space<smem>>
    %356 = vector.broadcast %355 : f32 to vector<16x16xf32>
    %357 = arith.mulf %356, %354 : vector<16x16xf32>
    %358 = arith.addf %344, %357 : vector<16x16xf32>
    %c73 = arith.constant 73 : index
    %359 = memref.load %arg1[%c73] : memref<221xf32, #tpu.memory_space<smem>>
    %360 = vector.broadcast %359 : f32 to vector<16x16xf32>
    %361 = arith.mulf %360, %354 : vector<16x16xf32>
    %362 = arith.addf %348, %361 : vector<16x16xf32>
    %c91 = arith.constant 91 : index
    %363 = memref.load %arg1[%c91] : memref<221xf32, #tpu.memory_space<smem>>
    %364 = vector.broadcast %363 : f32 to vector<16x16xf32>
    %365 = arith.mulf %364, %354 : vector<16x16xf32>
    %366 = arith.addf %352, %365 : vector<16x16xf32>
    %c0_116 = arith.constant 0 : index
    %c8_117 = arith.constant 8 : index
    %c1_118 = arith.constant 1 : index
    %367 = vector.load %arg5[%c0_116, %c8_117, %c1_118] : memref<2x25x18xf32, #tpu.memory_space<vmem>>, vector<1x16x16xf32>
    %368 = vector.shape_cast %367 : vector<1x16x16xf32> to vector<16x16xf32>
    %c56 = arith.constant 56 : index
    %369 = memref.load %arg1[%c56] : memref<221xf32, #tpu.memory_space<smem>>
    %370 = vector.broadcast %369 : f32 to vector<16x16xf32>
    %371 = arith.mulf %370, %368 : vector<16x16xf32>
    %372 = arith.addf %358, %371 : vector<16x16xf32>
    %c74 = arith.constant 74 : index
    %373 = memref.load %arg1[%c74] : memref<221xf32, #tpu.memory_space<smem>>
    %374 = vector.broadcast %373 : f32 to vector<16x16xf32>
    %375 = arith.mulf %374, %368 : vector<16x16xf32>
    %376 = arith.addf %362, %375 : vector<16x16xf32>
    %c92 = arith.constant 92 : index
    %377 = memref.load %arg1[%c92] : memref<221xf32, #tpu.memory_space<smem>>
    %378 = vector.broadcast %377 : f32 to vector<16x16xf32>
    %379 = arith.mulf %378, %368 : vector<16x16xf32>
    %380 = arith.addf %366, %379 : vector<16x16xf32>
    %c0_119 = arith.constant 0 : index
    %c8_120 = arith.constant 8 : index
    %c2_121 = arith.constant 2 : index
    %381 = vector.load %arg5[%c0_119, %c8_120, %c2_121] : memref<2x25x18xf32, #tpu.memory_space<vmem>>, vector<1x16x16xf32>
    %382 = vector.shape_cast %381 : vector<1x16x16xf32> to vector<16x16xf32>
    %c57 = arith.constant 57 : index
    %383 = memref.load %arg1[%c57] : memref<221xf32, #tpu.memory_space<smem>>
    %384 = vector.broadcast %383 : f32 to vector<16x16xf32>
    %385 = arith.mulf %384, %382 : vector<16x16xf32>
    %386 = arith.addf %372, %385 : vector<16x16xf32>
    %c75 = arith.constant 75 : index
    %387 = memref.load %arg1[%c75] : memref<221xf32, #tpu.memory_space<smem>>
    %388 = vector.broadcast %387 : f32 to vector<16x16xf32>
    %389 = arith.mulf %388, %382 : vector<16x16xf32>
    %390 = arith.addf %376, %389 : vector<16x16xf32>
    %c93 = arith.constant 93 : index
    %391 = memref.load %arg1[%c93] : memref<221xf32, #tpu.memory_space<smem>>
    %392 = vector.broadcast %391 : f32 to vector<16x16xf32>
    %393 = arith.mulf %392, %382 : vector<16x16xf32>
    %394 = arith.addf %380, %393 : vector<16x16xf32>
    %c0_122 = arith.constant 0 : index
    %c9_123 = arith.constant 9 : index
    %c0_124 = arith.constant 0 : index
    %395 = vector.load %arg5[%c0_122, %c9_123, %c0_124] : memref<2x25x18xf32, #tpu.memory_space<vmem>>, vector<1x16x16xf32>
    %396 = vector.shape_cast %395 : vector<1x16x16xf32> to vector<16x16xf32>
    %c58 = arith.constant 58 : index
    %397 = memref.load %arg1[%c58] : memref<221xf32, #tpu.memory_space<smem>>
    %398 = vector.broadcast %397 : f32 to vector<16x16xf32>
    %399 = arith.mulf %398, %396 : vector<16x16xf32>
    %400 = arith.addf %386, %399 : vector<16x16xf32>
    %c76 = arith.constant 76 : index
    %401 = memref.load %arg1[%c76] : memref<221xf32, #tpu.memory_space<smem>>
    %402 = vector.broadcast %401 : f32 to vector<16x16xf32>
    %403 = arith.mulf %402, %396 : vector<16x16xf32>
    %404 = arith.addf %390, %403 : vector<16x16xf32>
    %c94 = arith.constant 94 : index
    %405 = memref.load %arg1[%c94] : memref<221xf32, #tpu.memory_space<smem>>
    %406 = vector.broadcast %405 : f32 to vector<16x16xf32>
    %407 = arith.mulf %406, %396 : vector<16x16xf32>
    %408 = arith.addf %394, %407 : vector<16x16xf32>
    %c0_125 = arith.constant 0 : index
    %c9_126 = arith.constant 9 : index
    %c1_127 = arith.constant 1 : index
    %409 = vector.load %arg5[%c0_125, %c9_126, %c1_127] : memref<2x25x18xf32, #tpu.memory_space<vmem>>, vector<1x16x16xf32>
    %410 = vector.shape_cast %409 : vector<1x16x16xf32> to vector<16x16xf32>
    %c59 = arith.constant 59 : index
    %411 = memref.load %arg1[%c59] : memref<221xf32, #tpu.memory_space<smem>>
    %412 = vector.broadcast %411 : f32 to vector<16x16xf32>
    %413 = arith.mulf %412, %410 : vector<16x16xf32>
    %414 = arith.addf %400, %413 : vector<16x16xf32>
    %c77 = arith.constant 77 : index
    %415 = memref.load %arg1[%c77] : memref<221xf32, #tpu.memory_space<smem>>
    %416 = vector.broadcast %415 : f32 to vector<16x16xf32>
    %417 = arith.mulf %416, %410 : vector<16x16xf32>
    %418 = arith.addf %404, %417 : vector<16x16xf32>
    %c95 = arith.constant 95 : index
    %419 = memref.load %arg1[%c95] : memref<221xf32, #tpu.memory_space<smem>>
    %420 = vector.broadcast %419 : f32 to vector<16x16xf32>
    %421 = arith.mulf %420, %410 : vector<16x16xf32>
    %422 = arith.addf %408, %421 : vector<16x16xf32>
    %c0_128 = arith.constant 0 : index
    %c9_129 = arith.constant 9 : index
    %c2_130 = arith.constant 2 : index
    %423 = vector.load %arg5[%c0_128, %c9_129, %c2_130] : memref<2x25x18xf32, #tpu.memory_space<vmem>>, vector<1x16x16xf32>
    %424 = vector.shape_cast %423 : vector<1x16x16xf32> to vector<16x16xf32>
    %c60 = arith.constant 60 : index
    %425 = memref.load %arg1[%c60] : memref<221xf32, #tpu.memory_space<smem>>
    %426 = vector.broadcast %425 : f32 to vector<16x16xf32>
    %427 = arith.mulf %426, %424 : vector<16x16xf32>
    %428 = arith.addf %414, %427 : vector<16x16xf32>
    %c78 = arith.constant 78 : index
    %429 = memref.load %arg1[%c78] : memref<221xf32, #tpu.memory_space<smem>>
    %430 = vector.broadcast %429 : f32 to vector<16x16xf32>
    %431 = arith.mulf %430, %424 : vector<16x16xf32>
    %432 = arith.addf %418, %431 : vector<16x16xf32>
    %c96 = arith.constant 96 : index
    %433 = memref.load %arg1[%c96] : memref<221xf32, #tpu.memory_space<smem>>
    %434 = vector.broadcast %433 : f32 to vector<16x16xf32>
    %435 = arith.mulf %434, %424 : vector<16x16xf32>
    %436 = arith.addf %422, %435 : vector<16x16xf32>
    %c1_131 = arith.constant 1 : index
    %c7_132 = arith.constant 7 : index
    %c0_133 = arith.constant 0 : index
    %437 = vector.load %arg5[%c1_131, %c7_132, %c0_133] : memref<2x25x18xf32, #tpu.memory_space<vmem>>, vector<1x16x16xf32>
    %438 = vector.shape_cast %437 : vector<1x16x16xf32> to vector<16x16xf32>
    %c61 = arith.constant 61 : index
    %439 = memref.load %arg1[%c61] : memref<221xf32, #tpu.memory_space<smem>>
    %440 = vector.broadcast %439 : f32 to vector<16x16xf32>
    %441 = arith.mulf %440, %438 : vector<16x16xf32>
    %442 = arith.addf %428, %441 : vector<16x16xf32>
    %c79 = arith.constant 79 : index
    %443 = memref.load %arg1[%c79] : memref<221xf32, #tpu.memory_space<smem>>
    %444 = vector.broadcast %443 : f32 to vector<16x16xf32>
    %445 = arith.mulf %444, %438 : vector<16x16xf32>
    %446 = arith.addf %432, %445 : vector<16x16xf32>
    %c97 = arith.constant 97 : index
    %447 = memref.load %arg1[%c97] : memref<221xf32, #tpu.memory_space<smem>>
    %448 = vector.broadcast %447 : f32 to vector<16x16xf32>
    %449 = arith.mulf %448, %438 : vector<16x16xf32>
    %450 = arith.addf %436, %449 : vector<16x16xf32>
    %c1_134 = arith.constant 1 : index
    %c7_135 = arith.constant 7 : index
    %c1_136 = arith.constant 1 : index
    %451 = vector.load %arg5[%c1_134, %c7_135, %c1_136] : memref<2x25x18xf32, #tpu.memory_space<vmem>>, vector<1x16x16xf32>
    %452 = vector.shape_cast %451 : vector<1x16x16xf32> to vector<16x16xf32>
    %c62 = arith.constant 62 : index
    %453 = memref.load %arg1[%c62] : memref<221xf32, #tpu.memory_space<smem>>
    %454 = vector.broadcast %453 : f32 to vector<16x16xf32>
    %455 = arith.mulf %454, %452 : vector<16x16xf32>
    %456 = arith.addf %442, %455 : vector<16x16xf32>
    %c80 = arith.constant 80 : index
    %457 = memref.load %arg1[%c80] : memref<221xf32, #tpu.memory_space<smem>>
    %458 = vector.broadcast %457 : f32 to vector<16x16xf32>
    %459 = arith.mulf %458, %452 : vector<16x16xf32>
    %460 = arith.addf %446, %459 : vector<16x16xf32>
    %c98 = arith.constant 98 : index
    %461 = memref.load %arg1[%c98] : memref<221xf32, #tpu.memory_space<smem>>
    %462 = vector.broadcast %461 : f32 to vector<16x16xf32>
    %463 = arith.mulf %462, %452 : vector<16x16xf32>
    %464 = arith.addf %450, %463 : vector<16x16xf32>
    %c1_137 = arith.constant 1 : index
    %c7_138 = arith.constant 7 : index
    %c2_139 = arith.constant 2 : index
    %465 = vector.load %arg5[%c1_137, %c7_138, %c2_139] : memref<2x25x18xf32, #tpu.memory_space<vmem>>, vector<1x16x16xf32>
    %466 = vector.shape_cast %465 : vector<1x16x16xf32> to vector<16x16xf32>
    %c63 = arith.constant 63 : index
    %467 = memref.load %arg1[%c63] : memref<221xf32, #tpu.memory_space<smem>>
    %468 = vector.broadcast %467 : f32 to vector<16x16xf32>
    %469 = arith.mulf %468, %466 : vector<16x16xf32>
    %470 = arith.addf %456, %469 : vector<16x16xf32>
    %c81 = arith.constant 81 : index
    %471 = memref.load %arg1[%c81] : memref<221xf32, #tpu.memory_space<smem>>
    %472 = vector.broadcast %471 : f32 to vector<16x16xf32>
    %473 = arith.mulf %472, %466 : vector<16x16xf32>
    %474 = arith.addf %460, %473 : vector<16x16xf32>
    %c99 = arith.constant 99 : index
    %475 = memref.load %arg1[%c99] : memref<221xf32, #tpu.memory_space<smem>>
    %476 = vector.broadcast %475 : f32 to vector<16x16xf32>
    %477 = arith.mulf %476, %466 : vector<16x16xf32>
    %478 = arith.addf %464, %477 : vector<16x16xf32>
    %c1_140 = arith.constant 1 : index
    %c8_141 = arith.constant 8 : index
    %c0_142 = arith.constant 0 : index
    %479 = vector.load %arg5[%c1_140, %c8_141, %c0_142] : memref<2x25x18xf32, #tpu.memory_space<vmem>>, vector<1x16x16xf32>
    %480 = vector.shape_cast %479 : vector<1x16x16xf32> to vector<16x16xf32>
    %c64 = arith.constant 64 : index
    %481 = memref.load %arg1[%c64] : memref<221xf32, #tpu.memory_space<smem>>
    %482 = vector.broadcast %481 : f32 to vector<16x16xf32>
    %483 = arith.mulf %482, %480 : vector<16x16xf32>
    %484 = arith.addf %470, %483 : vector<16x16xf32>
    %c82 = arith.constant 82 : index
    %485 = memref.load %arg1[%c82] : memref<221xf32, #tpu.memory_space<smem>>
    %486 = vector.broadcast %485 : f32 to vector<16x16xf32>
    %487 = arith.mulf %486, %480 : vector<16x16xf32>
    %488 = arith.addf %474, %487 : vector<16x16xf32>
    %c100 = arith.constant 100 : index
    %489 = memref.load %arg1[%c100] : memref<221xf32, #tpu.memory_space<smem>>
    %490 = vector.broadcast %489 : f32 to vector<16x16xf32>
    %491 = arith.mulf %490, %480 : vector<16x16xf32>
    %492 = arith.addf %478, %491 : vector<16x16xf32>
    %c1_143 = arith.constant 1 : index
    %c8_144 = arith.constant 8 : index
    %c1_145 = arith.constant 1 : index
    %493 = vector.load %arg5[%c1_143, %c8_144, %c1_145] : memref<2x25x18xf32, #tpu.memory_space<vmem>>, vector<1x16x16xf32>
    %494 = vector.shape_cast %493 : vector<1x16x16xf32> to vector<16x16xf32>
    %c65 = arith.constant 65 : index
    %495 = memref.load %arg1[%c65] : memref<221xf32, #tpu.memory_space<smem>>
    %496 = vector.broadcast %495 : f32 to vector<16x16xf32>
    %497 = arith.mulf %496, %494 : vector<16x16xf32>
    %498 = arith.addf %484, %497 : vector<16x16xf32>
    %c83 = arith.constant 83 : index
    %499 = memref.load %arg1[%c83] : memref<221xf32, #tpu.memory_space<smem>>
    %500 = vector.broadcast %499 : f32 to vector<16x16xf32>
    %501 = arith.mulf %500, %494 : vector<16x16xf32>
    %502 = arith.addf %488, %501 : vector<16x16xf32>
    %c101 = arith.constant 101 : index
    %503 = memref.load %arg1[%c101] : memref<221xf32, #tpu.memory_space<smem>>
    %504 = vector.broadcast %503 : f32 to vector<16x16xf32>
    %505 = arith.mulf %504, %494 : vector<16x16xf32>
    %506 = arith.addf %492, %505 : vector<16x16xf32>
    %c1_146 = arith.constant 1 : index
    %c8_147 = arith.constant 8 : index
    %c2_148 = arith.constant 2 : index
    %507 = vector.load %arg5[%c1_146, %c8_147, %c2_148] : memref<2x25x18xf32, #tpu.memory_space<vmem>>, vector<1x16x16xf32>
    %508 = vector.shape_cast %507 : vector<1x16x16xf32> to vector<16x16xf32>
    %c66 = arith.constant 66 : index
    %509 = memref.load %arg1[%c66] : memref<221xf32, #tpu.memory_space<smem>>
    %510 = vector.broadcast %509 : f32 to vector<16x16xf32>
    %511 = arith.mulf %510, %508 : vector<16x16xf32>
    %512 = arith.addf %498, %511 : vector<16x16xf32>
    %c84 = arith.constant 84 : index
    %513 = memref.load %arg1[%c84] : memref<221xf32, #tpu.memory_space<smem>>
    %514 = vector.broadcast %513 : f32 to vector<16x16xf32>
    %515 = arith.mulf %514, %508 : vector<16x16xf32>
    %516 = arith.addf %502, %515 : vector<16x16xf32>
    %c102 = arith.constant 102 : index
    %517 = memref.load %arg1[%c102] : memref<221xf32, #tpu.memory_space<smem>>
    %518 = vector.broadcast %517 : f32 to vector<16x16xf32>
    %519 = arith.mulf %518, %508 : vector<16x16xf32>
    %520 = arith.addf %506, %519 : vector<16x16xf32>
    %c1_149 = arith.constant 1 : index
    %c9_150 = arith.constant 9 : index
    %c0_151 = arith.constant 0 : index
    %521 = vector.load %arg5[%c1_149, %c9_150, %c0_151] : memref<2x25x18xf32, #tpu.memory_space<vmem>>, vector<1x16x16xf32>
    %522 = vector.shape_cast %521 : vector<1x16x16xf32> to vector<16x16xf32>
    %c67 = arith.constant 67 : index
    %523 = memref.load %arg1[%c67] : memref<221xf32, #tpu.memory_space<smem>>
    %524 = vector.broadcast %523 : f32 to vector<16x16xf32>
    %525 = arith.mulf %524, %522 : vector<16x16xf32>
    %526 = arith.addf %512, %525 : vector<16x16xf32>
    %c85 = arith.constant 85 : index
    %527 = memref.load %arg1[%c85] : memref<221xf32, #tpu.memory_space<smem>>
    %528 = vector.broadcast %527 : f32 to vector<16x16xf32>
    %529 = arith.mulf %528, %522 : vector<16x16xf32>
    %530 = arith.addf %516, %529 : vector<16x16xf32>
    %c103 = arith.constant 103 : index
    %531 = memref.load %arg1[%c103] : memref<221xf32, #tpu.memory_space<smem>>
    %532 = vector.broadcast %531 : f32 to vector<16x16xf32>
    %533 = arith.mulf %532, %522 : vector<16x16xf32>
    %534 = arith.addf %520, %533 : vector<16x16xf32>
    %c1_152 = arith.constant 1 : index
    %c9_153 = arith.constant 9 : index
    %c1_154 = arith.constant 1 : index
    %535 = vector.load %arg5[%c1_152, %c9_153, %c1_154] : memref<2x25x18xf32, #tpu.memory_space<vmem>>, vector<1x16x16xf32>
    %536 = vector.shape_cast %535 : vector<1x16x16xf32> to vector<16x16xf32>
    %c68 = arith.constant 68 : index
    %537 = memref.load %arg1[%c68] : memref<221xf32, #tpu.memory_space<smem>>
    %538 = vector.broadcast %537 : f32 to vector<16x16xf32>
    %539 = arith.mulf %538, %536 : vector<16x16xf32>
    %540 = arith.addf %526, %539 : vector<16x16xf32>
    %c86 = arith.constant 86 : index
    %541 = memref.load %arg1[%c86] : memref<221xf32, #tpu.memory_space<smem>>
    %542 = vector.broadcast %541 : f32 to vector<16x16xf32>
    %543 = arith.mulf %542, %536 : vector<16x16xf32>
    %544 = arith.addf %530, %543 : vector<16x16xf32>
    %c104 = arith.constant 104 : index
    %545 = memref.load %arg1[%c104] : memref<221xf32, #tpu.memory_space<smem>>
    %546 = vector.broadcast %545 : f32 to vector<16x16xf32>
    %547 = arith.mulf %546, %536 : vector<16x16xf32>
    %548 = arith.addf %534, %547 : vector<16x16xf32>
    %c1_155 = arith.constant 1 : index
    %c9_156 = arith.constant 9 : index
    %c2_157 = arith.constant 2 : index
    %549 = vector.load %arg5[%c1_155, %c9_156, %c2_157] : memref<2x25x18xf32, #tpu.memory_space<vmem>>, vector<1x16x16xf32>
    %550 = vector.shape_cast %549 : vector<1x16x16xf32> to vector<16x16xf32>
    %c69 = arith.constant 69 : index
    %551 = memref.load %arg1[%c69] : memref<221xf32, #tpu.memory_space<smem>>
    %552 = vector.broadcast %551 : f32 to vector<16x16xf32>
    %553 = arith.mulf %552, %550 : vector<16x16xf32>
    %554 = arith.addf %540, %553 : vector<16x16xf32>
    %c87 = arith.constant 87 : index
    %555 = memref.load %arg1[%c87] : memref<221xf32, #tpu.memory_space<smem>>
    %556 = vector.broadcast %555 : f32 to vector<16x16xf32>
    %557 = arith.mulf %556, %550 : vector<16x16xf32>
    %558 = arith.addf %544, %557 : vector<16x16xf32>
    %c105 = arith.constant 105 : index
    %559 = memref.load %arg1[%c105] : memref<221xf32, #tpu.memory_space<smem>>
    %560 = vector.broadcast %559 : f32 to vector<16x16xf32>
    %561 = arith.mulf %560, %550 : vector<16x16xf32>
    %562 = arith.addf %548, %561 : vector<16x16xf32>
    %563 = math.tanh %554 : vector<16x16xf32>
    %c0_158 = arith.constant 0 : index
    %c8_159 = arith.constant 8 : index
    %c1_160 = arith.constant 1 : index
    %564 = vector.load %arg6[%c0_158, %c8_159, %c1_160] : memref<3x25x18xf32, #tpu.memory_space<vmem>>, vector<1x16x16xf32>
    %565 = vector.shape_cast %564 : vector<1x16x16xf32> to vector<16x16xf32>
    %566 = vector.shape_cast %563 : vector<16x16xf32> to vector<1x16x16xf32>
    tpu.vector_store %arg6[%c0_158, %c8_159, %c1_160], %566 {strides = array<i32>} : memref<3x25x18xf32, #tpu.memory_space<vmem>>, vector<1x16x16xf32>,
    %567 = math.tanh %558 : vector<16x16xf32>
    %c1_161 = arith.constant 1 : index
    %c8_162 = arith.constant 8 : index
    %c1_163 = arith.constant 1 : index
    %568 = vector.load %arg6[%c1_161, %c8_162, %c1_163] : memref<3x25x18xf32, #tpu.memory_space<vmem>>, vector<1x16x16xf32>
    %569 = vector.shape_cast %568 : vector<1x16x16xf32> to vector<16x16xf32>
    %570 = vector.shape_cast %567 : vector<16x16xf32> to vector<1x16x16xf32>
    tpu.vector_store %arg6[%c1_161, %c8_162, %c1_163], %570 {strides = array<i32>} : memref<3x25x18xf32, #tpu.memory_space<vmem>>, vector<1x16x16xf32>,
    %571 = math.tanh %562 : vector<16x16xf32>
    %c2_164 = arith.constant 2 : index
    %c8_165 = arith.constant 8 : index
    %c1_166 = arith.constant 1 : index
    %572 = vector.load %arg6[%c2_164, %c8_165, %c1_166] : memref<3x25x18xf32, #tpu.memory_space<vmem>>, vector<1x16x16xf32>
    %573 = vector.shape_cast %572 : vector<1x16x16xf32> to vector<16x16xf32>
    %574 = vector.shape_cast %571 : vector<16x16xf32> to vector<1x16x16xf32>
    tpu.vector_store %arg6[%c2_164, %c8_165, %c1_166], %574 {strides = array<i32>} : memref<3x25x18xf32, #tpu.memory_space<vmem>>, vector<1x16x16xf32>,
    %c217 = arith.constant 217 : index
    %575 = memref.load %arg1[%c217] : memref<221xf32, #tpu.memory_space<smem>>
    %576 = vector.broadcast %575 : f32 to vector<16x16xf32>
    %c218 = arith.constant 218 : index
    %577 = memref.load %arg1[%c218] : memref<221xf32, #tpu.memory_space<smem>>
    %578 = vector.broadcast %577 : f32 to vector<16x16xf32>
    %c219 = arith.constant 219 : index
    %579 = memref.load %arg1[%c219] : memref<221xf32, #tpu.memory_space<smem>>
    %580 = vector.broadcast %579 : f32 to vector<16x16xf32>
    %c220 = arith.constant 220 : index
    %581 = memref.load %arg1[%c220] : memref<221xf32, #tpu.memory_space<smem>>
    %582 = vector.broadcast %581 : f32 to vector<16x16xf32>
    %c0_167 = arith.constant 0 : index
    %c7_168 = arith.constant 7 : index
    %c0_169 = arith.constant 0 : index
    %583 = vector.load %arg6[%c0_167, %c7_168, %c0_169] : memref<3x25x18xf32, #tpu.memory_space<vmem>>, vector<1x16x16xf32>
    %584 = vector.shape_cast %583 : vector<1x16x16xf32> to vector<16x16xf32>
    %c109 = arith.constant 109 : index
    %585 = memref.load %arg1[%c109] : memref<221xf32, #tpu.memory_space<smem>>
    %586 = vector.broadcast %585 : f32 to vector<16x16xf32>
    %587 = arith.mulf %586, %584 : vector<16x16xf32>
    %588 = arith.addf %576, %587 : vector<16x16xf32>
    %c136 = arith.constant 136 : index
    %589 = memref.load %arg1[%c136] : memref<221xf32, #tpu.memory_space<smem>>
    %590 = vector.broadcast %589 : f32 to vector<16x16xf32>
    %591 = arith.mulf %590, %584 : vector<16x16xf32>
    %592 = arith.addf %578, %591 : vector<16x16xf32>
    %c163 = arith.constant 163 : index
    %593 = memref.load %arg1[%c163] : memref<221xf32, #tpu.memory_space<smem>>
    %594 = vector.broadcast %593 : f32 to vector<16x16xf32>
    %595 = arith.mulf %594, %584 : vector<16x16xf32>
    %596 = arith.addf %580, %595 : vector<16x16xf32>
    %c190 = arith.constant 190 : index
    %597 = memref.load %arg1[%c190] : memref<221xf32, #tpu.memory_space<smem>>
    %598 = vector.broadcast %597 : f32 to vector<16x16xf32>
    %599 = arith.mulf %598, %584 : vector<16x16xf32>
    %600 = arith.addf %582, %599 : vector<16x16xf32>
    %c0_170 = arith.constant 0 : index
    %c7_171 = arith.constant 7 : index
    %c1_172 = arith.constant 1 : index
    %601 = vector.load %arg6[%c0_170, %c7_171, %c1_172] : memref<3x25x18xf32, #tpu.memory_space<vmem>>, vector<1x16x16xf32>
    %602 = vector.shape_cast %601 : vector<1x16x16xf32> to vector<16x16xf32>
    %c110 = arith.constant 110 : index
    %603 = memref.load %arg1[%c110] : memref<221xf32, #tpu.memory_space<smem>>
    %604 = vector.broadcast %603 : f32 to vector<16x16xf32>
    %605 = arith.mulf %604, %602 : vector<16x16xf32>
    %606 = arith.addf %588, %605 : vector<16x16xf32>
    %c137 = arith.constant 137 : index
    %607 = memref.load %arg1[%c137] : memref<221xf32, #tpu.memory_space<smem>>
    %608 = vector.broadcast %607 : f32 to vector<16x16xf32>
    %609 = arith.mulf %608, %602 : vector<16x16xf32>
    %610 = arith.addf %592, %609 : vector<16x16xf32>
    %c164 = arith.constant 164 : index
    %611 = memref.load %arg1[%c164] : memref<221xf32, #tpu.memory_space<smem>>
    %612 = vector.broadcast %611 : f32 to vector<16x16xf32>
    %613 = arith.mulf %612, %602 : vector<16x16xf32>
    %614 = arith.addf %596, %613 : vector<16x16xf32>
    %c191 = arith.constant 191 : index
    %615 = memref.load %arg1[%c191] : memref<221xf32, #tpu.memory_space<smem>>
    %616 = vector.broadcast %615 : f32 to vector<16x16xf32>
    %617 = arith.mulf %616, %602 : vector<16x16xf32>
    %618 = arith.addf %600, %617 : vector<16x16xf32>
    %c0_173 = arith.constant 0 : index
    %c7_174 = arith.constant 7 : index
    %c2_175 = arith.constant 2 : index
    %619 = vector.load %arg6[%c0_173, %c7_174, %c2_175] : memref<3x25x18xf32, #tpu.memory_space<vmem>>, vector<1x16x16xf32>
    %620 = vector.shape_cast %619 : vector<1x16x16xf32> to vector<16x16xf32>
    %c111 = arith.constant 111 : index
    %621 = memref.load %arg1[%c111] : memref<221xf32, #tpu.memory_space<smem>>
    %622 = vector.broadcast %621 : f32 to vector<16x16xf32>
    %623 = arith.mulf %622, %620 : vector<16x16xf32>
    %624 = arith.addf %606, %623 : vector<16x16xf32>
    %c138 = arith.constant 138 : index
    %625 = memref.load %arg1[%c138] : memref<221xf32, #tpu.memory_space<smem>>
    %626 = vector.broadcast %625 : f32 to vector<16x16xf32>
    %627 = arith.mulf %626, %620 : vector<16x16xf32>
    %628 = arith.addf %610, %627 : vector<16x16xf32>
    %c165 = arith.constant 165 : index
    %629 = memref.load %arg1[%c165] : memref<221xf32, #tpu.memory_space<smem>>
    %630 = vector.broadcast %629 : f32 to vector<16x16xf32>
    %631 = arith.mulf %630, %620 : vector<16x16xf32>
    %632 = arith.addf %614, %631 : vector<16x16xf32>
    %c192 = arith.constant 192 : index
    %633 = memref.load %arg1[%c192] : memref<221xf32, #tpu.memory_space<smem>>
    %634 = vector.broadcast %633 : f32 to vector<16x16xf32>
    %635 = arith.mulf %634, %620 : vector<16x16xf32>
    %636 = arith.addf %618, %635 : vector<16x16xf32>
    %c0_176 = arith.constant 0 : index
    %c8_177 = arith.constant 8 : index
    %c0_178 = arith.constant 0 : index
    %637 = vector.load %arg6[%c0_176, %c8_177, %c0_178] : memref<3x25x18xf32, #tpu.memory_space<vmem>>, vector<1x16x16xf32>
    %638 = vector.shape_cast %637 : vector<1x16x16xf32> to vector<16x16xf32>
    %c112 = arith.constant 112 : index
    %639 = memref.load %arg1[%c112] : memref<221xf32, #tpu.memory_space<smem>>
    %640 = vector.broadcast %639 : f32 to vector<16x16xf32>
    %641 = arith.mulf %640, %638 : vector<16x16xf32>
    %642 = arith.addf %624, %641 : vector<16x16xf32>
    %c139 = arith.constant 139 : index
    %643 = memref.load %arg1[%c139] : memref<221xf32, #tpu.memory_space<smem>>
    %644 = vector.broadcast %643 : f32 to vector<16x16xf32>
    %645 = arith.mulf %644, %638 : vector<16x16xf32>
    %646 = arith.addf %628, %645 : vector<16x16xf32>
    %c166 = arith.constant 166 : index
    %647 = memref.load %arg1[%c166] : memref<221xf32, #tpu.memory_space<smem>>
    %648 = vector.broadcast %647 : f32 to vector<16x16xf32>
    %649 = arith.mulf %648, %638 : vector<16x16xf32>
    %650 = arith.addf %632, %649 : vector<16x16xf32>
    %c193 = arith.constant 193 : index
    %651 = memref.load %arg1[%c193] : memref<221xf32, #tpu.memory_space<smem>>
    %652 = vector.broadcast %651 : f32 to vector<16x16xf32>
    %653 = arith.mulf %652, %638 : vector<16x16xf32>
    %654 = arith.addf %636, %653 : vector<16x16xf32>
    %c0_179 = arith.constant 0 : index
    %c8_180 = arith.constant 8 : index
    %c1_181 = arith.constant 1 : index
    %655 = vector.load %arg6[%c0_179, %c8_180, %c1_181] : memref<3x25x18xf32, #tpu.memory_space<vmem>>, vector<1x16x16xf32>
    %656 = vector.shape_cast %655 : vector<1x16x16xf32> to vector<16x16xf32>
    %c113 = arith.constant 113 : index
    %657 = memref.load %arg1[%c113] : memref<221xf32, #tpu.memory_space<smem>>
    %658 = vector.broadcast %657 : f32 to vector<16x16xf32>
    %659 = arith.mulf %658, %656 : vector<16x16xf32>
    %660 = arith.addf %642, %659 : vector<16x16xf32>
    %c140 = arith.constant 140 : index
    %661 = memref.load %arg1[%c140] : memref<221xf32, #tpu.memory_space<smem>>
    %662 = vector.broadcast %661 : f32 to vector<16x16xf32>
    %663 = arith.mulf %662, %656 : vector<16x16xf32>
    %664 = arith.addf %646, %663 : vector<16x16xf32>
    %c167 = arith.constant 167 : index
    %665 = memref.load %arg1[%c167] : memref<221xf32, #tpu.memory_space<smem>>
    %666 = vector.broadcast %665 : f32 to vector<16x16xf32>
    %667 = arith.mulf %666, %656 : vector<16x16xf32>
    %668 = arith.addf %650, %667 : vector<16x16xf32>
    %c194 = arith.constant 194 : index
    %669 = memref.load %arg1[%c194] : memref<221xf32, #tpu.memory_space<smem>>
    %670 = vector.broadcast %669 : f32 to vector<16x16xf32>
    %671 = arith.mulf %670, %656 : vector<16x16xf32>
    %672 = arith.addf %654, %671 : vector<16x16xf32>
    %c0_182 = arith.constant 0 : index
    %c8_183 = arith.constant 8 : index
    %c2_184 = arith.constant 2 : index
    %673 = vector.load %arg6[%c0_182, %c8_183, %c2_184] : memref<3x25x18xf32, #tpu.memory_space<vmem>>, vector<1x16x16xf32>
    %674 = vector.shape_cast %673 : vector<1x16x16xf32> to vector<16x16xf32>
    %c114 = arith.constant 114 : index
    %675 = memref.load %arg1[%c114] : memref<221xf32, #tpu.memory_space<smem>>
    %676 = vector.broadcast %675 : f32 to vector<16x16xf32>
    %677 = arith.mulf %676, %674 : vector<16x16xf32>
    %678 = arith.addf %660, %677 : vector<16x16xf32>
    %c141 = arith.constant 141 : index
    %679 = memref.load %arg1[%c141] : memref<221xf32, #tpu.memory_space<smem>>
    %680 = vector.broadcast %679 : f32 to vector<16x16xf32>
    %681 = arith.mulf %680, %674 : vector<16x16xf32>
    %682 = arith.addf %664, %681 : vector<16x16xf32>
    %c168 = arith.constant 168 : index
    %683 = memref.load %arg1[%c168] : memref<221xf32, #tpu.memory_space<smem>>
    %684 = vector.broadcast %683 : f32 to vector<16x16xf32>
    %685 = arith.mulf %684, %674 : vector<16x16xf32>
    %686 = arith.addf %668, %685 : vector<16x16xf32>
    %c195 = arith.constant 195 : index
    %687 = memref.load %arg1[%c195] : memref<221xf32, #tpu.memory_space<smem>>
    %688 = vector.broadcast %687 : f32 to vector<16x16xf32>
    %689 = arith.mulf %688, %674 : vector<16x16xf32>
    %690 = arith.addf %672, %689 : vector<16x16xf32>
    %c0_185 = arith.constant 0 : index
    %c9_186 = arith.constant 9 : index
    %c0_187 = arith.constant 0 : index
    %691 = vector.load %arg6[%c0_185, %c9_186, %c0_187] : memref<3x25x18xf32, #tpu.memory_space<vmem>>, vector<1x16x16xf32>
    %692 = vector.shape_cast %691 : vector<1x16x16xf32> to vector<16x16xf32>
    %c115 = arith.constant 115 : index
    %693 = memref.load %arg1[%c115] : memref<221xf32, #tpu.memory_space<smem>>
    %694 = vector.broadcast %693 : f32 to vector<16x16xf32>
    %695 = arith.mulf %694, %692 : vector<16x16xf32>
    %696 = arith.addf %678, %695 : vector<16x16xf32>
    %c142 = arith.constant 142 : index
    %697 = memref.load %arg1[%c142] : memref<221xf32, #tpu.memory_space<smem>>
    %698 = vector.broadcast %697 : f32 to vector<16x16xf32>
    %699 = arith.mulf %698, %692 : vector<16x16xf32>
    %700 = arith.addf %682, %699 : vector<16x16xf32>
    %c169 = arith.constant 169 : index
    %701 = memref.load %arg1[%c169] : memref<221xf32, #tpu.memory_space<smem>>
    %702 = vector.broadcast %701 : f32 to vector<16x16xf32>
    %703 = arith.mulf %702, %692 : vector<16x16xf32>
    %704 = arith.addf %686, %703 : vector<16x16xf32>
    %c196 = arith.constant 196 : index
    %705 = memref.load %arg1[%c196] : memref<221xf32, #tpu.memory_space<smem>>
    %706 = vector.broadcast %705 : f32 to vector<16x16xf32>
    %707 = arith.mulf %706, %692 : vector<16x16xf32>
    %708 = arith.addf %690, %707 : vector<16x16xf32>
    %c0_188 = arith.constant 0 : index
    %c9_189 = arith.constant 9 : index
    %c1_190 = arith.constant 1 : index
    %709 = vector.load %arg6[%c0_188, %c9_189, %c1_190] : memref<3x25x18xf32, #tpu.memory_space<vmem>>, vector<1x16x16xf32>
    %710 = vector.shape_cast %709 : vector<1x16x16xf32> to vector<16x16xf32>
    %c116 = arith.constant 116 : index
    %711 = memref.load %arg1[%c116] : memref<221xf32, #tpu.memory_space<smem>>
    %712 = vector.broadcast %711 : f32 to vector<16x16xf32>
    %713 = arith.mulf %712, %710 : vector<16x16xf32>
    %714 = arith.addf %696, %713 : vector<16x16xf32>
    %c143 = arith.constant 143 : index
    %715 = memref.load %arg1[%c143] : memref<221xf32, #tpu.memory_space<smem>>
    %716 = vector.broadcast %715 : f32 to vector<16x16xf32>
    %717 = arith.mulf %716, %710 : vector<16x16xf32>
    %718 = arith.addf %700, %717 : vector<16x16xf32>
    %c170 = arith.constant 170 : index
    %719 = memref.load %arg1[%c170] : memref<221xf32, #tpu.memory_space<smem>>
    %720 = vector.broadcast %719 : f32 to vector<16x16xf32>
    %721 = arith.mulf %720, %710 : vector<16x16xf32>
    %722 = arith.addf %704, %721 : vector<16x16xf32>
    %c197 = arith.constant 197 : index
    %723 = memref.load %arg1[%c197] : memref<221xf32, #tpu.memory_space<smem>>
    %724 = vector.broadcast %723 : f32 to vector<16x16xf32>
    %725 = arith.mulf %724, %710 : vector<16x16xf32>
    %726 = arith.addf %708, %725 : vector<16x16xf32>
    %c0_191 = arith.constant 0 : index
    %c9_192 = arith.constant 9 : index
    %c2_193 = arith.constant 2 : index
    %727 = vector.load %arg6[%c0_191, %c9_192, %c2_193] : memref<3x25x18xf32, #tpu.memory_space<vmem>>, vector<1x16x16xf32>
    %728 = vector.shape_cast %727 : vector<1x16x16xf32> to vector<16x16xf32>
    %c117 = arith.constant 117 : index
    %729 = memref.load %arg1[%c117] : memref<221xf32, #tpu.memory_space<smem>>
    %730 = vector.broadcast %729 : f32 to vector<16x16xf32>
    %731 = arith.mulf %730, %728 : vector<16x16xf32>
    %732 = arith.addf %714, %731 : vector<16x16xf32>
    %c144 = arith.constant 144 : index
    %733 = memref.load %arg1[%c144] : memref<221xf32, #tpu.memory_space<smem>>
    %734 = vector.broadcast %733 : f32 to vector<16x16xf32>
    %735 = arith.mulf %734, %728 : vector<16x16xf32>
    %736 = arith.addf %718, %735 : vector<16x16xf32>
    %c171 = arith.constant 171 : index
    %737 = memref.load %arg1[%c171] : memref<221xf32, #tpu.memory_space<smem>>
    %738 = vector.broadcast %737 : f32 to vector<16x16xf32>
    %739 = arith.mulf %738, %728 : vector<16x16xf32>
    %740 = arith.addf %722, %739 : vector<16x16xf32>
    %c198 = arith.constant 198 : index
    %741 = memref.load %arg1[%c198] : memref<221xf32, #tpu.memory_space<smem>>
    %742 = vector.broadcast %741 : f32 to vector<16x16xf32>
    %743 = arith.mulf %742, %728 : vector<16x16xf32>
    %744 = arith.addf %726, %743 : vector<16x16xf32>
    %c1_194 = arith.constant 1 : index
    %c7_195 = arith.constant 7 : index
    %c0_196 = arith.constant 0 : index
    %745 = vector.load %arg6[%c1_194, %c7_195, %c0_196] : memref<3x25x18xf32, #tpu.memory_space<vmem>>, vector<1x16x16xf32>
    %746 = vector.shape_cast %745 : vector<1x16x16xf32> to vector<16x16xf32>
    %c118 = arith.constant 118 : index
    %747 = memref.load %arg1[%c118] : memref<221xf32, #tpu.memory_space<smem>>
    %748 = vector.broadcast %747 : f32 to vector<16x16xf32>
    %749 = arith.mulf %748, %746 : vector<16x16xf32>
    %750 = arith.addf %732, %749 : vector<16x16xf32>
    %c145 = arith.constant 145 : index
    %751 = memref.load %arg1[%c145] : memref<221xf32, #tpu.memory_space<smem>>
    %752 = vector.broadcast %751 : f32 to vector<16x16xf32>
    %753 = arith.mulf %752, %746 : vector<16x16xf32>
    %754 = arith.addf %736, %753 : vector<16x16xf32>
    %c172 = arith.constant 172 : index
    %755 = memref.load %arg1[%c172] : memref<221xf32, #tpu.memory_space<smem>>
    %756 = vector.broadcast %755 : f32 to vector<16x16xf32>
    %757 = arith.mulf %756, %746 : vector<16x16xf32>
    %758 = arith.addf %740, %757 : vector<16x16xf32>
    %c199 = arith.constant 199 : index
    %759 = memref.load %arg1[%c199] : memref<221xf32, #tpu.memory_space<smem>>
    %760 = vector.broadcast %759 : f32 to vector<16x16xf32>
    %761 = arith.mulf %760, %746 : vector<16x16xf32>
    %762 = arith.addf %744, %761 : vector<16x16xf32>
    %c1_197 = arith.constant 1 : index
    %c7_198 = arith.constant 7 : index
    %c1_199 = arith.constant 1 : index
    %763 = vector.load %arg6[%c1_197, %c7_198, %c1_199] : memref<3x25x18xf32, #tpu.memory_space<vmem>>, vector<1x16x16xf32>
    %764 = vector.shape_cast %763 : vector<1x16x16xf32> to vector<16x16xf32>
    %c119 = arith.constant 119 : index
    %765 = memref.load %arg1[%c119] : memref<221xf32, #tpu.memory_space<smem>>
    %766 = vector.broadcast %765 : f32 to vector<16x16xf32>
    %767 = arith.mulf %766, %764 : vector<16x16xf32>
    %768 = arith.addf %750, %767 : vector<16x16xf32>
    %c146 = arith.constant 146 : index
    %769 = memref.load %arg1[%c146] : memref<221xf32, #tpu.memory_space<smem>>
    %770 = vector.broadcast %769 : f32 to vector<16x16xf32>
    %771 = arith.mulf %770, %764 : vector<16x16xf32>
    %772 = arith.addf %754, %771 : vector<16x16xf32>
    %c173 = arith.constant 173 : index
    %773 = memref.load %arg1[%c173] : memref<221xf32, #tpu.memory_space<smem>>
    %774 = vector.broadcast %773 : f32 to vector<16x16xf32>
    %775 = arith.mulf %774, %764 : vector<16x16xf32>
    %776 = arith.addf %758, %775 : vector<16x16xf32>
    %c200 = arith.constant 200 : index
    %777 = memref.load %arg1[%c200] : memref<221xf32, #tpu.memory_space<smem>>
    %778 = vector.broadcast %777 : f32 to vector<16x16xf32>
    %779 = arith.mulf %778, %764 : vector<16x16xf32>
    %780 = arith.addf %762, %779 : vector<16x16xf32>
    %c1_200 = arith.constant 1 : index
    %c7_201 = arith.constant 7 : index
    %c2_202 = arith.constant 2 : index
    %781 = vector.load %arg6[%c1_200, %c7_201, %c2_202] : memref<3x25x18xf32, #tpu.memory_space<vmem>>, vector<1x16x16xf32>
    %782 = vector.shape_cast %781 : vector<1x16x16xf32> to vector<16x16xf32>
    %c120 = arith.constant 120 : index
    %783 = memref.load %arg1[%c120] : memref<221xf32, #tpu.memory_space<smem>>
    %784 = vector.broadcast %783 : f32 to vector<16x16xf32>
    %785 = arith.mulf %784, %782 : vector<16x16xf32>
    %786 = arith.addf %768, %785 : vector<16x16xf32>
    %c147 = arith.constant 147 : index
    %787 = memref.load %arg1[%c147] : memref<221xf32, #tpu.memory_space<smem>>
    %788 = vector.broadcast %787 : f32 to vector<16x16xf32>
    %789 = arith.mulf %788, %782 : vector<16x16xf32>
    %790 = arith.addf %772, %789 : vector<16x16xf32>
    %c174 = arith.constant 174 : index
    %791 = memref.load %arg1[%c174] : memref<221xf32, #tpu.memory_space<smem>>
    %792 = vector.broadcast %791 : f32 to vector<16x16xf32>
    %793 = arith.mulf %792, %782 : vector<16x16xf32>
    %794 = arith.addf %776, %793 : vector<16x16xf32>
    %c201 = arith.constant 201 : index
    %795 = memref.load %arg1[%c201] : memref<221xf32, #tpu.memory_space<smem>>
    %796 = vector.broadcast %795 : f32 to vector<16x16xf32>
    %797 = arith.mulf %796, %782 : vector<16x16xf32>
    %798 = arith.addf %780, %797 : vector<16x16xf32>
    %c1_203 = arith.constant 1 : index
    %c8_204 = arith.constant 8 : index
    %c0_205 = arith.constant 0 : index
    %799 = vector.load %arg6[%c1_203, %c8_204, %c0_205] : memref<3x25x18xf32, #tpu.memory_space<vmem>>, vector<1x16x16xf32>
    %800 = vector.shape_cast %799 : vector<1x16x16xf32> to vector<16x16xf32>
    %c121 = arith.constant 121 : index
    %801 = memref.load %arg1[%c121] : memref<221xf32, #tpu.memory_space<smem>>
    %802 = vector.broadcast %801 : f32 to vector<16x16xf32>
    %803 = arith.mulf %802, %800 : vector<16x16xf32>
    %804 = arith.addf %786, %803 : vector<16x16xf32>
    %c148 = arith.constant 148 : index
    %805 = memref.load %arg1[%c148] : memref<221xf32, #tpu.memory_space<smem>>
    %806 = vector.broadcast %805 : f32 to vector<16x16xf32>
    %807 = arith.mulf %806, %800 : vector<16x16xf32>
    %808 = arith.addf %790, %807 : vector<16x16xf32>
    %c175 = arith.constant 175 : index
    %809 = memref.load %arg1[%c175] : memref<221xf32, #tpu.memory_space<smem>>
    %810 = vector.broadcast %809 : f32 to vector<16x16xf32>
    %811 = arith.mulf %810, %800 : vector<16x16xf32>
    %812 = arith.addf %794, %811 : vector<16x16xf32>
    %c202 = arith.constant 202 : index
    %813 = memref.load %arg1[%c202] : memref<221xf32, #tpu.memory_space<smem>>
    %814 = vector.broadcast %813 : f32 to vector<16x16xf32>
    %815 = arith.mulf %814, %800 : vector<16x16xf32>
    %816 = arith.addf %798, %815 : vector<16x16xf32>
    %c1_206 = arith.constant 1 : index
    %c8_207 = arith.constant 8 : index
    %c1_208 = arith.constant 1 : index
    %817 = vector.load %arg6[%c1_206, %c8_207, %c1_208] : memref<3x25x18xf32, #tpu.memory_space<vmem>>, vector<1x16x16xf32>
    %818 = vector.shape_cast %817 : vector<1x16x16xf32> to vector<16x16xf32>
    %c122 = arith.constant 122 : index
    %819 = memref.load %arg1[%c122] : memref<221xf32, #tpu.memory_space<smem>>
    %820 = vector.broadcast %819 : f32 to vector<16x16xf32>
    %821 = arith.mulf %820, %818 : vector<16x16xf32>
    %822 = arith.addf %804, %821 : vector<16x16xf32>
    %c149 = arith.constant 149 : index
    %823 = memref.load %arg1[%c149] : memref<221xf32, #tpu.memory_space<smem>>
    %824 = vector.broadcast %823 : f32 to vector<16x16xf32>
    %825 = arith.mulf %824, %818 : vector<16x16xf32>
    %826 = arith.addf %808, %825 : vector<16x16xf32>
    %c176 = arith.constant 176 : index
    %827 = memref.load %arg1[%c176] : memref<221xf32, #tpu.memory_space<smem>>
    %828 = vector.broadcast %827 : f32 to vector<16x16xf32>
    %829 = arith.mulf %828, %818 : vector<16x16xf32>
    %830 = arith.addf %812, %829 : vector<16x16xf32>
    %c203 = arith.constant 203 : index
    %831 = memref.load %arg1[%c203] : memref<221xf32, #tpu.memory_space<smem>>
    %832 = vector.broadcast %831 : f32 to vector<16x16xf32>
    %833 = arith.mulf %832, %818 : vector<16x16xf32>
    %834 = arith.addf %816, %833 : vector<16x16xf32>
    %c1_209 = arith.constant 1 : index
    %c8_210 = arith.constant 8 : index
    %c2_211 = arith.constant 2 : index
    %835 = vector.load %arg6[%c1_209, %c8_210, %c2_211] : memref<3x25x18xf32, #tpu.memory_space<vmem>>, vector<1x16x16xf32>
    %836 = vector.shape_cast %835 : vector<1x16x16xf32> to vector<16x16xf32>
    %c123 = arith.constant 123 : index
    %837 = memref.load %arg1[%c123] : memref<221xf32, #tpu.memory_space<smem>>
    %838 = vector.broadcast %837 : f32 to vector<16x16xf32>
    %839 = arith.mulf %838, %836 : vector<16x16xf32>
    %840 = arith.addf %822, %839 : vector<16x16xf32>
    %c150 = arith.constant 150 : index
    %841 = memref.load %arg1[%c150] : memref<221xf32, #tpu.memory_space<smem>>
    %842 = vector.broadcast %841 : f32 to vector<16x16xf32>
    %843 = arith.mulf %842, %836 : vector<16x16xf32>
    %844 = arith.addf %826, %843 : vector<16x16xf32>
    %c177 = arith.constant 177 : index
    %845 = memref.load %arg1[%c177] : memref<221xf32, #tpu.memory_space<smem>>
    %846 = vector.broadcast %845 : f32 to vector<16x16xf32>
    %847 = arith.mulf %846, %836 : vector<16x16xf32>
    %848 = arith.addf %830, %847 : vector<16x16xf32>
    %c204 = arith.constant 204 : index
    %849 = memref.load %arg1[%c204] : memref<221xf32, #tpu.memory_space<smem>>
    %850 = vector.broadcast %849 : f32 to vector<16x16xf32>
    %851 = arith.mulf %850, %836 : vector<16x16xf32>
    %852 = arith.addf %834, %851 : vector<16x16xf32>
    %c1_212 = arith.constant 1 : index
    %c9_213 = arith.constant 9 : index
    %c0_214 = arith.constant 0 : index
    %853 = vector.load %arg6[%c1_212, %c9_213, %c0_214] : memref<3x25x18xf32, #tpu.memory_space<vmem>>, vector<1x16x16xf32>
    %854 = vector.shape_cast %853 : vector<1x16x16xf32> to vector<16x16xf32>
    %c124 = arith.constant 124 : index
    %855 = memref.load %arg1[%c124] : memref<221xf32, #tpu.memory_space<smem>>
    %856 = vector.broadcast %855 : f32 to vector<16x16xf32>
    %857 = arith.mulf %856, %854 : vector<16x16xf32>
    %858 = arith.addf %840, %857 : vector<16x16xf32>
    %c151 = arith.constant 151 : index
    %859 = memref.load %arg1[%c151] : memref<221xf32, #tpu.memory_space<smem>>
    %860 = vector.broadcast %859 : f32 to vector<16x16xf32>
    %861 = arith.mulf %860, %854 : vector<16x16xf32>
    %862 = arith.addf %844, %861 : vector<16x16xf32>
    %c178 = arith.constant 178 : index
    %863 = memref.load %arg1[%c178] : memref<221xf32, #tpu.memory_space<smem>>
    %864 = vector.broadcast %863 : f32 to vector<16x16xf32>
    %865 = arith.mulf %864, %854 : vector<16x16xf32>
    %866 = arith.addf %848, %865 : vector<16x16xf32>
    %c205 = arith.constant 205 : index
    %867 = memref.load %arg1[%c205] : memref<221xf32, #tpu.memory_space<smem>>
    %868 = vector.broadcast %867 : f32 to vector<16x16xf32>
    %869 = arith.mulf %868, %854 : vector<16x16xf32>
    %870 = arith.addf %852, %869 : vector<16x16xf32>
    %c1_215 = arith.constant 1 : index
    %c9_216 = arith.constant 9 : index
    %c1_217 = arith.constant 1 : index
    %871 = vector.load %arg6[%c1_215, %c9_216, %c1_217] : memref<3x25x18xf32, #tpu.memory_space<vmem>>, vector<1x16x16xf32>
    %872 = vector.shape_cast %871 : vector<1x16x16xf32> to vector<16x16xf32>
    %c125 = arith.constant 125 : index
    %873 = memref.load %arg1[%c125] : memref<221xf32, #tpu.memory_space<smem>>
    %874 = vector.broadcast %873 : f32 to vector<16x16xf32>
    %875 = arith.mulf %874, %872 : vector<16x16xf32>
    %876 = arith.addf %858, %875 : vector<16x16xf32>
    %c152 = arith.constant 152 : index
    %877 = memref.load %arg1[%c152] : memref<221xf32, #tpu.memory_space<smem>>
    %878 = vector.broadcast %877 : f32 to vector<16x16xf32>
    %879 = arith.mulf %878, %872 : vector<16x16xf32>
    %880 = arith.addf %862, %879 : vector<16x16xf32>
    %c179 = arith.constant 179 : index
    %881 = memref.load %arg1[%c179] : memref<221xf32, #tpu.memory_space<smem>>
    %882 = vector.broadcast %881 : f32 to vector<16x16xf32>
    %883 = arith.mulf %882, %872 : vector<16x16xf32>
    %884 = arith.addf %866, %883 : vector<16x16xf32>
    %c206 = arith.constant 206 : index
    %885 = memref.load %arg1[%c206] : memref<221xf32, #tpu.memory_space<smem>>
    %886 = vector.broadcast %885 : f32 to vector<16x16xf32>
    %887 = arith.mulf %886, %872 : vector<16x16xf32>
    %888 = arith.addf %870, %887 : vector<16x16xf32>
    %c1_218 = arith.constant 1 : index
    %c9_219 = arith.constant 9 : index
    %c2_220 = arith.constant 2 : index
    %889 = vector.load %arg6[%c1_218, %c9_219, %c2_220] : memref<3x25x18xf32, #tpu.memory_space<vmem>>, vector<1x16x16xf32>
    %890 = vector.shape_cast %889 : vector<1x16x16xf32> to vector<16x16xf32>
    %c126 = arith.constant 126 : index
    %891 = memref.load %arg1[%c126] : memref<221xf32, #tpu.memory_space<smem>>
    %892 = vector.broadcast %891 : f32 to vector<16x16xf32>
    %893 = arith.mulf %892, %890 : vector<16x16xf32>
    %894 = arith.addf %876, %893 : vector<16x16xf32>
    %c153 = arith.constant 153 : index
    %895 = memref.load %arg1[%c153] : memref<221xf32, #tpu.memory_space<smem>>
    %896 = vector.broadcast %895 : f32 to vector<16x16xf32>
    %897 = arith.mulf %896, %890 : vector<16x16xf32>
    %898 = arith.addf %880, %897 : vector<16x16xf32>
    %c180 = arith.constant 180 : index
    %899 = memref.load %arg1[%c180] : memref<221xf32, #tpu.memory_space<smem>>
    %900 = vector.broadcast %899 : f32 to vector<16x16xf32>
    %901 = arith.mulf %900, %890 : vector<16x16xf32>
    %902 = arith.addf %884, %901 : vector<16x16xf32>
    %c207 = arith.constant 207 : index
    %903 = memref.load %arg1[%c207] : memref<221xf32, #tpu.memory_space<smem>>
    %904 = vector.broadcast %903 : f32 to vector<16x16xf32>
    %905 = arith.mulf %904, %890 : vector<16x16xf32>
    %906 = arith.addf %888, %905 : vector<16x16xf32>
    %c2_221 = arith.constant 2 : index
    %c7_222 = arith.constant 7 : index
    %c0_223 = arith.constant 0 : index
    %907 = vector.load %arg6[%c2_221, %c7_222, %c0_223] : memref<3x25x18xf32, #tpu.memory_space<vmem>>, vector<1x16x16xf32>
    %908 = vector.shape_cast %907 : vector<1x16x16xf32> to vector<16x16xf32>
    %c127 = arith.constant 127 : index
    %909 = memref.load %arg1[%c127] : memref<221xf32, #tpu.memory_space<smem>>
    %910 = vector.broadcast %909 : f32 to vector<16x16xf32>
    %911 = arith.mulf %910, %908 : vector<16x16xf32>
    %912 = arith.addf %894, %911 : vector<16x16xf32>
    %c154 = arith.constant 154 : index
    %913 = memref.load %arg1[%c154] : memref<221xf32, #tpu.memory_space<smem>>
    %914 = vector.broadcast %913 : f32 to vector<16x16xf32>
    %915 = arith.mulf %914, %908 : vector<16x16xf32>
    %916 = arith.addf %898, %915 : vector<16x16xf32>
    %c181 = arith.constant 181 : index
    %917 = memref.load %arg1[%c181] : memref<221xf32, #tpu.memory_space<smem>>
    %918 = vector.broadcast %917 : f32 to vector<16x16xf32>
    %919 = arith.mulf %918, %908 : vector<16x16xf32>
    %920 = arith.addf %902, %919 : vector<16x16xf32>
    %c208 = arith.constant 208 : index
    %921 = memref.load %arg1[%c208] : memref<221xf32, #tpu.memory_space<smem>>
    %922 = vector.broadcast %921 : f32 to vector<16x16xf32>
    %923 = arith.mulf %922, %908 : vector<16x16xf32>
    %924 = arith.addf %906, %923 : vector<16x16xf32>
    %c2_224 = arith.constant 2 : index
    %c7_225 = arith.constant 7 : index
    %c1_226 = arith.constant 1 : index
    %925 = vector.load %arg6[%c2_224, %c7_225, %c1_226] : memref<3x25x18xf32, #tpu.memory_space<vmem>>, vector<1x16x16xf32>
    %926 = vector.shape_cast %925 : vector<1x16x16xf32> to vector<16x16xf32>
    %c128 = arith.constant 128 : index
    %927 = memref.load %arg1[%c128] : memref<221xf32, #tpu.memory_space<smem>>
    %928 = vector.broadcast %927 : f32 to vector<16x16xf32>
    %929 = arith.mulf %928, %926 : vector<16x16xf32>
    %930 = arith.addf %912, %929 : vector<16x16xf32>
    %c155 = arith.constant 155 : index
    %931 = memref.load %arg1[%c155] : memref<221xf32, #tpu.memory_space<smem>>
    %932 = vector.broadcast %931 : f32 to vector<16x16xf32>
    %933 = arith.mulf %932, %926 : vector<16x16xf32>
    %934 = arith.addf %916, %933 : vector<16x16xf32>
    %c182 = arith.constant 182 : index
    %935 = memref.load %arg1[%c182] : memref<221xf32, #tpu.memory_space<smem>>
    %936 = vector.broadcast %935 : f32 to vector<16x16xf32>
    %937 = arith.mulf %936, %926 : vector<16x16xf32>
    %938 = arith.addf %920, %937 : vector<16x16xf32>
    %c209 = arith.constant 209 : index
    %939 = memref.load %arg1[%c209] : memref<221xf32, #tpu.memory_space<smem>>
    %940 = vector.broadcast %939 : f32 to vector<16x16xf32>
    %941 = arith.mulf %940, %926 : vector<16x16xf32>
    %942 = arith.addf %924, %941 : vector<16x16xf32>
    %c2_227 = arith.constant 2 : index
    %c7_228 = arith.constant 7 : index
    %c2_229 = arith.constant 2 : index
    %943 = vector.load %arg6[%c2_227, %c7_228, %c2_229] : memref<3x25x18xf32, #tpu.memory_space<vmem>>, vector<1x16x16xf32>
    %944 = vector.shape_cast %943 : vector<1x16x16xf32> to vector<16x16xf32>
    %c129 = arith.constant 129 : index
    %945 = memref.load %arg1[%c129] : memref<221xf32, #tpu.memory_space<smem>>
    %946 = vector.broadcast %945 : f32 to vector<16x16xf32>
    %947 = arith.mulf %946, %944 : vector<16x16xf32>
    %948 = arith.addf %930, %947 : vector<16x16xf32>
    %c156 = arith.constant 156 : index
    %949 = memref.load %arg1[%c156] : memref<221xf32, #tpu.memory_space<smem>>
    %950 = vector.broadcast %949 : f32 to vector<16x16xf32>
    %951 = arith.mulf %950, %944 : vector<16x16xf32>
    %952 = arith.addf %934, %951 : vector<16x16xf32>
    %c183 = arith.constant 183 : index
    %953 = memref.load %arg1[%c183] : memref<221xf32, #tpu.memory_space<smem>>
    %954 = vector.broadcast %953 : f32 to vector<16x16xf32>
    %955 = arith.mulf %954, %944 : vector<16x16xf32>
    %956 = arith.addf %938, %955 : vector<16x16xf32>
    %c210 = arith.constant 210 : index
    %957 = memref.load %arg1[%c210] : memref<221xf32, #tpu.memory_space<smem>>
    %958 = vector.broadcast %957 : f32 to vector<16x16xf32>
    %959 = arith.mulf %958, %944 : vector<16x16xf32>
    %960 = arith.addf %942, %959 : vector<16x16xf32>
    %c2_230 = arith.constant 2 : index
    %c8_231 = arith.constant 8 : index
    %c0_232 = arith.constant 0 : index
    %961 = vector.load %arg6[%c2_230, %c8_231, %c0_232] : memref<3x25x18xf32, #tpu.memory_space<vmem>>, vector<1x16x16xf32>
    %962 = vector.shape_cast %961 : vector<1x16x16xf32> to vector<16x16xf32>
    %c130 = arith.constant 130 : index
    %963 = memref.load %arg1[%c130] : memref<221xf32, #tpu.memory_space<smem>>
    %964 = vector.broadcast %963 : f32 to vector<16x16xf32>
    %965 = arith.mulf %964, %962 : vector<16x16xf32>
    %966 = arith.addf %948, %965 : vector<16x16xf32>
    %c157 = arith.constant 157 : index
    %967 = memref.load %arg1[%c157] : memref<221xf32, #tpu.memory_space<smem>>
    %968 = vector.broadcast %967 : f32 to vector<16x16xf32>
    %969 = arith.mulf %968, %962 : vector<16x16xf32>
    %970 = arith.addf %952, %969 : vector<16x16xf32>
    %c184 = arith.constant 184 : index
    %971 = memref.load %arg1[%c184] : memref<221xf32, #tpu.memory_space<smem>>
    %972 = vector.broadcast %971 : f32 to vector<16x16xf32>
    %973 = arith.mulf %972, %962 : vector<16x16xf32>
    %974 = arith.addf %956, %973 : vector<16x16xf32>
    %c211 = arith.constant 211 : index
    %975 = memref.load %arg1[%c211] : memref<221xf32, #tpu.memory_space<smem>>
    %976 = vector.broadcast %975 : f32 to vector<16x16xf32>
    %977 = arith.mulf %976, %962 : vector<16x16xf32>
    %978 = arith.addf %960, %977 : vector<16x16xf32>
    %c2_233 = arith.constant 2 : index
    %c8_234 = arith.constant 8 : index
    %c1_235 = arith.constant 1 : index
    %979 = vector.load %arg6[%c2_233, %c8_234, %c1_235] : memref<3x25x18xf32, #tpu.memory_space<vmem>>, vector<1x16x16xf32>
    %980 = vector.shape_cast %979 : vector<1x16x16xf32> to vector<16x16xf32>
    %c131 = arith.constant 131 : index
    %981 = memref.load %arg1[%c131] : memref<221xf32, #tpu.memory_space<smem>>
    %982 = vector.broadcast %981 : f32 to vector<16x16xf32>
    %983 = arith.mulf %982, %980 : vector<16x16xf32>
    %984 = arith.addf %966, %983 : vector<16x16xf32>
    %c158 = arith.constant 158 : index
    %985 = memref.load %arg1[%c158] : memref<221xf32, #tpu.memory_space<smem>>
    %986 = vector.broadcast %985 : f32 to vector<16x16xf32>
    %987 = arith.mulf %986, %980 : vector<16x16xf32>
    %988 = arith.addf %970, %987 : vector<16x16xf32>
    %c185 = arith.constant 185 : index
    %989 = memref.load %arg1[%c185] : memref<221xf32, #tpu.memory_space<smem>>
    %990 = vector.broadcast %989 : f32 to vector<16x16xf32>
    %991 = arith.mulf %990, %980 : vector<16x16xf32>
    %992 = arith.addf %974, %991 : vector<16x16xf32>
    %c212 = arith.constant 212 : index
    %993 = memref.load %arg1[%c212] : memref<221xf32, #tpu.memory_space<smem>>
    %994 = vector.broadcast %993 : f32 to vector<16x16xf32>
    %995 = arith.mulf %994, %980 : vector<16x16xf32>
    %996 = arith.addf %978, %995 : vector<16x16xf32>
    %c2_236 = arith.constant 2 : index
    %c8_237 = arith.constant 8 : index
    %c2_238 = arith.constant 2 : index
    %997 = vector.load %arg6[%c2_236, %c8_237, %c2_238] : memref<3x25x18xf32, #tpu.memory_space<vmem>>, vector<1x16x16xf32>
    %998 = vector.shape_cast %997 : vector<1x16x16xf32> to vector<16x16xf32>
    %c132 = arith.constant 132 : index
    %999 = memref.load %arg1[%c132] : memref<221xf32, #tpu.memory_space<smem>>
    %1000 = vector.broadcast %999 : f32 to vector<16x16xf32>
    %1001 = arith.mulf %1000, %998 : vector<16x16xf32>
    %1002 = arith.addf %984, %1001 : vector<16x16xf32>
    %c159 = arith.constant 159 : index
    %1003 = memref.load %arg1[%c159] : memref<221xf32, #tpu.memory_space<smem>>
    %1004 = vector.broadcast %1003 : f32 to vector<16x16xf32>
    %1005 = arith.mulf %1004, %998 : vector<16x16xf32>
    %1006 = arith.addf %988, %1005 : vector<16x16xf32>
    %c186 = arith.constant 186 : index
    %1007 = memref.load %arg1[%c186] : memref<221xf32, #tpu.memory_space<smem>>
    %1008 = vector.broadcast %1007 : f32 to vector<16x16xf32>
    %1009 = arith.mulf %1008, %998 : vector<16x16xf32>
    %1010 = arith.addf %992, %1009 : vector<16x16xf32>
    %c213 = arith.constant 213 : index
    %1011 = memref.load %arg1[%c213] : memref<221xf32, #tpu.memory_space<smem>>
    %1012 = vector.broadcast %1011 : f32 to vector<16x16xf32>
    %1013 = arith.mulf %1012, %998 : vector<16x16xf32>
    %1014 = arith.addf %996, %1013 : vector<16x16xf32>
    %c2_239 = arith.constant 2 : index
    %c9_240 = arith.constant 9 : index
    %c0_241 = arith.constant 0 : index
    %1015 = vector.load %arg6[%c2_239, %c9_240, %c0_241] : memref<3x25x18xf32, #tpu.memory_space<vmem>>, vector<1x16x16xf32>
    %1016 = vector.shape_cast %1015 : vector<1x16x16xf32> to vector<16x16xf32>
    %c133 = arith.constant 133 : index
    %1017 = memref.load %arg1[%c133] : memref<221xf32, #tpu.memory_space<smem>>
    %1018 = vector.broadcast %1017 : f32 to vector<16x16xf32>
    %1019 = arith.mulf %1018, %1016 : vector<16x16xf32>
    %1020 = arith.addf %1002, %1019 : vector<16x16xf32>
    %c160 = arith.constant 160 : index
    %1021 = memref.load %arg1[%c160] : memref<221xf32, #tpu.memory_space<smem>>
    %1022 = vector.broadcast %1021 : f32 to vector<16x16xf32>
    %1023 = arith.mulf %1022, %1016 : vector<16x16xf32>
    %1024 = arith.addf %1006, %1023 : vector<16x16xf32>
    %c187 = arith.constant 187 : index
    %1025 = memref.load %arg1[%c187] : memref<221xf32, #tpu.memory_space<smem>>
    %1026 = vector.broadcast %1025 : f32 to vector<16x16xf32>
    %1027 = arith.mulf %1026, %1016 : vector<16x16xf32>
    %1028 = arith.addf %1010, %1027 : vector<16x16xf32>
    %c214 = arith.constant 214 : index
    %1029 = memref.load %arg1[%c214] : memref<221xf32, #tpu.memory_space<smem>>
    %1030 = vector.broadcast %1029 : f32 to vector<16x16xf32>
    %1031 = arith.mulf %1030, %1016 : vector<16x16xf32>
    %1032 = arith.addf %1014, %1031 : vector<16x16xf32>
    %c2_242 = arith.constant 2 : index
    %c9_243 = arith.constant 9 : index
    %c1_244 = arith.constant 1 : index
    %1033 = vector.load %arg6[%c2_242, %c9_243, %c1_244] : memref<3x25x18xf32, #tpu.memory_space<vmem>>, vector<1x16x16xf32>
    %1034 = vector.shape_cast %1033 : vector<1x16x16xf32> to vector<16x16xf32>
    %c134 = arith.constant 134 : index
    %1035 = memref.load %arg1[%c134] : memref<221xf32, #tpu.memory_space<smem>>
    %1036 = vector.broadcast %1035 : f32 to vector<16x16xf32>
    %1037 = arith.mulf %1036, %1034 : vector<16x16xf32>
    %1038 = arith.addf %1020, %1037 : vector<16x16xf32>
    %c161 = arith.constant 161 : index
    %1039 = memref.load %arg1[%c161] : memref<221xf32, #tpu.memory_space<smem>>
    %1040 = vector.broadcast %1039 : f32 to vector<16x16xf32>
    %1041 = arith.mulf %1040, %1034 : vector<16x16xf32>
    %1042 = arith.addf %1024, %1041 : vector<16x16xf32>
    %c188 = arith.constant 188 : index
    %1043 = memref.load %arg1[%c188] : memref<221xf32, #tpu.memory_space<smem>>
    %1044 = vector.broadcast %1043 : f32 to vector<16x16xf32>
    %1045 = arith.mulf %1044, %1034 : vector<16x16xf32>
    %1046 = arith.addf %1028, %1045 : vector<16x16xf32>
    %c215 = arith.constant 215 : index
    %1047 = memref.load %arg1[%c215] : memref<221xf32, #tpu.memory_space<smem>>
    %1048 = vector.broadcast %1047 : f32 to vector<16x16xf32>
    %1049 = arith.mulf %1048, %1034 : vector<16x16xf32>
    %1050 = arith.addf %1032, %1049 : vector<16x16xf32>
    %c2_245 = arith.constant 2 : index
    %c9_246 = arith.constant 9 : index
    %c2_247 = arith.constant 2 : index
    %1051 = vector.load %arg6[%c2_245, %c9_246, %c2_247] : memref<3x25x18xf32, #tpu.memory_space<vmem>>, vector<1x16x16xf32>
    %1052 = vector.shape_cast %1051 : vector<1x16x16xf32> to vector<16x16xf32>
    %c135 = arith.constant 135 : index
    %1053 = memref.load %arg1[%c135] : memref<221xf32, #tpu.memory_space<smem>>
    %1054 = vector.broadcast %1053 : f32 to vector<16x16xf32>
    %1055 = arith.mulf %1054, %1052 : vector<16x16xf32>
    %1056 = arith.addf %1038, %1055 : vector<16x16xf32>
    %c162 = arith.constant 162 : index
    %1057 = memref.load %arg1[%c162] : memref<221xf32, #tpu.memory_space<smem>>
    %1058 = vector.broadcast %1057 : f32 to vector<16x16xf32>
    %1059 = arith.mulf %1058, %1052 : vector<16x16xf32>
    %1060 = arith.addf %1042, %1059 : vector<16x16xf32>
    %c189 = arith.constant 189 : index
    %1061 = memref.load %arg1[%c189] : memref<221xf32, #tpu.memory_space<smem>>
    %1062 = vector.broadcast %1061 : f32 to vector<16x16xf32>
    %1063 = arith.mulf %1062, %1052 : vector<16x16xf32>
    %1064 = arith.addf %1046, %1063 : vector<16x16xf32>
    %c216 = arith.constant 216 : index
    %1065 = memref.load %arg1[%c216] : memref<221xf32, #tpu.memory_space<smem>>
    %1066 = vector.broadcast %1065 : f32 to vector<16x16xf32>
    %1067 = arith.mulf %1066, %1052 : vector<16x16xf32>
    %1068 = arith.addf %1050, %1067 : vector<16x16xf32>
    %cst_248 = arith.constant 0.000000e+00 : f32
    %1069 = vector.broadcast %cst_248 : f32 to vector<32x32xf32>
    %cst_249 = arith.constant 0.000000e+00 : f32
    %1070 = vector.broadcast %cst_249 : f32 to vector<16x32xf32>
    %1071 = arith.negf %1056 : vector<16x16xf32>
    %1072 = math.exp %1071 : vector<16x16xf32>
    %cst_250 = arith.constant 1.000000e+00 : f32
    %1073 = vector.broadcast %cst_250 : f32 to vector<16x16xf32>
    %1074 = arith.addf %1073, %1072 : vector<16x16xf32>
    %1075 = arith.divf %1073, %1074 : vector<16x16xf32>
    %cst_251 = arith.constant dense<0.000000e+00> : vector<16x32xf32>
    %1076 = tpu.matmul %1075, %14, %cst_251 {dimension_numbers = #tpu.dot_dimension_numbers<[1], [0], [0], [1], [0, 0, 1, 1], [], []>} : vector<16x16xf32>, vector<16x32xf32>, vector<16x32xf32> -> vector<16x32xf32>
    %1077 = arith.addf %1070, %1076 : vector<16x32xf32>
    %1078 = arith.negf %1060 : vector<16x16xf32>
    %1079 = math.exp %1078 : vector<16x16xf32>
    %cst_252 = arith.constant 1.000000e+00 : f32
    %1080 = vector.broadcast %cst_252 : f32 to vector<16x16xf32>
    %1081 = arith.addf %1080, %1079 : vector<16x16xf32>
    %1082 = arith.divf %1080, %1081 : vector<16x16xf32>
    %cst_253 = arith.constant dense<0.000000e+00> : vector<16x32xf32>
    %1083 = tpu.matmul %1082, %21, %cst_253 {dimension_numbers = #tpu.dot_dimension_numbers<[1], [0], [0], [1], [0, 0, 1, 1], [], []>} : vector<16x16xf32>, vector<16x32xf32>, vector<16x32xf32> -> vector<16x32xf32>
    %1084 = arith.addf %1077, %1083 : vector<16x32xf32>
    %cst_254 = arith.constant dense<0.000000e+00> : vector<32x32xf32>
    %1085 = tpu.matmul %30, %1084, %cst_254 {dimension_numbers = #tpu.dot_dimension_numbers<[1], [0], [0], [1], [0, 0, 1, 1], [], []>} : vector<32x16xf32>, vector<16x32xf32>, vector<32x32xf32> -> vector<32x32xf32>
    %1086 = arith.addf %1069, %1085 : vector<32x32xf32>
    %cst_255 = arith.constant 0.000000e+00 : f32
    %1087 = vector.broadcast %cst_255 : f32 to vector<16x32xf32>
    %1088 = arith.negf %1064 : vector<16x16xf32>
    %1089 = math.exp %1088 : vector<16x16xf32>
    %cst_256 = arith.constant 1.000000e+00 : f32
    %1090 = vector.broadcast %cst_256 : f32 to vector<16x16xf32>
    %1091 = arith.addf %1090, %1089 : vector<16x16xf32>
    %1092 = arith.divf %1090, %1091 : vector<16x16xf32>
    %cst_257 = arith.constant dense<0.000000e+00> : vector<16x32xf32>
    %1093 = tpu.matmul %1092, %14, %cst_257 {dimension_numbers = #tpu.dot_dimension_numbers<[1], [0], [0], [1], [0, 0, 1, 1], [], []>} : vector<16x16xf32>, vector<16x32xf32>, vector<16x32xf32> -> vector<16x32xf32>
    %1094 = arith.addf %1087, %1093 : vector<16x32xf32>
    %1095 = arith.negf %1068 : vector<16x16xf32>
    %1096 = math.exp %1095 : vector<16x16xf32>
    %cst_258 = arith.constant 1.000000e+00 : f32
    %1097 = vector.broadcast %cst_258 : f32 to vector<16x16xf32>
    %1098 = arith.addf %1097, %1096 : vector<16x16xf32>
    %1099 = arith.divf %1097, %1098 : vector<16x16xf32>
    %cst_259 = arith.constant dense<0.000000e+00> : vector<16x32xf32>
    %1100 = tpu.matmul %1099, %21, %cst_259 {dimension_numbers = #tpu.dot_dimension_numbers<[1], [0], [0], [1], [0, 0, 1, 1], [], []>} : vector<16x16xf32>, vector<16x32xf32>, vector<16x32xf32> -> vector<16x32xf32>
    %1101 = arith.addf %1094, %1100 : vector<16x32xf32>
    %cst_260 = arith.constant dense<0.000000e+00> : vector<32x32xf32>
    %1102 = tpu.matmul %37, %1101, %cst_260 {dimension_numbers = #tpu.dot_dimension_numbers<[1], [0], [0], [1], [0, 0, 1, 1], [], []>} : vector<32x16xf32>, vector<16x32xf32>, vector<32x32xf32> -> vector<32x32xf32>
    %1103 = arith.addf %1086, %1102 : vector<32x32xf32>
    %c0_261 = arith.constant 0 : index
    %c0_262 = arith.constant 0 : index
    %c0_263 = arith.constant 0 : index
    %c0_264 = arith.constant 0 : index
    %1104 = vector.load %arg3[%c0_261, %c0_262, %c0_263, %c0_264] : memref<2x1x32x32xf32, #tpu.memory_space<vmem>>, vector<1x1x32x32xf32>
    %1105 = vector.shape_cast %1104 : vector<1x1x32x32xf32> to vector<32x32xf32>
    %1106 = vector.shape_cast %1103 : vector<32x32xf32> to vector<1x1x32x32xf32>
    tpu.vector_store %arg3[%c0_261, %c0_262, %c0_263, %c0_264], %1106 {strides = array<i32>} : memref<2x1x32x32xf32, #tpu.memory_space<vmem>>, vector<1x1x32x32xf32>,
    %c1_265 = arith.constant 1 : index
    %c0_266 = arith.constant 0 : index
    %c0_267 = arith.constant 0 : index
    %c0_268 = arith.constant 0 : index
    %1107 = vector.load %arg2[%c1_265, %c0_266, %c0_267, %c0_268] : memref<2x1x16x16xf32, #tpu.memory_space<vmem>>, vector<1x1x16x16xf32>
    %1108 = vector.shape_cast %1107 : vector<1x1x16x16xf32> to vector<16x16xf32>
    %c0_269 = arith.constant 0 : index
    %c8_270 = arith.constant 8 : index
    %c2_271 = arith.constant 2 : index
    %1109 = vector.load %arg4[%c0_269, %c8_270, %c2_271] : memref<1x26x20xf32, #tpu.memory_space<vmem>>, vector<1x16x16xf32>
    %1110 = vector.shape_cast %1109 : vector<1x16x16xf32> to vector<16x16xf32>
    %1111 = vector.shape_cast %1108 : vector<16x16xf32> to vector<1x16x16xf32>
    tpu.vector_store %arg4[%c0_269, %c8_270, %c2_271], %1111 {strides = array<i32>} : memref<1x26x20xf32, #tpu.memory_space<vmem>>, vector<1x16x16xf32>,
    %c50_272 = arith.constant 50 : index
    %1112 = memref.load %arg1[%c50_272] : memref<221xf32, #tpu.memory_space<smem>>
    %1113 = vector.broadcast %1112 : f32 to vector<16x16xf32>
    %c51_273 = arith.constant 51 : index
    %1114 = memref.load %arg1[%c51_273] : memref<221xf32, #tpu.memory_space<smem>>
    %1115 = vector.broadcast %1114 : f32 to vector<16x16xf32>
    %c0_274 = arith.constant 0 : index
    %c6_275 = arith.constant 6 : index
    %c0_276 = arith.constant 0 : index
    %1116 = vector.load %arg4[%c0_274, %c6_275, %c0_276] : memref<1x26x20xf32, #tpu.memory_space<vmem>>, vector<1x16x16xf32>
    %1117 = vector.shape_cast %1116 : vector<1x16x16xf32> to vector<16x16xf32>
    %c0_277 = arith.constant 0 : index
    %1118 = memref.load %arg1[%c0_277] : memref<221xf32, #tpu.memory_space<smem>>
    %1119 = vector.broadcast %1118 : f32 to vector<16x16xf32>
    %1120 = arith.mulf %1119, %1117 : vector<16x16xf32>
    %1121 = arith.addf %1113, %1120 : vector<16x16xf32>
    %c25_278 = arith.constant 25 : index
    %1122 = memref.load %arg1[%c25_278] : memref<221xf32, #tpu.memory_space<smem>>
    %1123 = vector.broadcast %1122 : f32 to vector<16x16xf32>
    %1124 = arith.mulf %1123, %1117 : vector<16x16xf32>
    %1125 = arith.addf %1115, %1124 : vector<16x16xf32>
    %c0_279 = arith.constant 0 : index
    %c6_280 = arith.constant 6 : index
    %c1_281 = arith.constant 1 : index
    %1126 = vector.load %arg4[%c0_279, %c6_280, %c1_281] : memref<1x26x20xf32, #tpu.memory_space<vmem>>, vector<1x16x16xf32>
    %1127 = vector.shape_cast %1126 : vector<1x16x16xf32> to vector<16x16xf32>
    %c1_282 = arith.constant 1 : index
    %1128 = memref.load %arg1[%c1_282] : memref<221xf32, #tpu.memory_space<smem>>
    %1129 = vector.broadcast %1128 : f32 to vector<16x16xf32>
    %1130 = arith.mulf %1129, %1127 : vector<16x16xf32>
    %1131 = arith.addf %1121, %1130 : vector<16x16xf32>
    %c26_283 = arith.constant 26 : index
    %1132 = memref.load %arg1[%c26_283] : memref<221xf32, #tpu.memory_space<smem>>
    %1133 = vector.broadcast %1132 : f32 to vector<16x16xf32>
    %1134 = arith.mulf %1133, %1127 : vector<16x16xf32>
    %1135 = arith.addf %1125, %1134 : vector<16x16xf32>
    %c0_284 = arith.constant 0 : index
    %c6_285 = arith.constant 6 : index
    %c2_286 = arith.constant 2 : index
    %1136 = vector.load %arg4[%c0_284, %c6_285, %c2_286] : memref<1x26x20xf32, #tpu.memory_space<vmem>>, vector<1x16x16xf32>
    %1137 = vector.shape_cast %1136 : vector<1x16x16xf32> to vector<16x16xf32>
    %c2_287 = arith.constant 2 : index
    %1138 = memref.load %arg1[%c2_287] : memref<221xf32, #tpu.memory_space<smem>>
    %1139 = vector.broadcast %1138 : f32 to vector<16x16xf32>
    %1140 = arith.mulf %1139, %1137 : vector<16x16xf32>
    %1141 = arith.addf %1131, %1140 : vector<16x16xf32>
    %c27_288 = arith.constant 27 : index
    %1142 = memref.load %arg1[%c27_288] : memref<221xf32, #tpu.memory_space<smem>>
    %1143 = vector.broadcast %1142 : f32 to vector<16x16xf32>
    %1144 = arith.mulf %1143, %1137 : vector<16x16xf32>
    %1145 = arith.addf %1135, %1144 : vector<16x16xf32>
    %c0_289 = arith.constant 0 : index
    %c6_290 = arith.constant 6 : index
    %c3_291 = arith.constant 3 : index
    %1146 = vector.load %arg4[%c0_289, %c6_290, %c3_291] : memref<1x26x20xf32, #tpu.memory_space<vmem>>, vector<1x16x16xf32>
    %1147 = vector.shape_cast %1146 : vector<1x16x16xf32> to vector<16x16xf32>
    %c3_292 = arith.constant 3 : index
    %1148 = memref.load %arg1[%c3_292] : memref<221xf32, #tpu.memory_space<smem>>
    %1149 = vector.broadcast %1148 : f32 to vector<16x16xf32>
    %1150 = arith.mulf %1149, %1147 : vector<16x16xf32>
    %1151 = arith.addf %1141, %1150 : vector<16x16xf32>
    %c28_293 = arith.constant 28 : index
    %1152 = memref.load %arg1[%c28_293] : memref<221xf32, #tpu.memory_space<smem>>
    %1153 = vector.broadcast %1152 : f32 to vector<16x16xf32>
    %1154 = arith.mulf %1153, %1147 : vector<16x16xf32>
    %1155 = arith.addf %1145, %1154 : vector<16x16xf32>
    %c0_294 = arith.constant 0 : index
    %c6_295 = arith.constant 6 : index
    %c4_296 = arith.constant 4 : index
    %1156 = vector.load %arg4[%c0_294, %c6_295, %c4_296] : memref<1x26x20xf32, #tpu.memory_space<vmem>>, vector<1x16x16xf32>
    %1157 = vector.shape_cast %1156 : vector<1x16x16xf32> to vector<16x16xf32>
    %c4_297 = arith.constant 4 : index
    %1158 = memref.load %arg1[%c4_297] : memref<221xf32, #tpu.memory_space<smem>>
    %1159 = vector.broadcast %1158 : f32 to vector<16x16xf32>
    %1160 = arith.mulf %1159, %1157 : vector<16x16xf32>
    %1161 = arith.addf %1151, %1160 : vector<16x16xf32>
    %c29_298 = arith.constant 29 : index
    %1162 = memref.load %arg1[%c29_298] : memref<221xf32, #tpu.memory_space<smem>>
    %1163 = vector.broadcast %1162 : f32 to vector<16x16xf32>
    %1164 = arith.mulf %1163, %1157 : vector<16x16xf32>
    %1165 = arith.addf %1155, %1164 : vector<16x16xf32>
    %c0_299 = arith.constant 0 : index
    %c7_300 = arith.constant 7 : index
    %c0_301 = arith.constant 0 : index
    %1166 = vector.load %arg4[%c0_299, %c7_300, %c0_301] : memref<1x26x20xf32, #tpu.memory_space<vmem>>, vector<1x16x16xf32>
    %1167 = vector.shape_cast %1166 : vector<1x16x16xf32> to vector<16x16xf32>
    %c5_302 = arith.constant 5 : index
    %1168 = memref.load %arg1[%c5_302] : memref<221xf32, #tpu.memory_space<smem>>
    %1169 = vector.broadcast %1168 : f32 to vector<16x16xf32>
    %1170 = arith.mulf %1169, %1167 : vector<16x16xf32>
    %1171 = arith.addf %1161, %1170 : vector<16x16xf32>
    %c30_303 = arith.constant 30 : index
    %1172 = memref.load %arg1[%c30_303] : memref<221xf32, #tpu.memory_space<smem>>
    %1173 = vector.broadcast %1172 : f32 to vector<16x16xf32>
    %1174 = arith.mulf %1173, %1167 : vector<16x16xf32>
    %1175 = arith.addf %1165, %1174 : vector<16x16xf32>
    %c0_304 = arith.constant 0 : index
    %c7_305 = arith.constant 7 : index
    %c1_306 = arith.constant 1 : index
    %1176 = vector.load %arg4[%c0_304, %c7_305, %c1_306] : memref<1x26x20xf32, #tpu.memory_space<vmem>>, vector<1x16x16xf32>
    %1177 = vector.shape_cast %1176 : vector<1x16x16xf32> to vector<16x16xf32>
    %c6_307 = arith.constant 6 : index
    %1178 = memref.load %arg1[%c6_307] : memref<221xf32, #tpu.memory_space<smem>>
    %1179 = vector.broadcast %1178 : f32 to vector<16x16xf32>
    %1180 = arith.mulf %1179, %1177 : vector<16x16xf32>
    %1181 = arith.addf %1171, %1180 : vector<16x16xf32>
    %c31_308 = arith.constant 31 : index
    %1182 = memref.load %arg1[%c31_308] : memref<221xf32, #tpu.memory_space<smem>>
    %1183 = vector.broadcast %1182 : f32 to vector<16x16xf32>
    %1184 = arith.mulf %1183, %1177 : vector<16x16xf32>
    %1185 = arith.addf %1175, %1184 : vector<16x16xf32>
    %c0_309 = arith.constant 0 : index
    %c7_310 = arith.constant 7 : index
    %c2_311 = arith.constant 2 : index
    %1186 = vector.load %arg4[%c0_309, %c7_310, %c2_311] : memref<1x26x20xf32, #tpu.memory_space<vmem>>, vector<1x16x16xf32>
    %1187 = vector.shape_cast %1186 : vector<1x16x16xf32> to vector<16x16xf32>
    %c7_312 = arith.constant 7 : index
    %1188 = memref.load %arg1[%c7_312] : memref<221xf32, #tpu.memory_space<smem>>
    %1189 = vector.broadcast %1188 : f32 to vector<16x16xf32>
    %1190 = arith.mulf %1189, %1187 : vector<16x16xf32>
    %1191 = arith.addf %1181, %1190 : vector<16x16xf32>
    %c32_313 = arith.constant 32 : index
    %1192 = memref.load %arg1[%c32_313] : memref<221xf32, #tpu.memory_space<smem>>
    %1193 = vector.broadcast %1192 : f32 to vector<16x16xf32>
    %1194 = arith.mulf %1193, %1187 : vector<16x16xf32>
    %1195 = arith.addf %1185, %1194 : vector<16x16xf32>
    %c0_314 = arith.constant 0 : index
    %c7_315 = arith.constant 7 : index
    %c3_316 = arith.constant 3 : index
    %1196 = vector.load %arg4[%c0_314, %c7_315, %c3_316] : memref<1x26x20xf32, #tpu.memory_space<vmem>>, vector<1x16x16xf32>
    %1197 = vector.shape_cast %1196 : vector<1x16x16xf32> to vector<16x16xf32>
    %c8_317 = arith.constant 8 : index
    %1198 = memref.load %arg1[%c8_317] : memref<221xf32, #tpu.memory_space<smem>>
    %1199 = vector.broadcast %1198 : f32 to vector<16x16xf32>
    %1200 = arith.mulf %1199, %1197 : vector<16x16xf32>
    %1201 = arith.addf %1191, %1200 : vector<16x16xf32>
    %c33_318 = arith.constant 33 : index
    %1202 = memref.load %arg1[%c33_318] : memref<221xf32, #tpu.memory_space<smem>>
    %1203 = vector.broadcast %1202 : f32 to vector<16x16xf32>
    %1204 = arith.mulf %1203, %1197 : vector<16x16xf32>
    %1205 = arith.addf %1195, %1204 : vector<16x16xf32>
    %c0_319 = arith.constant 0 : index
    %c7_320 = arith.constant 7 : index
    %c4_321 = arith.constant 4 : index
    %1206 = vector.load %arg4[%c0_319, %c7_320, %c4_321] : memref<1x26x20xf32, #tpu.memory_space<vmem>>, vector<1x16x16xf32>
    %1207 = vector.shape_cast %1206 : vector<1x16x16xf32> to vector<16x16xf32>
    %c9_322 = arith.constant 9 : index
    %1208 = memref.load %arg1[%c9_322] : memref<221xf32, #tpu.memory_space<smem>>
    %1209 = vector.broadcast %1208 : f32 to vector<16x16xf32>
    %1210 = arith.mulf %1209, %1207 : vector<16x16xf32>
    %1211 = arith.addf %1201, %1210 : vector<16x16xf32>
    %c34_323 = arith.constant 34 : index
    %1212 = memref.load %arg1[%c34_323] : memref<221xf32, #tpu.memory_space<smem>>
    %1213 = vector.broadcast %1212 : f32 to vector<16x16xf32>
    %1214 = arith.mulf %1213, %1207 : vector<16x16xf32>
    %1215 = arith.addf %1205, %1214 : vector<16x16xf32>
    %c0_324 = arith.constant 0 : index
    %c8_325 = arith.constant 8 : index
    %c0_326 = arith.constant 0 : index
    %1216 = vector.load %arg4[%c0_324, %c8_325, %c0_326] : memref<1x26x20xf32, #tpu.memory_space<vmem>>, vector<1x16x16xf32>
    %1217 = vector.shape_cast %1216 : vector<1x16x16xf32> to vector<16x16xf32>
    %c10_327 = arith.constant 10 : index
    %1218 = memref.load %arg1[%c10_327] : memref<221xf32, #tpu.memory_space<smem>>
    %1219 = vector.broadcast %1218 : f32 to vector<16x16xf32>
    %1220 = arith.mulf %1219, %1217 : vector<16x16xf32>
    %1221 = arith.addf %1211, %1220 : vector<16x16xf32>
    %c35_328 = arith.constant 35 : index
    %1222 = memref.load %arg1[%c35_328] : memref<221xf32, #tpu.memory_space<smem>>
    %1223 = vector.broadcast %1222 : f32 to vector<16x16xf32>
    %1224 = arith.mulf %1223, %1217 : vector<16x16xf32>
    %1225 = arith.addf %1215, %1224 : vector<16x16xf32>
    %c0_329 = arith.constant 0 : index
    %c8_330 = arith.constant 8 : index
    %c1_331 = arith.constant 1 : index
    %1226 = vector.load %arg4[%c0_329, %c8_330, %c1_331] : memref<1x26x20xf32, #tpu.memory_space<vmem>>, vector<1x16x16xf32>
    %1227 = vector.shape_cast %1226 : vector<1x16x16xf32> to vector<16x16xf32>
    %c11_332 = arith.constant 11 : index
    %1228 = memref.load %arg1[%c11_332] : memref<221xf32, #tpu.memory_space<smem>>
    %1229 = vector.broadcast %1228 : f32 to vector<16x16xf32>
    %1230 = arith.mulf %1229, %1227 : vector<16x16xf32>
    %1231 = arith.addf %1221, %1230 : vector<16x16xf32>
    %c36_333 = arith.constant 36 : index
    %1232 = memref.load %arg1[%c36_333] : memref<221xf32, #tpu.memory_space<smem>>
    %1233 = vector.broadcast %1232 : f32 to vector<16x16xf32>
    %1234 = arith.mulf %1233, %1227 : vector<16x16xf32>
    %1235 = arith.addf %1225, %1234 : vector<16x16xf32>
    %c0_334 = arith.constant 0 : index
    %c8_335 = arith.constant 8 : index
    %c2_336 = arith.constant 2 : index
    %1236 = vector.load %arg4[%c0_334, %c8_335, %c2_336] : memref<1x26x20xf32, #tpu.memory_space<vmem>>, vector<1x16x16xf32>
    %1237 = vector.shape_cast %1236 : vector<1x16x16xf32> to vector<16x16xf32>
    %c12_337 = arith.constant 12 : index
    %1238 = memref.load %arg1[%c12_337] : memref<221xf32, #tpu.memory_space<smem>>
    %1239 = vector.broadcast %1238 : f32 to vector<16x16xf32>
    %1240 = arith.mulf %1239, %1237 : vector<16x16xf32>
    %1241 = arith.addf %1231, %1240 : vector<16x16xf32>
    %c37_338 = arith.constant 37 : index
    %1242 = memref.load %arg1[%c37_338] : memref<221xf32, #tpu.memory_space<smem>>
    %1243 = vector.broadcast %1242 : f32 to vector<16x16xf32>
    %1244 = arith.mulf %1243, %1237 : vector<16x16xf32>
    %1245 = arith.addf %1235, %1244 : vector<16x16xf32>
    %c0_339 = arith.constant 0 : index
    %c8_340 = arith.constant 8 : index
    %c3_341 = arith.constant 3 : index
    %1246 = vector.load %arg4[%c0_339, %c8_340, %c3_341] : memref<1x26x20xf32, #tpu.memory_space<vmem>>, vector<1x16x16xf32>
    %1247 = vector.shape_cast %1246 : vector<1x16x16xf32> to vector<16x16xf32>
    %c13_342 = arith.constant 13 : index
    %1248 = memref.load %arg1[%c13_342] : memref<221xf32, #tpu.memory_space<smem>>
    %1249 = vector.broadcast %1248 : f32 to vector<16x16xf32>
    %1250 = arith.mulf %1249, %1247 : vector<16x16xf32>
    %1251 = arith.addf %1241, %1250 : vector<16x16xf32>
    %c38_343 = arith.constant 38 : index
    %1252 = memref.load %arg1[%c38_343] : memref<221xf32, #tpu.memory_space<smem>>
    %1253 = vector.broadcast %1252 : f32 to vector<16x16xf32>
    %1254 = arith.mulf %1253, %1247 : vector<16x16xf32>
    %1255 = arith.addf %1245, %1254 : vector<16x16xf32>
    %c0_344 = arith.constant 0 : index
    %c8_345 = arith.constant 8 : index
    %c4_346 = arith.constant 4 : index
    %1256 = vector.load %arg4[%c0_344, %c8_345, %c4_346] : memref<1x26x20xf32, #tpu.memory_space<vmem>>, vector<1x16x16xf32>
    %1257 = vector.shape_cast %1256 : vector<1x16x16xf32> to vector<16x16xf32>
    %c14_347 = arith.constant 14 : index
    %1258 = memref.load %arg1[%c14_347] : memref<221xf32, #tpu.memory_space<smem>>
    %1259 = vector.broadcast %1258 : f32 to vector<16x16xf32>
    %1260 = arith.mulf %1259, %1257 : vector<16x16xf32>
    %1261 = arith.addf %1251, %1260 : vector<16x16xf32>
    %c39_348 = arith.constant 39 : index
    %1262 = memref.load %arg1[%c39_348] : memref<221xf32, #tpu.memory_space<smem>>
    %1263 = vector.broadcast %1262 : f32 to vector<16x16xf32>
    %1264 = arith.mulf %1263, %1257 : vector<16x16xf32>
    %1265 = arith.addf %1255, %1264 : vector<16x16xf32>
    %c0_349 = arith.constant 0 : index
    %c9_350 = arith.constant 9 : index
    %c0_351 = arith.constant 0 : index
    %1266 = vector.load %arg4[%c0_349, %c9_350, %c0_351] : memref<1x26x20xf32, #tpu.memory_space<vmem>>, vector<1x16x16xf32>
    %1267 = vector.shape_cast %1266 : vector<1x16x16xf32> to vector<16x16xf32>
    %c15_352 = arith.constant 15 : index
    %1268 = memref.load %arg1[%c15_352] : memref<221xf32, #tpu.memory_space<smem>>
    %1269 = vector.broadcast %1268 : f32 to vector<16x16xf32>
    %1270 = arith.mulf %1269, %1267 : vector<16x16xf32>
    %1271 = arith.addf %1261, %1270 : vector<16x16xf32>
    %c40_353 = arith.constant 40 : index
    %1272 = memref.load %arg1[%c40_353] : memref<221xf32, #tpu.memory_space<smem>>
    %1273 = vector.broadcast %1272 : f32 to vector<16x16xf32>
    %1274 = arith.mulf %1273, %1267 : vector<16x16xf32>
    %1275 = arith.addf %1265, %1274 : vector<16x16xf32>
    %c0_354 = arith.constant 0 : index
    %c9_355 = arith.constant 9 : index
    %c1_356 = arith.constant 1 : index
    %1276 = vector.load %arg4[%c0_354, %c9_355, %c1_356] : memref<1x26x20xf32, #tpu.memory_space<vmem>>, vector<1x16x16xf32>
    %1277 = vector.shape_cast %1276 : vector<1x16x16xf32> to vector<16x16xf32>
    %c16_357 = arith.constant 16 : index
    %1278 = memref.load %arg1[%c16_357] : memref<221xf32, #tpu.memory_space<smem>>
    %1279 = vector.broadcast %1278 : f32 to vector<16x16xf32>
    %1280 = arith.mulf %1279, %1277 : vector<16x16xf32>
    %1281 = arith.addf %1271, %1280 : vector<16x16xf32>
    %c41_358 = arith.constant 41 : index
    %1282 = memref.load %arg1[%c41_358] : memref<221xf32, #tpu.memory_space<smem>>
    %1283 = vector.broadcast %1282 : f32 to vector<16x16xf32>
    %1284 = arith.mulf %1283, %1277 : vector<16x16xf32>
    %1285 = arith.addf %1275, %1284 : vector<16x16xf32>
    %c0_359 = arith.constant 0 : index
    %c9_360 = arith.constant 9 : index
    %c2_361 = arith.constant 2 : index
    %1286 = vector.load %arg4[%c0_359, %c9_360, %c2_361] : memref<1x26x20xf32, #tpu.memory_space<vmem>>, vector<1x16x16xf32>
    %1287 = vector.shape_cast %1286 : vector<1x16x16xf32> to vector<16x16xf32>
    %c17_362 = arith.constant 17 : index
    %1288 = memref.load %arg1[%c17_362] : memref<221xf32, #tpu.memory_space<smem>>
    %1289 = vector.broadcast %1288 : f32 to vector<16x16xf32>
    %1290 = arith.mulf %1289, %1287 : vector<16x16xf32>
    %1291 = arith.addf %1281, %1290 : vector<16x16xf32>
    %c42_363 = arith.constant 42 : index
    %1292 = memref.load %arg1[%c42_363] : memref<221xf32, #tpu.memory_space<smem>>
    %1293 = vector.broadcast %1292 : f32 to vector<16x16xf32>
    %1294 = arith.mulf %1293, %1287 : vector<16x16xf32>
    %1295 = arith.addf %1285, %1294 : vector<16x16xf32>
    %c0_364 = arith.constant 0 : index
    %c9_365 = arith.constant 9 : index
    %c3_366 = arith.constant 3 : index
    %1296 = vector.load %arg4[%c0_364, %c9_365, %c3_366] : memref<1x26x20xf32, #tpu.memory_space<vmem>>, vector<1x16x16xf32>
    %1297 = vector.shape_cast %1296 : vector<1x16x16xf32> to vector<16x16xf32>
    %c18_367 = arith.constant 18 : index
    %1298 = memref.load %arg1[%c18_367] : memref<221xf32, #tpu.memory_space<smem>>
    %1299 = vector.broadcast %1298 : f32 to vector<16x16xf32>
    %1300 = arith.mulf %1299, %1297 : vector<16x16xf32>
    %1301 = arith.addf %1291, %1300 : vector<16x16xf32>
    %c43_368 = arith.constant 43 : index
    %1302 = memref.load %arg1[%c43_368] : memref<221xf32, #tpu.memory_space<smem>>
    %1303 = vector.broadcast %1302 : f32 to vector<16x16xf32>
    %1304 = arith.mulf %1303, %1297 : vector<16x16xf32>
    %1305 = arith.addf %1295, %1304 : vector<16x16xf32>
    %c0_369 = arith.constant 0 : index
    %c9_370 = arith.constant 9 : index
    %c4_371 = arith.constant 4 : index
    %1306 = vector.load %arg4[%c0_369, %c9_370, %c4_371] : memref<1x26x20xf32, #tpu.memory_space<vmem>>, vector<1x16x16xf32>
    %1307 = vector.shape_cast %1306 : vector<1x16x16xf32> to vector<16x16xf32>
    %c19_372 = arith.constant 19 : index
    %1308 = memref.load %arg1[%c19_372] : memref<221xf32, #tpu.memory_space<smem>>
    %1309 = vector.broadcast %1308 : f32 to vector<16x16xf32>
    %1310 = arith.mulf %1309, %1307 : vector<16x16xf32>
    %1311 = arith.addf %1301, %1310 : vector<16x16xf32>
    %c44_373 = arith.constant 44 : index
    %1312 = memref.load %arg1[%c44_373] : memref<221xf32, #tpu.memory_space<smem>>
    %1313 = vector.broadcast %1312 : f32 to vector<16x16xf32>
    %1314 = arith.mulf %1313, %1307 : vector<16x16xf32>
    %1315 = arith.addf %1305, %1314 : vector<16x16xf32>
    %c0_374 = arith.constant 0 : index
    %c10_375 = arith.constant 10 : index
    %c0_376 = arith.constant 0 : index
    %1316 = vector.load %arg4[%c0_374, %c10_375, %c0_376] : memref<1x26x20xf32, #tpu.memory_space<vmem>>, vector<1x16x16xf32>
    %1317 = vector.shape_cast %1316 : vector<1x16x16xf32> to vector<16x16xf32>
    %c20_377 = arith.constant 20 : index
    %1318 = memref.load %arg1[%c20_377] : memref<221xf32, #tpu.memory_space<smem>>
    %1319 = vector.broadcast %1318 : f32 to vector<16x16xf32>
    %1320 = arith.mulf %1319, %1317 : vector<16x16xf32>
    %1321 = arith.addf %1311, %1320 : vector<16x16xf32>
    %c45_378 = arith.constant 45 : index
    %1322 = memref.load %arg1[%c45_378] : memref<221xf32, #tpu.memory_space<smem>>
    %1323 = vector.broadcast %1322 : f32 to vector<16x16xf32>
    %1324 = arith.mulf %1323, %1317 : vector<16x16xf32>
    %1325 = arith.addf %1315, %1324 : vector<16x16xf32>
    %c0_379 = arith.constant 0 : index
    %c10_380 = arith.constant 10 : index
    %c1_381 = arith.constant 1 : index
    %1326 = vector.load %arg4[%c0_379, %c10_380, %c1_381] : memref<1x26x20xf32, #tpu.memory_space<vmem>>, vector<1x16x16xf32>
    %1327 = vector.shape_cast %1326 : vector<1x16x16xf32> to vector<16x16xf32>
    %c21_382 = arith.constant 21 : index
    %1328 = memref.load %arg1[%c21_382] : memref<221xf32, #tpu.memory_space<smem>>
    %1329 = vector.broadcast %1328 : f32 to vector<16x16xf32>
    %1330 = arith.mulf %1329, %1327 : vector<16x16xf32>
    %1331 = arith.addf %1321, %1330 : vector<16x16xf32>
    %c46_383 = arith.constant 46 : index
    %1332 = memref.load %arg1[%c46_383] : memref<221xf32, #tpu.memory_space<smem>>
    %1333 = vector.broadcast %1332 : f32 to vector<16x16xf32>
    %1334 = arith.mulf %1333, %1327 : vector<16x16xf32>
    %1335 = arith.addf %1325, %1334 : vector<16x16xf32>
    %c0_384 = arith.constant 0 : index
    %c10_385 = arith.constant 10 : index
    %c2_386 = arith.constant 2 : index
    %1336 = vector.load %arg4[%c0_384, %c10_385, %c2_386] : memref<1x26x20xf32, #tpu.memory_space<vmem>>, vector<1x16x16xf32>
    %1337 = vector.shape_cast %1336 : vector<1x16x16xf32> to vector<16x16xf32>
    %c22_387 = arith.constant 22 : index
    %1338 = memref.load %arg1[%c22_387] : memref<221xf32, #tpu.memory_space<smem>>
    %1339 = vector.broadcast %1338 : f32 to vector<16x16xf32>
    %1340 = arith.mulf %1339, %1337 : vector<16x16xf32>
    %1341 = arith.addf %1331, %1340 : vector<16x16xf32>
    %c47_388 = arith.constant 47 : index
    %1342 = memref.load %arg1[%c47_388] : memref<221xf32, #tpu.memory_space<smem>>
    %1343 = vector.broadcast %1342 : f32 to vector<16x16xf32>
    %1344 = arith.mulf %1343, %1337 : vector<16x16xf32>
    %1345 = arith.addf %1335, %1344 : vector<16x16xf32>
    %c0_389 = arith.constant 0 : index
    %c10_390 = arith.constant 10 : index
    %c3_391 = arith.constant 3 : index
    %1346 = vector.load %arg4[%c0_389, %c10_390, %c3_391] : memref<1x26x20xf32, #tpu.memory_space<vmem>>, vector<1x16x16xf32>
    %1347 = vector.shape_cast %1346 : vector<1x16x16xf32> to vector<16x16xf32>
    %c23_392 = arith.constant 23 : index
    %1348 = memref.load %arg1[%c23_392] : memref<221xf32, #tpu.memory_space<smem>>
    %1349 = vector.broadcast %1348 : f32 to vector<16x16xf32>
    %1350 = arith.mulf %1349, %1347 : vector<16x16xf32>
    %1351 = arith.addf %1341, %1350 : vector<16x16xf32>
    %c48_393 = arith.constant 48 : index
    %1352 = memref.load %arg1[%c48_393] : memref<221xf32, #tpu.memory_space<smem>>
    %1353 = vector.broadcast %1352 : f32 to vector<16x16xf32>
    %1354 = arith.mulf %1353, %1347 : vector<16x16xf32>
    %1355 = arith.addf %1345, %1354 : vector<16x16xf32>
    %c0_394 = arith.constant 0 : index
    %c10_395 = arith.constant 10 : index
    %c4_396 = arith.constant 4 : index
    %1356 = vector.load %arg4[%c0_394, %c10_395, %c4_396] : memref<1x26x20xf32, #tpu.memory_space<vmem>>, vector<1x16x16xf32>
    %1357 = vector.shape_cast %1356 : vector<1x16x16xf32> to vector<16x16xf32>
    %c24_397 = arith.constant 24 : index
    %1358 = memref.load %arg1[%c24_397] : memref<221xf32, #tpu.memory_space<smem>>
    %1359 = vector.broadcast %1358 : f32 to vector<16x16xf32>
    %1360 = arith.mulf %1359, %1357 : vector<16x16xf32>
    %1361 = arith.addf %1351, %1360 : vector<16x16xf32>
    %c49_398 = arith.constant 49 : index
    %1362 = memref.load %arg1[%c49_398] : memref<221xf32, #tpu.memory_space<smem>>
    %1363 = vector.broadcast %1362 : f32 to vector<16x16xf32>
    %1364 = arith.mulf %1363, %1357 : vector<16x16xf32>
    %1365 = arith.addf %1355, %1364 : vector<16x16xf32>
    %1366 = math.tanh %1361 : vector<16x16xf32>
    %c0_399 = arith.constant 0 : index
    %c8_400 = arith.constant 8 : index
    %c1_401 = arith.constant 1 : index
    %1367 = vector.load %arg5[%c0_399, %c8_400, %c1_401] : memref<2x25x18xf32, #tpu.memory_space<vmem>>, vector<1x16x16xf32>
    %1368 = vector.shape_cast %1367 : vector<1x16x16xf32> to vector<16x16xf32>
    %1369 = vector.shape_cast %1366 : vector<16x16xf32> to vector<1x16x16xf32>
    tpu.vector_store %arg5[%c0_399, %c8_400, %c1_401], %1369 {strides = array<i32>} : memref<2x25x18xf32, #tpu.memory_space<vmem>>, vector<1x16x16xf32>,
    %1370 = math.tanh %1365 : vector<16x16xf32>
    %c1_402 = arith.constant 1 : index
    %c8_403 = arith.constant 8 : index
    %c1_404 = arith.constant 1 : index
    %1371 = vector.load %arg5[%c1_402, %c8_403, %c1_404] : memref<2x25x18xf32, #tpu.memory_space<vmem>>, vector<1x16x16xf32>
    %1372 = vector.shape_cast %1371 : vector<1x16x16xf32> to vector<16x16xf32>
    %1373 = vector.shape_cast %1370 : vector<16x16xf32> to vector<1x16x16xf32>
    tpu.vector_store %arg5[%c1_402, %c8_403, %c1_404], %1373 {strides = array<i32>} : memref<2x25x18xf32, #tpu.memory_space<vmem>>, vector<1x16x16xf32>,
    %c106_405 = arith.constant 106 : index
    %1374 = memref.load %arg1[%c106_405] : memref<221xf32, #tpu.memory_space<smem>>
    %1375 = vector.broadcast %1374 : f32 to vector<16x16xf32>
    %c107_406 = arith.constant 107 : index
    %1376 = memref.load %arg1[%c107_406] : memref<221xf32, #tpu.memory_space<smem>>
    %1377 = vector.broadcast %1376 : f32 to vector<16x16xf32>
    %c108_407 = arith.constant 108 : index
    %1378 = memref.load %arg1[%c108_407] : memref<221xf32, #tpu.memory_space<smem>>
    %1379 = vector.broadcast %1378 : f32 to vector<16x16xf32>
    %c0_408 = arith.constant 0 : index
    %c7_409 = arith.constant 7 : index
    %c0_410 = arith.constant 0 : index
    %1380 = vector.load %arg5[%c0_408, %c7_409, %c0_410] : memref<2x25x18xf32, #tpu.memory_space<vmem>>, vector<1x16x16xf32>
    %1381 = vector.shape_cast %1380 : vector<1x16x16xf32> to vector<16x16xf32>
    %c52_411 = arith.constant 52 : index
    %1382 = memref.load %arg1[%c52_411] : memref<221xf32, #tpu.memory_space<smem>>
    %1383 = vector.broadcast %1382 : f32 to vector<16x16xf32>
    %1384 = arith.mulf %1383, %1381 : vector<16x16xf32>
    %1385 = arith.addf %1375, %1384 : vector<16x16xf32>
    %c70_412 = arith.constant 70 : index
    %1386 = memref.load %arg1[%c70_412] : memref<221xf32, #tpu.memory_space<smem>>
    %1387 = vector.broadcast %1386 : f32 to vector<16x16xf32>
    %1388 = arith.mulf %1387, %1381 : vector<16x16xf32>
    %1389 = arith.addf %1377, %1388 : vector<16x16xf32>
    %c88_413 = arith.constant 88 : index
    %1390 = memref.load %arg1[%c88_413] : memref<221xf32, #tpu.memory_space<smem>>
    %1391 = vector.broadcast %1390 : f32 to vector<16x16xf32>
    %1392 = arith.mulf %1391, %1381 : vector<16x16xf32>
    %1393 = arith.addf %1379, %1392 : vector<16x16xf32>
    %c0_414 = arith.constant 0 : index
    %c7_415 = arith.constant 7 : index
    %c1_416 = arith.constant 1 : index
    %1394 = vector.load %arg5[%c0_414, %c7_415, %c1_416] : memref<2x25x18xf32, #tpu.memory_space<vmem>>, vector<1x16x16xf32>
    %1395 = vector.shape_cast %1394 : vector<1x16x16xf32> to vector<16x16xf32>
    %c53_417 = arith.constant 53 : index
    %1396 = memref.load %arg1[%c53_417] : memref<221xf32, #tpu.memory_space<smem>>
    %1397 = vector.broadcast %1396 : f32 to vector<16x16xf32>
    %1398 = arith.mulf %1397, %1395 : vector<16x16xf32>
    %1399 = arith.addf %1385, %1398 : vector<16x16xf32>
    %c71_418 = arith.constant 71 : index
    %1400 = memref.load %arg1[%c71_418] : memref<221xf32, #tpu.memory_space<smem>>
    %1401 = vector.broadcast %1400 : f32 to vector<16x16xf32>
    %1402 = arith.mulf %1401, %1395 : vector<16x16xf32>
    %1403 = arith.addf %1389, %1402 : vector<16x16xf32>
    %c89_419 = arith.constant 89 : index
    %1404 = memref.load %arg1[%c89_419] : memref<221xf32, #tpu.memory_space<smem>>
    %1405 = vector.broadcast %1404 : f32 to vector<16x16xf32>
    %1406 = arith.mulf %1405, %1395 : vector<16x16xf32>
    %1407 = arith.addf %1393, %1406 : vector<16x16xf32>
    %c0_420 = arith.constant 0 : index
    %c7_421 = arith.constant 7 : index
    %c2_422 = arith.constant 2 : index
    %1408 = vector.load %arg5[%c0_420, %c7_421, %c2_422] : memref<2x25x18xf32, #tpu.memory_space<vmem>>, vector<1x16x16xf32>
    %1409 = vector.shape_cast %1408 : vector<1x16x16xf32> to vector<16x16xf32>
    %c54_423 = arith.constant 54 : index
    %1410 = memref.load %arg1[%c54_423] : memref<221xf32, #tpu.memory_space<smem>>
    %1411 = vector.broadcast %1410 : f32 to vector<16x16xf32>
    %1412 = arith.mulf %1411, %1409 : vector<16x16xf32>
    %1413 = arith.addf %1399, %1412 : vector<16x16xf32>
    %c72_424 = arith.constant 72 : index
    %1414 = memref.load %arg1[%c72_424] : memref<221xf32, #tpu.memory_space<smem>>
    %1415 = vector.broadcast %1414 : f32 to vector<16x16xf32>
    %1416 = arith.mulf %1415, %1409 : vector<16x16xf32>
    %1417 = arith.addf %1403, %1416 : vector<16x16xf32>
    %c90_425 = arith.constant 90 : index
    %1418 = memref.load %arg1[%c90_425] : memref<221xf32, #tpu.memory_space<smem>>
    %1419 = vector.broadcast %1418 : f32 to vector<16x16xf32>
    %1420 = arith.mulf %1419, %1409 : vector<16x16xf32>
    %1421 = arith.addf %1407, %1420 : vector<16x16xf32>
    %c0_426 = arith.constant 0 : index
    %c8_427 = arith.constant 8 : index
    %c0_428 = arith.constant 0 : index
    %1422 = vector.load %arg5[%c0_426, %c8_427, %c0_428] : memref<2x25x18xf32, #tpu.memory_space<vmem>>, vector<1x16x16xf32>
    %1423 = vector.shape_cast %1422 : vector<1x16x16xf32> to vector<16x16xf32>
    %c55_429 = arith.constant 55 : index
    %1424 = memref.load %arg1[%c55_429] : memref<221xf32, #tpu.memory_space<smem>>
    %1425 = vector.broadcast %1424 : f32 to vector<16x16xf32>
    %1426 = arith.mulf %1425, %1423 : vector<16x16xf32>
    %1427 = arith.addf %1413, %1426 : vector<16x16xf32>
    %c73_430 = arith.constant 73 : index
    %1428 = memref.load %arg1[%c73_430] : memref<221xf32, #tpu.memory_space<smem>>
    %1429 = vector.broadcast %1428 : f32 to vector<16x16xf32>
    %1430 = arith.mulf %1429, %1423 : vector<16x16xf32>
    %1431 = arith.addf %1417, %1430 : vector<16x16xf32>
    %c91_431 = arith.constant 91 : index
    %1432 = memref.load %arg1[%c91_431] : memref<221xf32, #tpu.memory_space<smem>>
    %1433 = vector.broadcast %1432 : f32 to vector<16x16xf32>
    %1434 = arith.mulf %1433, %1423 : vector<16x16xf32>
    %1435 = arith.addf %1421, %1434 : vector<16x16xf32>
    %c0_432 = arith.constant 0 : index
    %c8_433 = arith.constant 8 : index
    %c1_434 = arith.constant 1 : index
    %1436 = vector.load %arg5[%c0_432, %c8_433, %c1_434] : memref<2x25x18xf32, #tpu.memory_space<vmem>>, vector<1x16x16xf32>
    %1437 = vector.shape_cast %1436 : vector<1x16x16xf32> to vector<16x16xf32>
    %c56_435 = arith.constant 56 : index
    %1438 = memref.load %arg1[%c56_435] : memref<221xf32, #tpu.memory_space<smem>>
    %1439 = vector.broadcast %1438 : f32 to vector<16x16xf32>
    %1440 = arith.mulf %1439, %1437 : vector<16x16xf32>
    %1441 = arith.addf %1427, %1440 : vector<16x16xf32>
    %c74_436 = arith.constant 74 : index
    %1442 = memref.load %arg1[%c74_436] : memref<221xf32, #tpu.memory_space<smem>>
    %1443 = vector.broadcast %1442 : f32 to vector<16x16xf32>
    %1444 = arith.mulf %1443, %1437 : vector<16x16xf32>
    %1445 = arith.addf %1431, %1444 : vector<16x16xf32>
    %c92_437 = arith.constant 92 : index
    %1446 = memref.load %arg1[%c92_437] : memref<221xf32, #tpu.memory_space<smem>>
    %1447 = vector.broadcast %1446 : f32 to vector<16x16xf32>
    %1448 = arith.mulf %1447, %1437 : vector<16x16xf32>
    %1449 = arith.addf %1435, %1448 : vector<16x16xf32>
    %c0_438 = arith.constant 0 : index
    %c8_439 = arith.constant 8 : index
    %c2_440 = arith.constant 2 : index
    %1450 = vector.load %arg5[%c0_438, %c8_439, %c2_440] : memref<2x25x18xf32, #tpu.memory_space<vmem>>, vector<1x16x16xf32>
    %1451 = vector.shape_cast %1450 : vector<1x16x16xf32> to vector<16x16xf32>
    %c57_441 = arith.constant 57 : index
    %1452 = memref.load %arg1[%c57_441] : memref<221xf32, #tpu.memory_space<smem>>
    %1453 = vector.broadcast %1452 : f32 to vector<16x16xf32>
    %1454 = arith.mulf %1453, %1451 : vector<16x16xf32>
    %1455 = arith.addf %1441, %1454 : vector<16x16xf32>
    %c75_442 = arith.constant 75 : index
    %1456 = memref.load %arg1[%c75_442] : memref<221xf32, #tpu.memory_space<smem>>
    %1457 = vector.broadcast %1456 : f32 to vector<16x16xf32>
    %1458 = arith.mulf %1457, %1451 : vector<16x16xf32>
    %1459 = arith.addf %1445, %1458 : vector<16x16xf32>
    %c93_443 = arith.constant 93 : index
    %1460 = memref.load %arg1[%c93_443] : memref<221xf32, #tpu.memory_space<smem>>
    %1461 = vector.broadcast %1460 : f32 to vector<16x16xf32>
    %1462 = arith.mulf %1461, %1451 : vector<16x16xf32>
    %1463 = arith.addf %1449, %1462 : vector<16x16xf32>
    %c0_444 = arith.constant 0 : index
    %c9_445 = arith.constant 9 : index
    %c0_446 = arith.constant 0 : index
    %1464 = vector.load %arg5[%c0_444, %c9_445, %c0_446] : memref<2x25x18xf32, #tpu.memory_space<vmem>>, vector<1x16x16xf32>
    %1465 = vector.shape_cast %1464 : vector<1x16x16xf32> to vector<16x16xf32>
    %c58_447 = arith.constant 58 : index
    %1466 = memref.load %arg1[%c58_447] : memref<221xf32, #tpu.memory_space<smem>>
    %1467 = vector.broadcast %1466 : f32 to vector<16x16xf32>
    %1468 = arith.mulf %1467, %1465 : vector<16x16xf32>
    %1469 = arith.addf %1455, %1468 : vector<16x16xf32>
    %c76_448 = arith.constant 76 : index
    %1470 = memref.load %arg1[%c76_448] : memref<221xf32, #tpu.memory_space<smem>>
    %1471 = vector.broadcast %1470 : f32 to vector<16x16xf32>
    %1472 = arith.mulf %1471, %1465 : vector<16x16xf32>
    %1473 = arith.addf %1459, %1472 : vector<16x16xf32>
    %c94_449 = arith.constant 94 : index
    %1474 = memref.load %arg1[%c94_449] : memref<221xf32, #tpu.memory_space<smem>>
    %1475 = vector.broadcast %1474 : f32 to vector<16x16xf32>
    %1476 = arith.mulf %1475, %1465 : vector<16x16xf32>
    %1477 = arith.addf %1463, %1476 : vector<16x16xf32>
    %c0_450 = arith.constant 0 : index
    %c9_451 = arith.constant 9 : index
    %c1_452 = arith.constant 1 : index
    %1478 = vector.load %arg5[%c0_450, %c9_451, %c1_452] : memref<2x25x18xf32, #tpu.memory_space<vmem>>, vector<1x16x16xf32>
    %1479 = vector.shape_cast %1478 : vector<1x16x16xf32> to vector<16x16xf32>
    %c59_453 = arith.constant 59 : index
    %1480 = memref.load %arg1[%c59_453] : memref<221xf32, #tpu.memory_space<smem>>
    %1481 = vector.broadcast %1480 : f32 to vector<16x16xf32>
    %1482 = arith.mulf %1481, %1479 : vector<16x16xf32>
    %1483 = arith.addf %1469, %1482 : vector<16x16xf32>
    %c77_454 = arith.constant 77 : index
    %1484 = memref.load %arg1[%c77_454] : memref<221xf32, #tpu.memory_space<smem>>
    %1485 = vector.broadcast %1484 : f32 to vector<16x16xf32>
    %1486 = arith.mulf %1485, %1479 : vector<16x16xf32>
    %1487 = arith.addf %1473, %1486 : vector<16x16xf32>
    %c95_455 = arith.constant 95 : index
    %1488 = memref.load %arg1[%c95_455] : memref<221xf32, #tpu.memory_space<smem>>
    %1489 = vector.broadcast %1488 : f32 to vector<16x16xf32>
    %1490 = arith.mulf %1489, %1479 : vector<16x16xf32>
    %1491 = arith.addf %1477, %1490 : vector<16x16xf32>
    %c0_456 = arith.constant 0 : index
    %c9_457 = arith.constant 9 : index
    %c2_458 = arith.constant 2 : index
    %1492 = vector.load %arg5[%c0_456, %c9_457, %c2_458] : memref<2x25x18xf32, #tpu.memory_space<vmem>>, vector<1x16x16xf32>
    %1493 = vector.shape_cast %1492 : vector<1x16x16xf32> to vector<16x16xf32>
    %c60_459 = arith.constant 60 : index
    %1494 = memref.load %arg1[%c60_459] : memref<221xf32, #tpu.memory_space<smem>>
    %1495 = vector.broadcast %1494 : f32 to vector<16x16xf32>
    %1496 = arith.mulf %1495, %1493 : vector<16x16xf32>
    %1497 = arith.addf %1483, %1496 : vector<16x16xf32>
    %c78_460 = arith.constant 78 : index
    %1498 = memref.load %arg1[%c78_460] : memref<221xf32, #tpu.memory_space<smem>>
    %1499 = vector.broadcast %1498 : f32 to vector<16x16xf32>
    %1500 = arith.mulf %1499, %1493 : vector<16x16xf32>
    %1501 = arith.addf %1487, %1500 : vector<16x16xf32>
    %c96_461 = arith.constant 96 : index
    %1502 = memref.load %arg1[%c96_461] : memref<221xf32, #tpu.memory_space<smem>>
    %1503 = vector.broadcast %1502 : f32 to vector<16x16xf32>
    %1504 = arith.mulf %1503, %1493 : vector<16x16xf32>
    %1505 = arith.addf %1491, %1504 : vector<16x16xf32>
    %c1_462 = arith.constant 1 : index
    %c7_463 = arith.constant 7 : index
    %c0_464 = arith.constant 0 : index
    %1506 = vector.load %arg5[%c1_462, %c7_463, %c0_464] : memref<2x25x18xf32, #tpu.memory_space<vmem>>, vector<1x16x16xf32>
    %1507 = vector.shape_cast %1506 : vector<1x16x16xf32> to vector<16x16xf32>
    %c61_465 = arith.constant 61 : index
    %1508 = memref.load %arg1[%c61_465] : memref<221xf32, #tpu.memory_space<smem>>
    %1509 = vector.broadcast %1508 : f32 to vector<16x16xf32>
    %1510 = arith.mulf %1509, %1507 : vector<16x16xf32>
    %1511 = arith.addf %1497, %1510 : vector<16x16xf32>
    %c79_466 = arith.constant 79 : index
    %1512 = memref.load %arg1[%c79_466] : memref<221xf32, #tpu.memory_space<smem>>
    %1513 = vector.broadcast %1512 : f32 to vector<16x16xf32>
    %1514 = arith.mulf %1513, %1507 : vector<16x16xf32>
    %1515 = arith.addf %1501, %1514 : vector<16x16xf32>
    %c97_467 = arith.constant 97 : index
    %1516 = memref.load %arg1[%c97_467] : memref<221xf32, #tpu.memory_space<smem>>
    %1517 = vector.broadcast %1516 : f32 to vector<16x16xf32>
    %1518 = arith.mulf %1517, %1507 : vector<16x16xf32>
    %1519 = arith.addf %1505, %1518 : vector<16x16xf32>
    %c1_468 = arith.constant 1 : index
    %c7_469 = arith.constant 7 : index
    %c1_470 = arith.constant 1 : index
    %1520 = vector.load %arg5[%c1_468, %c7_469, %c1_470] : memref<2x25x18xf32, #tpu.memory_space<vmem>>, vector<1x16x16xf32>
    %1521 = vector.shape_cast %1520 : vector<1x16x16xf32> to vector<16x16xf32>
    %c62_471 = arith.constant 62 : index
    %1522 = memref.load %arg1[%c62_471] : memref<221xf32, #tpu.memory_space<smem>>
    %1523 = vector.broadcast %1522 : f32 to vector<16x16xf32>
    %1524 = arith.mulf %1523, %1521 : vector<16x16xf32>
    %1525 = arith.addf %1511, %1524 : vector<16x16xf32>
    %c80_472 = arith.constant 80 : index
    %1526 = memref.load %arg1[%c80_472] : memref<221xf32, #tpu.memory_space<smem>>
    %1527 = vector.broadcast %1526 : f32 to vector<16x16xf32>
    %1528 = arith.mulf %1527, %1521 : vector<16x16xf32>
    %1529 = arith.addf %1515, %1528 : vector<16x16xf32>
    %c98_473 = arith.constant 98 : index
    %1530 = memref.load %arg1[%c98_473] : memref<221xf32, #tpu.memory_space<smem>>
    %1531 = vector.broadcast %1530 : f32 to vector<16x16xf32>
    %1532 = arith.mulf %1531, %1521 : vector<16x16xf32>
    %1533 = arith.addf %1519, %1532 : vector<16x16xf32>
    %c1_474 = arith.constant 1 : index
    %c7_475 = arith.constant 7 : index
    %c2_476 = arith.constant 2 : index
    %1534 = vector.load %arg5[%c1_474, %c7_475, %c2_476] : memref<2x25x18xf32, #tpu.memory_space<vmem>>, vector<1x16x16xf32>
    %1535 = vector.shape_cast %1534 : vector<1x16x16xf32> to vector<16x16xf32>
    %c63_477 = arith.constant 63 : index
    %1536 = memref.load %arg1[%c63_477] : memref<221xf32, #tpu.memory_space<smem>>
    %1537 = vector.broadcast %1536 : f32 to vector<16x16xf32>
    %1538 = arith.mulf %1537, %1535 : vector<16x16xf32>
    %1539 = arith.addf %1525, %1538 : vector<16x16xf32>
    %c81_478 = arith.constant 81 : index
    %1540 = memref.load %arg1[%c81_478] : memref<221xf32, #tpu.memory_space<smem>>
    %1541 = vector.broadcast %1540 : f32 to vector<16x16xf32>
    %1542 = arith.mulf %1541, %1535 : vector<16x16xf32>
    %1543 = arith.addf %1529, %1542 : vector<16x16xf32>
    %c99_479 = arith.constant 99 : index
    %1544 = memref.load %arg1[%c99_479] : memref<221xf32, #tpu.memory_space<smem>>
    %1545 = vector.broadcast %1544 : f32 to vector<16x16xf32>
    %1546 = arith.mulf %1545, %1535 : vector<16x16xf32>
    %1547 = arith.addf %1533, %1546 : vector<16x16xf32>
    %c1_480 = arith.constant 1 : index
    %c8_481 = arith.constant 8 : index
    %c0_482 = arith.constant 0 : index
    %1548 = vector.load %arg5[%c1_480, %c8_481, %c0_482] : memref<2x25x18xf32, #tpu.memory_space<vmem>>, vector<1x16x16xf32>
    %1549 = vector.shape_cast %1548 : vector<1x16x16xf32> to vector<16x16xf32>
    %c64_483 = arith.constant 64 : index
    %1550 = memref.load %arg1[%c64_483] : memref<221xf32, #tpu.memory_space<smem>>
    %1551 = vector.broadcast %1550 : f32 to vector<16x16xf32>
    %1552 = arith.mulf %1551, %1549 : vector<16x16xf32>
    %1553 = arith.addf %1539, %1552 : vector<16x16xf32>
    %c82_484 = arith.constant 82 : index
    %1554 = memref.load %arg1[%c82_484] : memref<221xf32, #tpu.memory_space<smem>>
    %1555 = vector.broadcast %1554 : f32 to vector<16x16xf32>
    %1556 = arith.mulf %1555, %1549 : vector<16x16xf32>
    %1557 = arith.addf %1543, %1556 : vector<16x16xf32>
    %c100_485 = arith.constant 100 : index
    %1558 = memref.load %arg1[%c100_485] : memref<221xf32, #tpu.memory_space<smem>>
    %1559 = vector.broadcast %1558 : f32 to vector<16x16xf32>
    %1560 = arith.mulf %1559, %1549 : vector<16x16xf32>
    %1561 = arith.addf %1547, %1560 : vector<16x16xf32>
    %c1_486 = arith.constant 1 : index
    %c8_487 = arith.constant 8 : index
    %c1_488 = arith.constant 1 : index
    %1562 = vector.load %arg5[%c1_486, %c8_487, %c1_488] : memref<2x25x18xf32, #tpu.memory_space<vmem>>, vector<1x16x16xf32>
    %1563 = vector.shape_cast %1562 : vector<1x16x16xf32> to vector<16x16xf32>
    %c65_489 = arith.constant 65 : index
    %1564 = memref.load %arg1[%c65_489] : memref<221xf32, #tpu.memory_space<smem>>
    %1565 = vector.broadcast %1564 : f32 to vector<16x16xf32>
    %1566 = arith.mulf %1565, %1563 : vector<16x16xf32>
    %1567 = arith.addf %1553, %1566 : vector<16x16xf32>
    %c83_490 = arith.constant 83 : index
    %1568 = memref.load %arg1[%c83_490] : memref<221xf32, #tpu.memory_space<smem>>
    %1569 = vector.broadcast %1568 : f32 to vector<16x16xf32>
    %1570 = arith.mulf %1569, %1563 : vector<16x16xf32>
    %1571 = arith.addf %1557, %1570 : vector<16x16xf32>
    %c101_491 = arith.constant 101 : index
    %1572 = memref.load %arg1[%c101_491] : memref<221xf32, #tpu.memory_space<smem>>
    %1573 = vector.broadcast %1572 : f32 to vector<16x16xf32>
    %1574 = arith.mulf %1573, %1563 : vector<16x16xf32>
    %1575 = arith.addf %1561, %1574 : vector<16x16xf32>
    %c1_492 = arith.constant 1 : index
    %c8_493 = arith.constant 8 : index
    %c2_494 = arith.constant 2 : index
    %1576 = vector.load %arg5[%c1_492, %c8_493, %c2_494] : memref<2x25x18xf32, #tpu.memory_space<vmem>>, vector<1x16x16xf32>
    %1577 = vector.shape_cast %1576 : vector<1x16x16xf32> to vector<16x16xf32>
    %c66_495 = arith.constant 66 : index
    %1578 = memref.load %arg1[%c66_495] : memref<221xf32, #tpu.memory_space<smem>>
    %1579 = vector.broadcast %1578 : f32 to vector<16x16xf32>
    %1580 = arith.mulf %1579, %1577 : vector<16x16xf32>
    %1581 = arith.addf %1567, %1580 : vector<16x16xf32>
    %c84_496 = arith.constant 84 : index
    %1582 = memref.load %arg1[%c84_496] : memref<221xf32, #tpu.memory_space<smem>>
    %1583 = vector.broadcast %1582 : f32 to vector<16x16xf32>
    %1584 = arith.mulf %1583, %1577 : vector<16x16xf32>
    %1585 = arith.addf %1571, %1584 : vector<16x16xf32>
    %c102_497 = arith.constant 102 : index
    %1586 = memref.load %arg1[%c102_497] : memref<221xf32, #tpu.memory_space<smem>>
    %1587 = vector.broadcast %1586 : f32 to vector<16x16xf32>
    %1588 = arith.mulf %1587, %1577 : vector<16x16xf32>
    %1589 = arith.addf %1575, %1588 : vector<16x16xf32>
    %c1_498 = arith.constant 1 : index
    %c9_499 = arith.constant 9 : index
    %c0_500 = arith.constant 0 : index
    %1590 = vector.load %arg5[%c1_498, %c9_499, %c0_500] : memref<2x25x18xf32, #tpu.memory_space<vmem>>, vector<1x16x16xf32>
    %1591 = vector.shape_cast %1590 : vector<1x16x16xf32> to vector<16x16xf32>
    %c67_501 = arith.constant 67 : index
    %1592 = memref.load %arg1[%c67_501] : memref<221xf32, #tpu.memory_space<smem>>
    %1593 = vector.broadcast %1592 : f32 to vector<16x16xf32>
    %1594 = arith.mulf %1593, %1591 : vector<16x16xf32>
    %1595 = arith.addf %1581, %1594 : vector<16x16xf32>
    %c85_502 = arith.constant 85 : index
    %1596 = memref.load %arg1[%c85_502] : memref<221xf32, #tpu.memory_space<smem>>
    %1597 = vector.broadcast %1596 : f32 to vector<16x16xf32>
    %1598 = arith.mulf %1597, %1591 : vector<16x16xf32>
    %1599 = arith.addf %1585, %1598 : vector<16x16xf32>
    %c103_503 = arith.constant 103 : index
    %1600 = memref.load %arg1[%c103_503] : memref<221xf32, #tpu.memory_space<smem>>
    %1601 = vector.broadcast %1600 : f32 to vector<16x16xf32>
    %1602 = arith.mulf %1601, %1591 : vector<16x16xf32>
    %1603 = arith.addf %1589, %1602 : vector<16x16xf32>
    %c1_504 = arith.constant 1 : index
    %c9_505 = arith.constant 9 : index
    %c1_506 = arith.constant 1 : index
    %1604 = vector.load %arg5[%c1_504, %c9_505, %c1_506] : memref<2x25x18xf32, #tpu.memory_space<vmem>>, vector<1x16x16xf32>
    %1605 = vector.shape_cast %1604 : vector<1x16x16xf32> to vector<16x16xf32>
    %c68_507 = arith.constant 68 : index
    %1606 = memref.load %arg1[%c68_507] : memref<221xf32, #tpu.memory_space<smem>>
    %1607 = vector.broadcast %1606 : f32 to vector<16x16xf32>
    %1608 = arith.mulf %1607, %1605 : vector<16x16xf32>
    %1609 = arith.addf %1595, %1608 : vector<16x16xf32>
    %c86_508 = arith.constant 86 : index
    %1610 = memref.load %arg1[%c86_508] : memref<221xf32, #tpu.memory_space<smem>>
    %1611 = vector.broadcast %1610 : f32 to vector<16x16xf32>
    %1612 = arith.mulf %1611, %1605 : vector<16x16xf32>
    %1613 = arith.addf %1599, %1612 : vector<16x16xf32>
    %c104_509 = arith.constant 104 : index
    %1614 = memref.load %arg1[%c104_509] : memref<221xf32, #tpu.memory_space<smem>>
    %1615 = vector.broadcast %1614 : f32 to vector<16x16xf32>
    %1616 = arith.mulf %1615, %1605 : vector<16x16xf32>
    %1617 = arith.addf %1603, %1616 : vector<16x16xf32>
    %c1_510 = arith.constant 1 : index
    %c9_511 = arith.constant 9 : index
    %c2_512 = arith.constant 2 : index
    %1618 = vector.load %arg5[%c1_510, %c9_511, %c2_512] : memref<2x25x18xf32, #tpu.memory_space<vmem>>, vector<1x16x16xf32>
    %1619 = vector.shape_cast %1618 : vector<1x16x16xf32> to vector<16x16xf32>
    %c69_513 = arith.constant 69 : index
    %1620 = memref.load %arg1[%c69_513] : memref<221xf32, #tpu.memory_space<smem>>
    %1621 = vector.broadcast %1620 : f32 to vector<16x16xf32>
    %1622 = arith.mulf %1621, %1619 : vector<16x16xf32>
    %1623 = arith.addf %1609, %1622 : vector<16x16xf32>
    %c87_514 = arith.constant 87 : index
    %1624 = memref.load %arg1[%c87_514] : memref<221xf32, #tpu.memory_space<smem>>
    %1625 = vector.broadcast %1624 : f32 to vector<16x16xf32>
    %1626 = arith.mulf %1625, %1619 : vector<16x16xf32>
    %1627 = arith.addf %1613, %1626 : vector<16x16xf32>
    %c105_515 = arith.constant 105 : index
    %1628 = memref.load %arg1[%c105_515] : memref<221xf32, #tpu.memory_space<smem>>
    %1629 = vector.broadcast %1628 : f32 to vector<16x16xf32>
    %1630 = arith.mulf %1629, %1619 : vector<16x16xf32>
    %1631 = arith.addf %1617, %1630 : vector<16x16xf32>
    %1632 = math.tanh %1623 : vector<16x16xf32>
    %c0_516 = arith.constant 0 : index
    %c8_517 = arith.constant 8 : index
    %c1_518 = arith.constant 1 : index
    %1633 = vector.load %arg6[%c0_516, %c8_517, %c1_518] : memref<3x25x18xf32, #tpu.memory_space<vmem>>, vector<1x16x16xf32>
    %1634 = vector.shape_cast %1633 : vector<1x16x16xf32> to vector<16x16xf32>
    %1635 = vector.shape_cast %1632 : vector<16x16xf32> to vector<1x16x16xf32>
    tpu.vector_store %arg6[%c0_516, %c8_517, %c1_518], %1635 {strides = array<i32>} : memref<3x25x18xf32, #tpu.memory_space<vmem>>, vector<1x16x16xf32>,
    %1636 = math.tanh %1627 : vector<16x16xf32>
    %c1_519 = arith.constant 1 : index
    %c8_520 = arith.constant 8 : index
    %c1_521 = arith.constant 1 : index
    %1637 = vector.load %arg6[%c1_519, %c8_520, %c1_521] : memref<3x25x18xf32, #tpu.memory_space<vmem>>, vector<1x16x16xf32>
    %1638 = vector.shape_cast %1637 : vector<1x16x16xf32> to vector<16x16xf32>
    %1639 = vector.shape_cast %1636 : vector<16x16xf32> to vector<1x16x16xf32>
    tpu.vector_store %arg6[%c1_519, %c8_520, %c1_521], %1639 {strides = array<i32>} : memref<3x25x18xf32, #tpu.memory_space<vmem>>, vector<1x16x16xf32>,
    %1640 = math.tanh %1631 : vector<16x16xf32>
    %c2_522 = arith.constant 2 : index
    %c8_523 = arith.constant 8 : index
    %c1_524 = arith.constant 1 : index
    %1641 = vector.load %arg6[%c2_522, %c8_523, %c1_524] : memref<3x25x18xf32, #tpu.memory_space<vmem>>, vector<1x16x16xf32>
    %1642 = vector.shape_cast %1641 : vector<1x16x16xf32> to vector<16x16xf32>
    %1643 = vector.shape_cast %1640 : vector<16x16xf32> to vector<1x16x16xf32>
    tpu.vector_store %arg6[%c2_522, %c8_523, %c1_524], %1643 {strides = array<i32>} : memref<3x25x18xf32, #tpu.memory_space<vmem>>, vector<1x16x16xf32>,
    %c217_525 = arith.constant 217 : index
    %1644 = memref.load %arg1[%c217_525] : memref<221xf32, #tpu.memory_space<smem>>
    %1645 = vector.broadcast %1644 : f32 to vector<16x16xf32>
    %c218_526 = arith.constant 218 : index
    %1646 = memref.load %arg1[%c218_526] : memref<221xf32, #tpu.memory_space<smem>>
    %1647 = vector.broadcast %1646 : f32 to vector<16x16xf32>
    %c219_527 = arith.constant 219 : index
    %1648 = memref.load %arg1[%c219_527] : memref<221xf32, #tpu.memory_space<smem>>
    %1649 = vector.broadcast %1648 : f32 to vector<16x16xf32>
    %c220_528 = arith.constant 220 : index
    %1650 = memref.load %arg1[%c220_528] : memref<221xf32, #tpu.memory_space<smem>>
    %1651 = vector.broadcast %1650 : f32 to vector<16x16xf32>
    %c0_529 = arith.constant 0 : index
    %c7_530 = arith.constant 7 : index
    %c0_531 = arith.constant 0 : index
    %1652 = vector.load %arg6[%c0_529, %c7_530, %c0_531] : memref<3x25x18xf32, #tpu.memory_space<vmem>>, vector<1x16x16xf32>
    %1653 = vector.shape_cast %1652 : vector<1x16x16xf32> to vector<16x16xf32>
    %c109_532 = arith.constant 109 : index
    %1654 = memref.load %arg1[%c109_532] : memref<221xf32, #tpu.memory_space<smem>>
    %1655 = vector.broadcast %1654 : f32 to vector<16x16xf32>
    %1656 = arith.mulf %1655, %1653 : vector<16x16xf32>
    %1657 = arith.addf %1645, %1656 : vector<16x16xf32>
    %c136_533 = arith.constant 136 : index
    %1658 = memref.load %arg1[%c136_533] : memref<221xf32, #tpu.memory_space<smem>>
    %1659 = vector.broadcast %1658 : f32 to vector<16x16xf32>
    %1660 = arith.mulf %1659, %1653 : vector<16x16xf32>
    %1661 = arith.addf %1647, %1660 : vector<16x16xf32>
    %c163_534 = arith.constant 163 : index
    %1662 = memref.load %arg1[%c163_534] : memref<221xf32, #tpu.memory_space<smem>>
    %1663 = vector.broadcast %1662 : f32 to vector<16x16xf32>
    %1664 = arith.mulf %1663, %1653 : vector<16x16xf32>
    %1665 = arith.addf %1649, %1664 : vector<16x16xf32>
    %c190_535 = arith.constant 190 : index
    %1666 = memref.load %arg1[%c190_535] : memref<221xf32, #tpu.memory_space<smem>>
    %1667 = vector.broadcast %1666 : f32 to vector<16x16xf32>
    %1668 = arith.mulf %1667, %1653 : vector<16x16xf32>
    %1669 = arith.addf %1651, %1668 : vector<16x16xf32>
    %c0_536 = arith.constant 0 : index
    %c7_537 = arith.constant 7 : index
    %c1_538 = arith.constant 1 : index
    %1670 = vector.load %arg6[%c0_536, %c7_537, %c1_538] : memref<3x25x18xf32, #tpu.memory_space<vmem>>, vector<1x16x16xf32>
    %1671 = vector.shape_cast %1670 : vector<1x16x16xf32> to vector<16x16xf32>
    %c110_539 = arith.constant 110 : index
    %1672 = memref.load %arg1[%c110_539] : memref<221xf32, #tpu.memory_space<smem>>
    %1673 = vector.broadcast %1672 : f32 to vector<16x16xf32>
    %1674 = arith.mulf %1673, %1671 : vector<16x16xf32>
    %1675 = arith.addf %1657, %1674 : vector<16x16xf32>
    %c137_540 = arith.constant 137 : index
    %1676 = memref.load %arg1[%c137_540] : memref<221xf32, #tpu.memory_space<smem>>
    %1677 = vector.broadcast %1676 : f32 to vector<16x16xf32>
    %1678 = arith.mulf %1677, %1671 : vector<16x16xf32>
    %1679 = arith.addf %1661, %1678 : vector<16x16xf32>
    %c164_541 = arith.constant 164 : index
    %1680 = memref.load %arg1[%c164_541] : memref<221xf32, #tpu.memory_space<smem>>
    %1681 = vector.broadcast %1680 : f32 to vector<16x16xf32>
    %1682 = arith.mulf %1681, %1671 : vector<16x16xf32>
    %1683 = arith.addf %1665, %1682 : vector<16x16xf32>
    %c191_542 = arith.constant 191 : index
    %1684 = memref.load %arg1[%c191_542] : memref<221xf32, #tpu.memory_space<smem>>
    %1685 = vector.broadcast %1684 : f32 to vector<16x16xf32>
    %1686 = arith.mulf %1685, %1671 : vector<16x16xf32>
    %1687 = arith.addf %1669, %1686 : vector<16x16xf32>
    %c0_543 = arith.constant 0 : index
    %c7_544 = arith.constant 7 : index
    %c2_545 = arith.constant 2 : index
    %1688 = vector.load %arg6[%c0_543, %c7_544, %c2_545] : memref<3x25x18xf32, #tpu.memory_space<vmem>>, vector<1x16x16xf32>
    %1689 = vector.shape_cast %1688 : vector<1x16x16xf32> to vector<16x16xf32>
    %c111_546 = arith.constant 111 : index
    %1690 = memref.load %arg1[%c111_546] : memref<221xf32, #tpu.memory_space<smem>>
    %1691 = vector.broadcast %1690 : f32 to vector<16x16xf32>
    %1692 = arith.mulf %1691, %1689 : vector<16x16xf32>
    %1693 = arith.addf %1675, %1692 : vector<16x16xf32>
    %c138_547 = arith.constant 138 : index
    %1694 = memref.load %arg1[%c138_547] : memref<221xf32, #tpu.memory_space<smem>>
    %1695 = vector.broadcast %1694 : f32 to vector<16x16xf32>
    %1696 = arith.mulf %1695, %1689 : vector<16x16xf32>
    %1697 = arith.addf %1679, %1696 : vector<16x16xf32>
    %c165_548 = arith.constant 165 : index
    %1698 = memref.load %arg1[%c165_548] : memref<221xf32, #tpu.memory_space<smem>>
    %1699 = vector.broadcast %1698 : f32 to vector<16x16xf32>
    %1700 = arith.mulf %1699, %1689 : vector<16x16xf32>
    %1701 = arith.addf %1683, %1700 : vector<16x16xf32>
    %c192_549 = arith.constant 192 : index
    %1702 = memref.load %arg1[%c192_549] : memref<221xf32, #tpu.memory_space<smem>>
    %1703 = vector.broadcast %1702 : f32 to vector<16x16xf32>
    %1704 = arith.mulf %1703, %1689 : vector<16x16xf32>
    %1705 = arith.addf %1687, %1704 : vector<16x16xf32>
    %c0_550 = arith.constant 0 : index
    %c8_551 = arith.constant 8 : index
    %c0_552 = arith.constant 0 : index
    %1706 = vector.load %arg6[%c0_550, %c8_551, %c0_552] : memref<3x25x18xf32, #tpu.memory_space<vmem>>, vector<1x16x16xf32>
    %1707 = vector.shape_cast %1706 : vector<1x16x16xf32> to vector<16x16xf32>
    %c112_553 = arith.constant 112 : index
    %1708 = memref.load %arg1[%c112_553] : memref<221xf32, #tpu.memory_space<smem>>
    %1709 = vector.broadcast %1708 : f32 to vector<16x16xf32>
    %1710 = arith.mulf %1709, %1707 : vector<16x16xf32>
    %1711 = arith.addf %1693, %1710 : vector<16x16xf32>
    %c139_554 = arith.constant 139 : index
    %1712 = memref.load %arg1[%c139_554] : memref<221xf32, #tpu.memory_space<smem>>
    %1713 = vector.broadcast %1712 : f32 to vector<16x16xf32>
    %1714 = arith.mulf %1713, %1707 : vector<16x16xf32>
    %1715 = arith.addf %1697, %1714 : vector<16x16xf32>
    %c166_555 = arith.constant 166 : index
    %1716 = memref.load %arg1[%c166_555] : memref<221xf32, #tpu.memory_space<smem>>
    %1717 = vector.broadcast %1716 : f32 to vector<16x16xf32>
    %1718 = arith.mulf %1717, %1707 : vector<16x16xf32>
    %1719 = arith.addf %1701, %1718 : vector<16x16xf32>
    %c193_556 = arith.constant 193 : index
    %1720 = memref.load %arg1[%c193_556] : memref<221xf32, #tpu.memory_space<smem>>
    %1721 = vector.broadcast %1720 : f32 to vector<16x16xf32>
    %1722 = arith.mulf %1721, %1707 : vector<16x16xf32>
    %1723 = arith.addf %1705, %1722 : vector<16x16xf32>
    %c0_557 = arith.constant 0 : index
    %c8_558 = arith.constant 8 : index
    %c1_559 = arith.constant 1 : index
    %1724 = vector.load %arg6[%c0_557, %c8_558, %c1_559] : memref<3x25x18xf32, #tpu.memory_space<vmem>>, vector<1x16x16xf32>
    %1725 = vector.shape_cast %1724 : vector<1x16x16xf32> to vector<16x16xf32>
    %c113_560 = arith.constant 113 : index
    %1726 = memref.load %arg1[%c113_560] : memref<221xf32, #tpu.memory_space<smem>>
    %1727 = vector.broadcast %1726 : f32 to vector<16x16xf32>
    %1728 = arith.mulf %1727, %1725 : vector<16x16xf32>
    %1729 = arith.addf %1711, %1728 : vector<16x16xf32>
    %c140_561 = arith.constant 140 : index
    %1730 = memref.load %arg1[%c140_561] : memref<221xf32, #tpu.memory_space<smem>>
    %1731 = vector.broadcast %1730 : f32 to vector<16x16xf32>
    %1732 = arith.mulf %1731, %1725 : vector<16x16xf32>
    %1733 = arith.addf %1715, %1732 : vector<16x16xf32>
    %c167_562 = arith.constant 167 : index
    %1734 = memref.load %arg1[%c167_562] : memref<221xf32, #tpu.memory_space<smem>>
    %1735 = vector.broadcast %1734 : f32 to vector<16x16xf32>
    %1736 = arith.mulf %1735, %1725 : vector<16x16xf32>
    %1737 = arith.addf %1719, %1736 : vector<16x16xf32>
    %c194_563 = arith.constant 194 : index
    %1738 = memref.load %arg1[%c194_563] : memref<221xf32, #tpu.memory_space<smem>>
    %1739 = vector.broadcast %1738 : f32 to vector<16x16xf32>
    %1740 = arith.mulf %1739, %1725 : vector<16x16xf32>
    %1741 = arith.addf %1723, %1740 : vector<16x16xf32>
    %c0_564 = arith.constant 0 : index
    %c8_565 = arith.constant 8 : index
    %c2_566 = arith.constant 2 : index
    %1742 = vector.load %arg6[%c0_564, %c8_565, %c2_566] : memref<3x25x18xf32, #tpu.memory_space<vmem>>, vector<1x16x16xf32>
    %1743 = vector.shape_cast %1742 : vector<1x16x16xf32> to vector<16x16xf32>
    %c114_567 = arith.constant 114 : index
    %1744 = memref.load %arg1[%c114_567] : memref<221xf32, #tpu.memory_space<smem>>
    %1745 = vector.broadcast %1744 : f32 to vector<16x16xf32>
    %1746 = arith.mulf %1745, %1743 : vector<16x16xf32>
    %1747 = arith.addf %1729, %1746 : vector<16x16xf32>
    %c141_568 = arith.constant 141 : index
    %1748 = memref.load %arg1[%c141_568] : memref<221xf32, #tpu.memory_space<smem>>
    %1749 = vector.broadcast %1748 : f32 to vector<16x16xf32>
    %1750 = arith.mulf %1749, %1743 : vector<16x16xf32>
    %1751 = arith.addf %1733, %1750 : vector<16x16xf32>
    %c168_569 = arith.constant 168 : index
    %1752 = memref.load %arg1[%c168_569] : memref<221xf32, #tpu.memory_space<smem>>
    %1753 = vector.broadcast %1752 : f32 to vector<16x16xf32>
    %1754 = arith.mulf %1753, %1743 : vector<16x16xf32>
    %1755 = arith.addf %1737, %1754 : vector<16x16xf32>
    %c195_570 = arith.constant 195 : index
    %1756 = memref.load %arg1[%c195_570] : memref<221xf32, #tpu.memory_space<smem>>
    %1757 = vector.broadcast %1756 : f32 to vector<16x16xf32>
    %1758 = arith.mulf %1757, %1743 : vector<16x16xf32>
    %1759 = arith.addf %1741, %1758 : vector<16x16xf32>
    %c0_571 = arith.constant 0 : index
    %c9_572 = arith.constant 9 : index
    %c0_573 = arith.constant 0 : index
    %1760 = vector.load %arg6[%c0_571, %c9_572, %c0_573] : memref<3x25x18xf32, #tpu.memory_space<vmem>>, vector<1x16x16xf32>
    %1761 = vector.shape_cast %1760 : vector<1x16x16xf32> to vector<16x16xf32>
    %c115_574 = arith.constant 115 : index
    %1762 = memref.load %arg1[%c115_574] : memref<221xf32, #tpu.memory_space<smem>>
    %1763 = vector.broadcast %1762 : f32 to vector<16x16xf32>
    %1764 = arith.mulf %1763, %1761 : vector<16x16xf32>
    %1765 = arith.addf %1747, %1764 : vector<16x16xf32>
    %c142_575 = arith.constant 142 : index
    %1766 = memref.load %arg1[%c142_575] : memref<221xf32, #tpu.memory_space<smem>>
    %1767 = vector.broadcast %1766 : f32 to vector<16x16xf32>
    %1768 = arith.mulf %1767, %1761 : vector<16x16xf32>
    %1769 = arith.addf %1751, %1768 : vector<16x16xf32>
    %c169_576 = arith.constant 169 : index
    %1770 = memref.load %arg1[%c169_576] : memref<221xf32, #tpu.memory_space<smem>>
    %1771 = vector.broadcast %1770 : f32 to vector<16x16xf32>
    %1772 = arith.mulf %1771, %1761 : vector<16x16xf32>
    %1773 = arith.addf %1755, %1772 : vector<16x16xf32>
    %c196_577 = arith.constant 196 : index
    %1774 = memref.load %arg1[%c196_577] : memref<221xf32, #tpu.memory_space<smem>>
    %1775 = vector.broadcast %1774 : f32 to vector<16x16xf32>
    %1776 = arith.mulf %1775, %1761 : vector<16x16xf32>
    %1777 = arith.addf %1759, %1776 : vector<16x16xf32>
    %c0_578 = arith.constant 0 : index
    %c9_579 = arith.constant 9 : index
    %c1_580 = arith.constant 1 : index
    %1778 = vector.load %arg6[%c0_578, %c9_579, %c1_580] : memref<3x25x18xf32, #tpu.memory_space<vmem>>, vector<1x16x16xf32>
    %1779 = vector.shape_cast %1778 : vector<1x16x16xf32> to vector<16x16xf32>
    %c116_581 = arith.constant 116 : index
    %1780 = memref.load %arg1[%c116_581] : memref<221xf32, #tpu.memory_space<smem>>
    %1781 = vector.broadcast %1780 : f32 to vector<16x16xf32>
    %1782 = arith.mulf %1781, %1779 : vector<16x16xf32>
    %1783 = arith.addf %1765, %1782 : vector<16x16xf32>
    %c143_582 = arith.constant 143 : index
    %1784 = memref.load %arg1[%c143_582] : memref<221xf32, #tpu.memory_space<smem>>
    %1785 = vector.broadcast %1784 : f32 to vector<16x16xf32>
    %1786 = arith.mulf %1785, %1779 : vector<16x16xf32>
    %1787 = arith.addf %1769, %1786 : vector<16x16xf32>
    %c170_583 = arith.constant 170 : index
    %1788 = memref.load %arg1[%c170_583] : memref<221xf32, #tpu.memory_space<smem>>
    %1789 = vector.broadcast %1788 : f32 to vector<16x16xf32>
    %1790 = arith.mulf %1789, %1779 : vector<16x16xf32>
    %1791 = arith.addf %1773, %1790 : vector<16x16xf32>
    %c197_584 = arith.constant 197 : index
    %1792 = memref.load %arg1[%c197_584] : memref<221xf32, #tpu.memory_space<smem>>
    %1793 = vector.broadcast %1792 : f32 to vector<16x16xf32>
    %1794 = arith.mulf %1793, %1779 : vector<16x16xf32>
    %1795 = arith.addf %1777, %1794 : vector<16x16xf32>
    %c0_585 = arith.constant 0 : index
    %c9_586 = arith.constant 9 : index
    %c2_587 = arith.constant 2 : index
    %1796 = vector.load %arg6[%c0_585, %c9_586, %c2_587] : memref<3x25x18xf32, #tpu.memory_space<vmem>>, vector<1x16x16xf32>
    %1797 = vector.shape_cast %1796 : vector<1x16x16xf32> to vector<16x16xf32>
    %c117_588 = arith.constant 117 : index
    %1798 = memref.load %arg1[%c117_588] : memref<221xf32, #tpu.memory_space<smem>>
    %1799 = vector.broadcast %1798 : f32 to vector<16x16xf32>
    %1800 = arith.mulf %1799, %1797 : vector<16x16xf32>
    %1801 = arith.addf %1783, %1800 : vector<16x16xf32>
    %c144_589 = arith.constant 144 : index
    %1802 = memref.load %arg1[%c144_589] : memref<221xf32, #tpu.memory_space<smem>>
    %1803 = vector.broadcast %1802 : f32 to vector<16x16xf32>
    %1804 = arith.mulf %1803, %1797 : vector<16x16xf32>
    %1805 = arith.addf %1787, %1804 : vector<16x16xf32>
    %c171_590 = arith.constant 171 : index
    %1806 = memref.load %arg1[%c171_590] : memref<221xf32, #tpu.memory_space<smem>>
    %1807 = vector.broadcast %1806 : f32 to vector<16x16xf32>
    %1808 = arith.mulf %1807, %1797 : vector<16x16xf32>
    %1809 = arith.addf %1791, %1808 : vector<16x16xf32>
    %c198_591 = arith.constant 198 : index
    %1810 = memref.load %arg1[%c198_591] : memref<221xf32, #tpu.memory_space<smem>>
    %1811 = vector.broadcast %1810 : f32 to vector<16x16xf32>
    %1812 = arith.mulf %1811, %1797 : vector<16x16xf32>
    %1813 = arith.addf %1795, %1812 : vector<16x16xf32>
    %c1_592 = arith.constant 1 : index
    %c7_593 = arith.constant 7 : index
    %c0_594 = arith.constant 0 : index
    %1814 = vector.load %arg6[%c1_592, %c7_593, %c0_594] : memref<3x25x18xf32, #tpu.memory_space<vmem>>, vector<1x16x16xf32>
    %1815 = vector.shape_cast %1814 : vector<1x16x16xf32> to vector<16x16xf32>
    %c118_595 = arith.constant 118 : index
    %1816 = memref.load %arg1[%c118_595] : memref<221xf32, #tpu.memory_space<smem>>
    %1817 = vector.broadcast %1816 : f32 to vector<16x16xf32>
    %1818 = arith.mulf %1817, %1815 : vector<16x16xf32>
    %1819 = arith.addf %1801, %1818 : vector<16x16xf32>
    %c145_596 = arith.constant 145 : index
    %1820 = memref.load %arg1[%c145_596] : memref<221xf32, #tpu.memory_space<smem>>
    %1821 = vector.broadcast %1820 : f32 to vector<16x16xf32>
    %1822 = arith.mulf %1821, %1815 : vector<16x16xf32>
    %1823 = arith.addf %1805, %1822 : vector<16x16xf32>
    %c172_597 = arith.constant 172 : index
    %1824 = memref.load %arg1[%c172_597] : memref<221xf32, #tpu.memory_space<smem>>
    %1825 = vector.broadcast %1824 : f32 to vector<16x16xf32>
    %1826 = arith.mulf %1825, %1815 : vector<16x16xf32>
    %1827 = arith.addf %1809, %1826 : vector<16x16xf32>
    %c199_598 = arith.constant 199 : index
    %1828 = memref.load %arg1[%c199_598] : memref<221xf32, #tpu.memory_space<smem>>
    %1829 = vector.broadcast %1828 : f32 to vector<16x16xf32>
    %1830 = arith.mulf %1829, %1815 : vector<16x16xf32>
    %1831 = arith.addf %1813, %1830 : vector<16x16xf32>
    %c1_599 = arith.constant 1 : index
    %c7_600 = arith.constant 7 : index
    %c1_601 = arith.constant 1 : index
    %1832 = vector.load %arg6[%c1_599, %c7_600, %c1_601] : memref<3x25x18xf32, #tpu.memory_space<vmem>>, vector<1x16x16xf32>
    %1833 = vector.shape_cast %1832 : vector<1x16x16xf32> to vector<16x16xf32>
    %c119_602 = arith.constant 119 : index
    %1834 = memref.load %arg1[%c119_602] : memref<221xf32, #tpu.memory_space<smem>>
    %1835 = vector.broadcast %1834 : f32 to vector<16x16xf32>
    %1836 = arith.mulf %1835, %1833 : vector<16x16xf32>
    %1837 = arith.addf %1819, %1836 : vector<16x16xf32>
    %c146_603 = arith.constant 146 : index
    %1838 = memref.load %arg1[%c146_603] : memref<221xf32, #tpu.memory_space<smem>>
    %1839 = vector.broadcast %1838 : f32 to vector<16x16xf32>
    %1840 = arith.mulf %1839, %1833 : vector<16x16xf32>
    %1841 = arith.addf %1823, %1840 : vector<16x16xf32>
    %c173_604 = arith.constant 173 : index
    %1842 = memref.load %arg1[%c173_604] : memref<221xf32, #tpu.memory_space<smem>>
    %1843 = vector.broadcast %1842 : f32 to vector<16x16xf32>
    %1844 = arith.mulf %1843, %1833 : vector<16x16xf32>
    %1845 = arith.addf %1827, %1844 : vector<16x16xf32>
    %c200_605 = arith.constant 200 : index
    %1846 = memref.load %arg1[%c200_605] : memref<221xf32, #tpu.memory_space<smem>>
    %1847 = vector.broadcast %1846 : f32 to vector<16x16xf32>
    %1848 = arith.mulf %1847, %1833 : vector<16x16xf32>
    %1849 = arith.addf %1831, %1848 : vector<16x16xf32>
    %c1_606 = arith.constant 1 : index
    %c7_607 = arith.constant 7 : index
    %c2_608 = arith.constant 2 : index
    %1850 = vector.load %arg6[%c1_606, %c7_607, %c2_608] : memref<3x25x18xf32, #tpu.memory_space<vmem>>, vector<1x16x16xf32>
    %1851 = vector.shape_cast %1850 : vector<1x16x16xf32> to vector<16x16xf32>
    %c120_609 = arith.constant 120 : index
    %1852 = memref.load %arg1[%c120_609] : memref<221xf32, #tpu.memory_space<smem>>
    %1853 = vector.broadcast %1852 : f32 to vector<16x16xf32>
    %1854 = arith.mulf %1853, %1851 : vector<16x16xf32>
    %1855 = arith.addf %1837, %1854 : vector<16x16xf32>
    %c147_610 = arith.constant 147 : index
    %1856 = memref.load %arg1[%c147_610] : memref<221xf32, #tpu.memory_space<smem>>
    %1857 = vector.broadcast %1856 : f32 to vector<16x16xf32>
    %1858 = arith.mulf %1857, %1851 : vector<16x16xf32>
    %1859 = arith.addf %1841, %1858 : vector<16x16xf32>
    %c174_611 = arith.constant 174 : index
    %1860 = memref.load %arg1[%c174_611] : memref<221xf32, #tpu.memory_space<smem>>
    %1861 = vector.broadcast %1860 : f32 to vector<16x16xf32>
    %1862 = arith.mulf %1861, %1851 : vector<16x16xf32>
    %1863 = arith.addf %1845, %1862 : vector<16x16xf32>
    %c201_612 = arith.constant 201 : index
    %1864 = memref.load %arg1[%c201_612] : memref<221xf32, #tpu.memory_space<smem>>
    %1865 = vector.broadcast %1864 : f32 to vector<16x16xf32>
    %1866 = arith.mulf %1865, %1851 : vector<16x16xf32>
    %1867 = arith.addf %1849, %1866 : vector<16x16xf32>
    %c1_613 = arith.constant 1 : index
    %c8_614 = arith.constant 8 : index
    %c0_615 = arith.constant 0 : index
    %1868 = vector.load %arg6[%c1_613, %c8_614, %c0_615] : memref<3x25x18xf32, #tpu.memory_space<vmem>>, vector<1x16x16xf32>
    %1869 = vector.shape_cast %1868 : vector<1x16x16xf32> to vector<16x16xf32>
    %c121_616 = arith.constant 121 : index
    %1870 = memref.load %arg1[%c121_616] : memref<221xf32, #tpu.memory_space<smem>>
    %1871 = vector.broadcast %1870 : f32 to vector<16x16xf32>
    %1872 = arith.mulf %1871, %1869 : vector<16x16xf32>
    %1873 = arith.addf %1855, %1872 : vector<16x16xf32>
    %c148_617 = arith.constant 148 : index
    %1874 = memref.load %arg1[%c148_617] : memref<221xf32, #tpu.memory_space<smem>>
    %1875 = vector.broadcast %1874 : f32 to vector<16x16xf32>
    %1876 = arith.mulf %1875, %1869 : vector<16x16xf32>
    %1877 = arith.addf %1859, %1876 : vector<16x16xf32>
    %c175_618 = arith.constant 175 : index
    %1878 = memref.load %arg1[%c175_618] : memref<221xf32, #tpu.memory_space<smem>>
    %1879 = vector.broadcast %1878 : f32 to vector<16x16xf32>
    %1880 = arith.mulf %1879, %1869 : vector<16x16xf32>
    %1881 = arith.addf %1863, %1880 : vector<16x16xf32>
    %c202_619 = arith.constant 202 : index
    %1882 = memref.load %arg1[%c202_619] : memref<221xf32, #tpu.memory_space<smem>>
    %1883 = vector.broadcast %1882 : f32 to vector<16x16xf32>
    %1884 = arith.mulf %1883, %1869 : vector<16x16xf32>
    %1885 = arith.addf %1867, %1884 : vector<16x16xf32>
    %c1_620 = arith.constant 1 : index
    %c8_621 = arith.constant 8 : index
    %c1_622 = arith.constant 1 : index
    %1886 = vector.load %arg6[%c1_620, %c8_621, %c1_622] : memref<3x25x18xf32, #tpu.memory_space<vmem>>, vector<1x16x16xf32>
    %1887 = vector.shape_cast %1886 : vector<1x16x16xf32> to vector<16x16xf32>
    %c122_623 = arith.constant 122 : index
    %1888 = memref.load %arg1[%c122_623] : memref<221xf32, #tpu.memory_space<smem>>
    %1889 = vector.broadcast %1888 : f32 to vector<16x16xf32>
    %1890 = arith.mulf %1889, %1887 : vector<16x16xf32>
    %1891 = arith.addf %1873, %1890 : vector<16x16xf32>
    %c149_624 = arith.constant 149 : index
    %1892 = memref.load %arg1[%c149_624] : memref<221xf32, #tpu.memory_space<smem>>
    %1893 = vector.broadcast %1892 : f32 to vector<16x16xf32>
    %1894 = arith.mulf %1893, %1887 : vector<16x16xf32>
    %1895 = arith.addf %1877, %1894 : vector<16x16xf32>
    %c176_625 = arith.constant 176 : index
    %1896 = memref.load %arg1[%c176_625] : memref<221xf32, #tpu.memory_space<smem>>
    %1897 = vector.broadcast %1896 : f32 to vector<16x16xf32>
    %1898 = arith.mulf %1897, %1887 : vector<16x16xf32>
    %1899 = arith.addf %1881, %1898 : vector<16x16xf32>
    %c203_626 = arith.constant 203 : index
    %1900 = memref.load %arg1[%c203_626] : memref<221xf32, #tpu.memory_space<smem>>
    %1901 = vector.broadcast %1900 : f32 to vector<16x16xf32>
    %1902 = arith.mulf %1901, %1887 : vector<16x16xf32>
    %1903 = arith.addf %1885, %1902 : vector<16x16xf32>
    %c1_627 = arith.constant 1 : index
    %c8_628 = arith.constant 8 : index
    %c2_629 = arith.constant 2 : index
    %1904 = vector.load %arg6[%c1_627, %c8_628, %c2_629] : memref<3x25x18xf32, #tpu.memory_space<vmem>>, vector<1x16x16xf32>
    %1905 = vector.shape_cast %1904 : vector<1x16x16xf32> to vector<16x16xf32>
    %c123_630 = arith.constant 123 : index
    %1906 = memref.load %arg1[%c123_630] : memref<221xf32, #tpu.memory_space<smem>>
    %1907 = vector.broadcast %1906 : f32 to vector<16x16xf32>
    %1908 = arith.mulf %1907, %1905 : vector<16x16xf32>
    %1909 = arith.addf %1891, %1908 : vector<16x16xf32>
    %c150_631 = arith.constant 150 : index
    %1910 = memref.load %arg1[%c150_631] : memref<221xf32, #tpu.memory_space<smem>>
    %1911 = vector.broadcast %1910 : f32 to vector<16x16xf32>
    %1912 = arith.mulf %1911, %1905 : vector<16x16xf32>
    %1913 = arith.addf %1895, %1912 : vector<16x16xf32>
    %c177_632 = arith.constant 177 : index
    %1914 = memref.load %arg1[%c177_632] : memref<221xf32, #tpu.memory_space<smem>>
    %1915 = vector.broadcast %1914 : f32 to vector<16x16xf32>
    %1916 = arith.mulf %1915, %1905 : vector<16x16xf32>
    %1917 = arith.addf %1899, %1916 : vector<16x16xf32>
    %c204_633 = arith.constant 204 : index
    %1918 = memref.load %arg1[%c204_633] : memref<221xf32, #tpu.memory_space<smem>>
    %1919 = vector.broadcast %1918 : f32 to vector<16x16xf32>
    %1920 = arith.mulf %1919, %1905 : vector<16x16xf32>
    %1921 = arith.addf %1903, %1920 : vector<16x16xf32>
    %c1_634 = arith.constant 1 : index
    %c9_635 = arith.constant 9 : index
    %c0_636 = arith.constant 0 : index
    %1922 = vector.load %arg6[%c1_634, %c9_635, %c0_636] : memref<3x25x18xf32, #tpu.memory_space<vmem>>, vector<1x16x16xf32>
    %1923 = vector.shape_cast %1922 : vector<1x16x16xf32> to vector<16x16xf32>
    %c124_637 = arith.constant 124 : index
    %1924 = memref.load %arg1[%c124_637] : memref<221xf32, #tpu.memory_space<smem>>
    %1925 = vector.broadcast %1924 : f32 to vector<16x16xf32>
    %1926 = arith.mulf %1925, %1923 : vector<16x16xf32>
    %1927 = arith.addf %1909, %1926 : vector<16x16xf32>
    %c151_638 = arith.constant 151 : index
    %1928 = memref.load %arg1[%c151_638] : memref<221xf32, #tpu.memory_space<smem>>
    %1929 = vector.broadcast %1928 : f32 to vector<16x16xf32>
    %1930 = arith.mulf %1929, %1923 : vector<16x16xf32>
    %1931 = arith.addf %1913, %1930 : vector<16x16xf32>
    %c178_639 = arith.constant 178 : index
    %1932 = memref.load %arg1[%c178_639] : memref<221xf32, #tpu.memory_space<smem>>
    %1933 = vector.broadcast %1932 : f32 to vector<16x16xf32>
    %1934 = arith.mulf %1933, %1923 : vector<16x16xf32>
    %1935 = arith.addf %1917, %1934 : vector<16x16xf32>
    %c205_640 = arith.constant 205 : index
    %1936 = memref.load %arg1[%c205_640] : memref<221xf32, #tpu.memory_space<smem>>
    %1937 = vector.broadcast %1936 : f32 to vector<16x16xf32>
    %1938 = arith.mulf %1937, %1923 : vector<16x16xf32>
    %1939 = arith.addf %1921, %1938 : vector<16x16xf32>
    %c1_641 = arith.constant 1 : index
    %c9_642 = arith.constant 9 : index
    %c1_643 = arith.constant 1 : index
    %1940 = vector.load %arg6[%c1_641, %c9_642, %c1_643] : memref<3x25x18xf32, #tpu.memory_space<vmem>>, vector<1x16x16xf32>
    %1941 = vector.shape_cast %1940 : vector<1x16x16xf32> to vector<16x16xf32>
    %c125_644 = arith.constant 125 : index
    %1942 = memref.load %arg1[%c125_644] : memref<221xf32, #tpu.memory_space<smem>>
    %1943 = vector.broadcast %1942 : f32 to vector<16x16xf32>
    %1944 = arith.mulf %1943, %1941 : vector<16x16xf32>
    %1945 = arith.addf %1927, %1944 : vector<16x16xf32>
    %c152_645 = arith.constant 152 : index
    %1946 = memref.load %arg1[%c152_645] : memref<221xf32, #tpu.memory_space<smem>>
    %1947 = vector.broadcast %1946 : f32 to vector<16x16xf32>
    %1948 = arith.mulf %1947, %1941 : vector<16x16xf32>
    %1949 = arith.addf %1931, %1948 : vector<16x16xf32>
    %c179_646 = arith.constant 179 : index
    %1950 = memref.load %arg1[%c179_646] : memref<221xf32, #tpu.memory_space<smem>>
    %1951 = vector.broadcast %1950 : f32 to vector<16x16xf32>
    %1952 = arith.mulf %1951, %1941 : vector<16x16xf32>
    %1953 = arith.addf %1935, %1952 : vector<16x16xf32>
    %c206_647 = arith.constant 206 : index
    %1954 = memref.load %arg1[%c206_647] : memref<221xf32, #tpu.memory_space<smem>>
    %1955 = vector.broadcast %1954 : f32 to vector<16x16xf32>
    %1956 = arith.mulf %1955, %1941 : vector<16x16xf32>
    %1957 = arith.addf %1939, %1956 : vector<16x16xf32>
    %c1_648 = arith.constant 1 : index
    %c9_649 = arith.constant 9 : index
    %c2_650 = arith.constant 2 : index
    %1958 = vector.load %arg6[%c1_648, %c9_649, %c2_650] : memref<3x25x18xf32, #tpu.memory_space<vmem>>, vector<1x16x16xf32>
    %1959 = vector.shape_cast %1958 : vector<1x16x16xf32> to vector<16x16xf32>
    %c126_651 = arith.constant 126 : index
    %1960 = memref.load %arg1[%c126_651] : memref<221xf32, #tpu.memory_space<smem>>
    %1961 = vector.broadcast %1960 : f32 to vector<16x16xf32>
    %1962 = arith.mulf %1961, %1959 : vector<16x16xf32>
    %1963 = arith.addf %1945, %1962 : vector<16x16xf32>
    %c153_652 = arith.constant 153 : index
    %1964 = memref.load %arg1[%c153_652] : memref<221xf32, #tpu.memory_space<smem>>
    %1965 = vector.broadcast %1964 : f32 to vector<16x16xf32>
    %1966 = arith.mulf %1965, %1959 : vector<16x16xf32>
    %1967 = arith.addf %1949, %1966 : vector<16x16xf32>
    %c180_653 = arith.constant 180 : index
    %1968 = memref.load %arg1[%c180_653] : memref<221xf32, #tpu.memory_space<smem>>
    %1969 = vector.broadcast %1968 : f32 to vector<16x16xf32>
    %1970 = arith.mulf %1969, %1959 : vector<16x16xf32>
    %1971 = arith.addf %1953, %1970 : vector<16x16xf32>
    %c207_654 = arith.constant 207 : index
    %1972 = memref.load %arg1[%c207_654] : memref<221xf32, #tpu.memory_space<smem>>
    %1973 = vector.broadcast %1972 : f32 to vector<16x16xf32>
    %1974 = arith.mulf %1973, %1959 : vector<16x16xf32>
    %1975 = arith.addf %1957, %1974 : vector<16x16xf32>
    %c2_655 = arith.constant 2 : index
    %c7_656 = arith.constant 7 : index
    %c0_657 = arith.constant 0 : index
    %1976 = vector.load %arg6[%c2_655, %c7_656, %c0_657] : memref<3x25x18xf32, #tpu.memory_space<vmem>>, vector<1x16x16xf32>
    %1977 = vector.shape_cast %1976 : vector<1x16x16xf32> to vector<16x16xf32>
    %c127_658 = arith.constant 127 : index
    %1978 = memref.load %arg1[%c127_658] : memref<221xf32, #tpu.memory_space<smem>>
    %1979 = vector.broadcast %1978 : f32 to vector<16x16xf32>
    %1980 = arith.mulf %1979, %1977 : vector<16x16xf32>
    %1981 = arith.addf %1963, %1980 : vector<16x16xf32>
    %c154_659 = arith.constant 154 : index
    %1982 = memref.load %arg1[%c154_659] : memref<221xf32, #tpu.memory_space<smem>>
    %1983 = vector.broadcast %1982 : f32 to vector<16x16xf32>
    %1984 = arith.mulf %1983, %1977 : vector<16x16xf32>
    %1985 = arith.addf %1967, %1984 : vector<16x16xf32>
    %c181_660 = arith.constant 181 : index
    %1986 = memref.load %arg1[%c181_660] : memref<221xf32, #tpu.memory_space<smem>>
    %1987 = vector.broadcast %1986 : f32 to vector<16x16xf32>
    %1988 = arith.mulf %1987, %1977 : vector<16x16xf32>
    %1989 = arith.addf %1971, %1988 : vector<16x16xf32>
    %c208_661 = arith.constant 208 : index
    %1990 = memref.load %arg1[%c208_661] : memref<221xf32, #tpu.memory_space<smem>>
    %1991 = vector.broadcast %1990 : f32 to vector<16x16xf32>
    %1992 = arith.mulf %1991, %1977 : vector<16x16xf32>
    %1993 = arith.addf %1975, %1992 : vector<16x16xf32>
    %c2_662 = arith.constant 2 : index
    %c7_663 = arith.constant 7 : index
    %c1_664 = arith.constant 1 : index
    %1994 = vector.load %arg6[%c2_662, %c7_663, %c1_664] : memref<3x25x18xf32, #tpu.memory_space<vmem>>, vector<1x16x16xf32>
    %1995 = vector.shape_cast %1994 : vector<1x16x16xf32> to vector<16x16xf32>
    %c128_665 = arith.constant 128 : index
    %1996 = memref.load %arg1[%c128_665] : memref<221xf32, #tpu.memory_space<smem>>
    %1997 = vector.broadcast %1996 : f32 to vector<16x16xf32>
    %1998 = arith.mulf %1997, %1995 : vector<16x16xf32>
    %1999 = arith.addf %1981, %1998 : vector<16x16xf32>
    %c155_666 = arith.constant 155 : index
    %2000 = memref.load %arg1[%c155_666] : memref<221xf32, #tpu.memory_space<smem>>
    %2001 = vector.broadcast %2000 : f32 to vector<16x16xf32>
    %2002 = arith.mulf %2001, %1995 : vector<16x16xf32>
    %2003 = arith.addf %1985, %2002 : vector<16x16xf32>
    %c182_667 = arith.constant 182 : index
    %2004 = memref.load %arg1[%c182_667] : memref<221xf32, #tpu.memory_space<smem>>
    %2005 = vector.broadcast %2004 : f32 to vector<16x16xf32>
    %2006 = arith.mulf %2005, %1995 : vector<16x16xf32>
    %2007 = arith.addf %1989, %2006 : vector<16x16xf32>
    %c209_668 = arith.constant 209 : index
    %2008 = memref.load %arg1[%c209_668] : memref<221xf32, #tpu.memory_space<smem>>
    %2009 = vector.broadcast %2008 : f32 to vector<16x16xf32>
    %2010 = arith.mulf %2009, %1995 : vector<16x16xf32>
    %2011 = arith.addf %1993, %2010 : vector<16x16xf32>
    %c2_669 = arith.constant 2 : index
    %c7_670 = arith.constant 7 : index
    %c2_671 = arith.constant 2 : index
    %2012 = vector.load %arg6[%c2_669, %c7_670, %c2_671] : memref<3x25x18xf32, #tpu.memory_space<vmem>>, vector<1x16x16xf32>
    %2013 = vector.shape_cast %2012 : vector<1x16x16xf32> to vector<16x16xf32>
    %c129_672 = arith.constant 129 : index
    %2014 = memref.load %arg1[%c129_672] : memref<221xf32, #tpu.memory_space<smem>>
    %2015 = vector.broadcast %2014 : f32 to vector<16x16xf32>
    %2016 = arith.mulf %2015, %2013 : vector<16x16xf32>
    %2017 = arith.addf %1999, %2016 : vector<16x16xf32>
    %c156_673 = arith.constant 156 : index
    %2018 = memref.load %arg1[%c156_673] : memref<221xf32, #tpu.memory_space<smem>>
    %2019 = vector.broadcast %2018 : f32 to vector<16x16xf32>
    %2020 = arith.mulf %2019, %2013 : vector<16x16xf32>
    %2021 = arith.addf %2003, %2020 : vector<16x16xf32>
    %c183_674 = arith.constant 183 : index
    %2022 = memref.load %arg1[%c183_674] : memref<221xf32, #tpu.memory_space<smem>>
    %2023 = vector.broadcast %2022 : f32 to vector<16x16xf32>
    %2024 = arith.mulf %2023, %2013 : vector<16x16xf32>
    %2025 = arith.addf %2007, %2024 : vector<16x16xf32>
    %c210_675 = arith.constant 210 : index
    %2026 = memref.load %arg1[%c210_675] : memref<221xf32, #tpu.memory_space<smem>>
    %2027 = vector.broadcast %2026 : f32 to vector<16x16xf32>
    %2028 = arith.mulf %2027, %2013 : vector<16x16xf32>
    %2029 = arith.addf %2011, %2028 : vector<16x16xf32>
    %c2_676 = arith.constant 2 : index
    %c8_677 = arith.constant 8 : index
    %c0_678 = arith.constant 0 : index
    %2030 = vector.load %arg6[%c2_676, %c8_677, %c0_678] : memref<3x25x18xf32, #tpu.memory_space<vmem>>, vector<1x16x16xf32>
    %2031 = vector.shape_cast %2030 : vector<1x16x16xf32> to vector<16x16xf32>
    %c130_679 = arith.constant 130 : index
    %2032 = memref.load %arg1[%c130_679] : memref<221xf32, #tpu.memory_space<smem>>
    %2033 = vector.broadcast %2032 : f32 to vector<16x16xf32>
    %2034 = arith.mulf %2033, %2031 : vector<16x16xf32>
    %2035 = arith.addf %2017, %2034 : vector<16x16xf32>
    %c157_680 = arith.constant 157 : index
    %2036 = memref.load %arg1[%c157_680] : memref<221xf32, #tpu.memory_space<smem>>
    %2037 = vector.broadcast %2036 : f32 to vector<16x16xf32>
    %2038 = arith.mulf %2037, %2031 : vector<16x16xf32>
    %2039 = arith.addf %2021, %2038 : vector<16x16xf32>
    %c184_681 = arith.constant 184 : index
    %2040 = memref.load %arg1[%c184_681] : memref<221xf32, #tpu.memory_space<smem>>
    %2041 = vector.broadcast %2040 : f32 to vector<16x16xf32>
    %2042 = arith.mulf %2041, %2031 : vector<16x16xf32>
    %2043 = arith.addf %2025, %2042 : vector<16x16xf32>
    %c211_682 = arith.constant 211 : index
    %2044 = memref.load %arg1[%c211_682] : memref<221xf32, #tpu.memory_space<smem>>
    %2045 = vector.broadcast %2044 : f32 to vector<16x16xf32>
    %2046 = arith.mulf %2045, %2031 : vector<16x16xf32>
    %2047 = arith.addf %2029, %2046 : vector<16x16xf32>
    %c2_683 = arith.constant 2 : index
    %c8_684 = arith.constant 8 : index
    %c1_685 = arith.constant 1 : index
    %2048 = vector.load %arg6[%c2_683, %c8_684, %c1_685] : memref<3x25x18xf32, #tpu.memory_space<vmem>>, vector<1x16x16xf32>
    %2049 = vector.shape_cast %2048 : vector<1x16x16xf32> to vector<16x16xf32>
    %c131_686 = arith.constant 131 : index
    %2050 = memref.load %arg1[%c131_686] : memref<221xf32, #tpu.memory_space<smem>>
    %2051 = vector.broadcast %2050 : f32 to vector<16x16xf32>
    %2052 = arith.mulf %2051, %2049 : vector<16x16xf32>
    %2053 = arith.addf %2035, %2052 : vector<16x16xf32>
    %c158_687 = arith.constant 158 : index
    %2054 = memref.load %arg1[%c158_687] : memref<221xf32, #tpu.memory_space<smem>>
    %2055 = vector.broadcast %2054 : f32 to vector<16x16xf32>
    %2056 = arith.mulf %2055, %2049 : vector<16x16xf32>
    %2057 = arith.addf %2039, %2056 : vector<16x16xf32>
    %c185_688 = arith.constant 185 : index
    %2058 = memref.load %arg1[%c185_688] : memref<221xf32, #tpu.memory_space<smem>>
    %2059 = vector.broadcast %2058 : f32 to vector<16x16xf32>
    %2060 = arith.mulf %2059, %2049 : vector<16x16xf32>
    %2061 = arith.addf %2043, %2060 : vector<16x16xf32>
    %c212_689 = arith.constant 212 : index
    %2062 = memref.load %arg1[%c212_689] : memref<221xf32, #tpu.memory_space<smem>>
    %2063 = vector.broadcast %2062 : f32 to vector<16x16xf32>
    %2064 = arith.mulf %2063, %2049 : vector<16x16xf32>
    %2065 = arith.addf %2047, %2064 : vector<16x16xf32>
    %c2_690 = arith.constant 2 : index
    %c8_691 = arith.constant 8 : index
    %c2_692 = arith.constant 2 : index
    %2066 = vector.load %arg6[%c2_690, %c8_691, %c2_692] : memref<3x25x18xf32, #tpu.memory_space<vmem>>, vector<1x16x16xf32>
    %2067 = vector.shape_cast %2066 : vector<1x16x16xf32> to vector<16x16xf32>
    %c132_693 = arith.constant 132 : index
    %2068 = memref.load %arg1[%c132_693] : memref<221xf32, #tpu.memory_space<smem>>
    %2069 = vector.broadcast %2068 : f32 to vector<16x16xf32>
    %2070 = arith.mulf %2069, %2067 : vector<16x16xf32>
    %2071 = arith.addf %2053, %2070 : vector<16x16xf32>
    %c159_694 = arith.constant 159 : index
    %2072 = memref.load %arg1[%c159_694] : memref<221xf32, #tpu.memory_space<smem>>
    %2073 = vector.broadcast %2072 : f32 to vector<16x16xf32>
    %2074 = arith.mulf %2073, %2067 : vector<16x16xf32>
    %2075 = arith.addf %2057, %2074 : vector<16x16xf32>
    %c186_695 = arith.constant 186 : index
    %2076 = memref.load %arg1[%c186_695] : memref<221xf32, #tpu.memory_space<smem>>
    %2077 = vector.broadcast %2076 : f32 to vector<16x16xf32>
    %2078 = arith.mulf %2077, %2067 : vector<16x16xf32>
    %2079 = arith.addf %2061, %2078 : vector<16x16xf32>
    %c213_696 = arith.constant 213 : index
    %2080 = memref.load %arg1[%c213_696] : memref<221xf32, #tpu.memory_space<smem>>
    %2081 = vector.broadcast %2080 : f32 to vector<16x16xf32>
    %2082 = arith.mulf %2081, %2067 : vector<16x16xf32>
    %2083 = arith.addf %2065, %2082 : vector<16x16xf32>
    %c2_697 = arith.constant 2 : index
    %c9_698 = arith.constant 9 : index
    %c0_699 = arith.constant 0 : index
    %2084 = vector.load %arg6[%c2_697, %c9_698, %c0_699] : memref<3x25x18xf32, #tpu.memory_space<vmem>>, vector<1x16x16xf32>
    %2085 = vector.shape_cast %2084 : vector<1x16x16xf32> to vector<16x16xf32>
    %c133_700 = arith.constant 133 : index
    %2086 = memref.load %arg1[%c133_700] : memref<221xf32, #tpu.memory_space<smem>>
    %2087 = vector.broadcast %2086 : f32 to vector<16x16xf32>
    %2088 = arith.mulf %2087, %2085 : vector<16x16xf32>
    %2089 = arith.addf %2071, %2088 : vector<16x16xf32>
    %c160_701 = arith.constant 160 : index
    %2090 = memref.load %arg1[%c160_701] : memref<221xf32, #tpu.memory_space<smem>>
    %2091 = vector.broadcast %2090 : f32 to vector<16x16xf32>
    %2092 = arith.mulf %2091, %2085 : vector<16x16xf32>
    %2093 = arith.addf %2075, %2092 : vector<16x16xf32>
    %c187_702 = arith.constant 187 : index
    %2094 = memref.load %arg1[%c187_702] : memref<221xf32, #tpu.memory_space<smem>>
    %2095 = vector.broadcast %2094 : f32 to vector<16x16xf32>
    %2096 = arith.mulf %2095, %2085 : vector<16x16xf32>
    %2097 = arith.addf %2079, %2096 : vector<16x16xf32>
    %c214_703 = arith.constant 214 : index
    %2098 = memref.load %arg1[%c214_703] : memref<221xf32, #tpu.memory_space<smem>>
    %2099 = vector.broadcast %2098 : f32 to vector<16x16xf32>
    %2100 = arith.mulf %2099, %2085 : vector<16x16xf32>
    %2101 = arith.addf %2083, %2100 : vector<16x16xf32>
    %c2_704 = arith.constant 2 : index
    %c9_705 = arith.constant 9 : index
    %c1_706 = arith.constant 1 : index
    %2102 = vector.load %arg6[%c2_704, %c9_705, %c1_706] : memref<3x25x18xf32, #tpu.memory_space<vmem>>, vector<1x16x16xf32>
    %2103 = vector.shape_cast %2102 : vector<1x16x16xf32> to vector<16x16xf32>
    %c134_707 = arith.constant 134 : index
    %2104 = memref.load %arg1[%c134_707] : memref<221xf32, #tpu.memory_space<smem>>
    %2105 = vector.broadcast %2104 : f32 to vector<16x16xf32>
    %2106 = arith.mulf %2105, %2103 : vector<16x16xf32>
    %2107 = arith.addf %2089, %2106 : vector<16x16xf32>
    %c161_708 = arith.constant 161 : index
    %2108 = memref.load %arg1[%c161_708] : memref<221xf32, #tpu.memory_space<smem>>
    %2109 = vector.broadcast %2108 : f32 to vector<16x16xf32>
    %2110 = arith.mulf %2109, %2103 : vector<16x16xf32>
    %2111 = arith.addf %2093, %2110 : vector<16x16xf32>
    %c188_709 = arith.constant 188 : index
    %2112 = memref.load %arg1[%c188_709] : memref<221xf32, #tpu.memory_space<smem>>
    %2113 = vector.broadcast %2112 : f32 to vector<16x16xf32>
    %2114 = arith.mulf %2113, %2103 : vector<16x16xf32>
    %2115 = arith.addf %2097, %2114 : vector<16x16xf32>
    %c215_710 = arith.constant 215 : index
    %2116 = memref.load %arg1[%c215_710] : memref<221xf32, #tpu.memory_space<smem>>
    %2117 = vector.broadcast %2116 : f32 to vector<16x16xf32>
    %2118 = arith.mulf %2117, %2103 : vector<16x16xf32>
    %2119 = arith.addf %2101, %2118 : vector<16x16xf32>
    %c2_711 = arith.constant 2 : index
    %c9_712 = arith.constant 9 : index
    %c2_713 = arith.constant 2 : index
    %2120 = vector.load %arg6[%c2_711, %c9_712, %c2_713] : memref<3x25x18xf32, #tpu.memory_space<vmem>>, vector<1x16x16xf32>
    %2121 = vector.shape_cast %2120 : vector<1x16x16xf32> to vector<16x16xf32>
    %c135_714 = arith.constant 135 : index
    %2122 = memref.load %arg1[%c135_714] : memref<221xf32, #tpu.memory_space<smem>>
    %2123 = vector.broadcast %2122 : f32 to vector<16x16xf32>
    %2124 = arith.mulf %2123, %2121 : vector<16x16xf32>
    %2125 = arith.addf %2107, %2124 : vector<16x16xf32>
    %c162_715 = arith.constant 162 : index
    %2126 = memref.load %arg1[%c162_715] : memref<221xf32, #tpu.memory_space<smem>>
    %2127 = vector.broadcast %2126 : f32 to vector<16x16xf32>
    %2128 = arith.mulf %2127, %2121 : vector<16x16xf32>
    %2129 = arith.addf %2111, %2128 : vector<16x16xf32>
    %c189_716 = arith.constant 189 : index
    %2130 = memref.load %arg1[%c189_716] : memref<221xf32, #tpu.memory_space<smem>>
    %2131 = vector.broadcast %2130 : f32 to vector<16x16xf32>
    %2132 = arith.mulf %2131, %2121 : vector<16x16xf32>
    %2133 = arith.addf %2115, %2132 : vector<16x16xf32>
    %c216_717 = arith.constant 216 : index
    %2134 = memref.load %arg1[%c216_717] : memref<221xf32, #tpu.memory_space<smem>>
    %2135 = vector.broadcast %2134 : f32 to vector<16x16xf32>
    %2136 = arith.mulf %2135, %2121 : vector<16x16xf32>
    %2137 = arith.addf %2119, %2136 : vector<16x16xf32>
    %cst_718 = arith.constant 0.000000e+00 : f32
    %2138 = vector.broadcast %cst_718 : f32 to vector<32x32xf32>
    %cst_719 = arith.constant 0.000000e+00 : f32
    %2139 = vector.broadcast %cst_719 : f32 to vector<16x32xf32>
    %2140 = arith.negf %2125 : vector<16x16xf32>
    %2141 = math.exp %2140 : vector<16x16xf32>
    %cst_720 = arith.constant 1.000000e+00 : f32
    %2142 = vector.broadcast %cst_720 : f32 to vector<16x16xf32>
    %2143 = arith.addf %2142, %2141 : vector<16x16xf32>
    %2144 = arith.divf %2142, %2143 : vector<16x16xf32>
    %cst_721 = arith.constant dense<0.000000e+00> : vector<16x32xf32>
    %2145 = tpu.matmul %2144, %14, %cst_721 {dimension_numbers = #tpu.dot_dimension_numbers<[1], [0], [0], [1], [0, 0, 1, 1], [], []>} : vector<16x16xf32>, vector<16x32xf32>, vector<16x32xf32> -> vector<16x32xf32>
    %2146 = arith.addf %2139, %2145 : vector<16x32xf32>
    %2147 = arith.negf %2129 : vector<16x16xf32>
    %2148 = math.exp %2147 : vector<16x16xf32>
    %cst_722 = arith.constant 1.000000e+00 : f32
    %2149 = vector.broadcast %cst_722 : f32 to vector<16x16xf32>
    %2150 = arith.addf %2149, %2148 : vector<16x16xf32>
    %2151 = arith.divf %2149, %2150 : vector<16x16xf32>
    %cst_723 = arith.constant dense<0.000000e+00> : vector<16x32xf32>
    %2152 = tpu.matmul %2151, %21, %cst_723 {dimension_numbers = #tpu.dot_dimension_numbers<[1], [0], [0], [1], [0, 0, 1, 1], [], []>} : vector<16x16xf32>, vector<16x32xf32>, vector<16x32xf32> -> vector<16x32xf32>
    %2153 = arith.addf %2146, %2152 : vector<16x32xf32>
    %cst_724 = arith.constant dense<0.000000e+00> : vector<32x32xf32>
    %2154 = tpu.matmul %30, %2153, %cst_724 {dimension_numbers = #tpu.dot_dimension_numbers<[1], [0], [0], [1], [0, 0, 1, 1], [], []>} : vector<32x16xf32>, vector<16x32xf32>, vector<32x32xf32> -> vector<32x32xf32>
    %2155 = arith.addf %2138, %2154 : vector<32x32xf32>
    %cst_725 = arith.constant 0.000000e+00 : f32
    %2156 = vector.broadcast %cst_725 : f32 to vector<16x32xf32>
    %2157 = arith.negf %2133 : vector<16x16xf32>
    %2158 = math.exp %2157 : vector<16x16xf32>
    %cst_726 = arith.constant 1.000000e+00 : f32
    %2159 = vector.broadcast %cst_726 : f32 to vector<16x16xf32>
    %2160 = arith.addf %2159, %2158 : vector<16x16xf32>
    %2161 = arith.divf %2159, %2160 : vector<16x16xf32>
    %cst_727 = arith.constant dense<0.000000e+00> : vector<16x32xf32>
    %2162 = tpu.matmul %2161, %14, %cst_727 {dimension_numbers = #tpu.dot_dimension_numbers<[1], [0], [0], [1], [0, 0, 1, 1], [], []>} : vector<16x16xf32>, vector<16x32xf32>, vector<16x32xf32> -> vector<16x32xf32>
    %2163 = arith.addf %2156, %2162 : vector<16x32xf32>
    %2164 = arith.negf %2137 : vector<16x16xf32>
    %2165 = math.exp %2164 : vector<16x16xf32>
    %cst_728 = arith.constant 1.000000e+00 : f32
    %2166 = vector.broadcast %cst_728 : f32 to vector<16x16xf32>
    %2167 = arith.addf %2166, %2165 : vector<16x16xf32>
    %2168 = arith.divf %2166, %2167 : vector<16x16xf32>
    %cst_729 = arith.constant dense<0.000000e+00> : vector<16x32xf32>
    %2169 = tpu.matmul %2168, %21, %cst_729 {dimension_numbers = #tpu.dot_dimension_numbers<[1], [0], [0], [1], [0, 0, 1, 1], [], []>} : vector<16x16xf32>, vector<16x32xf32>, vector<16x32xf32> -> vector<16x32xf32>
    %2170 = arith.addf %2163, %2169 : vector<16x32xf32>
    %cst_730 = arith.constant dense<0.000000e+00> : vector<32x32xf32>
    %2171 = tpu.matmul %37, %2170, %cst_730 {dimension_numbers = #tpu.dot_dimension_numbers<[1], [0], [0], [1], [0, 0, 1, 1], [], []>} : vector<32x16xf32>, vector<16x32xf32>, vector<32x32xf32> -> vector<32x32xf32>
    %2172 = arith.addf %2155, %2171 : vector<32x32xf32>
    %c1_731 = arith.constant 1 : index
    %c0_732 = arith.constant 0 : index
    %c0_733 = arith.constant 0 : index
    %c0_734 = arith.constant 0 : index
    %2173 = vector.load %arg3[%c1_731, %c0_732, %c0_733, %c0_734] : memref<2x1x32x32xf32, #tpu.memory_space<vmem>>, vector<1x1x32x32xf32>
    %2174 = vector.shape_cast %2173 : vector<1x1x32x32xf32> to vector<32x32xf32>
    %2175 = vector.shape_cast %2172 : vector<32x32xf32> to vector<1x1x32x32xf32>
    tpu.vector_store %arg3[%c1_731, %c0_732, %c0_733, %c0_734], %2175 {strides = array<i32>} : memref<2x1x32x32xf32, #tpu.memory_space<vmem>>, vector<1x1x32x32xf32>,
    return
  }
  func.func @transform_0(%arg0: i32) -> i32 {
    %c0_i32 = arith.constant 0 : i32
    %c0_i32_0 = arith.constant 0 : i32
    return %c0_i32 : i32
  }
  func.func @transform_1(%arg0: i32) -> (i32, i32, i32, i32) {
    %c0_i32 = arith.constant 0 : i32
    %c0_i32_0 = arith.constant 0 : i32
    %c0_i32_1 = arith.constant 0 : i32
    %c0_i32_2 = arith.constant 0 : i32
    return %arg0, %c0_i32, %c0_i32_0, %c0_i32_1 : i32, i32, i32, i32
  }
  func.func @transform_2(%arg0: i32) -> (i32, i32, i32, i32) {
    %c0_i32 = arith.constant 0 : i32
    %c0_i32_0 = arith.constant 0 : i32
    %c0_i32_1 = arith.constant 0 : i32
    %c0_i32_2 = arith.constant 0 : i32
    return %arg0, %c0_i32, %c0_i32_0, %c0_i32_1 : i32, i32, i32, i32
  }
}

</mosaic_0001>

<bundles_post_ra>
// kernel: net_grow_forward.1
= control target key start
LH: loop header
LB: loop body
LE: loop exit
PB: predicated region body
PF: predicated region fallthrough
CT: control target
= control target key end

     0   :  { %7 = vsyncpa [#allocation7], 0  ;;  %s11650_s0 = inlined_call_operand.vmem [shape: f32[221], index: 0, kind: input, shape index: {}]   ;;  %s11651_s1 = inlined_call_operand.vmem [shape: f32[2,1,16,16], index: 1, kind: input, shape index: {}]   ;;  %s11652_s2 = inlined_call_operand.hbm [shape: f32[2,1,32,32], index: 2, kind: output, shape index: {}]  }
   0x1   :  { %8 = vsyncpa [#allocation6], 0  ;;  %s15_s11 = sshll.u32 %s11650_s0, 4  ;;  %s16_s11 = int_to_ptr.vmem [resolvable:$true] %s15_s11 }
   0x2   :  { %s7300_s12 = scalar_lea.vmem %s16_s11, 32  ;;  %p7305_p1 = scmp.lt.s32.totalorder %s16_s11, %s16_s11 }
   0x3   :  { %p7301_p0 = scmp.ne.s32.totalorder %s16_s11, %s7300_s12  ;;  %p7306_p2 = scmp.lt.s32.totalorder %s7300_s12, %s7300_s12 }
   0x5   :  { %p7307_p3 = por %p7306_p2, %p7305_p1 }
   0x7   :  { %p7308_p4 = pnand %p7307_p3, %p7301_p0 }
   0x9   :  { %7311 = shalt.err (!%p7308_p4)
}
   0xa   :  { %s7338_s13 = smov [#allocation5]  }
   0xb   :  { %18 = dma.vmem_to_smem %s16_s11, 32, %s7338_s13, [#allocation7]  }
   0xc   :  { %7334 = dma.done.wait [#allocation7], 32  }
   0xd   :  { %7335 = vsyncadd [#allocation7], 4294967264 }
   0xe   :  { %24 = sfence }
   0xf   :  { %v102_v0 = vld [vmem:[%s11651_s1] sm:$0xff]  ;;  %vm25_vm0 = vcmask 162816   ;;  %s7339_s16 = smov 2   ;;  %v11653_v1 = vmov 0.0   ;;  %vm29_vm1 = vcmask 156672   ;;  %v103_v2 = vld [vmem:[%s11651_s1 + $0x8] sm:$0xff] }
  0x10   :  { %106 = vrot.lane.b32.xlu0 %v102_v0, %s7339_s16  ;;  %26 = vst.msk [vmem:[#allocation2] sm:$0xff] %vm25_vm0, %v11653_v1  ;;  %27 = vst.msk [vmem:[#allocation2 + $0x8] sm:$0xff] %vm25_vm0, %v11653_v1  ;;  %vm112_vm2 = vcmask 146448   ;;  %s6432_s18 = sld [smem:[#allocation5 + $0x1a]]  ;;  %s6431_s19 = sld [smem:[#allocation5 + $0x1]]  ;;  %vm31_vm3 = vcmask 146432  }
  0x11   :  { %28 = vst.msk [vmem:[#allocation2 + $0x10] sm:$0xff] %vm25_vm0, %v11653_v1  ;;  %s6433_s20 = sld [smem:[#allocation5 + $0x2]]  ;;  %s6434_s21 = sld [smem:[#allocation5 + $0x1b]]  ;;  %vm35_vm4 = vcmask 139264   ;;  %vm759_vm5 = vcmask 138248   ;;  %vm2717_vm12 = vcmask 130048  }
  0x12   :  { %30 = vst.msk [vmem:[#allocation2 + $0x18] sm:$0x3] %vm29_vm1, %v11653_v1  ;;  %s6435_s22 = sld [smem:[#allocation5 + $0x3]]  ;;  %s7341_s23 = smov 127  }
  0x13   :  { %s6436_s24 = sld [smem:[#allocation5 + $0x1c]]  ;;  %s7342_s25 = smov 126  }
  0x14   :  { %108 = vrot.lane.b32.xlu0 %v103_v2, %s7339_s16  ;;  %s6437_s26 = sld [smem:[#allocation5 + $0x4]]  ;;  %s6438_s27 = sld [smem:[#allocation5 + $0x1d]] }
  0x15   :  { %s7343_s28 = smov 125   ;;  %s6441_s29 = sld [smem:[#allocation5 + $0x6]] }
  0x16   :  { %v148_v5 = vstv %s6432_s18  ;;  %v7382_v6 = vstv %s6431_s19  ;;  %s6442_s30 = sld [smem:[#allocation5 + $0x1f]]  ;;  %s7344_s3 = smov 124  }
  0x17   :  { %v7389_v10 = vstv %s6433_s20  ;;  %v7399_v14 = vstv %s6434_s21  ;;  %s6443_s4 = sld [smem:[#allocation5 + $0x7]]  ;;  %s6444_s5 = sld [smem:[#allocation5 + $0x20]] }
  0x18   :  { %v7406_v17 = vstv %s6435_s22  ;;  %s6445_s6 = sld [smem:[#allocation5 + $0x8]]  ;;  %s6447_s7 = sld [smem:[#allocation5 + $0x9]] }
  0x19   :  { %v7414_v20 = vstv %s6436_s24  ;;  %s6451_s8 = sld [smem:[#allocation5 + $0xb]]  ;;  %s6453_s9 = sld [smem:[#allocation5 + $0xc]] }
  0x1a   :  { %v7422_v23 = vstv %s6437_s26  ;;  %v7430_v26 = vstv %s6438_s27  ;;  %s6455_s10 = sld [smem:[#allocation5 + $0xd]]  ;;  %s6457_s11 = sld [smem:[#allocation5 + $0xe]] }
  0x1b   :  { %v7440_v30 = vstv %s6441_s29  ;;  %s6461_s12 = sld [smem:[#allocation5 + $0x10]]  ;;  %s6446_s13 = sld [smem:[#allocation5 + $0x21]] }
  0x1c   :  { %v7448_v33 = vstv %s6442_s30  ;;  %s6448_s14 = sld [smem:[#allocation5 + $0x22]]  ;;  %s6463_s15 = sld [smem:[#allocation5 + $0x11]] }
  0x1d   :  { %v7458_v37 = vstv %s6443_s4  ;;  %v7466_v40 = vstv %s6444_s5  ;;  %s6467_s0 = sld [smem:[#allocation5 + $0x13]]  ;;  %s6465_s17 = sld [smem:[#allocation5 + $0x12]] }
  0x1e   :  { %v7474_v43 = vstv %s6445_s6  ;;  %v7482_v46 = vstv %s6447_s7  ;;  %s6452_s18 = sld [smem:[#allocation5 + $0x24]]  ;;  %s6454_s19 = sld [smem:[#allocation5 + $0x25]] }
  0x1f   :  { %v7492_v50 = vstv %s6451_s8  ;;  %v7500_v53 = vstv %s6453_s9  ;;  %s6456_s20 = sld [smem:[#allocation5 + $0x26]]  ;;  %s6471_s21 = sld [smem:[#allocation5 + $0x15]] }
  0x20   :  { %11786 = vst [vmem:[#allocation12_spill] sm:$0xff] %v7492_v50  ;;  %11787 = vst [vmem:[#allocation13_spill] sm:$0xff] %v7500_v53  ;;  %v7510_v57 = vstv %s6455_s10  ;;  %v7518_v60 = vstv %s6457_s11  ;;  %s6458_s22 = sld [smem:[#allocation5 + $0x27]]  ;;  %s6473_s24 = sld [smem:[#allocation5 + $0x16]] }
  0x21   :  { %11789 = vst [vmem:[#allocation15_spill] sm:$0xff] %v7510_v57  ;;  %v512_v0 = vstv %s6461_s12  ;;  %s7612_s26 = sld [smem:[#allocation5 + $0x18]]  ;;  %s6475_s27 = sld [smem:[#allocation5 + $0x17]] }
  0x22   :  { %s7618_s29 = sld [smem:[#allocation5 + $0x29]]  ;;  %s7629_s30 = sld [smem:[#allocation5 + $0x2a]] }
  0x23   :  { %s7640_s4 = sld [smem:[#allocation5 + $0x2b]]  ;;  %s7651_s5 = sld [smem:[#allocation5 + $0x2c]] }
  0x24   :  { %s7662_s6 = sld [smem:[#allocation5 + $0x2e]]  ;;  %s7673_s7 = sld [smem:[#allocation5 + $0x2f]] }
  0x25   :  { %s7684_s8 = sld [smem:[#allocation5 + $0x30]]  ;;  %s7695_s9 = sld [smem:[#allocation5 + $0x31]] }
  0x26   :  { %s8320_s10 = sld [smem:[#allocation5 + $0x5a]]  ;;  %s8327_s11 = sld [smem:[#allocation5 + $0x38]] }
  0x27   :  { %s8334_s12 = sld [smem:[#allocation5 + $0x4a]] }
  0x82   :  { %v107_v3 = vpop.permute.xlu0 %106 }
  0x83   :  { %113 = vst.msk [vmem:[#allocation2 + $0x8] sm:$0xff] %vm112_vm2, %v107_v3 }
  0x86   :  { %v109_v4 = vpop.permute.xlu0 %108 }
  0x87   :  { %114 = vst.msk [vmem:[#allocation2 + $0x10] sm:$0xff] %vm112_vm2, %v109_v4  ;;  %v7533_v4 = vstv %s6446_s13  ;;  %s8348_s13 = sld [smem:[#allocation5 + $0x5c]] }
  0x8a   :  { %v7384_v7 = vld [vmem:[#allocation2 + $0x6] sm:$0xff] }
  0x8b   :  { %v149_v8 = vmul.f32 %v148_v5, %v7384_v7  ;;  %v135_v9 = vmul.f32 %v7382_v6, %v7384_v7  ;;  %v163_v13 = vmul.f32 %v7389_v10, %v7384_v7  ;;  %v177_v15 = vmul.f32 %v7399_v14, %v7384_v7  ;;  %v7438_v29 = vld [vmem:[#allocation2 + $0x7] sm:$0xff] }
  0x8c   :  { %v191_v18 = vmul.f32 %v7406_v17, %v7384_v7  ;;  %v205_v21 = vmul.f32 %v7414_v20, %v7384_v7  ;;  %v219_v24 = vmul.f32 %v7422_v23, %v7384_v7  ;;  %v233_v27 = vmul.f32 %v7430_v26, %v7384_v7  ;;  %v7490_v49 = vld [vmem:[#allocation2 + $0x8] sm:$0xff] }
  0x8d   :  { %153 = vrot.lane.b32.xlu0 %v149_v8, %s7341_s23  ;;  %139 = vrot.lane.b32.xlu1 %v135_v9, %s7341_s23  ;;  %v261_v31 = vmul.f32 %v7440_v30, %v7438_v29  ;;  %v275_v34 = vmul.f32 %v7448_v33, %v7438_v29  ;;  %v289_v38 = vmul.f32 %v7458_v37, %v7438_v29 }
  0x8e   :  { %v7393_v11 = vld [vmem:[#allocation2 + $0xe] sm:$0xff]  ;;  %v303_v41 = vmul.f32 %v7466_v40, %v7438_v29  ;;  %v317_v44 = vmul.f32 %v7474_v43, %v7438_v29  ;;  %v345_v47 = vmul.f32 %v7482_v46, %v7438_v29  ;;  %v387_v51 = vmul.f32 %v7492_v50, %v7490_v49 }
  0x8f   :  { %v136_v12 = vmul.f32 %v7382_v6, %v7393_v11  ;;  %v150_v16 = vmul.f32 %v148_v5, %v7393_v11  ;;  %v164_v19 = vmul.f32 %v7389_v10, %v7393_v11  ;;  %v178_v22 = vmul.f32 %v7399_v14, %v7393_v11  ;;  %v7456_v36 = vld [vmem:[#allocation2 + $0xf] sm:$0xff] }
  0x90   :  { %v192_v25 = vmul.f32 %v7406_v17, %v7393_v11  ;;  %v206_v28 = vmul.f32 %v7414_v20, %v7393_v11  ;;  %v220_v32 = vmul.f32 %v7422_v23, %v7393_v11  ;;  %v234_v35 = vmul.f32 %v7430_v26, %v7393_v11  ;;  %11785 = vst [vmem:[#allocation11_spill] sm:$0xff] %v7456_v36  ;;  %v7508_v56 = vld [vmem:[#allocation2 + $0x10] sm:$0xff] }
  0x91   :  { %167 = vrot.lane.b32.xlu0 %v163_v13, %s7342_s25  ;;  %141 = vrot.lane.b32.xlu1 %v136_v12, %s7341_s23  ;;  %v262_v39 = vmul.f32 %v7440_v30, %v7456_v36  ;;  %v276_v42 = vmul.f32 %v7448_v33, %v7456_v36  ;;  %v290_v45 = vmul.f32 %v7458_v37, %v7456_v36  ;;  %v7526_v63 = vld [vmem:[#allocation2 + $0x9] sm:$0xff]  ;;  %v7541_v9 = vld [vmem:[#allocation2 + $0x11] sm:$0xff] }
  0x92   :  { %v304_v48 = vmul.f32 %v7466_v40, %v7456_v36  ;;  %v318_v52 = vmul.f32 %v7474_v43, %v7456_v36  ;;  %v415_v54 = vmul.f32 %v7500_v53, %v7490_v49  ;;  %v346_v55 = vmul.f32 %v7482_v46, %v7456_v36  ;;  %11788 = vst [vmem:[#allocation14_spill] sm:$0xff] %v7508_v56 }
  0x93   :  { %v443_v58 = vmul.f32 %v7510_v57, %v7490_v49  ;;  %v388_v59 = vmul.f32 %v7492_v50, %v7508_v56  ;;  %v471_v61 = vmul.f32 %v7518_v60, %v7490_v49  ;;  %v416_v62 = vmul.f32 %v7500_v53, %v7508_v56  ;;  %11790 = vst [vmem:[#allocation16_spill] sm:$0xff] %v7541_v9 }
  0x94   :  { %v513_v2 = vmul.f32 %v512_v0, %v7526_v63  ;;  %v444_v3 = vmul.f32 %v7510_v57, %v7508_v56  ;;  %v331_v5 = vmul.f32 %v7533_v4, %v7438_v29  ;;  %v472_v8 = vmul.f32 %v7518_v60, %v7508_v56 }
  0x95   :  { %181 = vrot.lane.b32.xlu0 %v177_v15, %s7342_s25  ;;  %155 = vrot.lane.b32.xlu1 %v150_v16, %s7341_s23  ;;  %v332_v12 = vmul.f32 %v7533_v4, %v7456_v36  ;;  %v514_v13 = vmul.f32 %v512_v0, %v7541_v9  ;;  %v7548_v15 = vstv %s6448_s14  ;;  %v7550_v16 = vstv %s6463_s15  ;;  %s7869_s14 = sld [smem:[#allocation5 + $0x19]]  ;;  %s7883_s15 = sld [smem:[#allocation5 + $0x33]] }
  0x96   :  { %11791 = vst [vmem:[#allocation17_spill] sm:$0xff] %v7548_v15  ;;  %11792 = vst [vmem:[#allocation18_spill] sm:$0xff] %v7550_v16 }
  0x99   :  { %195 = vrot.lane.b32.xlu0 %v191_v18, %s7343_s28  ;;  %169 = vrot.lane.b32.xlu1 %v164_v19, %s7342_s25  ;;  %v359_v18 = vmul.f32 %v7548_v15, %v7438_v29  ;;  %v541_v19 = vmul.f32 %v7550_v16, %v7526_v63 }
  0x9d   :  { %209 = vrot.lane.b32.xlu0 %v205_v21, %s7343_s28  ;;  %183 = vrot.lane.b32.xlu1 %v178_v22, %s7342_s25  ;;  %v360_v21 = vmul.f32 %v7548_v15, %v7456_v36  ;;  %v542_v22 = vmul.f32 %v7550_v16, %v7541_v9 }
  0xa1   :  { %223 = vrot.lane.b32.xlu0 %v219_v24, %s7344_s3  ;;  %197 = vrot.lane.b32.xlu1 %v192_v25, %s7343_s28  ;;  %v7564_v24 = vstv %s6467_s0  ;;  %v7566_v25 = vstv %s6465_s17  ;;  %s6439_s0 = sld [smem:[#allocation5 + $0x5]]  ;;  %s6440_s17 = sld [smem:[#allocation5 + $0x1e]] }
  0xa2   :  { %11793 = vst [vmem:[#allocation19_spill] sm:$0xff] %v7564_v24  ;;  %11794 = vst [vmem:[#allocation20_spill] sm:$0xff] %v7566_v25 }
  0xa5   :  { %237 = vrot.lane.b32.xlu0 %v233_v27, %s7344_s3  ;;  %211 = vrot.lane.b32.xlu1 %v206_v28, %s7343_s28  ;;  %v597_v27 = vmul.f32 %v7564_v24, %v7526_v63  ;;  %v569_v28 = vmul.f32 %v7566_v25, %v7526_v63 }
  0xa9   :  { %265 = vrot.lane.b32.xlu0 %v261_v31, %s7341_s23  ;;  %225 = vrot.lane.b32.xlu1 %v220_v32, %s7344_s3  ;;  %v7574_v31 = vstv %s6452_s18  ;;  %s6449_s18 = sld [smem:[#allocation5 + $0xa]] }
  0xaa   :  { %11795 = vst [vmem:[#allocation21_spill] sm:$0xff] %v7574_v31  ;;  %v401_v32 = vmul.f32 %v7574_v31, %v7490_v49 }
  0xad   :  { %279 = vrot.lane.b32.xlu0 %v275_v34, %s7341_s23  ;;  %239 = vrot.lane.b32.xlu1 %v234_v35, %s7344_s3  ;;  %v570_v34 = vmul.f32 %v7566_v25, %v7541_v9  ;;  %v7582_v35 = vstv %s6454_s19  ;;  %s6450_s19 = sld [smem:[#allocation5 + $0x23]] }
  0xae   :  { %11796 = vst [vmem:[#allocation22_spill] sm:$0xff] %v7582_v35 }
  0xb1   :  { %293 = vrot.lane.b32.xlu0 %v289_v38, %s7342_s25  ;;  %267 = vrot.lane.b32.xlu1 %v262_v39, %s7341_s23  ;;  %v429_v38 = vmul.f32 %v7582_v35, %v7490_v49  ;;  %v598_v39 = vmul.f32 %v7564_v24, %v7541_v9 }
  0xb5   :  { %307 = vrot.lane.b32.xlu0 %v303_v41, %s7342_s25  ;;  %281 = vrot.lane.b32.xlu1 %v276_v42, %s7341_s23  ;;  %v430_v41 = vmul.f32 %v7582_v35, %v7508_v56  ;;  %v402_v42 = vmul.f32 %v7574_v31, %v7508_v56 }
  0xb9   :  { %321 = vrot.lane.b32.xlu0 %v317_v44, %s7343_s28  ;;  %295 = vrot.lane.b32.xlu1 %v290_v45, %s7342_s25  ;;  %v7596_v44 = vld [vmem:[#allocation2 + $0xa] sm:$0xff]  ;;  %v456_v45 = vstv %s6456_s20  ;;  %s6459_s20 = sld [smem:[#allocation5 + $0xf]] }
  0xba   :  { %11797 = vst [vmem:[#allocation23_spill] sm:$0xff] %v7596_v44 }
  0xbd   :  { %349 = vrot.lane.b32.xlu0 %v345_v47, %s7344_s3  ;;  %309 = vrot.lane.b32.xlu1 %v304_v48, %s7342_s25  ;;  %v7598_v47 = vstv %s6471_s21  ;;  %v457_v48 = vmul.f32 %v456_v45, %v7490_v49  ;;  %s7984_s21 = sld [smem:[#allocation5 + $0x28]] }
  0xbe   :  { %11798 = vst [vmem:[#allocation24_spill] sm:$0xff] %v7598_v47 }
  0xc1   :  { %391 = vrot.lane.b32.xlu0 %v387_v51, %s7341_s23  ;;  %323 = vrot.lane.b32.xlu1 %v318_v52, %s7343_s28  ;;  %v639_v51 = vmul.f32 %v7598_v47, %v7596_v44  ;;  %v7605_v52 = vld [vmem:[#allocation2 + $0x12] sm:$0xff] }
  0xc2   :  { %11799 = vst [vmem:[#allocation25_spill] sm:$0xff] %v7605_v52 }
  0xc5   :  { %419 = vrot.lane.b32.xlu0 %v415_v54, %s7342_s25  ;;  %351 = vrot.lane.b32.xlu1 %v346_v55, %s7344_s3  ;;  %v458_v54 = vmul.f32 %v456_v45, %v7508_v56  ;;  %v640_v55 = vmul.f32 %v7598_v47, %v7605_v52 }
  0xc9   :  { %447 = vrot.lane.b32.xlu0 %v443_v58, %s7343_s28  ;;  %393 = vrot.lane.b32.xlu1 %v388_v59, %s7341_s23  ;;  %v484_v58 = vstv %s6458_s22  ;;  %v666_v59 = vstv %s6473_s24  ;;  %s7991_s22 = sld [smem:[#allocation5 + $0x1a]]  ;;  %s6469_s24 = sld [smem:[#allocation5 + $0x14]] }
  0xcd   :  { %475 = vrot.lane.b32.xlu0 %v471_v61, %s7344_s3  ;;  %421 = vrot.lane.b32.xlu1 %v416_v62, %s7342_s25  ;;  %v485_v61 = vmul.f32 %v484_v58, %v7490_v49  ;;  %v667_v62 = vmul.f32 %v666_v59, %v7596_v44 }
  0xd1   :  { %517 = vrot.lane.b32.xlu0 %v513_v2, %s7341_s23  ;;  %449 = vrot.lane.b32.xlu1 %v444_v3, %s7343_s28  ;;  %v486_v3 = vmul.f32 %v484_v58, %v7508_v56 }
  0xd5   :  { %335 = vrot.lane.b32.xlu0 %v331_v5, %s7343_s28  ;;  %477 = vrot.lane.b32.xlu1 %v472_v8, %s7344_s3  ;;  %v668_v5 = vmul.f32 %v666_v59, %v7605_v52  ;;  %v722_v8 = vstv %s7612_s26  ;;  %v610_v59 = vstv %s7651_s5  ;;  %s8022_s26 = sld [smem:[#allocation5 + $0x2d]] }
  0xd6   :  { %v724_v45 = vmul.f32 %v722_v8, %v7605_v52  ;;  %s8284_s5 = sld [smem:[#allocation5 + $0x35]] }
  0xd9   :  { %337 = vrot.lane.b32.xlu0 %v332_v12, %s7343_s28  ;;  %519 = vrot.lane.b32.xlu1 %v514_v13, %s7341_s23  ;;  %v694_v12 = vstv %s6475_s27  ;;  %s6715_s27 = sld [smem:[#allocation5 + $0x10]] }
  0xdd   :  { %363 = vrot.lane.b32.xlu0 %v359_v18, %s7344_s3  ;;  %545 = vrot.lane.b32.xlu1 %v541_v19, %s7342_s25  ;;  %v723_v19 = vmul.f32 %v722_v8, %v7596_v44  ;;  %v652_v8 = vstv %s7662_s6  ;;  %s8289_s6 = sld [smem:[#allocation5 + $0x47]] }
  0xe1   :  { %365 = vrot.lane.b32.xlu0 %v360_v21, %s7344_s3  ;;  %547 = vrot.lane.b32.xlu1 %v542_v22, %s7342_s25  ;;  %v695_v21 = vmul.f32 %v694_v12, %v7596_v44  ;;  %v526_v22 = vstv %s7618_s29  ;;  %s7345_s29 = smov 1  }
  0xe2   :  { %v528_v58 = vmul.f32 %v526_v22, %v7541_v9 }
  0xe5   :  { %601 = vrot.lane.b32.xlu0 %v597_v27, %s7344_s3  ;;  %573 = vrot.lane.b32.xlu1 %v569_v28, %s7343_s28 }
  0xe9   :  { %405 = vrot.lane.b32.xlu0 %v401_v32, %s7341_s23  ;;  %575 = vrot.lane.b32.xlu1 %v570_v34, %s7343_s28  ;;  %v527_v32 = vmul.f32 %v526_v22, %v7526_v63  ;;  %v696_v34 = vmul.f32 %v694_v12, %v7605_v52 }
  0xed   :  { %433 = vrot.lane.b32.xlu0 %v429_v38, %s7342_s25  ;;  %603 = vrot.lane.b32.xlu1 %v598_v39, %s7344_s3  ;;  %v554_v38 = vstv %s7629_s30  ;;  %s6684_s30 = sld [smem:[#allocation5 + $0x19]] }
  0xf1   :  { %435 = vrot.lane.b32.xlu0 %v430_v41, %s7342_s25  ;;  %407 = vrot.lane.b32.xlu1 %v402_v42, %s7341_s23  ;;  %v555_v42 = vmul.f32 %v554_v38, %v7526_v63 }
  0xf5   :  { %461 = vrot.lane.b32.xlu0 %v457_v48, %s7343_s28  ;;  %643 = vrot.lane.b32.xlu1 %v639_v51, %s7341_s23  ;;  %v582_v48 = vstv %s7640_s4  ;;  %s6683_s4 = sld [smem:[#allocation5 + $0x33]] }
  0xf6   :  { %v584_v22 = vmul.f32 %v582_v48, %v7541_v9 }
  0xf9   :  { %463 = vrot.lane.b32.xlu0 %v458_v54, %s7343_s28  ;;  %645 = vrot.lane.b32.xlu1 %v640_v55, %s7341_s23  ;;  %v583_v55 = vmul.f32 %v582_v48, %v7526_v63 }
  0xfd   :  { %489 = vrot.lane.b32.xlu0 %v485_v61, %s7344_s3  ;;  %671 = vrot.lane.b32.xlu1 %v667_v62, %s7342_s25 }
  0xff   :  { %v7622_v0 = vpop.permute.xlu0 %153  ;;  %v7624_v2 = vpop.permute.xlu1 %139 }
 0x101   :  { %491 = vrot.lane.b32.xlu0 %v486_v3, %s7344_s3  ;;  %673 = vrot.lane.b32.xlu1 %v668_v5, %s7342_s25  ;;  %v611_v3 = vmul.f32 %v610_v59, %v7526_v63  ;;  %v556_v5 = vmul.f32 %v554_v38, %v7541_v9 }
 0x103   :  { %v7633_v13 = vpop.permute.xlu0 %167  ;;  %v7635_v18 = vpop.permute.xlu1 %141 }
 0x105   :  { %727 = vrot.lane.b32.xlu0 %v723_v19, %s7344_s3  ;;  %699 = vrot.lane.b32.xlu1 %v695_v21, %s7343_s28  ;;  %v653_v21 = vmul.f32 %v652_v8, %v7596_v44 }
 0x107   :  { %v7644_v27 = vpop.permute.xlu0 %181  ;;  %v7646_v28 = vpop.permute.xlu1 %155 }
 0x108   :  { %11800 = vst [vmem:[#allocation26_spill] sm:$0xff] %v7646_v28 }
 0x109   :  { %531 = vrot.lane.b32.xlu0 %v527_v32, %s7341_s23  ;;  %701 = vrot.lane.b32.xlu1 %v696_v34, %s7343_s28  ;;  %v680_v32 = vstv %s7673_s7  ;;  %s8293_s7 = sld [smem:[#allocation5 + $0x59]] }
 0x10b   :  { %v7655_v39 = vpop.permute.xlu0 %195  ;;  %v7657_v41 = vpop.permute.xlu1 %169 }
 0x10c   :  { %11801 = vst [vmem:[#allocation27_spill] sm:$0xff] %v7657_v41 }
 0x10d   :  { %559 = vrot.lane.b32.xlu0 %v555_v42, %s7342_s25  ;;  %729 = vrot.lane.b32.xlu1 %v724_v45, %s7344_s3  ;;  %v681_v42 = vmul.f32 %v680_v32, %v7596_v44  ;;  %v612_v45 = vmul.f32 %v610_v59, %v7541_v9 }
 0x10f   :  { %v7666_v51 = vpop.permute.xlu0 %209  ;;  %v7668_v54 = vpop.permute.xlu1 %183 }
 0x110   :  { %11802 = vst [vmem:[#allocation28_spill] sm:$0xff] %v7668_v54 }
 0x111   :  { %587 = vrot.lane.b32.xlu0 %v583_v55, %s7343_s28  ;;  %533 = vrot.lane.b32.xlu1 %v528_v58, %s7341_s23  ;;  %v708_v55 = vstv %s7684_s8  ;;  %s8302_s8 = sld [smem:[#allocation5 + $0x36]] }
 0x113   :  { %v7677_v61 = vpop.permute.xlu0 %223  ;;  %v7679_v62 = vpop.permute.xlu1 %197 }
 0x114   :  { %11803 = vst [vmem:[#allocation29_spill] sm:$0xff] %v7679_v62 }
 0x115   :  { %615 = vrot.lane.b32.xlu0 %v611_v3, %s7344_s3  ;;  %561 = vrot.lane.b32.xlu1 %v556_v5, %s7342_s25  ;;  %v709_v3 = vmul.f32 %v708_v55, %v7596_v44  ;;  %v654_v5 = vmul.f32 %v652_v8, %v7605_v52  ;;  %v6681_v8 = vld [vmem:[%s11651_s1 + $0x18] sm:$0xff] }
 0x117   :  { %v7688_v12 = vpop.permute.xlu0 %237  ;;  %v7690_v19 = vpop.permute.xlu1 %211 }
 0x118   :  { %11804 = vst [vmem:[#allocation30_spill] sm:$0xff] %v7690_v19 }
 0x119   :  { %657 = vrot.lane.b32.xlu0 %v653_v21, %s7341_s23  ;;  %589 = vrot.lane.b32.xlu1 %v584_v22, %s7343_s28  ;;  %v736_v21 = vstv %s7695_s9  ;;  %s8313_s9 = sld [smem:[#allocation5 + $0x48]] }
 0x11b   :  { %v7699_v34 = vpop.permute.xlu0 %265  ;;  %v7701_v38 = vpop.permute.xlu1 %225 }
 0x11c   :  { %11805 = vst [vmem:[#allocation31_spill] sm:$0xff] %v7701_v38 }
 0x11d   :  { %685 = vrot.lane.b32.xlu0 %v681_v42, %s7342_s25  ;;  %617 = vrot.lane.b32.xlu1 %v612_v45, %s7344_s3  ;;  %v737_v42 = vmul.f32 %v736_v21, %v7596_v44  ;;  %v682_v45 = vmul.f32 %v680_v32, %v7605_v52 }
 0x11f   :  { %v7708_v48 = vpop.permute.xlu0 %279  ;;  %v7710_v58 = vpop.permute.xlu1 %239 }
 0x120   :  { %11806 = vst [vmem:[#allocation32_spill] sm:$0xff] %v7710_v58 }
 0x121   :  { %713 = vrot.lane.b32.xlu0 %v709_v3, %s7343_s28  ;;  %659 = vrot.lane.b32.xlu1 %v654_v5, %s7341_s23  ;;  %v710_v5 = vmul.f32 %v708_v55, %v7605_v52 }
 0x123   :  { %v7717_v22 = vpop.permute.xlu0 %293  ;;  %v7719_v59 = vpop.permute.xlu1 %267 }
 0x124   :  { %11807 = vst [vmem:[#allocation33_spill] sm:$0xff] %v7719_v59 }
 0x125   :  { %741 = vrot.lane.b32.xlu0 %v737_v42, %s7344_s3  ;;  %687 = vrot.lane.b32.xlu1 %v682_v45, %s7342_s25  ;;  %v738_v42 = vmul.f32 %v736_v21, %v7605_v52  ;;  %v6680_v45 = vld [vmem:[%s11651_s1 + $0x10] sm:$0xff]  ;;  %s121_s1 = sld [smem:[#allocation5]] }
 0x127   :  { %v7728_v1 = vpop.permute.xlu0 %307  ;;  %v7730_v3 = vpop.permute.xlu1 %281 }
 0x128   :  { %11808 = vst [vmem:[#allocation34_spill] sm:$0xff] %v7730_v3 }
 0x129   :  { %715 = vrot.lane.b32.xlu1 %v710_v5, %s7343_s28  ;;  %3272 = vrot.lane.b32.xlu0 %v6681_v8, %s7339_s16 }
 0x12b   :  { %v7735_v47 = vpop.permute.xlu0 %321  ;;  %v7737_v32 = vpop.permute.xlu1 %295 }
 0x12c   :  { %11809 = vst [vmem:[#allocation35_spill] sm:$0xff] %v7737_v32 }
 0x12d   :  { %743 = vrot.lane.b32.xlu1 %v738_v42, %s7344_s3 }
 0x12f   :  { %v7744_v25 = vpop.permute.xlu0 %349  ;;  %v7746_v16 = vpop.permute.xlu1 %309 }
 0x130   :  { %11810 = vst [vmem:[#allocation36_spill] sm:$0xff] %v7746_v16 }
 0x131   :  { %3270 = vrot.lane.b32.xlu1 %v6680_v45, %s7339_s16  ;;  %s6428_s16 = sld [smem:[#allocation5 + $0x32]] }
 0x133   :  { %v7749_v55 = vpop.permute.xlu0 %391  ;;  %v7751_v8 = vpop.permute.xlu1 %323 }
 0x134   :  { %11811 = vst [vmem:[#allocation37_spill] sm:$0xff] %v7751_v8 }
 0x137   :  { %v7753_v5 = vpop.permute.xlu0 %419  ;;  %v7755_v9 = vpop.permute.xlu1 %351 }
 0x138   :  { %11812 = vst [vmem:[#allocation38_spill] sm:$0xff] %v7755_v9 }
 0x13b   :  { %v7757_v21 = vpop.permute.xlu0 %447  ;;  %v7759_v42 = vpop.permute.xlu1 %393 }
 0x13c   :  { %11813 = vst [vmem:[#allocation39_spill] sm:$0xff] %v7759_v42 }
 0x13f   :  { %v7761_v52 = vpop.permute.xlu0 %475  ;;  %v7763_v56 = vpop.permute.xlu1 %421 }
 0x140   :  { %11814 = vst [vmem:[#allocation40_spill] sm:$0xff] %v7763_v56 }
 0x143   :  { %v7765_v35 = vpop.permute.xlu0 %517  ;;  %v7767_v57 = vpop.permute.xlu1 %449 }
 0x144   :  { %11815 = vst [vmem:[#allocation41_spill] sm:$0xff] %v7767_v57 }
 0x147   :  { %v7769_v45 = vpop.permute.xlu0 %335  ;;  %v7771_v16 = vpop.permute.xlu1 %477 }
 0x148   :  { %11816 = vst [vmem:[#allocation42_spill] sm:$0xff] %v7771_v16 }
 0x14b   :  { %v7773_v8 = vpop.permute.xlu0 %337  ;;  %v7775_v3 = vpop.permute.xlu1 %519 }
 0x14c   :  { %11817 = vst [vmem:[#allocation43_spill] sm:$0xff] %v7773_v8  ;;  %11818 = vst [vmem:[#allocation44_spill] sm:$0xff] %v7775_v3 }
 0x14f   :  { %v7777_v9 = vpop.permute.xlu0 %363  ;;  %v7779_v31 = vpop.permute.xlu1 %545 }
 0x153   :  { %v7781_v42 = vpop.permute.xlu0 %365  ;;  %v7783_v32 = vpop.permute.xlu1 %547 }
 0x154   :  { %11819 = vst [vmem:[#allocation45_spill] sm:$0xff] %v7781_v42  ;;  %11820 = vst [vmem:[#allocation46_spill] sm:$0xff] %v7783_v32 }
 0x157   :  { %v7785_v56 = vpop.permute.xlu0 %601  ;;  %v7787_v59 = vpop.permute.xlu1 %573 }
 0x15b   :  { %v7789_v57 = vpop.permute.xlu0 %405  ;;  %v7791_v24 = vpop.permute.xlu1 %575 }
 0x15c   :  { %11821 = vst [vmem:[#allocation47_spill] sm:$0xff] %v7791_v24 }
 0x15f   :  { %v7793_v16 = vpop.permute.xlu0 %433  ;;  %v7795_v8 = vpop.permute.xlu1 %603 }
 0x160   :  { %11822 = vst [vmem:[#allocation48_spill] sm:$0xff] %v7795_v8 }
 0x163   :  { %v7797_v3 = vpop.permute.xlu0 %435  ;;  %v7799_v53 = vpop.permute.xlu1 %407 }
 0x164   :  { %11823 = vst [vmem:[#allocation49_spill] sm:$0xff] %v7797_v3  ;;  %11824 = vst [vmem:[#allocation50_spill] sm:$0xff] %v7799_v53 }
 0x167   :  { %v7801_v58 = vpop.permute.xlu0 %461  ;;  %v7803_v42 = vpop.permute.xlu1 %643 }
 0x168   :  { %11825 = vst [vmem:[#allocation51_spill] sm:$0xff] %v7803_v42 }
 0x16b   :  { %v7805_v32 = vpop.permute.xlu0 %463  ;;  %v7807_v36 = vpop.permute.xlu1 %645 }
 0x16c   :  { %11826 = vst [vmem:[#allocation52_spill] sm:$0xff] %v7805_v32  ;;  %11827 = vst [vmem:[#allocation53_spill] sm:$0xff] %v7807_v36 }
 0x16f   :  { %v7809_v19 = vpop.permute.xlu0 %489  ;;  %v7811_v38 = vpop.permute.xlu1 %671 }
 0x170   :  { %11828 = vst [vmem:[#allocation54_spill] sm:$0xff] %v7811_v38 }
 0x173   :  { %v7813_v24 = vpop.permute.xlu0 %491  ;;  %v7815_v54 = vpop.permute.xlu1 %673 }
 0x174   :  { %11829 = vst [vmem:[#allocation55_spill] sm:$0xff] %v7813_v24  ;;  %11830 = vst [vmem:[#allocation56_spill] sm:$0xff] %v7815_v54 }
 0x177   :  { %v7817_v8 = vpop.permute.xlu0 %727  ;;  %v7819_v3 = vpop.permute.xlu1 %699 }
 0x178   :  { %11831 = vst [vmem:[#allocation57_spill] sm:$0xff] %v7817_v8  ;;  %11832 = vst [vmem:[#allocation58_spill] sm:$0xff] %v7819_v3 }
 0x17b   :  { %v7821_v53 = vpop.permute.xlu0 %531  ;;  %v7823_v62 = vpop.permute.xlu1 %701 }
 0x17c   :  { %11833 = vst [vmem:[#allocation59_spill] sm:$0xff] %v7823_v62 }
 0x17f   :  { %v7825_v42 = vpop.permute.xlu0 %559  ;;  %v7827_v32 = vpop.permute.xlu1 %729 }
 0x180   :  { %11834 = vst [vmem:[#allocation60_spill] sm:$0xff] %v7827_v32 }
 0x183   :  { %v7829_v36 = vpop.permute.xlu0 %587  ;;  %v7831_v28 = vpop.permute.xlu1 %533 }
 0x184   :  { %11835 = vst [vmem:[#allocation61_spill] sm:$0xff] %v7829_v36  ;;  %11836 = vst [vmem:[#allocation62_spill] sm:$0xff] %v7831_v28 }
 0x187   :  { %v7833_v38 = vpop.permute.xlu0 %615  ;;  %v7835_v24 = vpop.permute.xlu1 %561 }
 0x188   :  { %11837 = vst [vmem:[#allocation63_spill] sm:$0xff] %v7833_v38  ;;  %11838 = vst [vmem:[#allocation64_spill] sm:$0xff] %v7835_v24 }
 0x18b   :  { %v7837_v54 = vpop.permute.xlu0 %657  ;;  %v7839_v8 = vpop.permute.xlu1 %589 }
 0x18c   :  { %11839 = vst [vmem:[#allocation65_spill] sm:$0xff] %v7837_v54  ;;  %11840 = vst [vmem:[#allocation66_spill] sm:$0xff] %v7839_v8  ;;  %v128_v54 = vstv %s7869_s14  ;;  %s8377_s14 = sld [smem:[#allocation5 + $0x5d]] }
 0x18d   :  { %v129_v44 = vmul.f32 %v128_v54, %v7384_v7 }
 0x18f   :  { %v7841_v3 = vpop.permute.xlu0 %685  ;;  %v7843_v15 = vpop.permute.xlu1 %617 }
 0x190   :  { %11841 = vst [vmem:[#allocation67_spill] sm:$0xff] %v7841_v3  ;;  %11842 = vst [vmem:[#allocation68_spill] sm:$0xff] %v7843_v15 }
 0x193   :  { %v7845_v62 = vpop.permute.xlu0 %713  ;;  %v7847_v50 = vpop.permute.xlu1 %659 }
 0x194   :  { %11843 = vst [vmem:[#allocation69_spill] sm:$0xff] %v7845_v62  ;;  %11844 = vst [vmem:[#allocation70_spill] sm:$0xff] %v7847_v50  ;;  %v7863_v50 = vstv %s121_s1  ;;  %s8357_s1 = sld [smem:[#allocation5 + $0x39]] }
 0x197   :  { %v7849_v32 = vpop.permute.xlu0 %741  ;;  %v7851_v36 = vpop.permute.xlu1 %687 }
 0x198   :  { %11845 = vst [vmem:[#allocation71_spill] sm:$0xff] %v7849_v32  ;;  %11846 = vst [vmem:[#allocation72_spill] sm:$0xff] %v7851_v36 }
 0x19b   :  { %v7853_v28 = vpop.permute.xlu1 %715  ;;  %v3273_v38 = vpop.permute.xlu0 %3272 }
 0x19c   :  { %11847 = vst [vmem:[#allocation73_spill] sm:$0xff] %v7853_v28  ;;  %3277 = vst.msk [vmem:[#allocation2 + $0x10] sm:$0xff] %vm112_vm2, %v3273_v38  ;;  %v123_v38 = vmul.f32 %v7863_v50, %v7384_v7 }
 0x19f   :  { %v7856_v24 = vpop.permute.xlu1 %743 }
 0x1a0   :  { %11848 = vst [vmem:[#allocation74_spill] sm:$0xff] %v7856_v24 }
 0x1a3   :  { %v3271_v8 = vpop.permute.xlu1 %3270 }
 0x1a4   :  { %3276 = vst.msk [vmem:[#allocation2 + $0x8] sm:$0xff] %vm112_vm2, %v3271_v8  ;;  %v7875_v8 = vstv %s6428_s16  ;;  %s8368_s16 = sld [smem:[#allocation5 + $0x4b]] }
 0x1ab   :  { %v7859_v15 = vld [vmem:[#allocation2 + $0xe] sm:$0xff]  ;;  %v7861_v62 = vld [vmem:[#allocation2 + $0x6] sm:$0xff] }
 0x1ac   :  { %v3299_v36 = vmul.f32 %v7859_v15, %v7382_v6  ;;  %v3298_v28 = vmul.f32 %v7861_v62, %v7382_v6  ;;  %v3327_v24 = vmul.f32 %v7859_v15, %v7389_v10  ;;  %v3326_v32 = vmul.f32 %v7861_v62, %v7389_v10  ;;  %v7881_v6 = vld [vmem:[#allocation2 + $0x7] sm:$0xff] }
 0x1ad   :  { %v3480_v3 = vmul.f32 %v7881_v6, %v7474_v43 }
 0x1ae   :  { %3304 = vrot.lane.b32.xlu1 %v3299_v36, %s7341_s23  ;;  %3302 = vrot.lane.b32.xlu0 %v3298_v28, %s7341_s23  ;;  %v125_v36 = vadd.f32 %v123_v38, %v7875_v8  ;;  %v3354_v28 = vmul.f32 %v7861_v62, %v7406_v17  ;;  %v3340_v38 = vmul.f32 %v7861_v62, %v7399_v14 }
 0x1b0   :  { %v145_v10 = vadd.f32 %v7624_v2, %v125_v36  ;;  %v118_v2 = vstv %s7883_s15  ;;  %v7906_v36 = vstv %s6439_s0  ;;  %s8385_s15 = sld [smem:[#allocation5 + $0x3b]]  ;;  %s8393_s0 = sld [smem:[#allocation5 + $0x4d]] }
 0x1b1   :  { %v131_v7 = vadd.f32 %v129_v44, %v118_v2 }
 0x1b2   :  { %3332 = vrot.lane.b32.xlu1 %v3327_v24, %s7342_s25  ;;  %3330 = vrot.lane.b32.xlu0 %v3326_v32, %s7342_s25  ;;  %v173_v24 = vadd.f32 %v7633_v13, %v145_v10  ;;  %v3355_v32 = vmul.f32 %v7859_v15, %v7406_v17  ;;  %v3382_v17 = vmul.f32 %v7861_v62, %v7422_v23 }
 0x1b3   :  { %v3368_v10 = vmul.f32 %v7861_v62, %v7414_v20 }
 0x1b4   :  { %v201_v41 = vadd.f32 %v7655_v39, %v173_v24  ;;  %v249_v39 = vmul.f32 %v7906_v36, %v7438_v29 }
 0x1b6   :  { %3358 = vrot.lane.b32.xlu1 %v3354_v28, %s7343_s28  ;;  %3484 = vrot.lane.b32.xlu0 %v3480_v3, %s7343_s28  ;;  %v229_v13 = vadd.f32 %v7677_v61, %v201_v41  ;;  %v3341_v3 = vmul.f32 %v7859_v15, %v7399_v14  ;;  %v159_v28 = vadd.f32 %v7622_v0, %v131_v7  ;;  %v7932_v0 = vstv %s6440_s17  ;;  %s8407_s17 = sld [smem:[#allocation5 + $0x5f]] }
 0x1b7   :  { %v3383_v61 = vmul.f32 %v7859_v15, %v7422_v23  ;;  %v3424_v23 = vmul.f32 %v7881_v6, %v7440_v30 }
 0x1b8   :  { %v251_v41 = vadd.f32 %v249_v39, %v229_v13  ;;  %v187_v14 = vadd.f32 %v7644_v27, %v159_v28  ;;  %v7940_v13 = vld [vmem:[#allocation2 + $0xf] sm:$0xff] }
 0x1b9   :  { %v7963_v28 = vld [vmem:[#allocation2 + $0x8] sm:$0xff] }
 0x1ba   :  { %3360 = vrot.lane.b32.xlu1 %v3355_v32, %s7343_s28  ;;  %3344 = vrot.lane.b32.xlu0 %v3340_v38, %s7342_s25  ;;  %v271_v44 = vadd.f32 %v7699_v34, %v251_v41  ;;  %v215_v24 = vadd.f32 %v7666_v51, %v187_v14  ;;  %v3369_v38 = vmul.f32 %v7859_v15, %v7414_v20 }
 0x1bb   :  { %v255_v51 = vmul.f32 %v7932_v0, %v7438_v29  ;;  %v3425_v20 = vmul.f32 %v7940_v13, %v7440_v30  ;;  %v3397_v30 = vmul.f32 %v7859_v15, %v7430_v26 }
 0x1bc   :  { %v299_v32 = vadd.f32 %v7717_v22, %v271_v44  ;;  %v243_v27 = vadd.f32 %v7688_v12, %v215_v24  ;;  %v7982_v44 = vstv %s6459_s20  ;;  %s8442_s20 = sld [smem:[#allocation5 + $0x3e]] }
 0x1be   :  { %3386 = vrot.lane.b32.xlu1 %v3382_v17, %s7344_s3  ;;  %3346 = vrot.lane.b32.xlu0 %v3341_v3, %s7342_s25  ;;  %v327_v34 = vadd.f32 %v7735_v47, %v299_v32  ;;  %v7942_v17 = vstv %s6449_s18  ;;  %v3396_v47 = vmul.f32 %v7861_v62, %v7430_v26  ;;  %v257_v12 = vadd.f32 %v255_v51, %v243_v27  ;;  %s8418_s18 = sld [smem:[#allocation5 + $0x3c]] }
 0x1bf   :  { %v375_v3 = vmul.f32 %v7942_v17, %v7490_v49  ;;  %v3634_v26 = vmul.f32 %v7963_v28, %v7518_v60  ;;  %v3466_v32 = vmul.f32 %v7881_v6, %v7466_v40  ;;  %v506_v27 = vstv %s7984_s21  ;;  %s8453_s21 = sld [smem:[#allocation5 + $0x3f]] }
 0x1c0   :  { %v355_v22 = vadd.f32 %v7744_v25, %v327_v34  ;;  %v285_v7 = vadd.f32 %v7708_v48, %v257_v12  ;;  %v3452_v25 = vmul.f32 %v7881_v6, %v7458_v37  ;;  %v3467_v34 = vmul.f32 %v7940_v13, %v7466_v40 }
 0x1c2   :  { %3388 = vrot.lane.b32.xlu1 %v3383_v61, %s7344_s3  ;;  %3372 = vrot.lane.b32.xlu0 %v3368_v10, %s7343_s28  ;;  %v377_v29 = vadd.f32 %v375_v3, %v355_v22  ;;  %v313_v39 = vadd.f32 %v7728_v1, %v285_v7  ;;  %v7969_v61 = vstv %s6450_s19  ;;  %v3453_v10 = vmul.f32 %v7940_v13, %v7458_v37  ;;  %s8429_s19 = sld [smem:[#allocation5 + $0x4e]] }
 0x1c3   :  { %v3481_v37 = vmul.f32 %v7940_v13, %v7474_v43  ;;  %v3508_v43 = vmul.f32 %v7881_v6, %v7482_v46  ;;  %v8035_v3 = vstv %s6469_s24  ;;  %s8477_s24 = sld [smem:[#allocation5 + $0x42]] }
 0x1c4   :  { %v397_v41 = vadd.f32 %v7749_v55, %v377_v29  ;;  %v341_v48 = vadd.f32 %v7769_v45, %v313_v39  ;;  %v381_v45 = vmul.f32 %v7969_v61, %v7490_v49  ;;  %v501_v49 = vmul.f32 %v7982_v44, %v7526_v63  ;;  %v11850_v39 = vld [vmem:[#allocation23_spill] sm:$0xff] }
 0x1c6   :  { %3428 = vrot.lane.b32.xlu1 %v3424_v23, %s7341_s23  ;;  %3374 = vrot.lane.b32.xlu0 %v3369_v38, %s7343_s28  ;;  %v425_v1 = vadd.f32 %v7753_v5, %v397_v41  ;;  %v369_v14 = vadd.f32 %v7777_v9, %v341_v48  ;;  %v3438_v5 = vmul.f32 %v7881_v6, %v7448_v33  ;;  %v11851_v48 = vld [vmem:[#allocation61_spill] sm:$0xff] }
 0x1c7   :  { %v627_v41 = vmul.f32 %v8035_v3, %v11850_v39 }
 0x1c8   :  { %v453_v55 = vadd.f32 %v7757_v21, %v425_v1  ;;  %v383_v24 = vadd.f32 %v381_v45, %v369_v14  ;;  %v11854_v1 = vld [vmem:[#allocation26_spill] sm:$0xff] }
 0x1ca   :  { %3430 = vrot.lane.b32.xlu1 %v3425_v20, %s7341_s23  ;;  %3400 = vrot.lane.b32.xlu0 %v3396_v47, %s7344_s3  ;;  %v481_v9 = vadd.f32 %v7761_v52, %v453_v55  ;;  %v411_v21 = vadd.f32 %v7789_v57, %v383_v24  ;;  %v3509_v57 = vmul.f32 %v7940_v13, %v7482_v46  ;;  %v11855_v55 = vld [vmem:[#allocation29_spill] sm:$0xff]  ;;  %v11857_v24 = vld [vmem:[#allocation28_spill] sm:$0xff] }
 0x1cb   :  { %v507_v46 = vmul.f32 %v506_v27, %v7526_v63  ;;  %v130_v63 = vmul.f32 %v128_v54, %v7393_v11 }
 0x1cc   :  { %v503_v52 = vadd.f32 %v501_v49, %v481_v9  ;;  %v439_v23 = vadd.f32 %v7793_v16, %v411_v21  ;;  %v3311_v16 = vstv %s7991_s22  ;;  %v8059_v9 = vld [vmem:[#allocation2 + $0x10] sm:$0xff]  ;;  %v11858_v21 = vld [vmem:[#allocation31_spill] sm:$0xff]  ;;  %s8466_s22 = sld [smem:[#allocation5 + $0x41]] }
 0x1cd   :  { %v3312_v40 = vmul.f32 %v3311_v16, %v7861_v62  ;;  %v3313_v7 = vmul.f32 %v3311_v16, %v7859_v15 }
 0x1ce   :  { %3456 = vrot.lane.b32.xlu1 %v3452_v25, %s7342_s25  ;;  %3402 = vrot.lane.b32.xlu0 %v3397_v30, %s7344_s3  ;;  %v467_v38 = vadd.f32 %v7801_v58, %v439_v23  ;;  %v523_v51 = vadd.f32 %v7765_v35, %v503_v52  ;;  %v124_v58 = vmul.f32 %v7863_v50, %v7393_v11 }
 0x1cf   :  { %v3494_v35 = vmul.f32 %v7881_v6, %v7533_v4  ;;  %v132_v11 = vadd.f32 %v130_v63, %v118_v2 }
 0x1d0   :  { %v495_v22 = vadd.f32 %v7809_v19, %v467_v38  ;;  %v551_v20 = vadd.f32 %v7779_v31, %v523_v51  ;;  %v126_v31 = vadd.f32 %v124_v58, %v7875_v8  ;;  %v11862_v58 = vld [vmem:[#allocation54_spill] sm:$0xff] }
 0x1d1   :  { %v160_v14 = vadd.f32 %v11854_v1, %v132_v11  ;;  %v11872_v1 = vld [vmem:[#allocation21_spill] sm:$0xff] }
 0x1d2   :  { %3458 = vrot.lane.b32.xlu1 %v3453_v10, %s7342_s25  ;;  %3638 = vrot.lane.b32.xlu0 %v3634_v26, %s7344_s3  ;;  %v579_v19 = vadd.f32 %v7787_v59, %v551_v20  ;;  %v509_v47 = vadd.f32 %v507_v46, %v495_v22  ;;  %v3495_v59 = vmul.f32 %v7940_v13, %v7533_v4  ;;  %v632_v10 = vstv %s8022_s26  ;;  %v11853_v26 = vld [vmem:[#allocation17_spill] sm:$0xff]  ;;  %v11861_v22 = vld [vmem:[#allocation11_spill] sm:$0xff]  ;;  %s8487_s26 = sld [smem:[#allocation5 + $0x44]] }
 0x1d3   :  { %v146_v29 = vadd.f32 %v7635_v18, %v126_v31  ;;  %v11852_v18 = vld [vmem:[#allocation12_spill] sm:$0xff]  ;;  %v188_v49 = vadd.f32 %v11857_v24, %v160_v14  ;;  %v633_v23 = vmul.f32 %v632_v10, %v11850_v39  ;;  %v250_v16 = vmul.f32 %v7906_v36, %v11861_v22  ;;  %v11864_v31 = vld [vmem:[#allocation58_spill] sm:$0xff] }
 0x1d4   :  { %v537_v12 = vadd.f32 %v7821_v53, %v509_v47  ;;  %v607_v25 = vadd.f32 %v7785_v56, %v579_v19  ;;  %v11849_v53 = vld [vmem:[#allocation27_spill] sm:$0xff]  ;;  %v3550_v56 = vmul.f32 %v7963_v28, %v11852_v18  ;;  %v3551_v38 = vmul.f32 %v8059_v9, %v11852_v18 }
 0x1d5   :  { %v174_v54 = vadd.f32 %v11849_v53, %v146_v29  ;;  %v256_v11 = vmul.f32 %v7932_v0, %v11861_v22  ;;  %v11868_v53 = vld [vmem:[#allocation65_spill] sm:$0xff]  ;;  %v3564_v14 = vmul.f32 %v7963_v28, %v11872_v1 }
 0x1d6   :  { %3486 = vrot.lane.b32.xlu1 %v3481_v37, %s7343_s28  ;;  %3442 = vrot.lane.b32.xlu0 %v3438_v5, %s7341_s23  ;;  %v565_v30 = vadd.f32 %v7825_v42, %v537_v12  ;;  %v3522_v42 = vmul.f32 %v7881_v6, %v11853_v26  ;;  %v629_v2 = vadd.f32 %v627_v41, %v607_v25  ;;  %v11856_v37 = vld [vmem:[#allocation63_spill] sm:$0xff]  ;;  %v11865_v12 = vld [vmem:[#allocation13_spill] sm:$0xff] }
 0x1d7   :  { %v202_v45 = vadd.f32 %v11855_v55, %v174_v54  ;;  %v11867_v25 = vld [vmem:[#allocation33_spill] sm:$0xff]  ;;  %v11869_v41 = vld [vmem:[#allocation35_spill] sm:$0xff]  ;;  %v11873_v55 = vld [vmem:[#allocation34_spill] sm:$0xff] }
 0x1d8   :  { %v593_v4 = vadd.f32 %v11851_v48, %v565_v30 }
 0x1da   :  { %3512 = vrot.lane.b32.xlu1 %v3508_v43, %s7344_s3  ;;  %3470 = vrot.lane.b32.xlu0 %v3466_v32, %s7342_s25  ;;  %v621_v5 = vadd.f32 %v11856_v37, %v593_v4  ;;  %v230_v43 = vadd.f32 %v11858_v21, %v202_v45  ;;  %v11859_v32 = vld [vmem:[#allocation51_spill] sm:$0xff]  ;;  %v11870_v4 = vld [vmem:[#allocation57_spill] sm:$0xff]  ;;  %v11877_v21 = vld [vmem:[#allocation36_spill] sm:$0xff] }
 0x1db   :  { %v649_v52 = vadd.f32 %v11859_v32, %v629_v2  ;;  %v11874_v2 = vld [vmem:[#allocation37_spill] sm:$0xff]  ;;  %v11878_v32 = vld [vmem:[#allocation38_spill] sm:$0xff] }
 0x1dc   :  { %v635_v46 = vadd.f32 %v633_v23, %v621_v5  ;;  %v252_v47 = vadd.f32 %v250_v16, %v230_v43  ;;  %v11875_v5 = vld [vmem:[#allocation69_spill] sm:$0xff]  ;;  %v11879_v23 = vld [vmem:[#allocation71_spill] sm:$0xff]  ;;  %v11882_v16 = vld [vmem:[#allocation14_spill] sm:$0xff] }
 0x1dd   :  { %v677_v20 = vadd.f32 %v11862_v58, %v649_v52  ;;  %v376_v58 = vmul.f32 %v7942_v17, %v11882_v16 }
 0x1de   :  { %3514 = vrot.lane.b32.xlu1 %v3509_v57, %s7344_s3  ;;  %3472 = vrot.lane.b32.xlu0 %v3467_v34, %s7342_s25  ;;  %v3523_v57 = vmul.f32 %v7940_v13, %v11853_v26  ;;  %v11860_v34 = vld [vmem:[#allocation30_spill] sm:$0xff]  ;;  %v272_v30 = vadd.f32 %v11867_v25, %v252_v47  ;;  %v663_v54 = vadd.f32 %v11868_v53, %v635_v46  ;;  %v11886_v53 = vld [vmem:[#allocation40_spill] sm:$0xff] }
 0x1df   :  { %v216_v51 = vadd.f32 %v11860_v34, %v188_v49  ;;  %v705_v63 = vadd.f32 %v11864_v31, %v677_v20  ;;  %v11876_v49 = vmov 0.0   ;;  %v11883_v20 = vld [vmem:[#allocation43_spill] sm:$0xff] }
 0x1e0   :  { %v300_v48 = vadd.f32 %v11869_v41, %v272_v30  ;;  %33 = vst.msk [vmem:[#allocation3 + $0x8] sm:$0xff] %vm31_vm3, %v11876_v49  ;;  %32 = vst.msk [vmem:[#allocation3] sm:$0xff] %vm31_vm3, %v11876_v49  ;;  %v3635_v30 = vmul.f32 %v8059_v9, %v7518_v60  ;;  %v11890_v60 = vld [vmem:[#allocation49_spill] sm:$0xff] }
 0x1e1   :  { %v733_v18 = vadd.f32 %v11870_v4, %v705_v63  ;;  %34 = vst.msk [vmem:[#allocation3 + $0x10] sm:$0xff] %vm31_vm3, %v11876_v49  ;;  %37 = vst.msk [vmem:[#allocation3 + $0x20] sm:$0xff] %vm31_vm3, %v11876_v49 }
 0x1e2   :  { %3316 = vrot.lane.b32.xlu1 %v3312_v40, %s7341_s23  ;;  %3498 = vrot.lane.b32.xlu0 %v3494_v35, %s7343_s28  ;;  %v8077_v40 = vld [vmem:[#allocation2 + $0x9] sm:$0xff]  ;;  %v328_v37 = vadd.f32 %v11874_v2, %v300_v48  ;;  %38 = vst.msk [vmem:[#allocation3 + $0x28] sm:$0xff] %vm31_vm3, %v11876_v49  ;;  %39 = vst.msk [vmem:[#allocation3 + $0x30] sm:$0xff] %vm31_vm3, %v11876_v49 }
 0x1e3   :  { %v11863_v35 = vld [vmem:[#allocation32_spill] sm:$0xff]  ;;  %41 = vst.msk [vmem:[#allocation4] sm:$0xff] %vm31_vm3, %v11876_v49  ;;  %42 = vst.msk [vmem:[#allocation4 + $0x8] sm:$0xff] %vm31_vm3, %v11876_v49  ;;  %7162 = vtanh.f32 %v733_v18  ;;  %v11888_v48 = vld [vmem:[#allocation41_spill] sm:$0xff]  ;;  %v3439_v18 = vmul.f32 %v7940_v13, %v7448_v33 }
 0x1e4   :  { %v244_v19 = vadd.f32 %v11863_v35, %v216_v51  ;;  %43 = vst.msk [vmem:[#allocation4 + $0x10] sm:$0xff] %vm31_vm3, %v11876_v49  ;;  %45 = vst.msk [vmem:[#allocation4 + $0x20] sm:$0xff] %vm31_vm3, %v11876_v49  ;;  %v356_v52 = vadd.f32 %v11878_v32, %v328_v37  ;;  %v11881_v51 = vld [vmem:[#allocation22_spill] sm:$0xff]  ;;  %v11892_v37 = vld [vmem:[#allocation52_spill] sm:$0xff] }
 0x1e5   :  { %46 = vst.msk [vmem:[#allocation4 + $0x28] sm:$0xff] %vm31_vm3, %v11876_v49  ;;  %47 = vst.msk [vmem:[#allocation4 + $0x30] sm:$0xff] %vm31_vm3, %v11876_v49  ;;  %v3592_v22 = vmul.f32 %v7963_v28, %v11881_v51  ;;  %v3593_v63 = vmul.f32 %v8059_v9, %v11881_v51  ;;  %v8175_v32 = vld [vmem:[#allocation2 + $0x11] sm:$0xff] }
 0x1e6   :  { %3318 = vrot.lane.b32.xlu1 %v3313_v7, %s7341_s23  ;;  %3500 = vrot.lane.b32.xlu0 %v3495_v59, %s7343_s28  ;;  %v3578_v7 = vmul.f32 %v7963_v28, %v11865_v12  ;;  %v11866_v59 = vld [vmem:[#allocation19_spill] sm:$0xff]  ;;  %v258_v39 = vadd.f32 %v256_v11, %v244_v19  ;;  %49 = vst.msk [vmem:[#allocation4 + $0x40] sm:$0xff] %vm31_vm3, %v11876_v49  ;;  %50 = vst.msk [vmem:[#allocation4 + $0x48] sm:$0xff] %vm31_vm3, %v11876_v49  ;;  %v11884_v19 = vld [vmem:[#allocation45_spill] sm:$0xff] }
 0x1e7   :  { %v3760_v29 = vmul.f32 %v8077_v40, %v11866_v59  ;;  %51 = vst.msk [vmem:[#allocation4 + $0x50] sm:$0xff] %vm31_vm3, %v11876_v49  ;;  %v378_v35 = vadd.f32 %v376_v58, %v356_v52  ;;  %v11895_v51 = vld [vmem:[#allocation46_spill] sm:$0xff] }
 0x1e8   :  { %v286_v45 = vadd.f32 %v11873_v55, %v258_v39  ;;  %v11887_v39 = vld [vmem:[#allocation50_spill] sm:$0xff]  ;;  %v3675_v55 = vstv %s6715_s27  ;;  %40 = vst.msk [vmem:[#allocation3 + $0x38] sm:$0x1] %vm35_vm4, %v11876_v49  ;;  %44 = vst.msk [vmem:[#allocation4 + $0x18] sm:$0x1] %vm35_vm4, %v11876_v49  ;;  %s8510_s27 = sld [smem:[#allocation5 + $0x50]] }
 0x1e9   :  { %48 = vst.msk [vmem:[#allocation4 + $0x38] sm:$0x1] %vm35_vm4, %v11876_v49  ;;  %36 = vst.msk [vmem:[#allocation3 + $0x18] sm:$0x1] %vm35_vm4, %v11876_v49 }
 0x1ea   :  { %3554 = vrot.lane.b32.xlu1 %v3550_v56, %s7341_s23  ;;  %3526 = vrot.lane.b32.xlu0 %v3522_v42, %s7344_s3  ;;  %v11871_v56 = vld [vmem:[#allocation67_spill] sm:$0xff]  ;;  %v3579_v42 = vmul.f32 %v8059_v9, %v11865_v12  ;;  %v314_v43 = vadd.f32 %v11877_v21, %v286_v45  ;;  %v382_v12 = vmul.f32 %v7969_v61, %v11882_v16  ;;  %v11891_v45 = vld [vmem:[#allocation16_spill] sm:$0xff]  ;;  %v11896_v16 = vld [vmem:[#allocation62_spill] sm:$0xff] }
 0x1eb   :  { %v691_v26 = vadd.f32 %v11871_v56, %v663_v54  ;;  %v502_v2 = vmul.f32 %v7982_v44, %v11891_v45  ;;  %v508_v52 = vmul.f32 %v506_v27, %v11891_v45  ;;  %v11900_v27 = vld [vmem:[#allocation48_spill] sm:$0xff]  ;;  %v11908_v45 = vld [vmem:[#allocation70_spill] sm:$0xff]  ;;  %52 = vst.msk [vmem:[#allocation4 + $0x58] sm:$0x1] %vm35_vm4, %v11876_v49 }
 0x1ec   :  { %v342_v46 = vadd.f32 %v11883_v20, %v314_v43  ;;  %v11893_v43 = vld [vmem:[#allocation55_spill] sm:$0xff]  ;;  %v11897_v20 = vld [vmem:[#allocation18_spill] sm:$0xff] }
 0x1ed   :  { %v719_v24 = vadd.f32 %v11875_v5, %v691_v26  ;;  %v7163_v11 = vpop.eup %7162  ;;  %v11889_v26 = vld [vmem:[#allocation42_spill] sm:$0xff] }
 0x1ee   :  { %3556 = vrot.lane.b32.xlu1 %v3551_v38, %s7341_s23  ;;  %3528 = vrot.lane.b32.xlu0 %v3523_v57, %s7344_s3  ;;  %v11880_v57 = vld [vmem:[#allocation15_spill] sm:$0xff]  ;;  %v370_v47 = vadd.f32 %v11884_v19, %v342_v46  ;;  %v3704_v46 = vmul.f32 %v8077_v40, %v11897_v20 }
 0x1ef   :  { %v747_v38 = vadd.f32 %v11879_v23, %v719_v24  ;;  %v3606_v34 = vmul.f32 %v7963_v28, %v11880_v57  ;;  %v3607_v31 = vmul.f32 %v8059_v9, %v11880_v57  ;;  %v3676_v24 = vmul.f32 %v3675_v55, %v8077_v40 }
 0x1f0   :  { %v384_v25 = vadd.f32 %v382_v12, %v370_v47  ;;  %v3677_v23 = vmul.f32 %v3675_v55, %v8175_v32  ;;  %v11899_v47 = vld [vmem:[#allocation64_spill] sm:$0xff]  ;;  %v11901_v12 = vld [vmem:[#allocation66_spill] sm:$0xff] }
 0x1f1   :  { %7164 = vtanh.f32 %v747_v38  ;;  %v11894_v38 = vld [vmem:[#allocation44_spill] sm:$0xff] }
 0x1f2   :  { %3582 = vrot.lane.b32.xlu1 %v3578_v7, %s7342_s25  ;;  %3764 = vrot.lane.b32.xlu0 %v3760_v29, %s7344_s3  ;;  %v11885_v7 = vld [vmem:[#allocation39_spill] sm:$0xff]  ;;  %v412_v41 = vadd.f32 %v11887_v39, %v384_v25  ;;  %v11902_v25 = vld [vmem:[#allocation25_spill] sm:$0xff] }
 0x1f3   :  { %v398_v29 = vadd.f32 %v11885_v7, %v378_v35  ;;  %v11898_v35 = vld [vmem:[#allocation47_spill] sm:$0xff]  ;;  %v634_v39 = vmul.f32 %v632_v10, %v11902_v25  ;;  %v11909_v10 = vld [vmem:[#allocation60_spill] sm:$0xff] }
 0x1f5   :  { %v426_v54 = vadd.f32 %v11886_v53, %v398_v29  ;;  %v3705_v29 = vmul.f32 %v8175_v32, %v11897_v20 }
 0x1f6   :  { %3584 = vrot.lane.b32.xlu1 %v3579_v42, %s7342_s25  ;;  %3568 = vrot.lane.b32.xlu0 %v3564_v14, %s7341_s23  ;;  %v440_v14 = vadd.f32 %v11890_v60, %v412_v41  ;;  %v11904_v41 = vld [vmem:[#allocation20_spill] sm:$0xff] }
 0x1f7   :  { %v454_v4 = vadd.f32 %v11888_v48, %v426_v54  ;;  %v3732_v48 = vmul.f32 %v8077_v40, %v11904_v41  ;;  %v3733_v60 = vmul.f32 %v8175_v32, %v11904_v41  ;;  %v3412_v41 = vmul.f32 %v7881_v6, %v7906_v36 }
 0x1f8   :  { %v468_v5 = vadd.f32 %v11892_v37, %v440_v14  ;;  %v11907_v14 = vld [vmem:[#allocation59_spill] sm:$0xff] }
 0x1f9   :  { %v482_v42 = vadd.f32 %v11889_v26, %v454_v4  ;;  %v11905_v4 = vld [vmem:[#allocation53_spill] sm:$0xff]  ;;  %v11906_v26 = vld [vmem:[#allocation56_spill] sm:$0xff] }
 0x1fa   :  { %3610 = vrot.lane.b32.xlu1 %v3606_v34, %s7343_s28  ;;  %3596 = vrot.lane.b32.xlu0 %v3592_v22, %s7342_s25  ;;  %v496_v33 = vadd.f32 %v11893_v43, %v468_v5  ;;  %v11910_v5 = vld [vmem:[#allocation72_spill] sm:$0xff] }
 0x1fb   :  { %v7165_v56 = vpop.eup %7164  ;;  %v504_v21 = vadd.f32 %v502_v2, %v482_v42 }
 0x1fc   :  { %v510_v34 = vadd.f32 %v508_v52, %v496_v33  ;;  %v3761_v33 = vmul.f32 %v8175_v32, %v11866_v59  ;;  %v11911_v52 = vld [vmem:[#allocation73_spill] sm:$0xff] }
 0x1fd   :  { %v524_v57 = vadd.f32 %v11894_v38, %v504_v21  ;;  %v11912_v38 = vld [vmem:[#allocation74_spill] sm:$0xff] }
 0x1fe   :  { %3612 = vrot.lane.b32.xlu1 %v3607_v31, %s7343_s28  ;;  %3598 = vrot.lane.b32.xlu0 %v3593_v63, %s7342_s25  ;;  %v538_v58 = vadd.f32 %v11896_v16, %v510_v34  ;;  %v3286_v16 = vmul.f32 %v7861_v62, %v7863_v50 }
 0x1ff   :  { %v552_v22 = vadd.f32 %v11895_v51, %v524_v57 }
 0x200   :  { %v566_v31 = vadd.f32 %v11899_v47, %v538_v58  ;;  %v8223_v58 = vld [vmem:[#allocation2 + $0xa] sm:$0xff]  ;;  %v3288_v47 = vadd.f32 %v3286_v16, %v7875_v8  ;;  %v3538_v16 = vmul.f32 %v7963_v28, %v7942_v17 }
 0x201   :  { %v580_v19 = vadd.f32 %v11898_v35, %v552_v22  ;;  %v3565_v22 = vmul.f32 %v8059_v9, %v11872_v1 }
 0x202   :  { %3640 = vrot.lane.b32.xlu1 %v3635_v30, %s7344_s3  ;;  %753 = vrot.lane.b32.xlu0 %v7163_v11, %s7345_s29  ;;  %v594_v7 = vadd.f32 %v11901_v12, %v566_v31  ;;  %v628_v30 = vmul.f32 %v8035_v3, %v11902_v25  ;;  %v11903_v11 = vld [vmem:[#allocation68_spill] sm:$0xff] }
 0x203   :  { %v608_v63 = vadd.f32 %v11900_v27, %v580_v19  ;;  %v3287_v19 = vmul.f32 %v7859_v15, %v7863_v50 }
 0x204   :  { %v622_v53 = vadd.f32 %v11903_v11, %v594_v7 }
 0x205   :  { %v630_v54 = vadd.f32 %v628_v30, %v608_v63  ;;  %v3289_v12 = vadd.f32 %v3287_v19, %v7875_v8 }
 0x206   :  { %3444 = vrot.lane.b32.xlu1 %v3439_v18, %s7341_s23  ;;  %766 = vrot.lane.b32.xlu0 %v7165_v56, %s7345_s29  ;;  %v636_v56 = vadd.f32 %v634_v39, %v622_v53  ;;  %v8238_v39 = vld [vmem:[#allocation2 + $0x12] sm:$0xff] }
 0x207   :  { %v650_v18 = vadd.f32 %v11905_v4, %v630_v54 }
 0x208   :  { %v664_v2 = vadd.f32 %v11908_v45, %v636_v56 }
 0x209   :  { %v678_v42 = vadd.f32 %v11906_v26, %v650_v18 }
 0x20a   :  { %3680 = vrot.lane.b32.xlu1 %v3676_v24, %s7341_s23  ;;  %v692_v24 = vadd.f32 %v11910_v5, %v664_v2 }
 0x20b   :  { %v706_v55 = vadd.f32 %v11907_v14, %v678_v42  ;;  %v3413_v42 = vmul.f32 %v7940_v13, %v7906_v36 }
 0x20d   :  { %v734_v37 = vadd.f32 %v11909_v10, %v706_v55 }
 0x20e   :  { %3682 = vrot.lane.b32.xlu1 %v3677_v23, %s7341_s23  ;;  %v720_v23 = vadd.f32 %v11911_v52, %v692_v24 }
 0x20f   :  { %7166 = vtanh.f32 %v734_v37 }
 0x210   :  { %v748_v57 = vadd.f32 %v11912_v38, %v720_v23 }
 0x212   :  { %3708 = vrot.lane.b32.xlu1 %v3704_v46, %s7342_s25  ;;  %7168 = vtanh.f32 %v748_v57  ;;  %v11913_v46 = vld [vmem:[#allocation24_spill] sm:$0xff] }
 0x213   :  { %v3802_v35 = vmul.f32 %v8223_v58, %v11913_v46  ;;  %v3803_v56 = vmul.f32 %v8238_v39, %v11913_v46 }
 0x216   :  { %3710 = vrot.lane.b32.xlu1 %v3705_v29, %s7342_s25 }
 0x219   :  { %v7167_v63 = vpop.eup %7166 }
 0x21a   :  { %3736 = vrot.lane.b32.xlu1 %v3732_v48, %s7343_s28 }
 0x21c   :  { %v7169_v50 = vpop.eup %7168 }
 0x21e   :  { %3738 = vrot.lane.b32.xlu1 %v3733_v60, %s7343_s28 }
 0x220   :  { %v3305_v21 = vpop.permute.xlu1 %3304  ;;  %v3303_v43 = vpop.permute.xlu0 %3302 }
 0x221   :  { %v3308_v1 = vadd.f32 %v3303_v43, %v3288_v47  ;;  %v3309_v29 = vadd.f32 %v3305_v21, %v3289_v12 }
 0x222   :  { %3766 = vrot.lane.b32.xlu1 %v3761_v33, %s7344_s3 }
 0x224   :  { %v3333_v34 = vpop.permute.xlu1 %3332  ;;  %v3331_v51 = vpop.permute.xlu0 %3330 }
 0x225   :  { %v3336_v7 = vadd.f32 %v3331_v51, %v3308_v1  ;;  %v3337_v53 = vadd.f32 %v3333_v34, %v3309_v29  ;;  %v3291_v34 = vstv %s6684_s30  ;;  %v3281_v1 = vstv %s6683_s4  ;;  %s8522_s30 = sld [smem:[#allocation5 + $0x51]]  ;;  %s8533_s4 = sld [smem:[#allocation5 + $0x53]] }
 0x226   :  { %3570 = vrot.lane.b32.xlu1 %v3565_v22, %s7341_s23  ;;  %v3292_v46 = vmul.f32 %v3291_v34, %v7861_v62  ;;  %v3293_v12 = vmul.f32 %v3291_v34, %v7859_v15  ;;  %v3664_v34 = vmul.f32 %v8077_v40, %v7982_v44 }
 0x228   :  { %v3359_v59 = vpop.permute.xlu1 %3358  ;;  %v3485_v20 = vpop.permute.xlu0 %3484 }
 0x229   :  { %v3364_v25 = vadd.f32 %v3359_v59, %v3336_v7 }
 0x22a   :  { %3806 = vrot.lane.b32.xlu1 %v3802_v35, %s7341_s23 }
 0x22c   :  { %v3361_v31 = vpop.permute.xlu1 %3360  ;;  %v8232_v27 = vpop.permute.xlu0 %3344 }
 0x22d   :  { %v3365_v48 = vadd.f32 %v3361_v31, %v3337_v53  ;;  %v3295_v53 = vadd.f32 %v3293_v12, %v3281_v1 }
 0x22e   :  { %755 = vrot.lane.b32.xlu1 %v7167_v63, %s7345_s29  ;;  %v3294_v63 = vadd.f32 %v3292_v46, %v3281_v1 }
 0x230   :  { %v3387_v30 = vpop.permute.xlu1 %3386  ;;  %v8236_v11 = vpop.permute.xlu0 %3346 }
 0x231   :  { %v3392_v54 = vadd.f32 %v3387_v30, %v3364_v25 }
 0x232   :  { %768 = vrot.lane.b32.xlu1 %v7169_v50, %s7345_s29 }
 0x233   :  { %v3414_v8 = vadd.f32 %v3412_v41, %v3392_v54 }
 0x234   :  { %v3389_v4 = vpop.permute.xlu1 %3388  ;;  %v3373_v18 = vpop.permute.xlu0 %3372 }
 0x235   :  { %v3393_v26 = vadd.f32 %v3389_v4, %v3365_v48  ;;  %v3418_v4 = vmul.f32 %v7881_v6, %v7932_v0 }
 0x236   :  { %3808 = vrot.lane.b32.xlu1 %v3803_v56, %s7341_s23 }
 0x237   :  { %v3415_v60 = vadd.f32 %v3413_v42, %v3393_v26 }
 0x238   :  { %v3429_v14 = vpop.permute.xlu1 %3428  ;;  %v3375_v55 = vpop.permute.xlu0 %3374 }
 0x239   :  { %v3434_v24 = vadd.f32 %v3429_v14, %v3414_v8  ;;  %v3419_v14 = vmul.f32 %v7940_v13, %v7932_v0 }
 0x23c   :  { %v3431_v45 = vpop.permute.xlu1 %3430  ;;  %v3401_v2 = vpop.permute.xlu0 %3400 }
 0x23d   :  { %v3435_v52 = vadd.f32 %v3431_v45, %v3415_v60 }
 0x240   :  { %v3457_v10 = vpop.permute.xlu1 %3456  ;;  %v3403_v36 = vpop.permute.xlu0 %3402 }
 0x241   :  { %v3462_v21 = vadd.f32 %v3457_v10, %v3434_v24 }
 0x243   :  { %v3490_v23 = vadd.f32 %v3485_v20, %v3462_v21  ;;  %v3539_v20 = vmul.f32 %v8059_v9, %v7942_v17 }
 0x244   :  { %v3459_v37 = vpop.permute.xlu1 %3458  ;;  %v8253_v5 = vpop.permute.xlu0 %3638 }
 0x245   :  { %v3463_v51 = vadd.f32 %v3459_v37, %v3435_v52 }
 0x248   :  { %v3487_v43 = vpop.permute.xlu1 %3486  ;;  %v3443_v33 = vpop.permute.xlu0 %3442 }
 0x249   :  { %v3491_v59 = vadd.f32 %v3487_v43, %v3463_v51 }
 0x24c   :  { %v3513_v38 = vpop.permute.xlu1 %3512  ;;  %v3471_v57 = vpop.permute.xlu0 %3470 }
 0x24d   :  { %v3518_v22 = vadd.f32 %v3513_v38, %v3490_v23 }
 0x24f   :  { %v3540_v35 = vadd.f32 %v3538_v16, %v3518_v22 }
 0x250   :  { %v3515_v19 = vpop.permute.xlu1 %3514  ;;  %v8258_v47 = vpop.permute.xlu0 %3472 }
 0x251   :  { %v3519_v31 = vadd.f32 %v3515_v19, %v3491_v59 }
 0x253   :  { %v3541_v7 = vadd.f32 %v3539_v20, %v3519_v31 }
 0x254   :  { %v3317_v29 = vpop.permute.xlu1 %3316  ;;  %v3499_v25 = vpop.permute.xlu0 %3498 }
 0x255   :  { %v3322_v30 = vadd.f32 %v3317_v29, %v3294_v63  ;;  %v802_v63 = vstv %s8284_s5  ;;  %s8544_s5 = sld [smem:[#allocation5 + $0x54]] }
 0x257   :  { %v3350_v50 = vadd.f32 %v8232_v27, %v3322_v30  ;;  %v816_v30 = vstv %s8289_s6  ;;  %s8557_s6 = sld [smem:[#allocation5 + $0x56]] }
 0x258   :  { %v3319_v62 = vpop.permute.xlu1 %3318  ;;  %v3501_v54 = vpop.permute.xlu0 %3500 }
 0x259   :  { %v3378_v41 = vadd.f32 %v3373_v18, %v3350_v50  ;;  %v3323_v48 = vadd.f32 %v3319_v62, %v3295_v53  ;;  %v3545_v50 = vmul.f32 %v8059_v9, %v7969_v61 }
 0x25b   :  { %v3406_v8 = vadd.f32 %v3401_v2, %v3378_v41  ;;  %v3351_v17 = vadd.f32 %v8236_v11, %v3323_v48  ;;  %v3544_v11 = vmul.f32 %v7963_v28, %v7969_v61 }
 0x25c   :  { %v3555_v56 = vpop.permute.xlu1 %3554  ;;  %v3527_v26 = vpop.permute.xlu0 %3526 }
 0x25d   :  { %v3420_v15 = vadd.f32 %v3418_v4, %v3406_v8  ;;  %v3379_v42 = vadd.f32 %v3375_v55, %v3351_v17  ;;  %v3560_v52 = vadd.f32 %v3555_v56, %v3540_v35  ;;  %v844_v4 = vstv %s8302_s8  ;;  %s8581_s8 = sld [smem:[#allocation5 + $0x57]] }
 0x25e   :  { %v858_v56 = vstv %s8313_s9  ;;  %s6514_s9 = sld [smem:[#allocation5 + $0x62]] }
 0x25f   :  { %v3448_v60 = vadd.f32 %v3443_v33, %v3420_v15  ;;  %v3407_v27 = vadd.f32 %v3403_v36, %v3379_v42 }
 0x260   :  { %v3557_v45 = vpop.permute.xlu1 %3556  ;;  %v3529_v10 = vpop.permute.xlu0 %3528 }
 0x261   :  { %v3476_v37 = vadd.f32 %v3471_v57, %v3448_v60  ;;  %v3421_v18 = vadd.f32 %v3419_v14, %v3407_v27  ;;  %v3561_v38 = vadd.f32 %v3557_v45, %v3541_v7  ;;  %v872_v14 = vstv %s8320_s10  ;;  %s6517_s10 = sld [smem:[#allocation5 + $0x63]] }
 0x263   :  { %v3504_v24 = vadd.f32 %v3499_v25, %v3476_v37 }
 0x264   :  { %v3583_v2 = vpop.permute.xlu1 %3582  ;;  %v8269_v21 = vpop.permute.xlu0 %3764 }
 0x265   :  { %v3532_v6 = vadd.f32 %v3527_v26, %v3504_v24  ;;  %v3588_v0 = vadd.f32 %v3583_v2, %v3560_v52 }
 0x267   :  { %v8273_v43 = vadd.f32 %v3544_v11, %v3532_v6  ;;  %v906_v11 = vstv %s8327_s11  ;;  %s6533_s11 = sld [smem:[#allocation5 + $0x45]] }
 0x268   :  { %v3585_v55 = vpop.permute.xlu1 %3584  ;;  %v8275_v33 = vpop.permute.xlu0 %3568 }
 0x269   :  { %v3589_v28 = vadd.f32 %v3585_v55, %v3561_v38 }
 0x26c   :  { %v3611_v13 = vpop.permute.xlu1 %3610  ;;  %v8277_v36 = vpop.permute.xlu0 %3596 }
 0x26d   :  { %v3616_v23 = vadd.f32 %v3611_v13, %v3588_v0  ;;  %v3791_v13 = vmul.f32 %v8238_v39, %v8035_v3 }
 0x26f   :  { %v3644_v57 = vadd.f32 %v8253_v5, %v3616_v23  ;;  %v3665_v5 = vmul.f32 %v8175_v32, %v7982_v44  ;;  %v920_v23 = vstv %s8334_s12  ;;  %s6523_s12 = sld [smem:[#allocation5 + $0x65]] }
 0x270   :  { %v3613_v51 = vpop.permute.xlu1 %3612  ;;  %v8282_v22 = vpop.permute.xlu0 %3598 }
 0x271   :  { %v3666_v16 = vadd.f32 %v3664_v34, %v3644_v57  ;;  %v3617_v59 = vadd.f32 %v3613_v51, %v3589_v28  ;;  %v934_v51 = vstv %s8348_s13  ;;  %s6526_s13 = sld [smem:[#allocation5 + $0x66]] }
 0x274   :  { %v3641_v46 = vpop.permute.xlu1 %3640  ;;  %v754_v35 = vpop.permute.xlu0 %753 }
 0x275   :  { %v3645_v19 = vadd.f32 %v3641_v46, %v3617_v59  ;;  %760 = vst.msk [vmem:[#allocation3 + $0x8] sm:$0xff] %vm759_vm5, %v754_v35  ;;  %v962_v35 = vstv %s8368_s16  ;;  %s6535_s16 = sld [smem:[#allocation5 + $0x69]] }
 0x277   :  { %v3667_v40 = vadd.f32 %v3665_v5, %v3645_v19 }
 0x278   :  { %v3445_v1 = vpop.permute.xlu1 %3444  ;;  %v767_v31 = vpop.permute.xlu0 %766 }
 0x279   :  { %v3449_v20 = vadd.f32 %v3445_v1, %v3421_v18  ;;  %773 = vst.msk [vmem:[#allocation3 + $0x28] sm:$0xff] %vm759_vm5, %v767_v31 }
 0x27b   :  { %v3477_v12 = vadd.f32 %v8258_v47, %v3449_v20 }
 0x27c   :  { %v3681_v7 = vpop.permute.xlu1 %3680  ;;  %v8296_v29 = vld [vmem:[#allocation3 + $0x7] sm:$0xff] }
 0x27d   :  { %v3505_v44 = vadd.f32 %v3501_v54, %v3477_v12  ;;  %v803_v25 = vmul.f32 %v802_v63, %v8296_v29  ;;  %v817_v62 = vmul.f32 %v816_v30, %v8296_v29  ;;  %v830_v54 = vstv %s8293_s7  ;;  %v8345_v6 = vld [vmem:[#allocation3 + $0x8] sm:$0xff]  ;;  %s8568_s7 = sld [smem:[#allocation5 + $0x60]] }
 0x27e   :  { %v831_v8 = vmul.f32 %v830_v54, %v8296_v29  ;;  %v3686_v9 = vadd.f32 %v3681_v7, %v3666_v16  ;;  %v845_v17 = vmul.f32 %v844_v4, %v8296_v29  ;;  %v859_v60 = vmul.f32 %v858_v56, %v8296_v29 }
 0x27f   :  { %807 = vrot.lane.b32.xlu0 %v803_v25, %s7341_s23  ;;  %v3533_v53 = vadd.f32 %v3529_v10, %v3505_v44  ;;  %v3790_v10 = vmul.f32 %v8223_v58, %v8035_v3  ;;  %v873_v24 = vmul.f32 %v872_v14, %v8296_v29  ;;  %v907_v0 = vmul.f32 %v906_v11, %v8345_v6 }
 0x280   :  { %v3683_v47 = vpop.permute.xlu1 %3682  ;;  %v921_v34 = vmul.f32 %v920_v23, %v8345_v6  ;;  %v935_v28 = vmul.f32 %v934_v51, %v8345_v6  ;;  %v948_v16 = vstv %s8357_s1  ;;  %v963_v5 = vmul.f32 %v962_v35, %v8345_v6  ;;  %s6532_s1 = sld [smem:[#allocation5 + $0x68]] }
 0x281   :  { %v8310_v41 = vadd.f32 %v3545_v50, %v3533_v53  ;;  %v3687_v27 = vadd.f32 %v3683_v47, %v3667_v40  ;;  %v949_v46 = vmul.f32 %v948_v16, %v8345_v6  ;;  %v976_v40 = vstv %s8377_s14  ;;  %s8679_s14 = sld [smem:[#allocation5 + $0x16]] }
 0x282   :  { %v977_v20 = vmul.f32 %v976_v40, %v8345_v6  ;;  %v1010_v7 = vstv %s8385_s15  ;;  %v1024_v25 = vstv %s8393_s0  ;;  %s8691_s15 = sld [smem:[#allocation5 + $0x26]]  ;;  %s8704_s0 = sld [smem:[#allocation5 + $0x17]] }
 0x283   :  { %821 = vrot.lane.b32.xlu0 %v817_v62, %s7341_s23 }
 0x284   :  { %v3709_v48 = vpop.permute.xlu1 %3708 }
 0x285   :  { %v3714_v26 = vadd.f32 %v3709_v48, %v3686_v9  ;;  %v1052_v48 = vstv %s8418_s18  ;;  %s6731_s18 = sld [smem:[#allocation5 + $0x18]] }
 0x287   :  { %835 = vrot.lane.b32.xlu0 %v831_v8, %s7341_s23 }
 0x288   :  { %v3711_v61 = vpop.permute.xlu1 %3710 }
 0x289   :  { %v3715_v18 = vadd.f32 %v3711_v61, %v3687_v27 }
 0x28b   :  { %849 = vrot.lane.b32.xlu0 %v845_v17, %s7342_s25 }
 0x28c   :  { %v3737_v15 = vpop.permute.xlu1 %3736 }
 0x28d   :  { %v3742_v42 = vadd.f32 %v3737_v15, %v3714_v26  ;;  %v1114_v26 = vstv %s8442_s20  ;;  %s6718_s20 = sld [smem:[#allocation5 + $0x2a]] }
 0x28f   :  { %v3770_v45 = vadd.f32 %v8269_v21, %v3742_v42  ;;  %863 = vrot.lane.b32.xlu0 %v859_v60, %s7342_s25  ;;  %v1156_v60 = vstv %s8453_s21  ;;  %s8749_s21 = sld [smem:[#allocation5 + $0x2c]] }
 0x290   :  { %v3739_v37 = vpop.permute.xlu1 %3738 }
 0x291   :  { %v8343_v2 = vadd.f32 %v3790_v10, %v3770_v45  ;;  %v3743_v21 = vadd.f32 %v3739_v37, %v3715_v18  ;;  %v1218_v10 = vstv %s8466_s22  ;;  %s8757_s22 = sld [smem:[#allocation5 + $0x2b]] }
 0x293   :  { %877 = vrot.lane.b32.xlu0 %v873_v24, %s7342_s25  ;;  %v1260_v24 = vstv %s8477_s24  ;;  %s8761_s24 = sld [smem:[#allocation5 + $0x2e]] }
 0x294   :  { %v3767_v55 = vpop.permute.xlu1 %3766 }
 0x295   :  { %v3771_v52 = vadd.f32 %v3767_v55, %v3743_v21 }
 0x297   :  { %911 = vrot.lane.b32.xlu0 %v907_v0, %s7341_s23  ;;  %v8360_v38 = vadd.f32 %v3791_v13, %v3771_v52  ;;  %v1322_v52 = vstv %s8487_s26  ;;  %s8774_s26 = sld [smem:[#allocation5 + $0x2f]] }
 0x298   :  { %v8362_v57 = vpop.permute.xlu1 %3570 }
 0x29b   :  { %925 = vrot.lane.b32.xlu0 %v921_v34, %s7341_s23 }
 0x29c   :  { %v8371_v3 = vpop.permute.xlu1 %3806 }
 0x29f   :  { %939 = vrot.lane.b32.xlu0 %v935_v28, %s7341_s23  ;;  %v8530_v28 = vld [vmem:[#allocation3 + $0x27] sm:$0xff] }
 0x2a0   :  { %v756_v59 = vpop.permute.xlu1 %755 }
 0x2a1   :  { %761 = vst.msk [vmem:[#allocation3 + $0x10] sm:$0xff] %vm759_vm5, %v756_v59 }
 0x2a3   :  { %953 = vrot.lane.b32.xlu0 %v949_v46, %s7342_s25 }
 0x2a4   :  { %v769_v19 = vpop.permute.xlu1 %768 }
 0x2a5   :  { %774 = vst.msk [vmem:[#allocation3 + $0x30] sm:$0xff] %vm759_vm5, %v769_v19 }
 0x2a7   :  { %967 = vrot.lane.b32.xlu0 %v963_v5, %s7342_s25 }
 0x2a8   :  { %v8396_v1 = vld [vmem:[#allocation3 + $0xf] sm:$0xff] }
 0x2a9   :  { %v804_v31 = vmul.f32 %v802_v63, %v8396_v1  ;;  %v8404_v12 = vld [vmem:[#allocation3 + $0x9] sm:$0xff]  ;;  %v818_v44 = vmul.f32 %v816_v30, %v8396_v1  ;;  %v832_v50 = vmul.f32 %v830_v54, %v8396_v1  ;;  %v1038_v30 = vstv %s8407_s17  ;;  %s8715_s17 = sld [smem:[#allocation5 + $0x27]] }
 0x2aa   :  { %v1011_v63 = vmul.f32 %v1010_v7, %v8404_v12  ;;  %v1025_v53 = vmul.f32 %v1024_v25, %v8404_v12  ;;  %v846_v47 = vmul.f32 %v844_v4, %v8396_v1  ;;  %v1039_v62 = vmul.f32 %v1038_v30, %v8404_v12 }
 0x2ab   :  { %809 = vrot.lane.b32.xlu1 %v804_v31, %s7341_s23  ;;  %981 = vrot.lane.b32.xlu0 %v977_v20, %s7342_s25  ;;  %v860_v54 = vmul.f32 %v858_v56, %v8396_v1  ;;  %v1053_v8 = vmul.f32 %v1052_v48, %v8404_v12  ;;  %v1066_v4 = vstv %s8429_s19  ;;  %v874_v61 = vmul.f32 %v872_v14, %v8396_v1  ;;  %v8461_v56 = vld [vmem:[#allocation3 + $0x10] sm:$0xff]  ;;  %s6716_s19 = sld [smem:[#allocation5 + $0x29]] }
 0x2ac   :  { %v1067_v9 = vmul.f32 %v1066_v4, %v8404_v12  ;;  %v8459_v17 = vld [vmem:[#allocation3 + $0x2f] sm:$0xff]  ;;  %v908_v15 = vmul.f32 %v906_v11, %v8461_v56  ;;  %v922_v14 = vmul.f32 %v920_v23, %v8461_v56  ;;  %v936_v37 = vmul.f32 %v934_v51, %v8461_v56 }
 0x2ad   :  { %11914 = vst [vmem:[#allocation27_spill] sm:$0xff] %v8459_v17  ;;  %v1116_v42 = vmul.f32 %v1114_v26, %v8459_v17  ;;  %v1158_v27 = vmul.f32 %v1156_v60, %v8459_v17  ;;  %v8485_v45 = vld [vmem:[#allocation3 + $0x30] sm:$0xff]  ;;  %v950_v11 = vmul.f32 %v948_v16, %v8461_v56  ;;  %v964_v0 = vmul.f32 %v962_v35, %v8461_v56 }
 0x2ae   :  { %11915 = vst [vmem:[#allocation23_spill] sm:$0xff] %v8485_v45  ;;  %v1220_v18 = vmul.f32 %v1218_v10, %v8485_v45  ;;  %v1262_v21 = vmul.f32 %v1260_v24, %v8485_v45  ;;  %v8507_v55 = vld [vmem:[#allocation3 + $0x31] sm:$0xff]  ;;  %v978_v34 = vmul.f32 %v976_v40, %v8461_v56  ;;  %v1128_v16 = vstv %s8510_s27  ;;  %v8554_v40 = vld [vmem:[#allocation3 + $0x28] sm:$0xff]  ;;  %s8786_s27 = sld [smem:[#allocation5 + $0x30]] }
 0x2af   :  { %823 = vrot.lane.b32.xlu1 %v818_v44, %s7341_s23  ;;  %1015 = vrot.lane.b32.xlu0 %v1011_v63, %s7341_s23  ;;  %11916 = vst [vmem:[#allocation61_spill] sm:$0xff] %v8507_v55  ;;  %v1324_v13 = vmul.f32 %v1322_v52, %v8507_v55  ;;  %v8520_v23 = vld [vmem:[#allocation3 + $0x11] sm:$0xff]  ;;  %v1129_v46 = vmul.f32 %v1128_v16, %v8530_v28  ;;  %v1170_v35 = vstv %s8522_s30  ;;  %11917 = vst [vmem:[#allocation12_spill] sm:$0xff] %v8554_v40  ;;  %s8797_s30 = sld [smem:[#allocation5 + $0x31]] }
 0x2b0   :  { %v1068_v51 = vmul.f32 %v1066_v4, %v8520_v23  ;;  %v1012_v59 = vmul.f32 %v1010_v7, %v8520_v23  ;;  %v1026_v19 = vmul.f32 %v1024_v25, %v8520_v23  ;;  %v1171_v5 = vmul.f32 %v1170_v35, %v8530_v28 }
 0x2b1   :  { %v1232_v31 = vstv %s8533_s4  ;;  %v1040_v20 = vmul.f32 %v1038_v30, %v8520_v23  ;;  %v1274_v44 = vstv %s8544_s5  ;;  %v1054_v63 = vmul.f32 %v1052_v48, %v8520_v23  ;;  %s8919_s4 = sld [smem:[#allocation5 + $0x4e]]  ;;  %s6739_s5 = sld [smem:[#allocation5 + $0x35]] }
 0x2b2   :  { %v1233_v7 = vmul.f32 %v1232_v31, %v8554_v40  ;;  %v1275_v25 = vmul.f32 %v1274_v44, %v8554_v40 }
 0x2b3   :  { %837 = vrot.lane.b32.xlu1 %v832_v50, %s7341_s23  ;;  %1029 = vrot.lane.b32.xlu0 %v1025_v53, %s7341_s23  ;;  %v8578_v50 = vld [vmem:[#allocation3 + $0x29] sm:$0xff]  ;;  %v1336_v53 = vstv %s8557_s6  ;;  %s8922_s6 = sld [smem:[#allocation5 + $0x46]] }
 0x2b4   :  { %11918 = vst [vmem:[#allocation17_spill] sm:$0xff] %v8578_v50  ;;  %v1337_v30 = vmul.f32 %v1336_v53, %v8578_v50 }
 0x2b7   :  { %851 = vrot.lane.b32.xlu1 %v846_v47, %s7342_s25  ;;  %1043 = vrot.lane.b32.xlu0 %v1039_v62, %s7341_s23  ;;  %v1115_v47 = vmul.f32 %v1114_v26, %v8530_v28  ;;  %v1080_v62 = vstv %s8568_s7  ;;  %v1142_v26 = vstv %s6514_s9  ;;  %s6742_s7 = sld [smem:[#allocation5 + $0x36]]  ;;  %s6748_s9 = sld [smem:[#allocation5 + $0x38]] }
 0x2b8   :  { %v1081_v48 = vmul.f32 %v1080_v62, %v8404_v12 }
 0x2bb   :  { %865 = vrot.lane.b32.xlu1 %v860_v54, %s7342_s25  ;;  %1057 = vrot.lane.b32.xlu0 %v1053_v8, %s7342_s25  ;;  %v1157_v54 = vmul.f32 %v1156_v60, %v8530_v28  ;;  %v1378_v8 = vstv %s8581_s8  ;;  %v1261_v60 = vmul.f32 %v1260_v24, %v8554_v40  ;;  %s8928_s8 = sld [smem:[#allocation5 + $0x6b]] }
 0x2bf   :  { %879 = vrot.lane.b32.xlu1 %v874_v61, %s7342_s25  ;;  %1071 = vrot.lane.b32.xlu0 %v1067_v9, %s7342_s25  ;;  %v1380_v61 = vmul.f32 %v1378_v8, %v8507_v55  ;;  %v1219_v9 = vmul.f32 %v1218_v10, %v8554_v40  ;;  %v1323_v10 = vmul.f32 %v1322_v52, %v8578_v50 }
 0x2c3   :  { %913 = vrot.lane.b32.xlu1 %v908_v15, %s7341_s23  ;;  %1121 = vrot.lane.b32.xlu0 %v1116_v42, %s7341_s23  ;;  %v1143_v42 = vmul.f32 %v1142_v26, %v8530_v28 }
 0x2c7   :  { %927 = vrot.lane.b32.xlu1 %v922_v14, %s7341_s23  ;;  %1163 = vrot.lane.b32.xlu0 %v1158_v27, %s7342_s25  ;;  %v1144_v27 = vmul.f32 %v1142_v26, %v8459_v17 }
 0x2cb   :  { %941 = vrot.lane.b32.xlu1 %v936_v37, %s7341_s23  ;;  %1225 = vrot.lane.b32.xlu0 %v1220_v18, %s7341_s23  ;;  %v1184_v37 = vstv %s6517_s10  ;;  %v1364_v18 = vstv %s6533_s11  ;;  %s8935_s10 = sld [smem:[#allocation5 + $0x58]]  ;;  %s8944_s11 = sld [smem:[#allocation5 + $0x39]] }
 0x2cf   :  { %955 = vrot.lane.b32.xlu1 %v950_v11, %s7342_s25  ;;  %1267 = vrot.lane.b32.xlu0 %v1262_v21, %s7342_s25  ;;  %v1185_v11 = vmul.f32 %v1184_v37, %v8530_v28  ;;  %v1365_v21 = vmul.f32 %v1364_v18, %v8578_v50 }
 0x2d3   :  { %969 = vrot.lane.b32.xlu1 %v964_v0, %s7342_s25  ;;  %1329 = vrot.lane.b32.xlu0 %v1324_v13, %s7341_s23  ;;  %v1186_v0 = vmul.f32 %v1184_v37, %v8459_v17  ;;  %v1366_v13 = vmul.f32 %v1364_v18, %v8507_v55  ;;  %v1082_v37 = vmul.f32 %v1080_v62, %v8520_v23  ;;  %v3829_v18 = vstv %s8679_s14  ;;  %s8968_s14 = sld [smem:[#allocation5 + $0x6a]] }
 0x2d7   :  { %983 = vrot.lane.b32.xlu1 %v978_v34, %s7342_s25  ;;  %1073 = vrot.lane.b32.xlu0 %v1068_v51, %s7342_s25  ;;  %v1246_v34 = vstv %s6523_s12  ;;  %s8946_s12 = sld [smem:[#allocation5 + $0x49]] }
 0x2db   :  { %1017 = vrot.lane.b32.xlu1 %v1012_v59, %s7341_s23  ;;  %1133 = vrot.lane.b32.xlu0 %v1129_v46, %s7341_s23  ;;  %v1247_v59 = vmul.f32 %v1246_v34, %v8554_v40  ;;  %v1130_v46 = vmul.f32 %v1128_v16, %v8459_v17 }
 0x2df   :  { %1031 = vrot.lane.b32.xlu1 %v1026_v19, %s7341_s23  ;;  %1175 = vrot.lane.b32.xlu0 %v1171_v5, %s7342_s25  ;;  %v1248_v5 = vmul.f32 %v1246_v34, %v8485_v45 }
 0x2e3   :  { %1045 = vrot.lane.b32.xlu1 %v1040_v20, %s7341_s23  ;;  %1237 = vrot.lane.b32.xlu0 %v1233_v7, %s7341_s23  ;;  %v1172_v20 = vmul.f32 %v1170_v35, %v8459_v17  ;;  %v1288_v7 = vstv %s6526_s13  ;;  %s8950_s13 = sld [smem:[#allocation5 + $0x34]] }
 0x2e4   :  { %v1290_v35 = vmul.f32 %v1288_v7, %v8485_v45 }
 0x2e7   :  { %1059 = vrot.lane.b32.xlu1 %v1054_v63, %s7342_s25  ;;  %1279 = vrot.lane.b32.xlu0 %v1275_v25, %s7342_s25  ;;  %v1289_v63 = vmul.f32 %v1288_v7, %v8554_v40  ;;  %v1234_v25 = vmul.f32 %v1232_v31, %v8485_v45 }
 0x2eb   :  { %1341 = vrot.lane.b32.xlu0 %v1337_v30, %s7341_s23  ;;  %1119 = vrot.lane.b32.xlu1 %v1115_v47, %s7341_s23  ;;  %v1276_v47 = vmul.f32 %v1274_v44, %v8485_v45  ;;  %v8683_v44 = vpop.permute.xlu1 %3808 }
 0x2ef   :  { %1085 = vrot.lane.b32.xlu0 %v1081_v48, %s7342_s25  ;;  %1161 = vrot.lane.b32.xlu1 %v1157_v54, %s7342_s25  ;;  %v1350_v48 = vstv %s6532_s1  ;;  %s8955_s1 = sld [smem:[#allocation5 + $0x6c]] }
 0x2f0   :  { %v1351_v31 = vmul.f32 %v1350_v48, %v8578_v50  ;;  %v1352_v26 = vmul.f32 %v1350_v48, %v8507_v55  ;;  %v3647_v48 = vstv %s8715_s17  ;;  %s8983_s17 = sld [smem:[#allocation5 + $0x4c]] }
 0x2f1   :  { %v8603_v4 = vpop.permute.xlu0 %807 }
 0x2f3   :  { %1385 = vrot.lane.b32.xlu0 %v1380_v61, %s7342_s25  ;;  %1223 = vrot.lane.b32.xlu1 %v1219_v9, %s7341_s23  ;;  %v1338_v61 = vmul.f32 %v1336_v53, %v8507_v55 }
 0x2f5   :  { %v8613_v15 = vpop.permute.xlu0 %821 }
 0x2f7   :  { %1147 = vrot.lane.b32.xlu0 %v1143_v42, %s7341_s23  ;;  %1265 = vrot.lane.b32.xlu1 %v1261_v60, %s7342_s25  ;;  %v1379_v42 = vmul.f32 %v1378_v8, %v8578_v50  ;;  %v1392_v60 = vstv %s6535_s16  ;;  %s8964_s16 = sld [smem:[#allocation5 + $0x3b]] }
 0x2f9   :  { %v8621_v14 = vpop.permute.xlu0 %835 }
 0x2fb   :  { %1149 = vrot.lane.b32.xlu0 %v1144_v27, %s7341_s23  ;;  %1327 = vrot.lane.b32.xlu1 %v1323_v10, %s7341_s23  ;;  %v1393_v10 = vmul.f32 %v1392_v60, %v8578_v50 }
 0x2fd   :  { %v8629_v24 = vpop.permute.xlu0 %849 }
 0x2ff   :  { %1189 = vrot.lane.b32.xlu0 %v1185_v11, %s7342_s25  ;;  %1369 = vrot.lane.b32.xlu1 %v1365_v21, %s7342_s25  ;;  %v1394_v21 = vmul.f32 %v1392_v60, %v8507_v55  ;;  %v3885_v60 = vstv %s6731_s18  ;;  %s8992_s18 = sld [smem:[#allocation5 + $0x37]] }
 0x301   :  { %v8635_v52 = vpop.permute.xlu0 %863 }
 0x303   :  { %1191 = vrot.lane.b32.xlu0 %v1186_v0, %s7342_s25  ;;  %1371 = vrot.lane.b32.xlu1 %v1366_v13, %s7342_s25  ;;  %v3830_v0 = vmul.f32 %v3829_v18, %v8223_v58  ;;  %v3619_v13 = vstv %s8691_s15  ;;  %s8976_s15 = sld [smem:[#allocation5 + $0x5b]] }
 0x305   :  { %v8641_v51 = vpop.permute.xlu0 %877 }
 0x307   :  { %1251 = vrot.lane.b32.xlu0 %v1247_v59, %s7341_s23  ;;  %1135 = vrot.lane.b32.xlu1 %v1130_v46, %s7341_s23  ;;  %v7266_v59 = vld [vmem:[#allocation2 + $0x8] sm:$0xff] }
 0x308   :  { %v3620_v46 = vmul.f32 %v7266_v59, %v3619_v13 }
 0x309   :  { %v8649_v19 = vpop.permute.xlu0 %911 }
 0x30b   :  { %1253 = vrot.lane.b32.xlu0 %v1248_v5, %s7341_s23  ;;  %1177 = vrot.lane.b32.xlu1 %v1172_v20, %s7342_s25  ;;  %v3831_v5 = vmul.f32 %v3829_v18, %v8238_v39  ;;  %v3857_v20 = vstv %s8704_s0  ;;  %s8979_s0 = sld [smem:[#allocation5 + $0x3c]] }
 0x30d   :  { %v8657_v16 = vpop.permute.xlu0 %925 }
 0x30f   :  { %1293 = vrot.lane.b32.xlu0 %v1289_v63, %s7342_s25  ;;  %1239 = vrot.lane.b32.xlu1 %v1234_v25, %s7341_s23  ;;  %v7267_v25 = vld [vmem:[#allocation2 + $0x10] sm:$0xff] }
 0x310   :  { %v3649_v18 = vmul.f32 %v7267_v25, %v3647_v48 }
 0x311   :  { %v8665_v30 = vpop.permute.xlu0 %939 }
 0x313   :  { %1295 = vrot.lane.b32.xlu0 %v1290_v35, %s7342_s25  ;;  %1281 = vrot.lane.b32.xlu1 %v1276_v47, %s7342_s25  ;;  %v3621_v35 = vmul.f32 %v7267_v25, %v3619_v13  ;;  %v3858_v47 = vmul.f32 %v3857_v20, %v8223_v58 }
 0x315   :  { %v8673_v54 = vpop.permute.xlu0 %953 }
 0x317   :  { %1355 = vrot.lane.b32.xlu0 %v1351_v31, %s7341_s23  ;;  %1343 = vrot.lane.b32.xlu1 %v1338_v61, %s7341_s23 }
 0x319   :  { %v8685_v9 = vpop.permute.xlu0 %967 }
 0x31b   :  { %1357 = vrot.lane.b32.xlu0 %v1352_v26, %s7341_s23  ;;  %1383 = vrot.lane.b32.xlu1 %v1379_v42, %s7342_s25  ;;  %v3648_v26 = vmul.f32 %v7266_v59, %v3647_v48  ;;  %v3859_v42 = vmul.f32 %v3857_v20, %v8238_v39  ;;  %v3717_v20 = vstv %s6718_s20  ;;  %s9004_s20 = sld [smem:[#allocation5 + $0x4f]] }
 0x31d   :  { %v8695_v53 = vpop.permute.xlu1 %809  ;;  %v8697_v27 = vpop.permute.xlu0 %981 }
 0x31f   :  { %1397 = vrot.lane.b32.xlu0 %v1393_v10, %s7342_s25  ;;  %1087 = vrot.lane.b32.xlu1 %v1082_v37, %s7342_s25 }
 0x321   :  { %v8708_v8 = vpop.permute.xlu1 %823  ;;  %v8710_v11 = vpop.permute.xlu0 %1015 }
 0x322   :  { %11919 = vst [vmem:[#allocation26_spill] sm:$0xff] %v8710_v11 }
 0x323   :  { %1399 = vrot.lane.b32.xlu0 %v1394_v21, %s7342_s25  ;;  %3834 = vrot.lane.b32.xlu1 %v3830_v0, %s7342_s25  ;;  %v3887_v21 = vmul.f32 %v3885_v60, %v8238_v39  ;;  %v3689_v0 = vstv %s6716_s19  ;;  %s9001_s19 = sld [smem:[#allocation5 + $0x47]] }
 0x325   :  { %v8719_v62 = vpop.permute.xlu1 %837  ;;  %v8721_v34 = vpop.permute.xlu0 %1029 }
 0x327   :  { %3624 = vrot.lane.b32.xlu0 %v3620_v46, %s7343_s28  ;;  %3836 = vrot.lane.b32.xlu1 %v3831_v5, %s7342_s25  ;;  %v3886_v46 = vmul.f32 %v3885_v60, %v8223_v58  ;;  %v3691_v5 = vmul.f32 %v3689_v0, %v8175_v32 }
 0x329   :  { %v8727_v7 = vpop.permute.xlu1 %851  ;;  %v8729_v63 = vpop.permute.xlu0 %1043 }
 0x32b   :  { %3626 = vrot.lane.b32.xlu0 %v3621_v35, %s7343_s28  ;;  %3862 = vrot.lane.b32.xlu1 %v3858_v47, %s7343_s28  ;;  %v8767_v47 = vld [vmem:[#allocation2 + $0x9] sm:$0xff] }
 0x32c   :  { %v3690_v48 = vmul.f32 %v8767_v47, %v3689_v0  ;;  %v3815_v0 = vstv %s8761_s24  ;;  %s9026_s24 = sld [smem:[#allocation5 + $0x45]] }
 0x32d   :  { %v8735_v31 = vpop.permute.xlu1 %865  ;;  %v8737_v61 = vpop.permute.xlu0 %1057  ;;  %v3817_v49 = vmul.f32 %v3815_v0, %v8238_v39 }
 0x32e   :  { %11920 = vst [vmem:[#allocation29_spill] sm:$0xff] %v8737_v61 }
 0x32f   :  { %3652 = vrot.lane.b32.xlu0 %v3648_v26, %s7344_s3  ;;  %3864 = vrot.lane.b32.xlu1 %v3859_v42, %s7343_s28  ;;  %v3719_v26 = vmul.f32 %v3717_v20, %v8175_v32  ;;  %v3773_v42 = vstv %s8749_s21  ;;  %s9009_s21 = sld [smem:[#allocation5 + $0x3a]] }
 0x330   :  { %v3774_v50 = vmul.f32 %v8767_v47, %v3773_v42 }
 0x331   :  { %v8742_v10 = vpop.permute.xlu1 %879  ;;  %v8744_v37 = vpop.permute.xlu0 %1071 }
 0x333   :  { %3654 = vrot.lane.b32.xlu0 %v3649_v18, %s7344_s3  ;;  %3892 = vrot.lane.b32.xlu1 %v3887_v21, %s7344_s3  ;;  %v3718_v21 = vmul.f32 %v8767_v47, %v3717_v20 }
 0x335   :  { %v8751_v13 = vpop.permute.xlu1 %913  ;;  %v8753_v59 = vpop.permute.xlu0 %1121 }
 0x336   :  { %11921 = vst [vmem:[#allocation63_spill] sm:$0xff] %v8753_v59 }
 0x337   :  { %3890 = vrot.lane.b32.xlu0 %v3886_v46, %s7344_s3  ;;  %3696 = vrot.lane.b32.xlu1 %v3691_v5, %s7341_s23  ;;  %v3775_v46 = vmul.f32 %v3773_v42, %v8175_v32  ;;  %v3745_v5 = vstv %s8757_s22  ;;  %v3843_v32 = vstv %s8774_s26  ;;  %s9016_s22 = sld [smem:[#allocation5 + $0x5e]]  ;;  %s9044_s26 = sld [smem:[#allocation5 + $0x48]] }
 0x338   :  { %v3746_v55 = vmul.f32 %v8767_v47, %v3745_v5 }
 0x339   :  { %v8763_v25 = vpop.permute.xlu1 %927  ;;  %v8765_v35 = vpop.permute.xlu0 %1163 }
 0x33a   :  { %11922 = vst [vmem:[#allocation28_spill] sm:$0xff] %v8765_v35 }
 0x33b   :  { %3694 = vrot.lane.b32.xlu0 %v3690_v48, %s7341_s23  ;;  %3724 = vrot.lane.b32.xlu1 %v3719_v26, %s7342_s25 }
 0x33d   :  { %v8776_v60 = vpop.permute.xlu1 %941  ;;  %v8778_v18 = vpop.permute.xlu0 %1225 }
 0x33e   :  { %11923 = vst [vmem:[#allocation31_spill] sm:$0xff] %v8778_v18  ;;  %v8804_v18 = vld [vmem:[#allocation2 + $0x11] sm:$0xff] }
 0x33f   :  { %3722 = vrot.lane.b32.xlu0 %v3718_v21, %s7342_s25  ;;  %3780 = vrot.lane.b32.xlu1 %v3775_v46, %s7344_s3  ;;  %v3845_v46 = vmul.f32 %v3843_v32, %v8238_v39 }
 0x341   :  { %v8788_v48 = vpop.permute.xlu1 %955  ;;  %v8790_v26 = vpop.permute.xlu0 %1267 }
 0x342   :  { %11924 = vst [vmem:[#allocation51_spill] sm:$0xff] %v8790_v26  ;;  %v3747_v26 = vmul.f32 %v8804_v18, %v3745_v5 }
 0x343   :  { %3822 = vrot.lane.b32.xlu1 %v3817_v49, %s7341_s23  ;;  %3750 = vrot.lane.b32.xlu0 %v3746_v55, %s7343_s28  ;;  %v3871_v49 = vstv %s8786_s27  ;;  %s9054_s27 = sld [smem:[#allocation5 + $0x52]] }
 0x344   :  { %v3873_v35 = vmul.f32 %v3871_v49, %v8238_v39 }
 0x345   :  { %v8799_v20 = vpop.permute.xlu1 %969  ;;  %v8801_v21 = vpop.permute.xlu0 %1329 }
 0x346   :  { %11925 = vst [vmem:[#allocation30_spill] sm:$0xff] %v8799_v20  ;;  %11926 = vst [vmem:[#allocation11_spill] sm:$0xff] %v8801_v21  ;;  %v3899_v21 = vstv %s8797_s30  ;;  %s9063_s30 = sld [smem:[#allocation5 + $0x3e]] }
 0x347   :  { %3850 = vrot.lane.b32.xlu1 %v3845_v46, %s7342_s25  ;;  %3752 = vrot.lane.b32.xlu0 %v3747_v26, %s7343_s28  ;;  %v3901_v26 = vmul.f32 %v3899_v21, %v8238_v39  ;;  %v3816_v46 = vmul.f32 %v3815_v0, %v8223_v58  ;;  %v3872_v39 = vmul.f32 %v3871_v49, %v8223_v58 }
 0x349   :  { %v8810_v55 = vpop.permute.xlu1 %983  ;;  %v8812_v45 = vpop.permute.xlu0 %1073 }
 0x34a   :  { %11927 = vst [vmem:[#allocation54_spill] sm:$0xff] %v8810_v55  ;;  %11928 = vst [vmem:[#allocation32_spill] sm:$0xff] %v8812_v45 }
 0x34b   :  { %3878 = vrot.lane.b32.xlu1 %v3873_v35, %s7343_s28  ;;  %3778 = vrot.lane.b32.xlu0 %v3774_v50, %s7344_s3  ;;  %v3844_v35 = vmul.f32 %v3843_v32, %v8223_v58 }
 0x34d   :  { %v8819_v59 = vpop.permute.xlu1 %1017  ;;  %v8821_v5 = vpop.permute.xlu0 %1133 }
 0x34e   :  { %11929 = vst [vmem:[#allocation58_spill] sm:$0xff] %v8819_v59 }
 0x34f   :  { %3906 = vrot.lane.b32.xlu1 %v3901_v26, %s7344_s3  ;;  %3820 = vrot.lane.b32.xlu0 %v3816_v46, %s7341_s23  ;;  %v3900_v46 = vmul.f32 %v3899_v21, %v8223_v58 }
 0x351   :  { %v8827_v45 = vpop.permute.xlu1 %1031  ;;  %v8829_v42 = vpop.permute.xlu0 %1175 }
 0x352   :  { %11930 = vst [vmem:[#allocation13_spill] sm:$0xff] %v8827_v45  ;;  %11931 = vst [vmem:[#allocation19_spill] sm:$0xff] %v8829_v42 }
 0x353   :  { %3848 = vrot.lane.b32.xlu0 %v3844_v35, %s7342_s25 }
 0x355   :  { %v8833_v50 = vpop.permute.xlu1 %1045  ;;  %v8835_v17 = vpop.permute.xlu0 %1237 }
 0x356   :  { %11932 = vst [vmem:[#allocation33_spill] sm:$0xff] %v8833_v50  ;;  %11933 = vst [vmem:[#allocation65_spill] sm:$0xff] %v8835_v17 }
 0x357   :  { %3876 = vrot.lane.b32.xlu0 %v3872_v39, %s7343_s28  ;;  %s6714_s28 = sld [smem:[#allocation5 + $0x28]] }
 0x359   :  { %v8839_v0 = vpop.permute.xlu1 %1059  ;;  %v8841_v26 = vpop.permute.xlu0 %1279 }
 0x35a   :  { %11934 = vst [vmem:[#allocation35_spill] sm:$0xff] %v8839_v0  ;;  %11935 = vst [vmem:[#allocation57_spill] sm:$0xff] %v8841_v26 }
 0x35b   :  { %3904 = vrot.lane.b32.xlu0 %v3900_v46, %s7344_s3  ;;  %s6724_s3 = sld [smem:[#allocation5 + $0x2d]] }
 0x35d   :  { %v8845_v45 = vpop.permute.xlu1 %1119  ;;  %v8847_v32 = vpop.permute.xlu0 %1341 }
 0x35e   :  { %11936 = vst [vmem:[#allocation67_spill] sm:$0xff] %v8845_v45  ;;  %11937 = vst [vmem:[#allocation21_spill] sm:$0xff] %v8847_v32 }
 0x361   :  { %v8849_v35 = vpop.permute.xlu1 %1161  ;;  %v8851_v50 = vpop.permute.xlu0 %1085 }
 0x362   :  { %11938 = vst [vmem:[#allocation34_spill] sm:$0xff] %v8849_v35  ;;  %11939 = vst [vmem:[#allocation37_spill] sm:$0xff] %v8851_v50 }
 0x365   :  { %v8853_v17 = vpop.permute.xlu1 %1223  ;;  %v8855_v49 = vpop.permute.xlu0 %1385 }
 0x366   :  { %11940 = vst [vmem:[#allocation69_spill] sm:$0xff] %v8853_v17  ;;  %11941 = vst [vmem:[#allocation36_spill] sm:$0xff] %v8855_v49 }
 0x369   :  { %v8857_v39 = vpop.permute.xlu1 %1265  ;;  %v8859_v61 = vpop.permute.xlu0 %1147 }
 0x36a   :  { %11942 = vst [vmem:[#allocation38_spill] sm:$0xff] %v8857_v39  ;;  %11943 = vst [vmem:[#allocation71_spill] sm:$0xff] %v8859_v61 }
 0x36d   :  { %v8861_v26 = vpop.permute.xlu1 %1327  ;;  %v8863_v58 = vpop.permute.xlu0 %1149 }
 0x36e   :  { %11944 = vst [vmem:[#allocation15_spill] sm:$0xff] %v8861_v26  ;;  %11945 = vst [vmem:[#allocation22_spill] sm:$0xff] %v8863_v58 }
 0x371   :  { %v8865_v21 = vpop.permute.xlu1 %1369  ;;  %v8867_v46 = vpop.permute.xlu0 %1189 }
 0x372   :  { %11946 = vst [vmem:[#allocation14_spill] sm:$0xff] %v8865_v21  ;;  %11947 = vst [vmem:[#allocation43_spill] sm:$0xff] %v8867_v46 }
 0x375   :  { %v8869_v32 = vpop.permute.xlu1 %1371  ;;  %v8871_v35 = vpop.permute.xlu0 %1191 }
 0x376   :  { %11948 = vst [vmem:[#allocation45_spill] sm:$0xff] %v8869_v32  ;;  %11949 = vst [vmem:[#allocation39_spill] sm:$0xff] %v8871_v35 }
 0x379   :  { %v8873_v45 = vpop.permute.xlu1 %1135  ;;  %v8875_v17 = vpop.permute.xlu0 %1251 }
 0x37a   :  { %11950 = vst [vmem:[#allocation40_spill] sm:$0xff] %v8873_v45  ;;  %11951 = vst [vmem:[#allocation50_spill] sm:$0xff] %v8875_v17 }
 0x37d   :  { %v8877_v49 = vpop.permute.xlu1 %1177  ;;  %v8879_v39 = vpop.permute.xlu0 %1253 }
 0x37e   :  { %11952 = vst [vmem:[#allocation41_spill] sm:$0xff] %v8877_v49  ;;  %11953 = vst [vmem:[#allocation42_spill] sm:$0xff] %v8879_v39 }
 0x381   :  { %v8881_v61 = vpop.permute.xlu1 %1239  ;;  %v8883_v26 = vpop.permute.xlu0 %1293 }
 0x382   :  { %11954 = vst [vmem:[#allocation49_spill] sm:$0xff] %v8881_v61  ;;  %11955 = vst [vmem:[#allocation16_spill] sm:$0xff] %v8883_v26 }
 0x385   :  { %v8885_v58 = vpop.permute.xlu1 %1281  ;;  %v8887_v21 = vpop.permute.xlu0 %1295 }
 0x386   :  { %11956 = vst [vmem:[#allocation52_spill] sm:$0xff] %v8885_v58  ;;  %11957 = vst [vmem:[#allocation55_spill] sm:$0xff] %v8887_v21  ;;  %v3574_v21 = vadd.f32 %v8275_v33, %v8273_v43  ;;  %v3812_v33 = vadd.f32 %v8371_v3, %v8343_v2 }
 0x389   :  { %v8889_v46 = vpop.permute.xlu1 %1343  ;;  %v8891_v32 = vpop.permute.xlu0 %1355 }
 0x38a   :  { %11958 = vst [vmem:[#allocation44_spill] sm:$0xff] %v8889_v46  ;;  %11959 = vst [vmem:[#allocation46_spill] sm:$0xff] %v8891_v32  ;;  %v3602_v32 = vadd.f32 %v8277_v36, %v3574_v21 }
 0x38d   :  { %v8893_v35 = vpop.permute.xlu1 %1383  ;;  %v8895_v45 = vpop.permute.xlu0 %1357 }
 0x38e   :  { %11960 = vst [vmem:[#allocation62_spill] sm:$0xff] %v8893_v35  ;;  %11961 = vst [vmem:[#allocation18_spill] sm:$0xff] %v8895_v45  ;;  %v3575_v45 = vadd.f32 %v8362_v57, %v8310_v41  ;;  %v3669_v35 = vstv %s6714_s28  ;;  %s9067_s28 = sld [smem:[#allocation5 + $0x3d]] }
 0x38f   :  { %v3670_v43 = vmul.f32 %v8767_v47, %v3669_v35 }
 0x390   :  { %v3603_v50 = vadd.f32 %v8282_v22, %v3575_v45 }
 0x391   :  { %v8897_v17 = vpop.permute.xlu1 %1087  ;;  %v8899_v49 = vpop.permute.xlu0 %1397 }
 0x392   :  { %11962 = vst [vmem:[#allocation47_spill] sm:$0xff] %v8897_v17  ;;  %11963 = vst [vmem:[#allocation64_spill] sm:$0xff] %v8899_v49  ;;  %v3813_v49 = vadd.f32 %v8683_v44, %v8360_v38  ;;  %v3671_v44 = vmul.f32 %v8804_v18, %v3669_v35 }
 0x395   :  { %v3835_v39 = vpop.permute.xlu1 %3834  ;;  %v8901_v61 = vpop.permute.xlu0 %1399 }
 0x396   :  { %11964 = vst [vmem:[#allocation48_spill] sm:$0xff] %v8901_v61  ;;  %v3840_v55 = vadd.f32 %v3835_v39, %v3812_v33 }
 0x399   :  { %v3837_v26 = vpop.permute.xlu1 %3836  ;;  %v3625_v58 = vpop.permute.xlu0 %3624 }
 0x39a   :  { %v3630_v17 = vadd.f32 %v3625_v58, %v3602_v32  ;;  %v3841_v11 = vadd.f32 %v3837_v26, %v3813_v49  ;;  %v3795_v58 = vstv %s6724_s3  ;;  %s9069_s3 = sld [smem:[#allocation5 + $0x61]] }
 0x39d   :  { %v3863_v46 = vpop.permute.xlu1 %3862  ;;  %v3627_v0 = vpop.permute.xlu0 %3626 }
 0x39e   :  { %v3631_v36 = vadd.f32 %v3627_v0, %v3603_v50  ;;  %v3868_v32 = vadd.f32 %v3863_v46, %v3840_v55 }
 0x3a1   :  { %v3865_v40 = vpop.permute.xlu1 %3864  ;;  %v3653_v61 = vpop.permute.xlu0 %3652 }
 0x3a2   :  { %v3658_v42 = vadd.f32 %v3653_v61, %v3630_v17  ;;  %v3869_v21 = vadd.f32 %v3865_v40, %v3841_v11 }
 0x3a4   :  { %v3672_v59 = vadd.f32 %v3670_v43, %v3658_v42  ;;  %v7270_v43 = vld [vmem:[#allocation2 + $0x12] sm:$0xff] }
 0x3a5   :  { %v3893_v41 = vpop.permute.xlu1 %3892  ;;  %v3655_v57 = vpop.permute.xlu0 %3654  ;;  %v3797_v33 = vmul.f32 %v7270_v43, %v3795_v58 }
 0x3a6   :  { %v3897_v20 = vadd.f32 %v3893_v41, %v3869_v21  ;;  %v3659_v38 = vadd.f32 %v3655_v57, %v3631_v36 }
 0x3a8   :  { %7170 = vtanh.f32 %v3897_v20  ;;  %v3673_v26 = vadd.f32 %v3671_v44, %v3659_v38  ;;  %v7271_v38 = vld [vmem:[#allocation2 + $0xa] sm:$0xff] }
 0x3a9   :  { %v3697_v22 = vpop.permute.xlu1 %3696  ;;  %v3891_v17 = vpop.permute.xlu0 %3890  ;;  %v3796_v44 = vmul.f32 %v7271_v38, %v3795_v58  ;;  %v3963_v58 = vstv %s6739_s5  ;;  %s9099_s5 = sld [smem:[#allocation5 + $0x64]] }
 0x3aa   :  { %v3896_v45 = vadd.f32 %v3891_v17, %v3868_v32  ;;  %v3701_v0 = vadd.f32 %v3697_v22, %v3673_v26 }
 0x3ac   :  { %7172 = vtanh.f32 %v3896_v45 }
 0x3ad   :  { %v3725_v61 = vpop.permute.xlu1 %3724  ;;  %v3695_v47 = vpop.permute.xlu0 %3694 }
 0x3ae   :  { %v3729_v18 = vadd.f32 %v3725_v61, %v3701_v0  ;;  %v3700_v20 = vadd.f32 %v3695_v47, %v3672_v59 }
 0x3b1   :  { %v3781_v2 = vpop.permute.xlu1 %3780  ;;  %v3723_v3 = vpop.permute.xlu0 %3722 }
 0x3b2   :  { %v7171_v40 = vpop.eup %7170  ;;  %v3728_v49 = vadd.f32 %v3723_v3, %v3700_v20 }
 0x3b3   :  { %3918 = vrot.lane.b32.xlu1 %v7171_v40, %s7345_s29 }
 0x3b5   :  { %v3823_v11 = vpop.permute.xlu1 %3822  ;;  %v3751_v42 = vpop.permute.xlu0 %3750 }
 0x3b6   :  { %v7173_v50 = vpop.eup %7172  ;;  %v3756_v46 = vadd.f32 %v3751_v42, %v3728_v49 }
 0x3b7   :  { %3916 = vrot.lane.b32.xlu0 %v7173_v50, %s7345_s29 }
 0x3b9   :  { %v3851_v55 = vpop.permute.xlu1 %3850  ;;  %v3753_v35 = vpop.permute.xlu0 %3752 }
 0x3ba   :  { %v3757_v39 = vadd.f32 %v3753_v35, %v3729_v18 }
 0x3bc   :  { %v3785_v36 = vadd.f32 %v3781_v2, %v3757_v39  ;;  %v4227_v39 = vstv %s8919_s4  ;;  %s6736_s4 = sld [smem:[#allocation5 + $0x34]] }
 0x3bd   :  { %v3779_v21 = vpop.permute.xlu0 %3778  ;;  %v3879_v32 = vpop.permute.xlu1 %3878 }
 0x3be   :  { %v3799_v41 = vadd.f32 %v3797_v33, %v3785_v36  ;;  %v3784_v57 = vadd.f32 %v3779_v21, %v3756_v46  ;;  %v790_v36 = vstv %s8922_s6  ;;  %s9104_s6 = sld [smem:[#allocation5 + $0x4a]] }
 0x3bf   :  { %v791_v38 = vmul.f32 %v790_v36, %v8296_v29 }
 0x3c0   :  { %v3827_v26 = vadd.f32 %v3823_v11, %v3799_v41  ;;  %v3798_v22 = vadd.f32 %v3796_v44, %v3784_v57  ;;  %v4005_v57 = vstv %s6742_s7  ;;  %v778_v44 = vstv %s8928_s8  ;;  %s9113_s7 = sld [smem:[#allocation5 + $0x3f]]  ;;  %s9119_s8 = sld [smem:[#allocation5 + $0x40]] }
 0x3c1   :  { %v3821_v17 = vpop.permute.xlu0 %3820  ;;  %v3907_v61 = vpop.permute.xlu1 %3906 }
 0x3c2   :  { %v3855_v45 = vadd.f32 %v3851_v55, %v3827_v26  ;;  %v3826_v40 = vadd.f32 %v3821_v17, %v3798_v22  ;;  %v4067_v17 = vstv %s6748_s9  ;;  %s9126_s9 = sld [smem:[#allocation5 + $0x55]] }
 0x3c4   :  { %v3883_v59 = vadd.f32 %v3879_v32, %v3855_v45 }
 0x3c5   :  { %v3849_v47 = vpop.permute.xlu0 %3848 }
 0x3c6   :  { %v3911_v3 = vadd.f32 %v3907_v61, %v3883_v59  ;;  %v3854_v50 = vadd.f32 %v3849_v47, %v3826_v40  ;;  %v793_v59 = vadd.f32 %v791_v38, %v778_v44  ;;  %v796_v61 = vstv %s8935_s10  ;;  %s9152_s10 = sld [smem:[#allocation5 + $0x4b]] }
 0x3c8   :  { %7174 = vtanh.f32 %v3911_v3  ;;  %v827_v40 = vadd.f32 %v8613_v15, %v793_v59  ;;  %v900_v59 = vstv %s8976_s15  ;;  %s6733_s15 = sld [smem:[#allocation5 + $0x6a]] }
 0x3c9   :  { %v3877_v42 = vpop.permute.xlu0 %3876 }
 0x3ca   :  { %v3882_v0 = vadd.f32 %v3877_v42, %v3854_v50  ;;  %v4109_v42 = vstv %s8944_s11  ;;  %v797_v50 = vmul.f32 %v796_v61, %v8296_v29  ;;  %v869_v15 = vadd.f32 %v8635_v52, %v827_v40  ;;  %s9165_s11 = sld [smem:[#allocation5 + $0x67]] }
 0x3cd   :  { %v3905_v2 = vpop.permute.xlu0 %3904 }
 0x3ce   :  { %v3910_v18 = vadd.f32 %v3905_v2, %v3882_v0  ;;  %v894_v0 = vstv %s8946_s12  ;;  %v784_v2 = vstv %s8950_s13  ;;  %s9173_s12 = sld [smem:[#allocation5 + $0x41]]  ;;  %s9189_s13 = sld [smem:[#allocation5 + $0x43]] }
 0x3cf   :  { %v785_v52 = vmul.f32 %v784_v2, %v8296_v29 }
 0x3d0   :  { %7176 = vtanh.f32 %v3910_v18  ;;  %v780_v18 = vstv %s8955_s1  ;;  %s9197_s1 = sld [smem:[#allocation5 + $0x4d]] }
 0x3d2   :  { %v7175_v20 = vpop.eup %7174 }
 0x3d3   :  { %3930 = vrot.lane.b32.xlu1 %v7175_v20, %s7345_s29 }
 0x3da   :  { %v7177_v35 = vpop.eup %7176 }
 0x3db   :  { %3928 = vrot.lane.b32.xlu0 %v7177_v35, %s7345_s29 }
 0x425   :  { %v3919_v11 = vpop.permute.xlu1 %3918 }
 0x426   :  { %3923 = vst.msk [vmem:[#allocation3 + $0x10] sm:$0xff] %vm759_vm5, %v3919_v11  ;;  %v895_v11 = vmul.f32 %v894_v0, %v8345_v6 }
 0x428   :  { %v897_v38 = vadd.f32 %v895_v11, %v869_v15 }
 0x429   :  { %v3917_v55 = vpop.permute.xlu0 %3916 }
 0x42a   :  { %3922 = vst.msk [vmem:[#allocation3 + $0x8] sm:$0xff] %vm759_vm5, %v3917_v55  ;;  %v786_v55 = vmul.f32 %v784_v2, %v8396_v1  ;;  %v931_v29 = vadd.f32 %v8657_v16, %v897_v38 }
 0x42c   :  { %v973_v16 = vadd.f32 %v8685_v9, %v931_v29  ;;  %v888_v9 = vstv %s8992_s18  ;;  %s6737_s18 = sld [smem:[#allocation5 + $0x46]] }
 0x42d   :  { %v8925_v49 = vld [vmem:[#allocation3 + $0x11] sm:$0xff] }
 0x42e   :  { %v8933_v46 = vmul.f32 %v4227_v39, %v8925_v49  ;;  %v8960_v22 = vld [vmem:[#allocation3 + $0x10] sm:$0xff] }
 0x42f   :  { %v4069_v47 = vmul.f32 %v4067_v17, %v8960_v22  ;;  %v4111_v20 = vmul.f32 %v4109_v42, %v8960_v22 }
 0x431   :  { %v8937_v43 = vld [vmem:[#allocation3 + $0xf] sm:$0xff]  ;;  %v8939_v33 = vld [vmem:[#allocation3 + $0x7] sm:$0xff] }
 0x432   :  { %v3965_v21 = vmul.f32 %v3963_v58, %v8937_v43  ;;  %v3964_v41 = vmul.f32 %v3963_v58, %v8939_v33  ;;  %v4007_v32 = vmul.f32 %v4005_v57, %v8937_v43  ;;  %v4006_v26 = vmul.f32 %v4005_v57, %v8939_v33  ;;  %v8962_v45 = vld [vmem:[#allocation3 + $0x8] sm:$0xff] }
 0x433   :  { %v4068_v3 = vmul.f32 %v4067_v17, %v8962_v45  ;;  %v4110_v35 = vmul.f32 %v4109_v42, %v8962_v45  ;;  %v4171_v58 = vstv %s8964_s16  ;;  %v776_v57 = vstv %s8968_s14  ;;  %s9216_s16 = sld [smem:[#allocation5 + $0x42]]  ;;  %s9253_s14 = sld [smem:[#allocation5 + $0x44]] }
 0x434   :  { %3970 = vrot.lane.b32.xlu1 %v3965_v21, %s7341_s23  ;;  %3968 = vrot.lane.b32.xlu0 %v3964_v41, %s7341_s23  ;;  %v8999_v21 = vld [vmem:[#allocation3 + $0x9] sm:$0xff]  ;;  %v799_v41 = vadd.f32 %v797_v50, %v780_v18  ;;  %v787_v40 = vadd.f32 %v785_v52, %v776_v57  ;;  %v998_v50 = vstv %s8983_s17  ;;  %v1102_v52 = vstv %s9004_s20  ;;  %s6754_s17 = sld [smem:[#allocation5 + $0x3a]]  ;;  %s6746_s20 = sld [smem:[#allocation5 + $0x49]] }
 0x435   :  { %v4172_v17 = vmul.f32 %v4171_v58, %v8999_v21 }
 0x438   :  { %4012 = vrot.lane.b32.xlu1 %v4007_v32, %s7342_s25  ;;  %4010 = vrot.lane.b32.xlu0 %v4006_v26, %s7342_s25  ;;  %v841_v32 = vadd.f32 %v8621_v14, %v799_v41  ;;  %v4173_v26 = vmul.f32 %v4171_v58, %v8925_v49  ;;  %v792_v14 = vmul.f32 %v790_v36, %v8396_v1  ;;  %v992_v41 = vstv %s9009_s21  ;;  %s6755_s21 = sld [smem:[#allocation5 + $0x4c]] }
 0x439   :  { %v901_v36 = vmul.f32 %v900_v59, %v8345_v6 }
 0x43a   :  { %v883_v42 = vadd.f32 %v8641_v51, %v841_v32  ;;  %v798_v51 = vmul.f32 %v796_v61, %v8396_v1  ;;  %v3977_v1 = vstv %s9001_s19  ;;  %v794_v58 = vadd.f32 %v792_v14, %v778_v44  ;;  %s6734_s19 = sld [smem:[#allocation5 + $0x6b]] }
 0x43b   :  { %v890_v32 = vmul.f32 %v888_v9, %v8461_v56  ;;  %v3978_v44 = vmul.f32 %v3977_v1, %v8939_v33 }
 0x43c   :  { %4074 = vrot.lane.b32.xlu1 %v4069_v47, %s7341_s23  ;;  %4072 = vrot.lane.b32.xlu0 %v4068_v3, %s7341_s23  ;;  %v788_v47 = vadd.f32 %v786_v55, %v776_v57  ;;  %v4213_v3 = vstv %s8979_s0  ;;  %v903_v61 = vadd.f32 %v901_v36, %v883_v42  ;;  %v800_v57 = vadd.f32 %v798_v51, %v780_v18  ;;  %s6745_s0 = sld [smem:[#allocation5 + $0x37]] }
 0x43d   :  { %v4214_v11 = vmul.f32 %v4213_v3, %v8999_v21  ;;  %v1004_v18 = vstv %s9016_s22  ;;  %v4019_v51 = vstv %s9044_s26  ;;  %s9323_s22 = sld [smem:[#allocation5 + $0x4f]]  ;;  %s6551_s26 = sld [smem:[#allocation5 + $0xc0]] }
 0x43e   :  { %v814_v2 = vadd.f32 %v8695_v53, %v788_v47  ;;  %v999_v53 = vmul.f32 %v998_v50, %v8404_v12 }
 0x440   :  { %4116 = vrot.lane.b32.xlu1 %v4111_v20, %s7342_s25  ;;  %4114 = vrot.lane.b32.xlu0 %v4110_v35, %s7342_s25  ;;  %v813_v20 = vadd.f32 %v8603_v4, %v787_v40  ;;  %v4215_v35 = vmul.f32 %v4213_v3, %v8925_v49  ;;  %v856_v55 = vadd.f32 %v8727_v7, %v814_v2 }
 0x441   :  { %v1001_v38 = vadd.f32 %v999_v53, %v973_v16  ;;  %v889_v7 = vmul.f32 %v888_v9, %v8345_v6  ;;  %v1005_v16 = vmul.f32 %v1004_v18, %v8404_v12  ;;  %v896_v2 = vmul.f32 %v894_v0, %v8461_v56 }
 0x442   :  { %v855_v4 = vadd.f32 %v8629_v24, %v813_v20  ;;  %v945_v24 = vadd.f32 %v8665_v30, %v903_v61  ;;  %v892_v47 = vadd.f32 %v890_v32, %v856_v55  ;;  %v4525_v30 = vstv %s9026_s24  ;;  %s6547_s24 = sld [smem:[#allocation5 + $0xbf]] }
 0x443   :  { %v1035_v29 = vadd.f32 %v8721_v34, %v1001_v38  ;;  %v4020_v9 = vmul.f32 %v4019_v51, %v8939_v33 }
 0x444   :  { %4178 = vrot.lane.b32.xlu1 %v4173_v26, %s7341_s23  ;;  %4176 = vrot.lane.b32.xlu0 %v4172_v17, %s7341_s23  ;;  %v828_v26 = vadd.f32 %v8708_v8, %v794_v58  ;;  %v842_v17 = vadd.f32 %v8719_v62, %v800_v57  ;;  %v891_v3 = vadd.f32 %v889_v7, %v855_v4  ;;  %v4275_v4 = vstv %s9063_s30  ;;  %v11965_v58 = vld [vmem:[#allocation30_spill] sm:$0xff]  ;;  %v11969_v7 = vld [vmem:[#allocation37_spill] sm:$0xff]  ;;  %s6546_s30 = sld [smem:[#allocation5 + $0xa4]] }
 0x445   :  { %v3931_v15 = vpop.permute.xlu1 %3930  ;;  %v987_v40 = vadd.f32 %v8697_v27, %v945_v24  ;;  %v1077_v62 = vadd.f32 %v8744_v37, %v1035_v29  ;;  %v918_v34 = vadd.f32 %v8751_v13, %v892_v47  ;;  %v1103_v27 = vmul.f32 %v1102_v52, %v8530_v28 }
 0x446   :  { %3935 = vst.msk [vmem:[#allocation3 + $0x30] sm:$0xff] %vm759_vm5, %v3931_v15  ;;  %v870_v6 = vadd.f32 %v8735_v31, %v828_v26  ;;  %v884_v8 = vadd.f32 %v8742_v10, %v842_v17  ;;  %v917_v14 = vadd.f32 %v8649_v19, %v891_v3  ;;  %v3979_v10 = vmul.f32 %v3977_v1, %v8937_v43 }
 0x447   :  { %v902_v37 = vmul.f32 %v900_v59, %v8461_v56  ;;  %v960_v13 = vadd.f32 %v8788_v48, %v918_v34  ;;  %v1007_v20 = vadd.f32 %v1005_v16, %v987_v40  ;;  %v994_v56 = vmul.f32 %v992_v41, %v8520_v23 }
 0x448   :  { %4220 = vrot.lane.b32.xlu1 %v4215_v35, %s7342_s25  ;;  %4218 = vrot.lane.b32.xlu0 %v4214_v11, %s7342_s25  ;;  %v959_v19 = vadd.f32 %v8673_v54, %v917_v14  ;;  %v898_v36 = vadd.f32 %v896_v2, %v870_v6  ;;  %v1105_v59 = vadd.f32 %v1103_v27, %v1077_v62  ;;  %v1206_v48 = vstv %s9054_s27  ;;  %v11971_v6 = vld [vmem:[#allocation12_spill] sm:$0xff]  ;;  %v11972_v62 = vld [vmem:[#allocation35_spill] sm:$0xff]  ;;  %v11973_v14 = vld [vmem:[#allocation29_spill] sm:$0xff]  ;;  %s6559_s27 = sld [smem:[#allocation5 + $0xc2]] }
 0x449   :  { %v904_v0 = vadd.f32 %v902_v37, %v884_v8  ;;  %v993_v35 = vmul.f32 %v992_v41, %v8404_v12  ;;  %v1049_v54 = vadd.f32 %v8729_v63, %v1007_v20  ;;  %v996_v55 = vadd.f32 %v994_v56, %v960_v13  ;;  %v11967_v41 = vld [vmem:[#allocation58_spill] sm:$0xff] }
 0x44a   :  { %v932_v11 = vadd.f32 %v8763_v25, %v898_v36  ;;  %v1139_v1 = vadd.f32 %v8821_v5, %v1105_v59  ;;  %v9117_v12 = vstv %s9067_s28  ;;  %v1108_v63 = vstv %s9069_s3  ;;  %v11966_v25 = vld [vmem:[#allocation54_spill] sm:$0xff]  ;;  %v11968_v5 = vld [vmem:[#allocation19_spill] sm:$0xff]  ;;  %v11976_v59 = vld [vmem:[#allocation33_spill] sm:$0xff]  ;;  %s6563_s28 = sld [smem:[#allocation5 + $0xc3]]  ;;  %s6550_s3 = sld [smem:[#allocation5 + $0xa5]] }
 0x44b   :  { %v946_v53 = vadd.f32 %v8776_v60, %v904_v0  ;;  %v995_v61 = vadd.f32 %v993_v35, %v959_v19  ;;  %v1022_v38 = vadd.f32 %v11967_v41, %v996_v55  ;;  %v1091_v24 = vadd.f32 %v11969_v7, %v1049_v54  ;;  %v11975_v19 = vld [vmem:[#allocation13_spill] sm:$0xff]  ;;  %v11981_v41 = vld [vmem:[#allocation67_spill] sm:$0xff] }
 0x44c   :  { %3982 = vrot.lane.b32.xlu0 %v3978_v44, %s7341_s23  ;;  %v974_v57 = vadd.f32 %v11965_v58, %v932_v11  ;;  %v1181_v32 = vadd.f32 %v11968_v5, %v1139_v1  ;;  %v11970_v44 = vld [vmem:[#allocation26_spill] sm:$0xff]  ;;  %v1000_v29 = vmul.f32 %v998_v50, %v8520_v23  ;;  %v4021_v47 = vmul.f32 %v4019_v51, %v8937_v43  ;;  %v11974_v50 = vld [vmem:[#allocation27_spill] sm:$0xff] }
 0x44d   :  { %v3929_v31 = vpop.permute.xlu0 %3928  ;;  %v9079_v42 = vld [vmem:[#allocation3 + $0x31] sm:$0xff]  ;;  %v988_v60 = vadd.f32 %v11966_v25, %v946_v53  ;;  %v1021_v17 = vadd.f32 %v11970_v44, %v995_v61  ;;  %v1006_v40 = vmul.f32 %v1004_v18, %v8520_v23  ;;  %v1207_v8 = vmul.f32 %v1206_v48, %v11971_v6  ;;  %v11977_v11 = vld [vmem:[#allocation71_spill] sm:$0xff] }
 0x44e   :  { %3934 = vst.msk [vmem:[#allocation3 + $0x28] sm:$0xff] %vm759_vm5, %v3929_v31  ;;  %v9096_v15 = vmul.f32 %v4525_v30, %v9079_v42  ;;  %v1064_v34 = vadd.f32 %v11972_v62, %v1022_v38  ;;  %v1109_v27 = vmul.f32 %v1108_v63, %v8530_v28  ;;  %v1002_v2 = vadd.f32 %v1000_v29, %v974_v57  ;;  %v11979_v58 = vld [vmem:[#allocation43_spill] sm:$0xff] }
 0x44f   :  { %v1063_v16 = vadd.f32 %v11973_v14, %v1021_v17  ;;  %v1212_v37 = vstv %s9099_s5  ;;  %v1008_v23 = vadd.f32 %v1006_v40, %v988_v60  ;;  %v1209_v18 = vadd.f32 %v1207_v8, %v1181_v32  ;;  %v11980_v25 = vld [vmem:[#allocation47_spill] sm:$0xff]  ;;  %v11985_v8 = vld [vmem:[#allocation17_spill] sm:$0xff]  ;;  %s6571_s5 = sld [smem:[#allocation5 + $0xc5]] }
 0x450   :  { %3984 = vrot.lane.b32.xlu0 %v3979_v10, %s7341_s23  ;;  %v1098_v10 = vmul.f32 %v9117_v12, %v11974_v50  ;;  %v1111_v13 = vadd.f32 %v1109_v27, %v1091_v24  ;;  %v4081_v51 = vstv %s9104_s6  ;;  %v1036_v20 = vadd.f32 %v11975_v19, %v1002_v2  ;;  %v11982_v24 = vld [vmem:[#allocation32_spill] sm:$0xff]  ;;  %v11983_v17 = vld [vmem:[#allocation63_spill] sm:$0xff]  ;;  %s6558_s6 = sld [smem:[#allocation5 + $0xa7]] }
 0x451   :  { %v1097_v36 = vmul.f32 %v9117_v12, %v8530_v28  ;;  %v4082_v0 = vmul.f32 %v4081_v51, %v8962_v45  ;;  %v1050_v35 = vadd.f32 %v11976_v59, %v1008_v23  ;;  %v4317_v53 = vstv %s9113_s7  ;;  %v11978_v28 = vld [vmem:[#allocation65_spill] sm:$0xff]  ;;  %s6575_s7 = sld [smem:[#allocation5 + $0xc6]] }
 0x452   :  { %v1100_v54 = vadd.f32 %v1098_v10, %v1064_v34  ;;  %v9163_v1 = vstv %s9119_s8  ;;  %v1243_v61 = vadd.f32 %v11978_v28, %v1209_v18  ;;  %v1213_v5 = vmul.f32 %v1212_v37, %v11971_v6  ;;  %v11986_v34 = vld [vmem:[#allocation34_spill] sm:$0xff]  ;;  %s6562_s8 = sld [smem:[#allocation5 + $0xa8]] }
 0x453   :  { %v1099_v55 = vadd.f32 %v1097_v36, %v1063_v16  ;;  %v1092_v60 = vadd.f32 %v11980_v25, %v1050_v35  ;;  %v4083_v32 = vmul.f32 %v4081_v51, %v8960_v22  ;;  %v1078_v44 = vadd.f32 %v11982_v24, %v1036_v20  ;;  %v11988_v36 = vld [vmem:[#allocation50_spill] sm:$0xff] }
 0x454   :  { %4024 = vrot.lane.b32.xlu0 %v4020_v9, %s7342_s25  ;;  %v1153_v9 = vadd.f32 %v11977_v11, %v1111_v13  ;;  %v1126_v29 = vadd.f32 %v11983_v17, %v1100_v54  ;;  %v1110_v40 = vmul.f32 %v1108_v63, %v11974_v50  ;;  %v1104_v14 = vmul.f32 %v1102_v52, %v11974_v50  ;;  %v11987_v13 = vld [vmem:[#allocation28_spill] sm:$0xff]  ;;  %v11989_v50 = vld [vmem:[#allocation23_spill] sm:$0xff] }
 0x455   :  { %v9129_v26 = vld [vmem:[#allocation3 + $0x27] sm:$0xff]  ;;  %v9143_v31 = vld [vmem:[#allocation3 + $0x2f] sm:$0xff]  ;;  %v1125_v38 = vadd.f32 %v11981_v41, %v1099_v55  ;;  %v4123_v10 = vstv %s9152_s10  ;;  %v1201_v63 = vmul.f32 %v9163_v1, %v11971_v6  ;;  %v1316_v35 = vstv %s9165_s11  ;;  %s6570_s10 = sld [smem:[#allocation5 + $0xaa]]  ;;  %s6587_s11 = sld [smem:[#allocation5 + $0xc9]] }
 0x456   :  { %v4276_v3 = vmul.f32 %v4275_v4, %v9129_v26  ;;  %v4277_v56 = vmul.f32 %v4275_v4, %v9143_v31  ;;  %v1310_v4 = vstv %s9126_s9  ;;  %v1195_v57 = vadd.f32 %v11979_v58, %v1153_v9  ;;  %v9205_v52 = vld [vmem:[#allocation3 + $0x28] sm:$0xff]  ;;  %v11994_v41 = vld [vmem:[#allocation41_spill] sm:$0xff]  ;;  %s6583_s9 = sld [smem:[#allocation5 + $0xc8]] }
 0x457   :  { %v4318_v7 = vmul.f32 %v4317_v53, %v9129_v26  ;;  %v1311_v62 = vmul.f32 %v1310_v4, %v11985_v8  ;;  %v1167_v27 = vadd.f32 %v11986_v34, %v1125_v38  ;;  %v1112_v2 = vadd.f32 %v1110_v40, %v1092_v60  ;;  %v11990_v6 = vld [vmem:[#allocation40_spill] sm:$0xff]  ;;  %v11997_v40 = vld [vmem:[#allocation39_spill] sm:$0xff] }
 0x458   :  { %4026 = vrot.lane.b32.xlu0 %v4021_v47, %s7342_s25  ;;  %4280 = vrot.lane.b32.xlu1 %v4276_v3, %s7341_s23  ;;  %v11984_v47 = vld [vmem:[#allocation57_spill] sm:$0xff]  ;;  %v1215_v16 = vadd.f32 %v1213_v5, %v1195_v57  ;;  %v4124_v23 = vmul.f32 %v4123_v10, %v8962_v45  ;;  %v4319_v18 = vmul.f32 %v4317_v53, %v9143_v31  ;;  %v11991_v11 = vld [vmem:[#allocation16_spill] sm:$0xff]  ;;  %v11992_v53 = vld [vmem:[#allocation22_spill] sm:$0xff]  ;;  %v4379_v28 = vstv %s9173_s12  ;;  %s6574_s12 = sld [smem:[#allocation5 + $0xab]] }
 0x459   :  { %v1285_v3 = vadd.f32 %v11984_v47, %v1243_v61  ;;  %v1168_v51 = vadd.f32 %v11987_v13, %v1126_v29  ;;  %v1106_v20 = vadd.f32 %v1104_v14, %v1078_v44  ;;  %v1203_v59 = vadd.f32 %v1201_v63, %v1167_v27  ;;  %v11993_v57 = vld [vmem:[#allocation21_spill] sm:$0xff]  ;;  %v11996_v47 = vld [vmem:[#allocation62_spill] sm:$0xff] }
 0x45a   :  { %v1154_v55 = vadd.f32 %v11992_v53, %v1112_v2  ;;  %v4125_v61 = vmul.f32 %v4123_v10, %v8960_v22  ;;  %v4380_v58 = vmul.f32 %v4379_v28, %v9205_v52  ;;  %v1317_v5 = vmul.f32 %v1316_v35, %v11985_v8  ;;  %v11998_v2 = vld [vmem:[#allocation38_spill] sm:$0xff]  ;;  %v11999_v10 = vld [vmem:[#allocation31_spill] sm:$0xff]  ;;  %v12005_v53 = vld [vmem:[#allocation52_spill] sm:$0xff] }
 0x45b   :  { %v1313_v19 = vadd.f32 %v1311_v62, %v1285_v3  ;;  %v1140_v54 = vadd.f32 %v11990_v6, %v1106_v20  ;;  %v9229_v44 = vstv %s9189_s13  ;;  %v1208_v17 = vmul.f32 %v1206_v48, %v11989_v50  ;;  %v12003_v6 = vld [vmem:[#allocation49_spill] sm:$0xff]  ;;  %s6595_s13 = sld [smem:[#allocation5 + $0xcb]] }
 0x45c   :  { %4086 = vrot.lane.b32.xlu0 %v4082_v0, %s7341_s23  ;;  %4282 = vrot.lane.b32.xlu1 %v4277_v56, %s7341_s23  ;;  %v1257_v0 = vadd.f32 %v11988_v36, %v1215_v16  ;;  %v1202_v56 = vmul.f32 %v9163_v1, %v11989_v50  ;;  %v1196_v62 = vadd.f32 %v11997_v40, %v1154_v55  ;;  %v4185_v34 = vstv %s9197_s1  ;;  %s6582_s1 = sld [smem:[#allocation5 + $0xad]] }
 0x45d   :  { %v1347_v25 = vadd.f32 %v11993_v57, %v1313_v19  ;;  %v1182_v38 = vadd.f32 %v11994_v41, %v1140_v54  ;;  %v1214_v27 = vmul.f32 %v1212_v37, %v11989_v50  ;;  %v4186_v14 = vmul.f32 %v4185_v34, %v8999_v21  ;;  %v12001_v19 = vld [vmem:[#allocation64_spill] sm:$0xff] }
 0x45e   :  { %v1299_v9 = vadd.f32 %v11991_v11, %v1257_v0  ;;  %v1204_v60 = vadd.f32 %v1202_v56, %v1168_v51  ;;  %v1305_v51 = vmul.f32 %v9229_v44, %v11985_v8  ;;  %v4421_v36 = vstv %s9216_s16  ;;  %v12004_v11 = vld [vmem:[#allocation61_spill] sm:$0xff]  ;;  %s6599_s16 = sld [smem:[#allocation5 + $0xcc]] }
 0x45f   :  { %v1389_v3 = vadd.f32 %v11996_v47, %v1347_v25  ;;  %v1216_v37 = vadd.f32 %v1214_v27, %v1196_v62  ;;  %v4187_v0 = vmul.f32 %v4185_v34, %v8925_v49  ;;  %v4422_v50 = vmul.f32 %v4421_v36, %v9205_v52  ;;  %v12007_v25 = vld [vmem:[#allocation15_spill] sm:$0xff]  ;;  %v12011_v27 = vld [vmem:[#allocation45_spill] sm:$0xff] }
 0x460   :  { %4088 = vrot.lane.b32.xlu0 %v4083_v32, %s7341_s23  ;;  %4322 = vrot.lane.b32.xlu1 %v4318_v7, %s7342_s25  ;;  %v9225_v32 = vld [vmem:[#allocation3 + $0x30] sm:$0xff]  ;;  %v1319_v29 = vadd.f32 %v1317_v5, %v1299_v9  ;;  %v1230_v63 = vadd.f32 %v11999_v10, %v1204_v60  ;;  %v1306_v9 = vmul.f32 %v9229_v44, %v12004_v11  ;;  %v12010_v62 = vld [vmem:[#allocation11_spill] sm:$0xff] }
 0x461   :  { %v11995_v7 = vld [vmem:[#allocation69_spill] sm:$0xff]  ;;  %v4381_v16 = vmul.f32 %v4379_v28, %v9225_v32  ;;  %7178 = vtanh.f32 %v1389_v3  ;;  %v12006_v28 = vld [vmem:[#allocation42_spill] sm:$0xff]  ;;  %v4423_v57 = vmul.f32 %v4421_v36, %v9225_v32 }
 0x462   :  { %v1229_v24 = vadd.f32 %v11995_v7, %v1203_v59  ;;  %v12002_v59 = vld [vmem:[#allocation51_spill] sm:$0xff]  ;;  %v9273_v5 = vld [vmem:[#allocation3 + $0x29] sm:$0xff]  ;;  %v12008_v7 = vld [vmem:[#allocation14_spill] sm:$0xff] }
 0x463   :  { %v1272_v8 = vadd.f32 %v12002_v59, %v1230_v63 }
 0x464   :  { %4128 = vrot.lane.b32.xlu0 %v4124_v23, %s7342_s25  ;;  %4324 = vrot.lane.b32.xlu1 %v4319_v18, %s7342_s25  ;;  %v1271_v48 = vadd.f32 %v11998_v2, %v1229_v24  ;;  %v1210_v23 = vadd.f32 %v1208_v17, %v1182_v38  ;;  %v12000_v18 = vld [vmem:[#allocation46_spill] sm:$0xff]  ;;  %v1312_v38 = vmul.f32 %v1310_v4, %v12004_v11 }
 0x465   :  { %v1361_v13 = vadd.f32 %v12000_v18, %v1319_v29  ;;  %v1308_v41 = vadd.f32 %v1306_v9, %v1272_v8  ;;  %v12009_v29 = vld [vmem:[#allocation55_spill] sm:$0xff]  ;;  %v1318_v4 = vmul.f32 %v1316_v35, %v12004_v11  ;;  %v12014_v18 = vld [vmem:[#allocation18_spill] sm:$0xff]  ;;  %v3937_v8 = vstv %s6733_s15  ;;  %s6594_s15 = sld [smem:[#allocation5 + $0xb0]] }
 0x466   :  { %v1307_v56 = vadd.f32 %v1305_v51, %v1271_v48  ;;  %v1244_v54 = vadd.f32 %v12003_v6, %v1210_v23  ;;  %v12013_v23 = vld [vmem:[#allocation36_spill] sm:$0xff]  ;;  %v4526_v51 = vmul.f32 %v4525_v30, %v9273_v5  ;;  %v3945_v30 = vstv %s6736_s4  ;;  %s6607_s4 = sld [smem:[#allocation5 + $0xce]] }
 0x467   :  { %v1403_v20 = vadd.f32 %v12001_v19, %v1361_v13  ;;  %v1334_v34 = vadd.f32 %v12010_v62, %v1308_v41  ;;  %v3946_v59 = vmul.f32 %v3945_v30, %v8939_v33 }
 0x468   :  { %4130 = vrot.lane.b32.xlu0 %v4125_v61, %s7342_s25  ;;  %4384 = vrot.lane.b32.xlu1 %v4380_v58, %s7341_s23  ;;  %v1286_v55 = vadd.f32 %v12005_v53, %v1244_v54  ;;  %v1258_v61 = vadd.f32 %v12006_v28, %v1216_v37  ;;  %v4228_v58 = vmul.f32 %v4227_v39, %v8999_v21  ;;  %v4483_v39 = vstv %s9253_s14  ;;  %v12015_v37 = vld [vmem:[#allocation48_spill] sm:$0xff]  ;;  %s6586_s14 = sld [smem:[#allocation5 + $0xae]] }
 0x469   :  { %7180 = vtanh.f32 %v1403_v20  ;;  %v1333_v60 = vadd.f32 %v12007_v25, %v1307_v56  ;;  %v4484_v3 = vmul.f32 %v4483_v39, %v9273_v5  ;;  %v4485_v10 = vmul.f32 %v4483_v39, %v9079_v42 }
 0x46a   :  { %v1314_v17 = vadd.f32 %v1312_v38, %v1286_v55  ;;  %v1300_v47 = vadd.f32 %v12009_v29, %v1258_v61  ;;  %v3947_v56 = vmul.f32 %v3945_v30, %v8937_v43  ;;  %v3948_v9 = vadd.f32 %v3946_v59, %v3937_v8 }
 0x46b   :  { %v1375_v24 = vadd.f32 %v12008_v7, %v1333_v60  ;;  %v7179_v40 = vpop.eup %7178  ;;  %v4049_v53 = vstv %s6745_s0  ;;  %v4153_v29 = vstv %s6754_s17  ;;  %v3939_v30 = vstv %s6734_s19  ;;  %s6611_s0 = sld [smem:[#allocation5 + $0xcf]]  ;;  %s6598_s17 = sld [smem:[#allocation5 + $0xb1]] }
 0x46c   :  { %4190 = vrot.lane.b32.xlu0 %v4186_v14, %s7341_s23  ;;  %4386 = vrot.lane.b32.xlu1 %v4381_v16, %s7341_s23  ;;  %v1376_v14 = vadd.f32 %v12011_v27, %v1334_v34  ;;  %v12012_v16 = vld [vmem:[#allocation44_spill] sm:$0xff]  ;;  %v1320_v48 = vadd.f32 %v1318_v4, %v1300_v47  ;;  %v3949_v11 = vadd.f32 %v3947_v56, %v3937_v8  ;;  %s6606_s19 = sld [smem:[#allocation5 + $0xb3]] }
 0x46d   :  { %7182 = vtanh.f32 %v1375_v24  ;;  %v1348_v2 = vadd.f32 %v12012_v16, %v1314_v17  ;;  %v4051_v60 = vmul.f32 %v4049_v53, %v8960_v22  ;;  %v4050_v41 = vmul.f32 %v4049_v53, %v8962_v45 }
 0x46e   :  { %7184 = vtanh.f32 %v1376_v14  ;;  %v1362_v13 = vadd.f32 %v12014_v18, %v1320_v48  ;;  %v4155_v4 = vmul.f32 %v4153_v29, %v8925_v49  ;;  %v4154_v27 = vmul.f32 %v4153_v29, %v8999_v21 }
 0x46f   :  { %v1390_v35 = vadd.f32 %v12013_v23, %v1348_v2 }
 0x470   :  { %4192 = vrot.lane.b32.xlu0 %v4187_v0, %s7341_s23  ;;  %4426 = vrot.lane.b32.xlu1 %v4422_v50, %s7342_s25  ;;  %v1404_v19 = vadd.f32 %v12015_v37, %v1362_v13  ;;  %v4259_v37 = vmul.f32 %v9143_v31, %v9117_v12 }
 0x471   :  { %7186 = vtanh.f32 %v1390_v35 }
 0x472   :  { %7188 = vtanh.f32 %v1404_v19  ;;  %v3951_v19 = vstv %s6737_s18  ;;  %s6619_s18 = sld [smem:[#allocation5 + $0xd1]] }
 0x473   :  { %v7181_v63 = vpop.eup %7180  ;;  %v3953_v8 = vmul.f32 %v3951_v19, %v8937_v43 }
 0x474   :  { %4232 = vrot.lane.b32.xlu0 %v4228_v58, %s7342_s25  ;;  %4428 = vrot.lane.b32.xlu1 %v4423_v57, %s7342_s25 }
 0x477   :  { %v7183_v20 = vpop.eup %7182 }
 0x478   :  { %1421 = vrot.lane.b32.xlu0 %v7179_v40, %s7345_s29  ;;  %4488 = vrot.lane.b32.xlu1 %v4484_v3, %s7341_s23  ;;  %v7185_v36 = vpop.eup %7184 }
 0x47b   :  { %v7187_v0 = vpop.eup %7186 }
 0x47c   :  { %1434 = vrot.lane.b32.xlu0 %v7181_v63, %s7345_s29  ;;  %4490 = vrot.lane.b32.xlu1 %v4485_v10, %s7341_s23  ;;  %v7189_v50 = vpop.eup %7188 }
 0x480   :  { %4530 = vrot.lane.b32.xlu1 %v4526_v51, %s7342_s25  ;;  %v4258_v51 = vmul.f32 %v9129_v26, %v9117_v12 }
 0x484   :  { %1409 = vrot.lane.b32.xlu1 %v7183_v20, %s7345_s29 }
 0x488   :  { %1411 = vrot.lane.b32.xlu1 %v7185_v36, %s7345_s29 }
 0x48c   :  { %1423 = vrot.lane.b32.xlu1 %v7187_v0, %s7345_s29 }
 0x490   :  { %1436 = vrot.lane.b32.xlu1 %v7189_v50, %s7345_s29  ;;  %v3952_v50 = vmul.f32 %v3951_v19, %v8939_v33 }
 0x492   :  { %v3954_v59 = vadd.f32 %v3952_v50, %v3939_v30  ;;  %v4467_v50 = vmul.f32 %v9079_v42, %v9229_v44 }
 0x4a6   :  { %v3971_v6 = vpop.permute.xlu1 %3970  ;;  %v3969_v54 = vpop.permute.xlu0 %3968 }
 0x4a7   :  { %v3975_v55 = vadd.f32 %v3971_v6, %v3949_v11  ;;  %v3974_v28 = vadd.f32 %v3969_v54, %v3948_v9  ;;  %v4055_v11 = vstv %s6746_s20  ;;  %v3955_v9 = vadd.f32 %v3953_v8, %v3939_v30  ;;  %s6623_s20 = sld [smem:[#allocation5 + $0xd2]] }
 0x4aa   :  { %v4013_v61 = vpop.permute.xlu1 %4012  ;;  %v4011_v58 = vpop.permute.xlu0 %4010 }
 0x4ab   :  { %v4017_v57 = vadd.f32 %v4013_v61, %v3975_v55  ;;  %v4016_v25 = vadd.f32 %v4011_v58, %v3974_v28  ;;  %v4056_v55 = vmul.f32 %v4055_v11, %v8962_v45 }
 0x4ad   :  { %v4053_v38 = vadd.f32 %v4051_v60, %v4017_v57  ;;  %v4052_v7 = vadd.f32 %v4050_v41, %v4016_v25  ;;  %v4057_v57 = vmul.f32 %v4055_v11, %v8960_v22  ;;  %v4363_v22 = vmul.f32 %v9225_v32, %v9163_v1 }
 0x4ae   :  { %v4075_v24 = vpop.permute.xlu1 %4074  ;;  %v4073_v17 = vpop.permute.xlu0 %4072 }
 0x4af   :  { %v4079_v47 = vadd.f32 %v4075_v24, %v4053_v38  ;;  %v4078_v39 = vadd.f32 %v4073_v17, %v4052_v7  ;;  %v4362_v24 = vmul.f32 %v9205_v52, %v9163_v1 }
 0x4b2   :  { %v4117_v3 = vpop.permute.xlu1 %4116  ;;  %v4115_v40 = vpop.permute.xlu0 %4114 }
 0x4b3   :  { %v4121_v62 = vadd.f32 %v4117_v3, %v4079_v47  ;;  %v4120_v34 = vadd.f32 %v4115_v40, %v4078_v39  ;;  %v4159_v3 = vstv %s6755_s21  ;;  %s6610_s21 = sld [smem:[#allocation5 + $0xb4]] }
 0x4b4   :  { %v4161_v52 = vmul.f32 %v4159_v3, %v8925_v49 }
 0x4b5   :  { %v4157_v14 = vadd.f32 %v4155_v4, %v4121_v62  ;;  %v4156_v16 = vadd.f32 %v4154_v27, %v4120_v34  ;;  %v4160_v34 = vmul.f32 %v4159_v3, %v8999_v21 }
 0x4b6   :  { %v4179_v2 = vpop.permute.xlu1 %4178  ;;  %v4177_v48 = vpop.permute.xlu0 %4176 }
 0x4b7   :  { %v4183_v10 = vadd.f32 %v4179_v2, %v4157_v14  ;;  %v4182_v63 = vadd.f32 %v4177_v48, %v4156_v16 }
 0x4ba   :  { %v4221_v23 = vpop.permute.xlu1 %4220  ;;  %v4219_v35 = vpop.permute.xlu0 %4218 }
 0x4bb   :  { %v4225_v18 = vadd.f32 %v4221_v23, %v4183_v10  ;;  %v4224_v13 = vadd.f32 %v4219_v35, %v4182_v63 }
 0x4bd   :  { %v4260_v20 = vadd.f32 %v4258_v51, %v4224_v13  ;;  %v4261_v36 = vadd.f32 %v4259_v37, %v4225_v18  ;;  %v4466_v18 = vmul.f32 %v9273_v5, %v9229_v44  ;;  %v11696_v13 = vstv %s9323_s22 }
 0x4be   :  { %v3983_v0 = vpop.permute.xlu0 %3982  ;;  %v4264_v30 = vmul.f32 %v11696_v13, %v9129_v26  ;;  %v1520_v44 = vstv %s6547_s24  ;;  %s6631_s24 = sld [smem:[#allocation5 + $0xd4]] }
 0x4bf   :  { %v3988_v6 = vadd.f32 %v3983_v0, %v3954_v59 }
 0x4c2   :  { %v3985_v56 = vpop.permute.xlu0 %3984 }
 0x4c3   :  { %v3989_v12 = vadd.f32 %v3985_v56, %v3955_v9 }
 0x4c6   :  { %v4025_v54 = vpop.permute.xlu0 %4024 }
 0x4c7   :  { %v4030_v53 = vadd.f32 %v4025_v54, %v3988_v6 }
 0x4c9   :  { %v4058_v31 = vadd.f32 %v4056_v55, %v4030_v53 }
 0x4ca   :  { %v4281_v28 = vpop.permute.xlu1 %4280  ;;  %v4027_v61 = vpop.permute.xlu0 %4026 }
 0x4cb   :  { %v4031_v58 = vadd.f32 %v4027_v61, %v3989_v12  ;;  %v4286_v41 = vadd.f32 %v4281_v28, %v4260_v20  ;;  %v1576_v12 = vstv %s6551_s26  ;;  %s6618_s26 = sld [smem:[#allocation5 + $0xb6]] }
 0x4cd   :  { %v4059_v33 = vadd.f32 %v4057_v57, %v4031_v58 }
 0x4ce   :  { %v4283_v25 = vpop.permute.xlu1 %4282  ;;  %v4087_v60 = vpop.permute.xlu0 %4086 }
 0x4cf   :  { %v4287_v17 = vadd.f32 %v4283_v25, %v4261_v36  ;;  %v4092_v45 = vadd.f32 %v4087_v60, %v4058_v31 }
 0x4d2   :  { %v4323_v43 = vpop.permute.xlu1 %4322  ;;  %v4089_v38 = vpop.permute.xlu0 %4088 }
 0x4d3   :  { %v4328_v7 = vadd.f32 %v4323_v43, %v4286_v41  ;;  %v4093_v4 = vadd.f32 %v4089_v38, %v4059_v33  ;;  %v1658_v33 = vstv %s6559_s27  ;;  %v1506_v43 = vstv %s6546_s30  ;;  %s6635_s27 = sld [smem:[#allocation5 + $0xd5]]  ;;  %s6622_s30 = sld [smem:[#allocation5 + $0xb7]] }
 0x4d5   :  { %v4364_v29 = vadd.f32 %v4362_v24, %v4328_v7  ;;  %v1714_v24 = vstv %s6563_s28  ;;  %s6643_s28 = sld [smem:[#allocation5 + $0xd7]] }
 0x4d6   :  { %v4325_v47 = vpop.permute.xlu1 %4324  ;;  %v4129_v39 = vpop.permute.xlu0 %4128 }
 0x4d7   :  { %v4329_v40 = vadd.f32 %v4325_v47, %v4287_v17  ;;  %v4134_v62 = vadd.f32 %v4129_v39, %v4092_v45 }
 0x4d9   :  { %v4365_v27 = vadd.f32 %v4363_v22, %v4329_v40  ;;  %v4162_v14 = vadd.f32 %v4160_v34, %v4134_v62  ;;  %v1796_v40 = vstv %s6571_s5  ;;  %s6647_s5 = sld [smem:[#allocation5 + $0xd8]] }
 0x4da   :  { %v4385_v16 = vpop.permute.xlu1 %4384  ;;  %v4131_v2 = vpop.permute.xlu0 %4130 }
 0x4db   :  { %v4135_v48 = vadd.f32 %v4131_v2, %v4093_v4  ;;  %v4390_v35 = vadd.f32 %v4385_v16, %v4364_v29  ;;  %v1562_v29 = vstv %s6550_s3  ;;  %v1644_v4 = vstv %s6558_s6  ;;  %s9499_s3 = sld [smem:[#allocation5 + $0xb9]]  ;;  %s6634_s6 = sld [smem:[#allocation5 + $0xba]] }
 0x4dc   :  { %v1852_v16 = vstv %s6575_s7  ;;  %s6642_s7 = sld [smem:[#allocation5 + $0xbc]] }
 0x4dd   :  { %v9325_v10 = vadd.f32 %v4161_v52, %v4135_v48  ;;  %v1700_v52 = vstv %s6562_s8  ;;  %s6646_s8 = sld [smem:[#allocation5 + $0xbd]] }
 0x4de   :  { %v4387_v63 = vpop.permute.xlu1 %4386  ;;  %v4191_v23 = vpop.permute.xlu0 %4190 }
 0x4df   :  { %12016 = vst [vmem:[#allocation66_spill] sm:$0xff] %v9325_v10  ;;  %v4391_v51 = vadd.f32 %v4387_v63, %v4365_v27  ;;  %v4196_v37 = vadd.f32 %v4191_v23, %v4162_v14  ;;  %v9709_v10 = vld [vmem:[#allocation3 + $0x30] sm:$0xff] }
 0x4e2   :  { %v4427_v1 = vpop.permute.xlu1 %4426  ;;  %v9327_v32 = vpop.permute.xlu0 %4192 }
 0x4e3   :  { %12017 = vst [vmem:[#allocation25_spill] sm:$0xff] %v9327_v32  ;;  %v4432_v21 = vadd.f32 %v4427_v1, %v4390_v35  ;;  %v1934_v1 = vstv %s6583_s9  ;;  %s9552_s9 = sld [smem:[#allocation5 + $0x59]] }
 0x4e5   :  { %v9332_v49 = vadd.f32 %v4466_v18, %v4432_v21 }
 0x4e6   :  { %v4429_v19 = vpop.permute.xlu1 %4428  ;;  %v4233_v20 = vpop.permute.xlu0 %4232 }
 0x4e7   :  { %v4433_v36 = vadd.f32 %v4429_v19, %v4391_v51  ;;  %v4238_v0 = vadd.f32 %v4233_v20, %v4196_v37  ;;  %v1782_v37 = vstv %s6570_s10  ;;  %s9562_s10 = sld [smem:[#allocation5 + $0x50]] }
 0x4e9   :  { %v9339_v56 = vadd.f32 %v4467_v50, %v4433_v36  ;;  %v9341_v59 = vadd.f32 %v4264_v30, %v4238_v0  ;;  %v1990_v36 = vstv %s6587_s11  ;;  %v1838_v30 = vstv %s6574_s12  ;;  %s9572_s11 = sld [smem:[#allocation5 + $0x5a]]  ;;  %s9585_s12 = sld [smem:[#allocation5 + $0x51]] }
 0x4ea   :  { %v9343_v5 = vpop.permute.xlu1 %4488  ;;  %v1422_v8 = vpop.permute.xlu0 %1421 }
 0x4eb   :  { %12018 = vst [vmem:[#allocation68_spill] sm:$0xff] %v9339_v56  ;;  %12019 = vst [vmem:[#allocation20_spill] sm:$0xff] %v9341_v59 }
 0x4ec   :  { %1428 = vst.msk [vmem:[#allocation4 + $0x28] sm:$0xff] %vm759_vm5, %v1422_v8 }
 0x4ee   :  { %v9346_v6 = vpop.permute.xlu1 %4490  ;;  %v1435_v54 = vpop.permute.xlu0 %1434 }
 0x4ef   :  { %12020 = vst [vmem:[#allocation53_spill] sm:$0xff] %v9346_v6  ;;  %1441 = vst.msk [vmem:[#allocation4 + $0x48] sm:$0xff] %vm759_vm5, %v1435_v54 }
 0x4f2   :  { %v9349_v11 = vpop.permute.xlu1 %4530 }
 0x4f3   :  { %v9403_v35 = vld [vmem:[#allocation4 + $0x27] sm:$0xff] }
 0x4f4   :  { %12024 = vst [vmem:[#allocation60_spill] sm:$0xff] %v9403_v35  ;;  %v1935_v18 = vmul.f32 %v1934_v1, %v9403_v35  ;;  %v1991_v0 = vmul.f32 %v1990_v36, %v9403_v35 }
 0x4f6   :  { %v1410_v42 = vpop.permute.xlu1 %1409 }
 0x4f7   :  { %1415 = vst.msk [vmem:[#allocation4 + $0x8] sm:$0xff] %vm759_vm5, %v1410_v42  ;;  %v9423_v42 = vld [vmem:[#allocation4 + $0x28] sm:$0xff] }
 0x4f8   :  { %12026 = vst [vmem:[#allocation73_spill] sm:$0xff] %v9423_v42 }
 0x4fa   :  { %v1412_v26 = vpop.permute.xlu1 %1411 }
 0x4fb   :  { %1416 = vst.msk [vmem:[#allocation4 + $0x10] sm:$0xff] %vm759_vm5, %v1412_v26  ;;  %v2072_v26 = vstv %s6595_s13  ;;  %s9611_s13 = sld [smem:[#allocation5 + $0x5c]] }
 0x4fe   :  { %v9353_v9 = vld [vmem:[#allocation4 + $0x7] sm:$0xff]  ;;  %v1424_v53 = vpop.permute.xlu1 %1423 }
 0x4ff   :  { %12021 = vst [vmem:[#allocation56_spill] sm:$0xff] %v9353_v9  ;;  %1429 = vst.msk [vmem:[#allocation4 + $0x30] sm:$0xff] %vm759_vm5, %v1424_v53  ;;  %v1521_v55 = vmul.f32 %v1520_v44, %v9353_v9  ;;  %v1577_v61 = vmul.f32 %v1576_v12, %v9353_v9  ;;  %v9363_v57 = vld [vmem:[#allocation4 + $0x8] sm:$0xff]  ;;  %v1507_v38 = vmul.f32 %v1506_v43, %v9353_v9 }
 0x500   :  { %v1659_v25 = vmul.f32 %v1658_v33, %v9363_v57  ;;  %v1715_v17 = vmul.f32 %v1714_v24, %v9363_v57  ;;  %v1563_v39 = vmul.f32 %v1562_v29, %v9353_v9  ;;  %v1645_v14 = vmul.f32 %v1644_v4, %v9363_v57 }
 0x501   :  { %1525 = vrot.lane.b32.xlu0 %v1521_v55, %s7341_s23  ;;  %v1701_v23 = vmul.f32 %v1700_v52, %v9363_v57  ;;  %v2073_v53 = vmul.f32 %v2072_v26, %v9423_v42 }
 0x502   :  { %v9358_v31 = vld [vmem:[#allocation4 + $0xf] sm:$0xff]  ;;  %v1437_v28 = vpop.permute.xlu1 %1436 }
 0x503   :  { %1442 = vst.msk [vmem:[#allocation4 + $0x50] sm:$0xff] %vm759_vm5, %v1437_v28  ;;  %v1522_v58 = vmul.f32 %v1520_v44, %v9358_v31  ;;  %v1578_v60 = vmul.f32 %v1576_v12, %v9358_v31  ;;  %v9369_v41 = vld [vmem:[#allocation4 + $0x10] sm:$0xff]  ;;  %v1508_v45 = vmul.f32 %v1506_v43, %v9358_v31  ;;  %v1564_v62 = vmul.f32 %v1562_v29, %v9358_v31 }
 0x504   :  { %v1660_v7 = vmul.f32 %v1658_v33, %v9369_v41  ;;  %v1716_v47 = vmul.f32 %v1714_v24, %v9369_v41  ;;  %v9383_v3 = vld [vmem:[#allocation4 + $0x9] sm:$0xff]  ;;  %v9389_v34 = vld [vmem:[#allocation4 + $0x11] sm:$0xff]  ;;  %v1646_v63 = vmul.f32 %v1644_v4, %v9369_v41  ;;  %v1702_v21 = vmul.f32 %v1700_v52, %v9369_v41 }
 0x505   :  { %1581 = vrot.lane.b32.xlu0 %v1577_v61, %s7342_s25  ;;  %1527 = vrot.lane.b32.xlu1 %v1522_v58, %s7341_s23  ;;  %12022 = vst [vmem:[#allocation59_spill] sm:$0xff] %v9383_v3  ;;  %v1797_v22 = vmul.f32 %v1796_v40, %v9383_v3  ;;  %12023 = vst [vmem:[#allocation70_spill] sm:$0xff] %v9389_v34  ;;  %v1798_v27 = vmul.f32 %v1796_v40, %v9389_v34  ;;  %v1920_v12 = vstv %s6582_s1  ;;  %s9626_s1 = sld [smem:[#allocation5 + $0x53]] }
 0x506   :  { %v1853_v2 = vmul.f32 %v1852_v16, %v9383_v3  ;;  %v1854_v48 = vmul.f32 %v1852_v16, %v9389_v34  ;;  %v9409_v51 = vld [vmem:[#allocation4 + $0x2f] sm:$0xff]  ;;  %v1783_v20 = vmul.f32 %v1782_v37, %v9383_v3  ;;  %v1784_v50 = vmul.f32 %v1782_v37, %v9389_v34 }
 0x507   :  { %12025 = vst [vmem:[#allocation72_spill] sm:$0xff] %v9409_v51  ;;  %v1936_v19 = vmul.f32 %v1934_v1, %v9409_v51  ;;  %v1992_v8 = vmul.f32 %v1990_v36, %v9409_v51  ;;  %v1839_v54 = vmul.f32 %v1838_v30, %v9383_v3  ;;  %v1840_v44 = vmul.f32 %v1838_v30, %v9389_v34  ;;  %v9429_v55 = vld [vmem:[#allocation4 + $0x30] sm:$0xff]  ;;  %v9483_v30 = vld [vmem:[#allocation4 + $0x48] sm:$0xff] }
 0x508   :  { %v2074_v28 = vmul.f32 %v2072_v26, %v9429_v55  ;;  %v1921_v61 = vmul.f32 %v1920_v12, %v9403_v35  ;;  %v2128_v58 = vstv %s6599_s16  ;;  %v2210_v24 = vstv %s6607_s4  ;;  %v9449_v29 = vld [vmem:[#allocation4 + $0x31] sm:$0xff]  ;;  %12031 = vst [vmem:[#allocation58_spill] sm:$0xff] %v9483_v30  ;;  %s9630_s16 = sld [smem:[#allocation5 + $0xbe]]  ;;  %s9658_s4 = sld [smem:[#allocation5 + $0xdc]] }
 0x509   :  { %1663 = vrot.lane.b32.xlu0 %v1659_v25, %s7341_s23  ;;  %1583 = vrot.lane.b32.xlu1 %v1578_v60, %s7342_s25  ;;  %v2129_v33 = vmul.f32 %v2128_v58, %v9423_v42  ;;  %v1922_v25 = vmul.f32 %v1920_v12, %v9409_v51  ;;  %v1976_v60 = vstv %s6586_s14  ;;  %v2130_v43 = vmul.f32 %v2128_v58, %v9429_v55  ;;  %s9650_s14 = sld [smem:[#allocation5 + $0x5d]] }
 0x50a   :  { %12028 = vst [vmem:[#allocation24_spill] sm:$0xff] %v9449_v29  ;;  %v2196_v1 = vstv %s6606_s19  ;;  %v2404_v37 = vstv %s6623_s20  ;;  %v2252_v36 = vstv %s6610_s21  ;;  %s9719_s19 = sld [smem:[#allocation5 + $0x56]]  ;;  %s9729_s20 = sld [smem:[#allocation5 + $0xdb]] }
 0x50b   :  { %s9735_s21 = sld [smem:[#allocation5 + $0x60]] }
 0x50d   :  { %1511 = vrot.lane.b32.xlu0 %v1507_v38, %s7341_s23  ;;  %1665 = vrot.lane.b32.xlu1 %v1660_v7, %s7341_s23  ;;  %v1977_v38 = vmul.f32 %v1976_v60, %v9403_v35  ;;  %v9443_v7 = vld [vmem:[#allocation4 + $0x29] sm:$0xff] }
 0x50e   :  { %12027 = vst [vmem:[#allocation74_spill] sm:$0xff] %v9443_v7  ;;  %v1450_v6 = vstv %s9658_s4  ;;  %s9943_s4 = sld [smem:[#allocation5 + $0xb5]] }
 0x511   :  { %1719 = vrot.lane.b32.xlu1 %v1715_v17, %s7342_s25  ;;  %1513 = vrot.lane.b32.xlu0 %v1508_v45, %s7341_s23  ;;  %v1978_v17 = vmul.f32 %v1976_v60, %v9409_v51  ;;  %v2211_v45 = vmul.f32 %v2210_v24, %v9443_v7 }
 0x515   :  { %1721 = vrot.lane.b32.xlu1 %v1716_v47, %s7342_s25  ;;  %1567 = vrot.lane.b32.xlu0 %v1563_v39, %s7342_s25  ;;  %v2058_v47 = vstv %s6594_s15  ;;  %v2212_v39 = vmul.f32 %v2210_v24, %v9449_v29  ;;  %v9507_v24 = vld [vmem:[#allocation4 + $0x49] sm:$0xff]  ;;  %s9683_s15 = sld [smem:[#allocation5 + $0x54]] }
 0x516   :  { %v2059_v40 = vmul.f32 %v2058_v47, %v9423_v42  ;;  %v2060_v4 = vmul.f32 %v2058_v47, %v9429_v55  ;;  %12033 = vst [vmem:[#allocation37_spill] sm:$0xff] %v9507_v24 }
 0x519   :  { %1569 = vrot.lane.b32.xlu1 %v1564_v62, %s7342_s25  ;;  %1801 = vrot.lane.b32.xlu0 %v1797_v22, %s7341_s23  ;;  %v2266_v62 = vstv %s6611_s0  ;;  %s9696_s0 = sld [smem:[#allocation5 + $0xc1]] }
 0x51a   :  { %v2267_v22 = vmul.f32 %v2266_v62, %v9443_v7 }
 0x51d   :  { %1803 = vrot.lane.b32.xlu1 %v1798_v27, %s7341_s23  ;;  %1649 = vrot.lane.b32.xlu0 %v1645_v14, %s7341_s23  ;;  %v2114_v27 = vstv %s6598_s17  ;;  %v2268_v14 = vmul.f32 %v2266_v62, %v9449_v29  ;;  %v9517_v62 = vld [vmem:[#allocation4 + $0x51] sm:$0xff]  ;;  %s9702_s17 = sld [smem:[#allocation5 + $0x5f]] }
 0x51e   :  { %v2115_v16 = vmul.f32 %v2114_v27, %v9423_v42  ;;  %v2116_v52 = vmul.f32 %v2114_v27, %v9429_v55  ;;  %12034 = vst [vmem:[#allocation26_spill] sm:$0xff] %v9517_v62 }
 0x521   :  { %1857 = vrot.lane.b32.xlu1 %v1853_v2, %s7342_s25  ;;  %1859 = vrot.lane.b32.xlu0 %v1854_v48, %s7342_s25  ;;  %v9463_v2 = vld [vmem:[#allocation4 + $0x47] sm:$0xff]  ;;  %v2348_v48 = vstv %s6619_s18  ;;  %s9713_s18 = sld [smem:[#allocation5 + $0xa3]] }
 0x522   :  { %12029 = vst [vmem:[#allocation30_spill] sm:$0xff] %v9463_v2 }
 0x525   :  { %1651 = vrot.lane.b32.xlu1 %v1646_v63, %s7341_s23  ;;  %1705 = vrot.lane.b32.xlu0 %v1701_v23, %s7342_s25  ;;  %v2349_v63 = vmul.f32 %v2348_v48, %v9463_v2  ;;  %v9469_v23 = vld [vmem:[#allocation4 + $0x4f] sm:$0xff] }
 0x526   :  { %12030 = vst [vmem:[#allocation54_spill] sm:$0xff] %v9469_v23 }
 0x529   :  { %1707 = vrot.lane.b32.xlu1 %v1702_v21, %s7342_s25  ;;  %1939 = vrot.lane.b32.xlu0 %v1935_v18, %s7341_s23  ;;  %v2350_v21 = vmul.f32 %v2348_v48, %v9469_v23  ;;  %v2197_v18 = vmul.f32 %v2196_v1, %v9443_v7  ;;  %v2680_v48 = vstv %s6647_s5  ;;  %s9799_s5 = sld [smem:[#allocation5 + $0xa9]] }
 0x52d   :  { %1941 = vrot.lane.b32.xlu1 %v1936_v19, %s7341_s23  ;;  %1787 = vrot.lane.b32.xlu0 %v1783_v20, %s7341_s23  ;;  %v2405_v19 = vmul.f32 %v2404_v37, %v9463_v2  ;;  %v2198_v20 = vmul.f32 %v2196_v1, %v9449_v29  ;;  %v2681_v1 = vmul.f32 %v2680_v48, %v9507_v24 }
 0x531   :  { %1995 = vrot.lane.b32.xlu1 %v1991_v0, %s7342_s25  ;;  %1789 = vrot.lane.b32.xlu0 %v1784_v50, %s7341_s23  ;;  %v2406_v0 = vmul.f32 %v2404_v37, %v9469_v23  ;;  %v2253_v50 = vmul.f32 %v2252_v36, %v9443_v7 }
 0x535   :  { %1997 = vrot.lane.b32.xlu1 %v1992_v8, %s7342_s25  ;;  %1843 = vrot.lane.b32.xlu0 %v1839_v54, %s7342_s25  ;;  %v2486_v8 = vstv %s6631_s24  ;;  %v2254_v54 = vmul.f32 %v2252_v36, %v9449_v29  ;;  %s9737_s24 = sld [smem:[#allocation5 + $0xc4]]  ;;  %v9765_v29 = vld [vmem:[#allocation3 + $0x11] sm:$0xff] }
 0x536   :  { %v2487_v26 = vmul.f32 %v2486_v8, %v9483_v30 }
 0x539   :  { %1845 = vrot.lane.b32.xlu1 %v1840_v44, %s7342_s25  ;;  %2077 = vrot.lane.b32.xlu0 %v2073_v53, %s7341_s23  ;;  %v9489_v44 = vld [vmem:[#allocation4 + $0x50] sm:$0xff]  ;;  %v2334_v53 = vstv %s6618_s26  ;;  %s9754_s26 = sld [smem:[#allocation5 + $0x57]] }
 0x53a   :  { %12032 = vst [vmem:[#allocation19_spill] sm:$0xff] %v9489_v44  ;;  %v2488_v12 = vmul.f32 %v2486_v8, %v9489_v44 }
 0x53d   :  { %2079 = vrot.lane.b32.xlu1 %v2074_v28, %s7341_s23  ;;  %1925 = vrot.lane.b32.xlu0 %v1921_v61, %s7341_s23  ;;  %v2335_v28 = vmul.f32 %v2334_v53, %v9463_v2  ;;  %v2542_v61 = vstv %s6635_s27  ;;  %s9756_s27 = sld [smem:[#allocation5 + $0xa6]] }
 0x53e   :  { %v2543_v58 = vmul.f32 %v2542_v61, %v9483_v30 }
 0x541   :  { %2133 = vrot.lane.b32.xlu1 %v2129_v33, %s7342_s25  ;;  %1927 = vrot.lane.b32.xlu0 %v1922_v25, %s7341_s23  ;;  %v2336_v33 = vmul.f32 %v2334_v53, %v9469_v23  ;;  %v2390_v25 = vstv %s6622_s30  ;;  %v2666_v53 = vstv %s6646_s8  ;;  %s9768_s30 = sld [smem:[#allocation5 + $0x62]]  ;;  %s9832_s8 = sld [smem:[#allocation5 + $0x66]] }
 0x545   :  { %2135 = vrot.lane.b32.xlu1 %v2130_v43, %s7342_s25  ;;  %1981 = vrot.lane.b32.xlu0 %v1977_v38, %s7342_s25  ;;  %v2544_v43 = vmul.f32 %v2542_v61, %v9489_v44  ;;  %v2391_v38 = vmul.f32 %v2390_v25, %v9463_v2  ;;  %v4497_v2 = vstv %s9719_s19  ;;  %s9980_s19 = sld [smem:[#allocation5 + $0x6c]] }
 0x549   :  { %1983 = vrot.lane.b32.xlu1 %v1978_v17, %s7342_s25  ;;  %2215 = vrot.lane.b32.xlu0 %v2211_v45, %s7341_s23  ;;  %v2624_v17 = vstv %s6643_s28  ;;  %s9778_s28 = sld [smem:[#allocation5 + $0xc7]] }
 0x54d   :  { %2217 = vrot.lane.b32.xlu1 %v2212_v39, %s7341_s23  ;;  %2063 = vrot.lane.b32.xlu0 %v2059_v40, %s7341_s23  ;;  %v2392_v39 = vmul.f32 %v2390_v25, %v9469_v23  ;;  %v2625_v40 = vmul.f32 %v2624_v17, %v9507_v24 }
 0x551   :  { %2271 = vrot.lane.b32.xlu1 %v2267_v22, %s7342_s25  ;;  %2065 = vrot.lane.b32.xlu0 %v2060_v4, %s7341_s23  ;;  %v2472_v22 = vstv %s9499_s3  ;;  %s9788_s3 = sld [smem:[#allocation5 + $0x63]] }
 0x555   :  { %2273 = vrot.lane.b32.xlu1 %v2268_v14, %s7342_s25  ;;  %2119 = vrot.lane.b32.xlu0 %v2115_v16, %s7342_s25  ;;  %v2626_v14 = vmul.f32 %v2624_v17, %v9517_v62  ;;  %v2473_v16 = vmul.f32 %v2472_v22, %v9483_v30 }
 0x559   :  { %2121 = vrot.lane.b32.xlu1 %v2116_v52, %s7342_s25  ;;  %2353 = vrot.lane.b32.xlu0 %v2349_v63, %s7341_s23 }
 0x55d   :  { %2355 = vrot.lane.b32.xlu1 %v2350_v21, %s7341_s23  ;;  %2201 = vrot.lane.b32.xlu0 %v2197_v18, %s7341_s23  ;;  %v2474_v21 = vmul.f32 %v2472_v22, %v9489_v44  ;;  %v2528_v18 = vstv %s6634_s6  ;;  %s9812_s6 = sld [smem:[#allocation5 + $0x65]] }
 0x55e   :  { %v2529_v36 = vmul.f32 %v2528_v18, %v9483_v30 }
 0x561   :  { %2409 = vrot.lane.b32.xlu1 %v2405_v19, %s7342_s25  ;;  %2203 = vrot.lane.b32.xlu0 %v2198_v20, %s7341_s23  ;;  %v2682_v20 = vmul.f32 %v2680_v48, %v9517_v62 }
 0x565   :  { %2411 = vrot.lane.b32.xlu1 %v2406_v0, %s7342_s25  ;;  %2257 = vrot.lane.b32.xlu0 %v2253_v50, %s7342_s25  ;;  %v2610_v0 = vstv %s6642_s7  ;;  %s9819_s7 = sld [smem:[#allocation5 + $0xca]] }
 0x566   :  { %v2612_v61 = vmul.f32 %v2610_v0, %v9517_v62 }
 0x569   :  { %2259 = vrot.lane.b32.xlu1 %v2254_v54, %s7342_s25  ;;  %2491 = vrot.lane.b32.xlu0 %v2487_v26, %s7341_s23  ;;  %v2530_v54 = vmul.f32 %v2528_v18, %v9489_v44  ;;  %v2611_v26 = vmul.f32 %v2610_v0, %v9507_v24  ;;  %v9597_v18 = vld [vmem:[#allocation3 + $0xf] sm:$0xff]  ;;  %v4033_v0 = vstv %s9572_s11  ;;  %s9861_s11 = sld [smem:[#allocation5 + $0xcd]] }
 0x56a   :  { %12036 = vst [vmem:[#allocation35_spill] sm:$0xff] %v9597_v18 }
 0x56d   :  { %2493 = vrot.lane.b32.xlu1 %v2488_v12, %s7341_s23  ;;  %2339 = vrot.lane.b32.xlu0 %v2335_v28, %s7341_s23 }
 0x571   :  { %2547 = vrot.lane.b32.xlu1 %v2543_v58, %s7342_s25  ;;  %2341 = vrot.lane.b32.xlu0 %v2336_v33, %s7341_s23  ;;  %v2667_v58 = vmul.f32 %v2666_v53, %v9507_v24  ;;  %v4435_v24 = vstv %s9683_s15  ;;  %s9952_s15 = sld [smem:[#allocation5 + $0xd6]] }
 0x573   :  { %v9503_v60 = vpop.permute.xlu0 %1525 }
 0x575   :  { %2549 = vrot.lane.b32.xlu1 %v2544_v43, %s7342_s25  ;;  %2395 = vrot.lane.b32.xlu0 %v2391_v38, %s7342_s25  ;;  %v2668_v43 = vmul.f32 %v2666_v53, %v9517_v62  ;;  %v3991_v38 = vstv %s9552_s9  ;;  %s9839_s9 = sld [smem:[#allocation5 + $0xac]] }
 0x577   :  { %v9511_v45 = vpop.permute.xlu1 %1527  ;;  %v9513_v47 = vpop.permute.xlu0 %1581 }
 0x579   :  { %2397 = vrot.lane.b32.xlu1 %v2392_v39, %s7342_s25  ;;  %2629 = vrot.lane.b32.xlu0 %v2625_v40, %s7341_s23  ;;  %v9581_v40 = vld [vmem:[#allocation3 + $0x7] sm:$0xff] }
 0x57a   :  { %12035 = vst [vmem:[#allocation12_spill] sm:$0xff] %v9581_v40  ;;  %v3992_v22 = vmul.f32 %v9581_v40, %v3991_v38 }
 0x57b   :  { %v9522_v4 = vpop.permute.xlu1 %1583  ;;  %v9524_v27 = vpop.permute.xlu0 %1663 }
 0x57d   :  { %2631 = vrot.lane.b32.xlu1 %v2626_v14, %s7341_s23  ;;  %2477 = vrot.lane.b32.xlu0 %v2473_v16, %s7341_s23  ;;  %v4289_v14 = vstv %s9562_s10  ;;  %v53_v16 = vlaneseq  ;;  %s9852_s10 = sld [smem:[#allocation5 + $0x68]] }
 0x57f   :  { %v9530_v52 = vpop.permute.xlu1 %1665  ;;  %v9532_v63 = vpop.permute.xlu0 %1511 }
 0x581   :  { %2685 = vrot.lane.b32.xlu1 %v2681_v1, %s7342_s25  ;;  %2479 = vrot.lane.b32.xlu0 %v2474_v21, %s7341_s23  ;;  %v9594_v1 = vld [vmem:[#allocation3 + $0x27] sm:$0xff] }
 0x582   :  { %v4290_v21 = vmul.f32 %v9594_v1, %v4289_v14 }
 0x583   :  { %v9538_v37 = vpop.permute.xlu1 %1719  ;;  %v9540_v19 = vpop.permute.xlu0 %1513 }
 0x585   :  { %2687 = vrot.lane.b32.xlu1 %v2682_v20, %s7342_s25  ;;  %2533 = vrot.lane.b32.xlu0 %v2529_v36, %s7342_s25  ;;  %v3993_v20 = vmul.f32 %v9597_v18, %v3991_v38  ;;  %v9600_v36 = vshrl.u32 %v53_v16, 7  ;;  %v4034_v38 = vmul.f32 %v9581_v40, %v4033_v0 }
 0x587   :  { %v9546_v50 = vpop.permute.xlu1 %1721  ;;  %v9548_v8 = vpop.permute.xlu0 %1567  ;;  %12037 = vst [vmem:[#allocation29_spill] sm:$0xff] %v9600_v36 }
 0x589   :  { %2535 = vrot.lane.b32.xlu1 %v2530_v54, %s7342_s25  ;;  %2615 = vrot.lane.b32.xlu0 %v2611_v26, %s7341_s23  ;;  %v9608_v54 = vand.u32 127, %v53_v16  ;;  %v58_v26 = vmul.u32 2, %v9600_v36 }
 0x58b   :  { %v9556_v12 = vpop.permute.xlu1 %1569  ;;  %v9558_v28 = vpop.permute.xlu0 %1801  ;;  %12039 = vst [vmem:[#allocation13_spill] sm:$0xff] %v9608_v54  ;;  %vm60_vm7 = vcmp.eq.s32.totalorder %v9608_v54, %v58_v26 }
 0x58d   :  { %2617 = vrot.lane.b32.xlu1 %v2612_v61, %s7341_s23  ;;  %2671 = vrot.lane.b32.xlu0 %v2667_v58, %s7342_s25  ;;  %v9617_v58 = vld [vmem:[#allocation3 + $0x2f] sm:$0xff] }
 0x58f   :  { %v9566_v33 = vpop.permute.xlu1 %1803  ;;  %v9568_v25 = vpop.permute.xlu0 %1649 }
 0x591   :  { %2673 = vrot.lane.b32.xlu1 %v2668_v43, %s7342_s25  ;;  %4234 = vrot.lane.b32.xlu0 %v8933_v46, %s7342_s25  ;;  %v4291_v43 = vmul.f32 %v9617_v58, %v4289_v14 }
 0x593   :  { %v9577_v17 = vpop.permute.xlu1 %1857  ;;  %v9579_v39 = vpop.permute.xlu0 %1859 }
 0x595   :  { %4532 = vrot.lane.b32.xlu1 %v9096_v15, %s7342_s25  ;;  %3996 = vrot.lane.b32.xlu0 %v3992_v22, %s7341_s23  ;;  %v9606_v15 = vadd.s32 8, %v9600_v36 }
 0x597   :  { %v9590_v48 = vpop.permute.xlu1 %1651  ;;  %v9592_v46 = vpop.permute.xlu0 %1705  ;;  %12038 = vst [vmem:[#allocation27_spill] sm:$0xff] %v9606_v15  ;;  %v59_v22 = vmul.u32 2, %v9606_v15  ;;  %v11708_v15 = vmov 1.0|1.0  }
 0x599   :  { %4294 = vrot.lane.b32.xlu1 %v4290_v21, %s7341_s23  ;;  %3998 = vrot.lane.b32.xlu0 %v3993_v20, %s7341_s23  ;;  %v66_v21 = vadd.s32 1, %v58_v26  ;;  %v4331_v20 = vstv %s9585_s12  ;;  %v67_v16 = vadd.s32 1, %v59_v22  ;;  %vm61_vm8 = vcmp.eq.s32.totalorder %v9608_v54, %v59_v22  ;;  %s9875_s12 = sld [smem:[#allocation5 + $0x69]] }
 0x59a   :  { %vm9645_vm11 = vmpackc.low %vm61_vm8, %vm60_vm7  ;;  %v12043_v26 = vmov 0  ;;  %v4095_v22 = vstv %s9611_s13  ;;  %s9882_s13 = sld [smem:[#allocation5 + $0xaf]] }
 0x59b   :  { %v9613_v53 = vpop.permute.xlu1 %1707  ;;  %v9615_v61 = vpop.permute.xlu0 %1939  ;;  %vm68_vm6 = vcmp.eq.s32.totalorder %v9608_v54, %v66_v21  ;;  %vm69_vm9 = vcmp.eq.s32.totalorder %v9608_v54, %v67_v16  ;;  %v12040_v21 = vmov 0  ;;  %v12044_v26 = vsel %vm9645_vm11, 4294967295, %v12043_v26 }
 0x59c   :  { %vm9639_vm10 = vmpackc.low %vm69_vm9, %vm68_vm6  ;;  %12045 = vst [vmem:[#allocation71_spill] sm:$0xff] %v12044_v26  ;;  %v1472_v54 = vstv %s9630_s16  ;;  %v9693_v26 = vld [vmem:[#allocation3 + $0x10] sm:$0xff]  ;;  %s9918_s16 = sld [smem:[#allocation5 + $0xb2]] }
 0x59d   :  { %4296 = vrot.lane.b32.xlu1 %v4291_v43, %s7341_s23  ;;  %4038 = vrot.lane.b32.xlu0 %v4034_v38, %s7342_s25  ;;  %v4332_v43 = vmul.f32 %v9594_v1, %v4331_v20  ;;  %v4035_v38 = vmul.f32 %v9597_v18, %v4033_v0  ;;  %v12041_v21 = vsel %vm9639_vm10, 4294967295, %v12040_v21  ;;  %v9690_v18 = vld [vmem:[#allocation3 + $0x28] sm:$0xff]  ;;  %12047 = vst [vmem:[#allocation43_spill] sm:$0xff] %v9693_v26 }
 0x59e   :  { %12042 = vst [vmem:[#allocation33_spill] sm:$0xff] %v12041_v21  ;;  %7095 = vmatprep.subr.msk.bf16.mxu1 %vm9639_vm10, %v11708_v15  ;;  %7087 = vmatprep.subr.msk.bf16.mxu0 %vm9639_vm10, %v11708_v15  ;;  %v1474_v62 = vmul.f32 %v1472_v54, %v9358_v31 }
 0x59f   :  { %v9632_v14 = vpop.permute.xlu1 %1941  ;;  %v9634_v13 = vpop.permute.xlu0 %1787  ;;  %7097 = vmatpush3.bf16.msk.msra.mxu1 %vm9639_vm10, %v11708_v15  ;;  %7089 = vmatpush3.bf16.msk.msra.mxu0 %vm9639_vm10, %v11708_v15 }
 0x5a0   :  { %7099 = vmatprep.subr.msk.bf16.mxu1 %vm9645_vm11, %v11708_v15  ;;  %7091 = vmatprep.subr.msk.bf16.mxu0 %vm9645_vm11, %v11708_v15  ;;  %v4097_v15 = vmul.f32 %v9693_v26, %v4095_v22 }
 0x5a1   :  { %4336 = vrot.lane.b32.xlu1 %v4332_v43, %s7342_s25  ;;  %4040 = vrot.lane.b32.xlu0 %v4035_v38, %s7342_s25  ;;  %v4333_v43 = vmul.f32 %v9617_v58, %v4331_v20  ;;  %v9665_v38 = vld [vmem:[#allocation3 + $0x8] sm:$0xff]  ;;  %v4393_v20 = vstv %s9626_s1  ;;  %s9900_s1 = sld [smem:[#allocation5 + $0xd0]] }
 0x5a2   :  { %12046 = vst [vmem:[#allocation65_spill] sm:$0xff] %v9665_v38  ;;  %v4096_v36 = vmul.f32 %v9665_v38, %v4095_v22  ;;  %v4394_v40 = vmul.f32 %v9690_v18, %v4393_v20  ;;  %v4395_v22 = vmul.f32 %v9709_v10, %v4393_v20  ;;  %v4436_v20 = vmul.f32 %v9690_v18, %v4435_v24 }
 0x5a3   :  { %v9660_v0 = vpop.permute.xlu1 %1995  ;;  %v9662_v16 = vpop.permute.xlu0 %1789 }
 0x5a5   :  { %4338 = vrot.lane.b32.xlu1 %v4333_v43, %s7342_s25  ;;  %4100 = vrot.lane.b32.xlu0 %v4096_v36, %s7341_s23  ;;  %v1473_v36 = vmul.f32 %v1472_v54, %v9353_v9  ;;  %v4137_v43 = vstv %s9650_s14  ;;  %v1476_v54 = vadd.f32 %v1474_v62, %v1450_v6  ;;  %s9931_s14 = sld [smem:[#allocation5 + $0xd3]] }
 0x5a7   :  { %v9686_v21 = vpop.permute.xlu1 %1997  ;;  %v9688_v59 = vpop.permute.xlu0 %1843 }
 0x5a9   :  { %4398 = vrot.lane.b32.xlu1 %v4394_v40, %s7341_s23  ;;  %4102 = vrot.lane.b32.xlu0 %v4097_v15, %s7341_s23  ;;  %v4138_v40 = vmul.f32 %v9665_v38, %v4137_v43  ;;  %v1475_v15 = vadd.f32 %v1473_v36, %v1450_v6  ;;  %v4139_v38 = vmul.f32 %v9693_v26, %v4137_v43  ;;  %v9744_v26 = vld [vmem:[#allocation3 + $0x9] sm:$0xff] }
 0x5aa   :  { %12049 = vst [vmem:[#allocation67_spill] sm:$0xff] %v9744_v26  ;;  %v1532_v6 = vadd.f32 %v9511_v45, %v1476_v54  ;;  %v9762_v54 = vld [vmem:[#allocation3 + $0x29] sm:$0xff] }
 0x5ab   :  { %v9705_v56 = vpop.permute.xlu1 %1845  ;;  %v9707_v32 = vpop.permute.xlu0 %2077  ;;  %v1531_v23 = vadd.f32 %v9503_v60, %v1475_v15  ;;  %v4437_v15 = vmul.f32 %v9709_v10, %v4435_v24 }
 0x5ac   :  { %v1588_v62 = vadd.f32 %v9522_v4, %v1532_v6  ;;  %v1448_v6 = vstv %s9729_s20  ;;  %s9990_s20 = sld [smem:[#allocation5 + $0x5b]] }
 0x5ad   :  { %4400 = vrot.lane.b32.xlu1 %v4395_v22, %s7341_s23  ;;  %4142 = vrot.lane.b32.xlu0 %v4138_v40, %s7342_s25  ;;  %v1610_v22 = vstv %s9696_s0  ;;  %v1587_v36 = vadd.f32 %v9513_v47, %v1531_v23  ;;  %v4199_v40 = vstv %s9702_s17  ;;  %s9961_s0 = sld [smem:[#allocation5 + $0xb8]]  ;;  %s9967_s17 = sld [smem:[#allocation5 + $0xbb]] }
 0x5ae   :  { %v1611_v23 = vmul.f32 %v1610_v22, %v9363_v57  ;;  %v1466_v47 = vstv %s9713_s18  ;;  %v4201_v4 = vmul.f32 %v9765_v29, %v4199_v40  ;;  %s9978_s18 = sld [smem:[#allocation5 + $0x58]] }
 0x5af   :  { %v9721_v44 = vpop.permute.xlu1 %2079  ;;  %v9723_v30 = vpop.permute.xlu0 %1925 }
 0x5b1   :  { %4440 = vrot.lane.b32.xlu1 %v4436_v20, %s7342_s25  ;;  %4144 = vrot.lane.b32.xlu0 %v4139_v38, %s7342_s25  ;;  %v4200_v20 = vmul.f32 %v9744_v26, %v4199_v40  ;;  %v1613_v38 = vadd.f32 %v1611_v23, %v1587_v36  ;;  %v1612_v36 = vmul.f32 %v1610_v22, %v9369_v41  ;;  %v9784_v22 = vld [vmem:[#allocation3 + $0x31] sm:$0xff] }
 0x5b3   :  { %v9739_v43 = vpop.permute.xlu1 %2133  ;;  %v9741_v60 = vpop.permute.xlu0 %1927  ;;  %v1669_v23 = vadd.f32 %v9524_v27, %v1613_v38  ;;  %v1468_v38 = vmul.f32 %v1466_v47, %v9358_v31 }
 0x5b4   :  { %12048 = vst [vmem:[#allocation47_spill] sm:$0xff] %v9741_v60  ;;  %v1614_v60 = vadd.f32 %v1612_v36, %v1588_v62 }
 0x5b5   :  { %4442 = vrot.lane.b32.xlu1 %v4437_v15, %s7342_s25  ;;  %4204 = vrot.lane.b32.xlu0 %v4200_v20, %s7341_s23  ;;  %v4498_v15 = vmul.f32 %v9762_v54, %v4497_v2  ;;  %v1467_v20 = vmul.f32 %v1466_v47, %v9353_v9  ;;  %v4499_v9 = vmul.f32 %v9784_v22, %v4497_v2 }
 0x5b6   :  { %v1725_v62 = vadd.f32 %v9538_v37, %v1669_v23  ;;  %v1470_v23 = vadd.f32 %v1468_v38, %v1448_v6  ;;  %v1886_v38 = vstv %s9778_s28  ;;  %s6799_s28 = sld [smem:[#allocation5 + $0x89]] }
 0x5b7   :  { %v9758_v24 = vpop.permute.xlu1 %2135  ;;  %v9760_v45 = vpop.permute.xlu0 %1981  ;;  %v1469_v27 = vadd.f32 %v1467_v20, %v1448_v6  ;;  %v4303_v20 = vstv %s9768_s30  ;;  %s6783_s30 = sld [smem:[#allocation5 + $0x67]] }
 0x5b8   :  { %12050 = vst [vmem:[#allocation32_spill] sm:$0xff] %v9758_v24  ;;  %12051 = vst [vmem:[#allocation63_spill] sm:$0xff] %v9760_v45  ;;  %v4241_v45 = vstv %s9735_s21  ;;  %v1748_v24 = vstv %s9737_s24  ;;  %s6756_s21 = sld [smem:[#allocation5 + $0x5e]]  ;;  %s6782_s24 = sld [smem:[#allocation5 + $0x55]] }
 0x5b9   :  { %4502 = vrot.lane.b32.xlu1 %v4498_v15, %s7341_s23  ;;  %4206 = vrot.lane.b32.xlu0 %v4201_v4, %s7341_s23  ;;  %v4242_v15 = vmul.f32 %v9744_v26, %v4241_v45  ;;  %v1670_v4 = vadd.f32 %v9530_v52, %v1614_v60  ;;  %v1517_v36 = vadd.f32 %v9532_v63, %v1469_v27  ;;  %v1604_v26 = vstv %s9756_s27  ;;  %s6774_s27 = sld [smem:[#allocation5 + $0x64]] }
 0x5ba   :  { %v1749_v2 = vmul.f32 %v1748_v24, %v9383_v3  ;;  %v1605_v6 = vmul.f32 %v1604_v26, %v9363_v57 }
 0x5bb   :  { %v9780_v40 = vpop.permute.xlu1 %1983  ;;  %v9782_v7 = vpop.permute.xlu0 %2215  ;;  %v1726_v52 = vadd.f32 %v9546_v50, %v1670_v4  ;;  %v1573_v63 = vadd.f32 %v9548_v8, %v1517_v36  ;;  %v4304_v4 = vmul.f32 %v9594_v1, %v4303_v20  ;;  %v4345_v36 = vstv %s9788_s3  ;;  %s6803_s3 = sld [smem:[#allocation5 + $0x8a]] }
 0x5bc   :  { %12052 = vst [vmem:[#allocation57_spill] sm:$0xff] %v9780_v40  ;;  %12053 = vst [vmem:[#allocation17_spill] sm:$0xff] %v9782_v7  ;;  %v4539_v40 = vstv %s9754_s26  ;;  %v1751_v60 = vadd.f32 %v1749_v2, %v1725_v62  ;;  %s6765_s26 = sld [smem:[#allocation5 + $0x61]] }
 0x5bd   :  { %4504 = vrot.lane.b32.xlu1 %v4499_v9, %s7341_s23  ;;  %4246 = vrot.lane.b32.xlu0 %v4242_v15, %s7342_s25  ;;  %v4540_v47 = vmul.f32 %v9762_v54, %v4539_v40  ;;  %v4243_v9 = vmul.f32 %v9765_v29, %v4241_v45  ;;  %v1518_v15 = vadd.f32 %v9540_v19, %v1470_v23 }
 0x5be   :  { %v1807_v27 = vadd.f32 %v9558_v28, %v1751_v60  ;;  %v1750_v45 = vmul.f32 %v1748_v24, %v9389_v34  ;;  %v4541_v62 = vmul.f32 %v9784_v22, %v4539_v40  ;;  %v1607_v2 = vadd.f32 %v1605_v6, %v1573_v63 }
 0x5bf   :  { %v9801_v7 = vpop.permute.xlu1 %2217  ;;  %v9803_v37 = vpop.permute.xlu0 %2063  ;;  %v1574_v19 = vadd.f32 %v9556_v12, %v1518_v15  ;;  %v1887_v23 = vmul.f32 %v1886_v38, %v9403_v35  ;;  %v1742_v12 = vstv %s9799_s5  ;;  %v4305_v63 = vmul.f32 %v9617_v58, %v4303_v20  ;;  %s6798_s5 = sld [smem:[#allocation5 + $0x6e]] }
 0x5c0   :  { %v1752_v28 = vadd.f32 %v1750_v45, %v1726_v52  ;;  %v1863_v24 = vadd.f32 %v9577_v17, %v1807_v27  ;;  %v1655_v40 = vadd.f32 %v9568_v25, %v1607_v2  ;;  %v4346_v60 = vmul.f32 %v9594_v1, %v4345_v36 }
 0x5c1   :  { %4544 = vrot.lane.b32.xlu1 %v4540_v47, %s7342_s25  ;;  %4248 = vrot.lane.b32.xlu0 %v4243_v9, %s7342_s25  ;;  %v1606_v9 = vmul.f32 %v1604_v26, %v9369_v41  ;;  %v4407_v27 = vstv %s9812_s6  ;;  %v1888_v20 = vmul.f32 %v1886_v38, %v9409_v51  ;;  %s6801_s6 = sld [smem:[#allocation5 + $0xbf]] }
 0x5c2   :  { %v1808_v47 = vadd.f32 %v9566_v33, %v1752_v28  ;;  %v1711_v25 = vadd.f32 %v9592_v46, %v1655_v40  ;;  %v1889_v26 = vadd.f32 %v1887_v23, %v1863_v24  ;;  %v4494_v46 = vadd.f32 %v9343_v5, %v9332_v49 }
 0x5c3   :  { %v9821_v50 = vpop.permute.xlu1 %2271  ;;  %v9823_v8 = vpop.permute.xlu0 %2065  ;;  %v1608_v15 = vadd.f32 %v1606_v9, %v1574_v19  ;;  %v4449_v5 = vstv %s9832_s8  ;;  %v1880_v9 = vstv %s9839_s9  ;;  %v4409_v23 = vmul.f32 %v9709_v10, %v4407_v27  ;;  %s6802_s8 = sld [smem:[#allocation5 + $0x6f]]  ;;  %s6810_s9 = sld [smem:[#allocation5 + $0x71]] }
 0x5c4   :  { %v1864_v33 = vadd.f32 %v9579_v39, %v1808_v47  ;;  %v1945_v6 = vadd.f32 %v9615_v61, %v1889_v26  ;;  %v1743_v39 = vmul.f32 %v1742_v12, %v9383_v3  ;;  %v4408_v61 = vmul.f32 %v9690_v18, %v4407_v27 }
 0x5c5   :  { %4546 = vrot.lane.b32.xlu1 %v4541_v62, %s7342_s25  ;;  %4308 = vrot.lane.b32.xlu0 %v4304_v4, %s7341_s23  ;;  %v1656_v45 = vadd.f32 %v9590_v48, %v1608_v15  ;;  %v2024_v62 = vstv %s9819_s7  ;;  %v4347_v48 = vmul.f32 %v9617_v58, %v4345_v36  ;;  %v4536_v49 = vadd.f32 %v9349_v11, %v4494_v46  ;;  %s6815_s7 = sld [smem:[#allocation5 + $0x8d]] }
 0x5c6   :  { %v1890_v28 = vadd.f32 %v1888_v20, %v1864_v33  ;;  %v1745_v2 = vadd.f32 %v1743_v39, %v1711_v25  ;;  %v2001_v24 = vadd.f32 %v9660_v0, %v1945_v6  ;;  %v2025_v40 = vmul.f32 %v2024_v62, %v9423_v42 }
 0x5c7   :  { %v9841_v52 = vpop.permute.xlu1 %2273  ;;  %v9843_v17 = vpop.permute.xlu0 %2119  ;;  %v1712_v38 = vadd.f32 %v9613_v53, %v1656_v45  ;;  %v1744_v53 = vmul.f32 %v1742_v12, %v9389_v34  ;;  %7190 = vtanh.f32 %v4536_v49  ;;  %v4511_v33 = vstv %s9852_s10  ;;  %s6823_s10 = sld [smem:[#allocation5 + $0x8f]] }
 0x5c8   :  { %v1946_v47 = vadd.f32 %v9632_v14, %v1890_v28  ;;  %v1793_v36 = vadd.f32 %v9634_v13, %v1745_v2  ;;  %v2027_v12 = vadd.f32 %v2025_v40, %v2001_v24  ;;  %v2026_v26 = vmul.f32 %v2024_v62, %v9429_v55  ;;  %v12054_v28 = vld [vmem:[#allocation74_spill] sm:$0xff] }
 0x5c9   :  { %4310 = vrot.lane.b32.xlu1 %v4305_v63, %s7341_s23  ;;  %4350 = vrot.lane.b32.xlu0 %v4346_v60, %s7342_s25  ;;  %v4450_v63 = vmul.f32 %v9690_v18, %v4449_v5  ;;  %v1746_v14 = vadd.f32 %v1744_v53, %v1712_v38  ;;  %v1881_v27 = vmul.f32 %v1880_v9, %v9403_v35  ;;  %v2162_v45 = vstv %s9861_s11  ;;  %s10094_s11 = sld [smem:[#allocation5 + $0xc0]] }
 0x5ca   :  { %v2002_v13 = vadd.f32 %v9686_v21, %v1946_v47  ;;  %v1849_v60 = vadd.f32 %v9688_v59, %v1793_v36  ;;  %v2083_v25 = vadd.f32 %v9707_v32, %v2027_v12  ;;  %v4451_v6 = vmul.f32 %v9709_v10, %v4449_v5  ;;  %v12055_v36 = vld [vmem:[#allocation32_spill] sm:$0xff] }
 0x5cb   :  { %v9863_v4 = vpop.permute.xlu1 %2121  ;;  %v9865_v19 = vpop.permute.xlu0 %2353  ;;  %v1794_v15 = vadd.f32 %v9662_v16, %v1746_v14  ;;  %v4512_v20 = vmul.f32 %v9762_v54, %v4511_v33  ;;  %v4553_v62 = vstv %s9875_s12  ;;  %v1882_v38 = vmul.f32 %v1880_v9, %v9409_v51  ;;  %v12057_v9 = vld [vmem:[#allocation47_spill] sm:$0xff]  ;;  %s10102_s12 = sld [smem:[#allocation5 + $0xc2]] }
 0x5cc   :  { %v2028_v39 = vadd.f32 %v2026_v26, %v2002_v13  ;;  %v1883_v32 = vadd.f32 %v1881_v27, %v1849_v60  ;;  %v2139_v46 = vadd.f32 %v9739_v43, %v2083_v25  ;;  %v2163_v2 = vmul.f32 %v2162_v45, %v12054_v28  ;;  %v12059_v13 = vld [vmem:[#allocation24_spill] sm:$0xff] }
 0x5cd   :  { %4352 = vrot.lane.b32.xlu1 %v4347_v48, %s7342_s25  ;;  %4412 = vrot.lane.b32.xlu0 %v4408_v61, %s7341_s23  ;;  %v1850_v16 = vadd.f32 %v9705_v56, %v1794_v15  ;;  %v2018_v24 = vstv %s9882_s13  ;;  %v4513_v43 = vmul.f32 %v9784_v22, %v4511_v33  ;;  %v4554_v5 = vmul.f32 %v9762_v54, %v4553_v62  ;;  %s6827_s13 = sld [smem:[#allocation5 + $0x90]] }
 0x5ce   :  { %v2084_v48 = vadd.f32 %v9721_v44, %v2028_v39  ;;  %v1931_v61 = vadd.f32 %v9723_v30, %v1883_v32  ;;  %v12056_v44 = vld [vmem:[#allocation63_spill] sm:$0xff]  ;;  %v2165_v30 = vadd.f32 %v2163_v2, %v2139_v46  ;;  %v2164_v60 = vmul.f32 %v2162_v45, %v12059_v13 }
 0x5cf   :  { %v9884_v11 = vpop.permute.xlu1 %2355  ;;  %v9886_v0 = vpop.permute.xlu0 %2201  ;;  %v1884_v47 = vadd.f32 %v1882_v38, %v1850_v16  ;;  %v2019_v12 = vmul.f32 %v2018_v24, %v9423_v42  ;;  %v2300_v15 = vstv %s9900_s1  ;;  %v4555_v27 = vmul.f32 %v9784_v22, %v4553_v62  ;;  %s6795_s1 = sld [smem:[#allocation5 + $0x88]] }
 0x5d0   :  { %v2140_v53 = vadd.f32 %v12055_v36, %v2084_v48  ;;  %v1987_v40 = vadd.f32 %v12056_v44, %v1931_v61  ;;  %v2020_v48 = vmul.f32 %v2018_v24, %v9429_v55  ;;  %v12061_v61 = vld [vmem:[#allocation30_spill] sm:$0xff]  ;;  %v2156_v62 = vstv %s9918_s16  ;;  %s6791_s16 = sld [smem:[#allocation5 + $0xda]] }
 0x5d1   :  { %4414 = vrot.lane.b32.xlu1 %v4409_v23, %s7341_s23  ;;  %4454 = vrot.lane.b32.xlu0 %v4450_v63, %s7342_s25  ;;  %v1932_v23 = vadd.f32 %v12057_v9, %v1884_v47  ;;  %v12058_v63 = vld [vmem:[#allocation17_spill] sm:$0xff]  ;;  %v7191_v33 = vpop.eup %7190  ;;  %v2301_v38 = vmul.f32 %v2300_v15, %v12061_v61  ;;  %v2157_v44 = vmul.f32 %v2156_v62, %v12054_v28 }
 0x5d2   :  { %v2221_v14 = vadd.f32 %v12058_v63, %v2165_v30  ;;  %v2166_v16 = vadd.f32 %v2164_v60, %v2140_v53  ;;  %v2021_v39 = vadd.f32 %v2019_v12, %v1987_v40  ;;  %v12062_v53 = vld [vmem:[#allocation54_spill] sm:$0xff]  ;;  %v2438_v40 = vstv %s9931_s14  ;;  %s6814_s14 = sld [smem:[#allocation5 + $0x72]] }
 0x5d3   :  { %v9902_v59 = vpop.permute.xlu1 %2409  ;;  %v9904_v21 = vpop.permute.xlu0 %2203  ;;  %v2302_v24 = vmul.f32 %v2300_v15, %v12062_v53  ;;  %v12063_v60 = vld [vmem:[#allocation58_spill] sm:$0xff] }
 0x5d4   :  { %v2277_v32 = vadd.f32 %v9821_v50, %v2221_v14  ;;  %v2222_v45 = vadd.f32 %v9801_v7, %v2166_v16  ;;  %v2069_v46 = vadd.f32 %v9803_v37, %v2021_v39  ;;  %v2439_v12 = vmul.f32 %v2438_v40, %v12063_v60 }
 0x5d5   :  { %4456 = vrot.lane.b32.xlu1 %v4451_v6, %s7342_s25  ;;  %4516 = vrot.lane.b32.xlu0 %v4512_v20, %s7341_s23  ;;  %v12060_v6 = vld [vmem:[#allocation57_spill] sm:$0xff] }
 0x5d6   :  { %v1988_v20 = vadd.f32 %v12060_v6, %v1932_v23  ;;  %v2278_v50 = vadd.f32 %v9841_v52, %v2222_v45  ;;  %v2125_v47 = vadd.f32 %v9843_v17, %v2069_v46  ;;  %v2303_v36 = vadd.f32 %v2301_v38, %v2277_v32 }
 0x5d7   :  { %v2412_v56 = vpop.permute.xlu1 %2411  ;;  %v2258_v49 = vpop.permute.xlu0 %2257  ;;  %v2576_v46 = vstv %s9952_s15  ;;  %s10127_s15 = sld [smem:[#allocation5 + $0xc3]] }
 0x5d8   :  { %v2359_v37 = vadd.f32 %v9865_v19, %v2303_v36  ;;  %v2304_v52 = vadd.f32 %v2302_v24, %v2278_v50  ;;  %v2159_v63 = vadd.f32 %v2157_v44, %v2125_v47  ;;  %v2158_v19 = vmul.f32 %v2156_v62, %v12059_v13 }
 0x5d9   :  { %4518 = vrot.lane.b32.xlu1 %v4513_v43, %s7341_s23  ;;  %4558 = vrot.lane.b32.xlu0 %v4554_v5, %s7342_s25  ;;  %v2022_v5 = vadd.f32 %v2020_v48, %v1988_v20 }
 0x5da   :  { %v2415_v17 = vadd.f32 %v9902_v59, %v2359_v37  ;;  %v2207_v14 = vadd.f32 %v9886_v0, %v2159_v63 }
 0x5db   :  { %v2260_v25 = vpop.permute.xlu1 %2259  ;;  %v2492_v26 = vpop.permute.xlu0 %2491  ;;  %v2070_v7 = vadd.f32 %v9823_v8, %v2022_v5  ;;  %v2360_v8 = vadd.f32 %v9884_v11, %v2304_v52  ;;  %v12064_v11 = vld [vmem:[#allocation19_spill] sm:$0xff] }
 0x5dc   :  { %v2263_v20 = vadd.f32 %v2258_v49, %v2207_v14  ;;  %v2441_v16 = vadd.f32 %v2439_v12, %v2415_v17  ;;  %v2440_v0 = vmul.f32 %v2438_v40, %v12064_v11 }
 0x5dd   :  { %4560 = vrot.lane.b32.xlu1 %v4555_v27, %s7342_s25  ;;  %4570 = vrot.lane.b32.xlu0 %v7191_v33, %s7345_s29  ;;  %v2126_v23 = vadd.f32 %v9863_v4, %v2070_v7  ;;  %v2294_v33 = vstv %s9943_s4  ;;  %v2416_v4 = vadd.f32 %v2412_v56, %v2360_v8  ;;  %v2432_v7 = vstv %s9961_s0  ;;  %s6553_s4 = sld [smem:[#allocation5 + $0x8b]] }
 0x5de   :  { %v2497_v39 = vadd.f32 %v2492_v26, %v2441_v16  ;;  %v2295_v32 = vmul.f32 %v2294_v33, %v12061_v61  ;;  %v12065_v26 = vld [vmem:[#allocation37_spill] sm:$0xff]  ;;  %v2570_v8 = vstv %s9967_s17  ;;  %s6839_s0 = sld [smem:[#allocation5 + $0x93]]  ;;  %s10150_s17 = sld [smem:[#allocation5 + $0xa4]] }
 0x5df   :  { %v2494_v2 = vpop.permute.xlu1 %2493  ;;  %v2340_v43 = vpop.permute.xlu0 %2339  ;;  %v2160_v6 = vadd.f32 %v2158_v19, %v2126_v23  ;;  %v2442_v62 = vadd.f32 %v2440_v0, %v2416_v4  ;;  %v2577_v47 = vmul.f32 %v2576_v46, %v12065_v26 }
 0x5e0   :  { %v2297_v5 = vadd.f32 %v2295_v32, %v2263_v20 }
 0x5e1   :  { %v2208_v59 = vadd.f32 %v9904_v21, %v2160_v6  ;;  %v2498_v56 = vadd.f32 %v2494_v2, %v2442_v62  ;;  %v2296_v21 = vmul.f32 %v2294_v33, %v12062_v53 }
 0x5e2   :  { %v2345_v49 = vadd.f32 %v2340_v43, %v2297_v5 }
 0x5e3   :  { %v2548_v30 = vpop.permute.xlu1 %2547  ;;  %v2342_v9 = vpop.permute.xlu0 %2341  ;;  %v2264_v38 = vadd.f32 %v2260_v25, %v2208_v59  ;;  %v12066_v25 = vld [vmem:[#allocation26_spill] sm:$0xff] }
 0x5e4   :  { %v2553_v50 = vadd.f32 %v2548_v30, %v2497_v39  ;;  %v2578_v17 = vmul.f32 %v2576_v46, %v12066_v25  ;;  %v2433_v30 = vmul.f32 %v2432_v7, %v12063_v60  ;;  %v2572_v5 = vmul.f32 %v2570_v8, %v12066_v25 }
 0x5e5   :  { %v2298_v24 = vadd.f32 %v2296_v21, %v2264_v38 }
 0x5e6   :  { %v2579_v23 = vadd.f32 %v2577_v47, %v2553_v50 }
 0x5e7   :  { %v2550_v15 = vpop.permute.xlu1 %2549  ;;  %v2396_v27 = vpop.permute.xlu0 %2395  ;;  %v2346_v52 = vadd.f32 %v2342_v9, %v2298_v24  ;;  %v2571_v9 = vmul.f32 %v2570_v8, %v12065_v26  ;;  %v3957_v8 = vstv %s9978_s18  ;;  %s6835_s18 = sld [smem:[#allocation5 + $0x92]] }
 0x5e8   :  { %v2554_v44 = vadd.f32 %v2550_v15, %v2498_v56  ;;  %v2401_v40 = vadd.f32 %v2396_v27, %v2345_v49  ;;  %v2434_v15 = vmul.f32 %v2432_v7, %v12064_v11  ;;  %v12067_v7 = vld [vmem:[#allocation66_spill] sm:$0xff] }
 0x5ea   :  { %v2580_v19 = vadd.f32 %v2578_v17, %v2554_v44  ;;  %v2435_v12 = vadd.f32 %v2433_v30, %v2401_v40 }
 0x5eb   :  { %v2398_v45 = vpop.permute.xlu1 %2397  ;;  %v2630_v48 = vpop.permute.xlu0 %2629 }
 0x5ec   :  { %v2635_v63 = vadd.f32 %v2630_v48, %v2579_v23  ;;  %v2402_v14 = vadd.f32 %v2398_v45, %v2346_v52 }
 0x5ee   :  { %v2436_v59 = vadd.f32 %v2434_v15, %v2402_v14 }
 0x5ef   :  { %v2632_v36 = vpop.permute.xlu1 %2631  ;;  %v2478_v37 = vpop.permute.xlu0 %2477 }
 0x5f0   :  { %v2636_v6 = vadd.f32 %v2632_v36, %v2580_v19  ;;  %v2483_v4 = vadd.f32 %v2478_v37, %v2435_v12  ;;  %v12068_v37 = vld [vmem:[#allocation25_spill] sm:$0xff]  ;;  %v12070_v19 = vld [vmem:[#allocation68_spill] sm:$0xff] }
 0x5f1   :  { %v4197_v24 = vadd.f32 %v12068_v37, %v12067_v7  ;;  %v12071_v12 = vld [vmem:[#allocation53_spill] sm:$0xff] }
 0x5f2   :  { %v12074_v7 = vld [vmem:[#allocation65_spill] sm:$0xff] }
 0x5f3   :  { %v2686_v2 = vpop.permute.xlu1 %2685  ;;  %v2480_v43 = vpop.permute.xlu0 %2479 }
 0x5f4   :  { %v2691_v33 = vadd.f32 %v2686_v2, %v2635_v63  ;;  %v2484_v32 = vadd.f32 %v2480_v43, %v2436_v59  ;;  %v12069_v2 = vstv %s9323_s22  ;;  %s9994_s22 = sld [smem:[#allocation5 + $0x52]] }
 0x5f5   :  { %v4265_v43 = vmul.f32 %v9617_v58, %v12069_v2 }
 0x5f6   :  { %v6662_v20 = vmul.f32 -1.442695, %v2691_v33  ;;  %v4495_v33 = vadd.f32 %v12071_v12, %v12070_v19 }
 0x5f7   :  { %v2688_v27 = vpop.permute.xlu1 %2687  ;;  %v2534_v16 = vpop.permute.xlu0 %2533 }
 0x5f8   :  { %7192 = vpow2.f32 %v6662_v20  ;;  %v2692_v39 = vadd.f32 %v2688_v27, %v2636_v6  ;;  %v2539_v0 = vadd.f32 %v2534_v16, %v2483_v4 }
 0x5fa   :  { %v6663_v46 = vmul.f32 -1.442695, %v2692_v39  ;;  %v2573_v48 = vadd.f32 %v2571_v9, %v2539_v0  ;;  %v12072_v9 = vld [vmem:[#allocation12_spill] sm:$0xff]  ;;  %v3941_v39 = vstv %s9980_s19  ;;  %s6822_s19 = sld [smem:[#allocation5 + $0x74]] }
 0x5fb   :  { %v2536_v45 = vpop.permute.xlu1 %2535  ;;  %v2616_v38 = vpop.permute.xlu0 %2615  ;;  %v3958_v59 = vmul.f32 %v12072_v9, %v3957_v8 }
 0x5fc   :  { %7194 = vpow2.f32 %v6663_v46  ;;  %v2540_v62 = vadd.f32 %v2536_v45, %v2484_v32  ;;  %v2621_v50 = vadd.f32 %v2616_v38, %v2573_v48  ;;  %v12073_v48 = vld [vmem:[#allocation35_spill] sm:$0xff] }
 0x5fd   :  { %v3960_v46 = vadd.f32 %v3958_v59, %v3941_v39  ;;  %v3959_v45 = vmul.f32 %v12073_v48, %v3957_v8 }
 0x5fe   :  { %v2574_v56 = vadd.f32 %v2572_v5, %v2540_v62 }
 0x5ff   :  { %v2618_v49 = vpop.permute.xlu1 %2617  ;;  %v2672_v21 = vpop.permute.xlu0 %2671 }
 0x600   :  { %v2677_v47 = vadd.f32 %v2672_v21, %v2621_v50  ;;  %v2622_v44 = vadd.f32 %v2618_v49, %v2574_v56  ;;  %v4061_v21 = vstv %s9990_s20  ;;  %s6826_s20 = sld [smem:[#allocation5 + $0x75]] }
 0x601   :  { %v4062_v37 = vmul.f32 %v12074_v7, %v4061_v21 }
 0x602   :  { %v7193_v36 = vpop.eup %7192  ;;  %v6660_v40 = vmul.f32 -1.442695, %v2677_v47  ;;  %v3961_v47 = vadd.f32 %v3959_v45, %v3941_v39 }
 0x603   :  { %v2898_v23 = vadd.f32 1.0, %v7193_v36  ;;  %v2674_v52 = vpop.permute.xlu1 %2673  ;;  %v4235_v63 = vpop.permute.xlu0 %4234 }
 0x604   :  { %7196 = vpow2.f32 %v6660_v40  ;;  %v2678_v17 = vadd.f32 %v2674_v52, %v2622_v44  ;;  %v4239_v30 = vadd.f32 %v4235_v63, %v4197_v24  ;;  %v12075_v44 = vld [vmem:[#allocation20_spill] sm:$0xff] }
 0x605   :  { %7198 = vrcp.f32 %v2898_v23 }
 0x606   :  { %v7195_v14 = vpop.eup %7194  ;;  %v6661_v6 = vmul.f32 -1.442695, %v2678_v17  ;;  %v4267_v4 = vadd.f32 %v4265_v43, %v4239_v30  ;;  %v4367_v43 = vstv %s9994_s22  ;;  %s10176_s22 = sld [smem:[#allocation5 + $0xa5]] }
 0x607   :  { %v2899_v20 = vadd.f32 1.0, %v7195_v14  ;;  %v4533_v15 = vpop.permute.xlu1 %4532  ;;  %v3997_v27 = vpop.permute.xlu0 %3996  ;;  %v4368_v12 = vmul.f32 %v9690_v18, %v4367_v43 }
 0x608   :  { %7200 = vpow2.f32 %v6661_v6  ;;  %v4537_v16 = vadd.f32 %v4533_v15, %v4495_v33  ;;  %v4002_v62 = vadd.f32 %v3997_v27, %v3960_v46  ;;  %v12076_v33 = vld [vmem:[#allocation43_spill] sm:$0xff] }
 0x609   :  { %7202 = vrcp.f32 %v2899_v20  ;;  %v4063_v6 = vmul.f32 %v12076_v33, %v4061_v21  ;;  %v12077_v20 = vmov 1.0|1.0   ;;  %v12079_v21 = vld [vmem:[#allocation67_spill] sm:$0xff] }
 0x60a   :  { %7204 = vtanh.f32 %v4537_v16 }
 0x60b   :  { %v4295_v0 = vpop.permute.xlu1 %4294  ;;  %v3999_v32 = vpop.permute.xlu0 %3998 }
 0x60c   :  { %v4300_v40 = vadd.f32 %v4295_v0, %v12075_v44  ;;  %v4003_v23 = vadd.f32 %v3999_v32, %v3961_v47  ;;  %v4369_v32 = vmul.f32 %v9709_v10, %v4367_v43 }
 0x60e   :  { %v7197_v38 = vpop.eup %7196 }
 0x60f   :  { %v7199_v5 = vpop.eup %7198  ;;  %v2886_v50 = vadd.f32 1.0, %v7197_v38  ;;  %v4297_v56 = vpop.permute.xlu1 %4296 }
 0x610   :  { %v4039_v49 = vpop.permute.xlu0 %4038  ;;  %7008 = vmatprep.mubr.msk.f32.mxu1 %vm2717_vm12, %v7199_v5  ;;  %v4301_v27 = vadd.f32 %v4297_v56, %v4267_v4  ;;  %v4165_v4 = vstv %s6756_s21  ;;  %s10187_s21 = sld [smem:[#allocation5 + $0xc5]] }
 0x611   :  { %v4044_v36 = vadd.f32 %v4039_v49, %v4002_v62  ;;  %7206 = vrcp.f32 %v2886_v50  ;;  %v4166_v47 = vmul.f32 %v12079_v21, %v4165_v4 }
 0x612   :  { %v7201_v24 = vpop.eup %7200 }
 0x613   :  { %v4064_v52 = vadd.f32 %v4062_v37, %v4044_v36  ;;  %v7203_v63 = vpop.eup %7202  ;;  %v2887_v17 = vadd.f32 1.0, %v7201_v24  ;;  %v4337_v30 = vpop.permute.xlu1 %4336 }
 0x614   :  { %v4041_v2 = vpop.permute.xlu0 %4040  ;;  %v7205_v8 = vpop.eup %7204  ;;  %v4342_v14 = vadd.f32 %v4337_v30, %v4300_v40  ;;  %7009 = vmatmul.mubr.msk.f32.vlgmr.msra.gmra.mrb[0].mxu1 %vm2717_vm12, %v7203_v63  ;;  %v4471_v40 = vstv %s6782_s24  ;;  %s10217_s24 = sld [smem:[#allocation5 + $0xc6]] }
 0x615   :  { %v4045_v19 = vadd.f32 %v4041_v2, %v4003_v23  ;;  %7208 = vrcp.f32 %v2887_v17  ;;  %4572 = vrot.lane.b32.xlu1 %v7205_v8, %s7345_s29  ;;  %7101 = vmatpush3.bf16.msk.msra.mxu1 %vm9645_vm11, %v12077_v20  ;;  %v4472_v17 = vmul.f32 %v9762_v54, %v4471_v40 }
 0x616   :  { %v4370_v16 = vadd.f32 %v4368_v12, %v4342_v14  ;;  %v4473_v12 = vmul.f32 %v9784_v22, %v4471_v40 }
 0x617   :  { %v4065_v9 = vadd.f32 %v4063_v6, %v4045_v19  ;;  %v4339_v59 = vpop.permute.xlu1 %4338 }
 0x618   :  { %v4101_v39 = vpop.permute.xlu0 %4100  ;;  %v4343_v0 = vadd.f32 %v4339_v59, %v4301_v27 }
 0x619   :  { %v4106_v62 = vadd.f32 %v4101_v39, %v4064_v52  ;;  %v4167_v52 = vmul.f32 %v9765_v29, %v4165_v4 }
 0x61a   :  { %v4371_v46 = vadd.f32 %v4369_v32, %v4343_v0 }
 0x61b   :  { %v7207_v48 = vpop.eup %7206  ;;  %v4399_v45 = vpop.permute.xlu1 %4398 }
 0x61c   :  { %v4103_v38 = vpop.permute.xlu0 %4102  ;;  %7015 = vmatprep.mubr.msk.f32.mxu1 %vm2717_vm12, %v7207_v48  ;;  %v4404_v36 = vadd.f32 %v4399_v45, %v4370_v16  ;;  %v4269_v16 = vstv %s6765_s26  ;;  %s6851_s26 = sld [smem:[#allocation5 + $0x96]] }
 0x61d   :  { %v4107_v7 = vadd.f32 %v4103_v38, %v4065_v9  ;;  %v4270_v32 = vmul.f32 %v9594_v1, %v4269_v16 }
 0x61f   :  { %v7209_v5 = vpop.eup %7208  ;;  %v4401_v50 = vpop.permute.xlu1 %4400 }
 0x620   :  { %v4143_v49 = vpop.permute.xlu0 %4142  ;;  %7016 = vmatmul.mubr.msk.f32.vlgmr.msra.gmra.mrb[0].mxu1 %vm2717_vm12, %v7209_v5  ;;  %v4405_v30 = vadd.f32 %v4401_v50, %v4371_v46  ;;  %v4271_v50 = vmul.f32 %v9617_v58, %v4269_v16 }
 0x621   :  { %v4148_v56 = vadd.f32 %v4143_v49, %v4106_v62 }
 0x623   :  { %v4168_v37 = vadd.f32 %v4166_v47, %v4148_v56  ;;  %v4441_v24 = vpop.permute.xlu1 %4440 }
 0x624   :  { %v4145_v44 = vpop.permute.xlu0 %4144  ;;  %v4446_v23 = vadd.f32 %v4441_v24, %v4404_v36 }
 0x625   :  { %v4149_v63 = vadd.f32 %v4145_v44, %v4107_v7 }
 0x626   :  { %v4474_v2 = vadd.f32 %v4472_v17, %v4446_v23 }
 0x627   :  { %v4169_v43 = vadd.f32 %v4167_v52, %v4149_v63  ;;  %v4443_v8 = vpop.permute.xlu1 %4442 }
 0x628   :  { %v4205_v14 = vpop.permute.xlu0 %4204  ;;  %v4447_v19 = vadd.f32 %v4443_v8, %v4405_v30 }
 0x629   :  { %v4210_v9 = vadd.f32 %v4205_v14, %v4168_v37  ;;  %v4373_v37 = vstv %s6774_s27  ;;  %s10238_s27 = sld [smem:[#allocation5 + $0xa7]] }
 0x62a   :  { %v4475_v33 = vadd.f32 %v4473_v12, %v4447_v19  ;;  %v4374_v44 = vmul.f32 %v9690_v18, %v4373_v37  ;;  %v4375_v30 = vmul.f32 %v9709_v10, %v4373_v37  ;;  %v4477_v19 = vstv %s6783_s30  ;;  %s6847_s30 = sld [smem:[#allocation5 + $0x95]] }
 0x62b   :  { %v4503_v6 = vpop.permute.xlu1 %4502  ;;  %v4479_v10 = vmul.f32 %v9784_v22, %v4477_v19  ;;  %v4651_v22 = vstv %s6799_s28  ;;  %s6834_s28 = sld [smem:[#allocation5 + $0x77]] }
 0x62c   :  { %v4207_v27 = vpop.permute.xlu0 %4206  ;;  %v4508_v29 = vadd.f32 %v4503_v6, %v4474_v2  ;;  %v4478_v6 = vmul.f32 %v9762_v54, %v4477_v19  ;;  %v4679_v19 = vstv %s6801_s6  ;;  %s6790_s6 = sld [smem:[#allocation5 + $0xd9]] }
 0x62d   :  { %v4211_v48 = vadd.f32 %v4207_v27, %v4169_v43 }
 0x62f   :  { %v4505_v59 = vpop.permute.xlu1 %4504 }
 0x630   :  { %v4247_v39 = vpop.permute.xlu0 %4246  ;;  %v4509_v49 = vadd.f32 %v4505_v59, %v4475_v33 }
 0x631   :  { %v4252_v0 = vadd.f32 %v4247_v39, %v4210_v9 }
 0x632   :  { %v10310_v25 = vstv %s6790_s6  ;;  %s10624_s6 = sld [smem:[#allocation5 + $0xc7]] }
 0x633   :  { %v4272_v46 = vadd.f32 %v4270_v32, %v4252_v0  ;;  %v4545_v45 = vpop.permute.xlu1 %4544 }
 0x634   :  { %v4249_v38 = vpop.permute.xlu0 %4248  ;;  %v4550_v62 = vadd.f32 %v4545_v45, %v4508_v29 }
 0x635   :  { %v4253_v5 = vadd.f32 %v4249_v38, %v4211_v48 }
 0x636   :  { %7210 = vtanh.f32 %v4550_v62 }
 0x637   :  { %v4273_v4 = vadd.f32 %v4271_v50, %v4253_v5  ;;  %v4547_v56 = vpop.permute.xlu1 %4546 }
 0x638   :  { %v4309_v21 = vpop.permute.xlu0 %4308  ;;  %v4551_v47 = vadd.f32 %v4547_v56, %v4509_v49 }
 0x639   :  { %v4314_v36 = vadd.f32 %v4309_v21, %v4272_v46  ;;  %v12080_v21 = vld [vmem:[#allocation56_spill] sm:$0xff] }
 0x63a   :  { %7212 = vtanh.f32 %v4551_v47  ;;  %v1493_v47 = vmul.f32 %v4651_v22, %v12080_v21 }
 0x63b   :  { %v4311_v7 = vpop.permute.xlu1 %4310 }
 0x63c   :  { %v4351_v1 = vpop.permute.xlu0 %4350  ;;  %v4315_v40 = vadd.f32 %v4311_v7, %v4273_v4  ;;  %v4707_v4 = vstv %s6803_s3  ;;  %s6794_s3 = sld [smem:[#allocation5 + $0x6d]] }
 0x63d   :  { %v4356_v24 = vadd.f32 %v4351_v1, %v4314_v36  ;;  %v1549_v36 = vmul.f32 %v4707_v4, %v12080_v21  ;;  %v1550_v7 = vmul.f32 %v4707_v4, %v9358_v31  ;;  %v4637_v1 = vstv %s6798_s5  ;;  %s6819_s5 = sld [smem:[#allocation5 + $0x8e]] }
 0x63f   :  { %v4376_v23 = vadd.f32 %v4374_v44, %v4356_v24  ;;  %v4353_v63 = vpop.permute.xlu1 %4352 }
 0x640   :  { %v4413_v17 = vpop.permute.xlu0 %4412  ;;  %v7211_v58 = vpop.eup %7210  ;;  %v4357_v52 = vadd.f32 %v4353_v63, %v4315_v40 }
 0x641   :  { %4582 = vrot.lane.b32.xlu0 %v7211_v58, %s7345_s29  ;;  %v4418_v2 = vadd.f32 %v4413_v17, %v4376_v23 }
 0x642   :  { %v4377_v43 = vadd.f32 %v4375_v30, %v4357_v52  ;;  %v1494_v52 = vmul.f32 %v4651_v22, %v9358_v31 }
 0x643   :  { %v4415_v8 = vpop.permute.xlu1 %4414 }
 0x644   :  { %v4455_v14 = vpop.permute.xlu0 %4454  ;;  %v7213_v12 = vpop.eup %7212  ;;  %v4419_v18 = vadd.f32 %v4415_v8, %v4377_v43  ;;  %v1479_v8 = vmul.f32 %v4637_v1, %v12080_v21 }
 0x645   :  { %v4460_v33 = vadd.f32 %v4455_v14, %v4418_v2  ;;  %4584 = vrot.lane.b32.xlu1 %v7213_v12, %s7345_s29 }
 0x647   :  { %v4480_v27 = vadd.f32 %v4478_v6, %v4460_v33  ;;  %v4457_v16 = vpop.permute.xlu1 %4456  ;;  %v4845_v6 = vstv %s6815_s7  ;;  %s10288_s7 = sld [smem:[#allocation5 + $0xa8]] }
 0x648   :  { %v4517_v9 = vpop.permute.xlu0 %4516  ;;  %v4461_v59 = vadd.f32 %v4457_v16, %v4419_v18 }
 0x649   :  { %v4522_v39 = vadd.f32 %v4517_v9, %v4480_v27  ;;  %v1480_v27 = vmul.f32 %v4637_v1, %v9358_v31 }
 0x64a   :  { %v4481_v0 = vadd.f32 %v4479_v10, %v4461_v59  ;;  %v4693_v59 = vstv %s6802_s8  ;;  %s6806_s8 = sld [smem:[#allocation5 + $0x70]] }
 0x64b   :  { %v4519_v32 = vpop.permute.xlu1 %4518 }
 0x64c   :  { %v4559_v29 = vpop.permute.xlu0 %4558  ;;  %v4523_v46 = vadd.f32 %v4519_v32, %v4481_v0  ;;  %v4775_v0 = vstv %s6810_s9  ;;  %s10320_s9 = sld [smem:[#allocation5 + $0xc8]] }
 0x64d   :  { %v4564_v48 = vadd.f32 %v4559_v29, %v4522_v39  ;;  %v1535_v39 = vmul.f32 %v4693_v59, %v12080_v21 }
 0x64f   :  { %7214 = vtanh.f32 %v4564_v48  ;;  %v4561_v45 = vpop.permute.xlu1 %4560 }
 0x650   :  { %v4571_v38 = vpop.permute.xlu0 %4570  ;;  %v4565_v62 = vadd.f32 %v4561_v45, %v4523_v46  ;;  %v1687_v46 = vmul.f32 %v4845_v6, %v9363_v57  ;;  %v1536_v45 = vmul.f32 %v4693_v59, %v9358_v31 }
 0x651   :  { %4576 = vst.msk [vmem:[#allocation4 + $0x8] sm:$0xff] %vm759_vm5, %v4571_v38 }
 0x652   :  { %7216 = vtanh.f32 %v4565_v62 }
 0x658   :  { %v10025_v5 = vld [vmem:[#allocation4 + $0x7] sm:$0xff] }
 0x659   :  { %v7215_v54 = vpop.eup %7214  ;;  %v4652_v50 = vmul.f32 %v4651_v22, %v10025_v5  ;;  %v4708_v56 = vmul.f32 %v4707_v4, %v10025_v5  ;;  %v4638_v37 = vmul.f32 %v4637_v1, %v10025_v5  ;;  %v10054_v2 = vld [vmem:[#allocation4 + $0x8] sm:$0xff]  ;;  %v4680_v33 = vmul.f32 %v4679_v19, %v10025_v5 }
 0x65a   :  { %4594 = vrot.lane.b32.xlu0 %v7215_v54, %s7345_s29  ;;  %v4846_v18 = vmul.f32 %v4845_v6, %v10054_v2  ;;  %v4694_v10 = vmul.f32 %v4693_v59, %v10025_v5  ;;  %v4776_v29 = vmul.f32 %v4775_v0, %v10054_v2  ;;  %v4927_v54 = vstv %s6823_s10  ;;  %s10354_s10 = sld [smem:[#allocation5 + $0xbe]] }
 0x65c   :  { %v7217_v49 = vpop.eup %7216 }
 0x65d   :  { %4596 = vrot.lane.b32.xlu1 %v7217_v49, %s7345_s29  ;;  %s6557_s29 = sld [smem:[#allocation5 + $0x8c]]  ;;  %v1688_v49 = vmul.f32 %v4845_v6, %v9369_v41 }
 0x65e   :  { %4656 = vrot.lane.b32.xlu0 %v4652_v50, %s7341_s23 }
 0x662   :  { %4712 = vrot.lane.b32.xlu0 %v4708_v56, %s7342_s25 }
 0x663   :  { %v1630_v63 = vstv %s6557_s29  ;;  %s6838_s29 = sld [smem:[#allocation5 + $0x78]] }
 0x664   :  { %v1631_v58 = vmul.f32 %v1630_v63, %v9363_v57  ;;  %v1632_v30 = vmul.f32 %v1630_v63, %v9369_v41  ;;  %v4790_v43 = vmul.f32 %v10054_v2, %v1630_v63 }
 0x666   :  { %1497 = vrot.lane.b32.xlu0 %v1493_v47, %s7341_s23 }
 0x66a   :  { %1553 = vrot.lane.b32.xlu0 %v1549_v36, %s7342_s25  ;;  %v1770_v36 = vmul.f32 %v4927_v54, %v9389_v34 }
 0x66e   :  { %1555 = vrot.lane.b32.xlu0 %v1550_v7, %s7342_s25  ;;  %v4735_v7 = vstv %s10094_s11  ;;  %s10368_s11 = sld [smem:[#allocation5 + $0xdc]] }
 0x672   :  { %4642 = vrot.lane.b32.xlu0 %v4638_v37, %s7341_s23  ;;  %v1617_v37 = vmul.f32 %v4775_v0, %v9363_v57 }
 0x687   :  { %v4573_v24 = vpop.permute.xlu1 %4572 }
 0x688   :  { %4577 = vst.msk [vmem:[#allocation4 + $0x10] sm:$0xff] %vm759_vm5, %v4573_v24  ;;  %v4817_v24 = vstv %s10102_s12  ;;  %s10378_s12 = sld [smem:[#allocation5 + $0xc9]] }
 0x68f   :  { %v10042_v44 = vld [vmem:[#allocation4 + $0xf] sm:$0xff] }
 0x690   :  { %v4653_v40 = vmul.f32 %v4651_v22, %v10042_v44  ;;  %v4639_v23 = vmul.f32 %v4637_v1, %v10042_v44  ;;  %v4709_v17 = vmul.f32 %v4707_v4, %v10042_v44  ;;  %v10060_v14 = vld [vmem:[#allocation4 + $0x10] sm:$0xff]  ;;  %v4681_v9 = vmul.f32 %v4679_v19, %v10042_v44 }
 0x691   :  { %v4791_v12 = vmul.f32 %v10060_v14, %v1630_v63  ;;  %v4847_v16 = vmul.f32 %v4845_v6, %v10060_v14  ;;  %v4695_v32 = vmul.f32 %v4693_v59, %v10042_v44  ;;  %v10087_v38 = vld [vmem:[#allocation4 + $0x9] sm:$0xff]  ;;  %v4777_v50 = vmul.f32 %v4775_v0, %v10060_v14  ;;  %v10100_v56 = vld [vmem:[#allocation4 + $0x11] sm:$0xff] }
 0x692   :  { %4658 = vrot.lane.b32.xlu1 %v4653_v40, %s7341_s23  ;;  %4644 = vrot.lane.b32.xlu0 %v4639_v23, %s7341_s23  ;;  %v4928_v22 = vmul.f32 %v4927_v54, %v10087_v38  ;;  %v1769_v4 = vmul.f32 %v4927_v54, %v9383_v3  ;;  %v4929_v47 = vmul.f32 %v4927_v54, %v10100_v56  ;;  %v4983_v40 = vstv %s6827_s13  ;;  %s10383_s13 = sld [smem:[#allocation5 + $0xc1]] }
 0x693   :  { %v4736_v1 = vmul.f32 %v4735_v7, %v10025_v5  ;;  %v4984_v23 = vmul.f32 %v4983_v40, %v10087_v38  ;;  %v4818_v63 = vmul.f32 %v4817_v24, %v10054_v2  ;;  %v10131_v19 = vstv %s6791_s16  ;;  %s6831_s16 = sld [smem:[#allocation5 + $0x91]] }
 0x694   :  { %v4985_v6 = vmul.f32 %v4983_v40, %v10100_v56  ;;  %v10139_v59 = vstv %s6553_s4  ;;  %v10158_v54 = vstv %s6839_s0  ;;  %s6859_s4 = sld [smem:[#allocation5 + $0x98]]  ;;  %s6818_s0 = sld [smem:[#allocation5 + $0x73]] }
 0x695   :  { %12081 = vst [vmem:[#allocation34_spill] sm:$0xff] %v10139_v59 }
 0x696   :  { %4714 = vrot.lane.b32.xlu1 %v4709_v17, %s7342_s25  ;;  %1635 = vrot.lane.b32.xlu0 %v1631_v58, %s7341_s23  ;;  %v10120_v58 = vstv %s6795_s1  ;;  %s6863_s1 = sld [smem:[#allocation5 + $0x99]] }
 0x69a   :  { %1499 = vrot.lane.b32.xlu1 %v1494_v52, %s7341_s23  ;;  %1637 = vrot.lane.b32.xlu0 %v1632_v30, %s7341_s23  ;;  %v4737_v52 = vmul.f32 %v4735_v7, %v10042_v44  ;;  %v1618_v30 = vmul.f32 %v4775_v0, %v9369_v41  ;;  %v4913_v7 = vstv %s6822_s19  ;;  %s10461_s19 = sld [smem:[#allocation5 + $0xab]] }
 0x69e   :  { %4794 = vrot.lane.b32.xlu1 %v4790_v43, %s7341_s23  ;;  %1483 = vrot.lane.b32.xlu0 %v1479_v8, %s7341_s23  ;;  %v4620_v43 = vmul.f32 %v10120_v58, %v10025_v5 }
 0x6a2   :  { %4796 = vrot.lane.b32.xlu1 %v4791_v12, %s7341_s23  ;;  %4684 = vrot.lane.b32.xlu0 %v4680_v33, %s7341_s23  ;;  %v4622_v33 = vadd.f32 %v4620_v43, %v10131_v19  ;;  %v4721_v43 = vstv %s10176_s22  ;;  %s6843_s22 = sld [smem:[#allocation5 + $0x94]] }
 0x6a6   :  { %4850 = vrot.lane.b32.xlu1 %v4846_v18, %s7342_s25  ;;  %1485 = vrot.lane.b32.xlu0 %v1480_v27, %s7341_s23  ;;  %v4819_v18 = vmul.f32 %v4817_v24, %v10060_v14  ;;  %v4831_v27 = vstv %s6814_s14  ;;  %s10402_s14 = sld [smem:[#allocation5 + $0xaa]] }
 0x6a7   :  { %v1673_v0 = vmul.f32 %v4831_v27, %v9363_v57 }
 0x6aa   :  { %4852 = vrot.lane.b32.xlu1 %v4847_v16, %s7342_s25  ;;  %4686 = vrot.lane.b32.xlu0 %v4681_v9, %s7341_s23 }
 0x6ae   :  { %4698 = vrot.lane.b32.xlu1 %v4694_v10, %s7342_s25  ;;  %1539 = vrot.lane.b32.xlu0 %v1535_v39, %s7342_s25  ;;  %v4832_v39 = vmul.f32 %v4831_v27, %v10054_v2 }
 0x6b2   :  { %4700 = vrot.lane.b32.xlu1 %v4695_v32, %s7342_s25  ;;  %4780 = vrot.lane.b32.xlu0 %v4776_v29, %s7341_s23  ;;  %v4758_v32 = vmul.f32 %v10054_v2, %v10139_v59  ;;  %v4873_v29 = vstv %s10127_s15  ;;  %s6846_s15 = sld [smem:[#allocation5 + $0x7a]] }
 0x6b3   :  { %v4583_v48 = vpop.permute.xlu0 %4582 }
 0x6b4   :  { %4588 = vst.msk [vmem:[#allocation4 + $0x28] sm:$0xff] %vm759_vm5, %v4583_v48 }
 0x6b6   :  { %1691 = vrot.lane.b32.xlu1 %v1687_v46, %s7342_s25  ;;  %1541 = vrot.lane.b32.xlu0 %v1536_v45, %s7342_s25  ;;  %v4833_v46 = vmul.f32 %v4831_v27, %v10060_v14  ;;  %v4874_v45 = vmul.f32 %v4873_v29, %v10054_v2 }
 0x6b7   :  { %v4585_v62 = vpop.permute.xlu1 %4584 }
 0x6b8   :  { %4589 = vst.msk [vmem:[#allocation4 + $0x30] sm:$0xff] %vm759_vm5, %v4585_v62 }
 0x6ba   :  { %4932 = vrot.lane.b32.xlu1 %v4928_v22, %s7341_s23  ;;  %4782 = vrot.lane.b32.xlu0 %v4777_v50, %s7341_s23  ;;  %v1825_v22 = vmul.f32 %v4983_v40, %v9383_v3 }
 0x6bb   :  { %v10154_v62 = vld [vmem:[#allocation4 + $0x27] sm:$0xff] }
 0x6bc   :  { %v5122_v50 = vmul.f32 %v10158_v54, %v10154_v62 }
 0x6be   :  { %1693 = vrot.lane.b32.xlu1 %v1688_v49, %s7342_s25  ;;  %1773 = vrot.lane.b32.xlu0 %v1769_v4, %s7341_s23  ;;  %v4665_v49 = vstv %s10150_s17  ;;  %v5065_v4 = vstv %s6835_s18  ;;  %s10448_s17 = sld [smem:[#allocation5 + $0xc4]]  ;;  %s6850_s18 = sld [smem:[#allocation5 + $0x7b]] }
 0x6bf   :  { %v10172_v24 = vld [vmem:[#allocation4 + $0x2f] sm:$0xff] }
 0x6c2   :  { %4934 = vrot.lane.b32.xlu1 %v4929_v47, %s7341_s23  ;;  %1775 = vrot.lane.b32.xlu0 %v1770_v36, %s7341_s23  ;;  %v4667_v47 = vmul.f32 %v4665_v49, %v10042_v44  ;;  %v5066_v36 = vmul.f32 %v5065_v4, %v10154_v62 }
 0x6c6   :  { %4740 = vrot.lane.b32.xlu1 %v4736_v1, %s7342_s25  ;;  %1621 = vrot.lane.b32.xlu0 %v1617_v37, %s7341_s23  ;;  %v4915_v1 = vmul.f32 %v4913_v7, %v10100_v56  ;;  %v1826_v37 = vmul.f32 %v4983_v40, %v9389_v34 }
 0x6ca   :  { %4988 = vrot.lane.b32.xlu1 %v4984_v23, %s7342_s25  ;;  %4822 = vrot.lane.b32.xlu0 %v4818_v63, %s7341_s23  ;;  %v1907_v23 = vmul.f32 %v5065_v4, %v9403_v35  ;;  %v5067_v63 = vmul.f32 %v5065_v4, %v10172_v24 }
 0x6cc   :  { %v4595_v17 = vpop.permute.xlu0 %4594 }
 0x6cd   :  { %4600 = vst.msk [vmem:[#allocation4 + $0x48] sm:$0xff] %vm759_vm5, %v4595_v17  ;;  %v10182_v17 = vstv %s6826_s20  ;;  %s10498_s20 = sld [smem:[#allocation5 + $0xcb]] }
 0x6ce   :  { %4742 = vrot.lane.b32.xlu1 %v4737_v52, %s7342_s25  ;;  %1623 = vrot.lane.b32.xlu0 %v1618_v30, %s7341_s23  ;;  %v4970_v40 = vmul.f32 %v10182_v17, %v10087_v38  ;;  %v4666_v52 = vmul.f32 %v4665_v49, %v10025_v5  ;;  %v4722_v49 = vmul.f32 %v4721_v43, %v10025_v5 }
 0x6cf   :  { %v4597_v8 = vpop.permute.xlu1 %4596 }
 0x6d0   :  { %v4657_v12 = vpop.permute.xlu0 %4656  ;;  %4601 = vst.msk [vmem:[#allocation4 + $0x50] sm:$0xff] %vm759_vm5, %v4597_v8  ;;  %v4723_v8 = vmul.f32 %v4721_v43, %v10042_v44  ;;  %vm3260_vm5 = vcmask 261120  }
 0x6d1   :  { %v4662_v16 = vadd.f32 %v4657_v12, %v4622_v33  ;;  %v4914_v12 = vmul.f32 %v4913_v7, %v10087_v38 }
 0x6d2   :  { %4990 = vrot.lane.b32.xlu1 %v4985_v6, %s7342_s25  ;;  %4824 = vrot.lane.b32.xlu0 %v4819_v18, %s7341_s23 }
 0x6d4   :  { %v4713_v9 = vpop.permute.xlu0 %4712 }
 0x6d5   :  { %v4718_v10 = vadd.f32 %v4713_v9, %v4662_v16  ;;  %v1755_v16 = vmul.f32 %v4913_v7, %v9383_v3  ;;  %v1674_v9 = vmul.f32 %v4831_v27, %v9369_v41  ;;  %v1756_v27 = vmul.f32 %v4913_v7, %v9389_v34 }
 0x6d6   :  { %4836 = vrot.lane.b32.xlu1 %v4832_v39, %s7342_s25  ;;  %1677 = vrot.lane.b32.xlu0 %v1673_v0, %s7342_s25  ;;  %v4955_v39 = vstv %s10187_s21  ;;  %s10516_s21 = sld [smem:[#allocation5 + $0xa3]] }
 0x6d7   :  { %v10148_v48 = vadd.f32 %v4758_v32, %v4718_v10  ;;  %v4956_v0 = vmul.f32 %v4955_v39, %v10087_v38  ;;  %v4875_v32 = vmul.f32 %v4873_v29, %v10060_v14 }
 0x6d8   :  { %v10189_v30 = vpop.permute.xlu0 %1497 }
 0x6d9   :  { %12082 = vst [vmem:[#allocation28_spill] sm:$0xff] %v10189_v30 }
 0x6da   :  { %4838 = vrot.lane.b32.xlu1 %v4833_v46, %s7342_s25  ;;  %4878 = vrot.lane.b32.xlu0 %v4874_v45, %s7342_s25  ;;  %v10335_v46 = vstv %s6806_s8  ;;  %s10640_s8 = sld [smem:[#allocation5 + $0xae]] }
 0x6dc   :  { %v10198_v6 = vpop.permute.xlu0 %1553 }
 0x6dd   :  { %12083 = vst [vmem:[#allocation50_spill] sm:$0xff] %v10198_v6 }
 0x6de   :  { %1829 = vrot.lane.b32.xlu1 %v1825_v22, %s7342_s25  ;;  %5126 = vrot.lane.b32.xlu0 %v5122_v50, %s7342_s25  ;;  %v5123_v22 = vmul.f32 %v10158_v54, %v10172_v24  ;;  %v4957_v50 = vmul.f32 %v4955_v39, %v10100_v56 }
 0x6e0   :  { %v10210_v45 = vpop.permute.xlu0 %1555 }
 0x6e1   :  { %12085 = vst [vmem:[#allocation23_spill] sm:$0xff] %v10210_v45 }
 0x6e2   :  { %4672 = vrot.lane.b32.xlu0 %v4667_v47, %s7341_s23  ;;  %5070 = vrot.lane.b32.xlu1 %v5066_v36, %s7341_s23  ;;  %v4621_v47 = vmul.f32 %v10120_v58, %v10042_v44 }
 0x6e4   :  { %v10221_v29 = vpop.permute.xlu0 %4642 }
 0x6e6   :  { %4920 = vrot.lane.b32.xlu0 %v4915_v1, %s7341_s23  ;;  %1831 = vrot.lane.b32.xlu1 %v1826_v37, %s7342_s25  ;;  %v1811_v1 = vmul.f32 %v10182_v17, %v9383_v3  ;;  %v1908_v37 = vmul.f32 %v5065_v4, %v9409_v51  ;;  %v4971_v4 = vmul.f32 %v10182_v17, %v10100_v56 }
 0x6ea   :  { %1911 = vrot.lane.b32.xlu0 %v1907_v23, %s7341_s23  ;;  %5072 = vrot.lane.b32.xlu1 %v5067_v63, %s7341_s23  ;;  %v4623_v23 = vadd.f32 %v4621_v47, %v10131_v19  ;;  %v11731_v63 = vstv %s10217_s24 }
 0x6ee   :  { %4974 = vrot.lane.b32.xlu0 %v4970_v40, %s7342_s25  ;;  %4670 = vrot.lane.b32.xlu1 %v4666_v52, %s7341_s23 }
 0x6f2   :  { %4728 = vrot.lane.b32.xlu0 %v4723_v8, %s7342_s25  ;;  %4918 = vrot.lane.b32.xlu1 %v4914_v12, %s7341_s23  ;;  %v5012_v8 = vmul.f32 %v11731_v63, %v10087_v38 }
 0x6f3   :  { %v7017_v33 = vpop.f32.mrb[0].mxu1 }
 0x6f4   :  { %v3057_v18 = vpop.f32.mrb[1].mxu1 }
 0x6f5   :  { %v7102_v10 = vpack.c.bf16 %v7017_v33, %v3057_v18  ;;  %v10247_v33 = vld [vmem:[#allocation4 + $0x28] sm:$0xff]  ;;  %v4759_v18 = vmul.f32 %v10060_v14, %v10139_v59 }
 0x6f6   :  { %1759 = vrot.lane.b32.xlu0 %v1755_v16, %s7341_s23  ;;  %1679 = vrot.lane.b32.xlu1 %v1674_v9, %s7342_s25  ;;  %v10253_v16 = vstv %s6851_s26  ;;  %s10551_s26 = sld [smem:[#allocation5 + $0xa6]] }
 0x6f7   :  { %7103 = vmatprep.subr.bf16.mxu1 %v7102_v10 }
 0x6f8   :  { %7105 = vmatpush3.bf16.msra.mxu1 %v7102_v10 }
 0x6f9   :  { %7111 = vmatprep.subr.msk.bf16.mxu1 %vm9639_vm10, %v12077_v20 }
 0x6fa   :  { %4960 = vrot.lane.b32.xlu0 %v4956_v0, %s7341_s23  ;;  %4880 = vrot.lane.b32.xlu1 %v4875_v32, %s7342_s25  ;;  %v5260_v0 = vmul.f32 %v10253_v16, %v10247_v33  ;;  %v1963_v32 = vmul.f32 %v10158_v54, %v9403_v35 }
 0x6fe   :  { %1761 = vrot.lane.b32.xlu0 %v1756_v27, %s7341_s23  ;;  %5128 = vrot.lane.b32.xlu1 %v5123_v22, %s7342_s25  ;;  %v4803_v27 = vstv %s10238_s27  ;;  %v10266_v22 = vstv %s6847_s30  ;;  %s10554_s27 = sld [smem:[#allocation5 + $0xcc]]  ;;  %s6830_s30 = sld [smem:[#allocation5 + $0x76]] }
 0x6ff   :  { %v4805_v47 = vmul.f32 %v4803_v27, %v10060_v14 }
 0x702   :  { %4962 = vrot.lane.b32.xlu0 %v4957_v50, %s7341_s23  ;;  %4726 = vrot.lane.b32.xlu1 %v4722_v49, %s7342_s25 }
 0x704   :  { %v4659_v36 = vpop.permute.xlu1 %4658  ;;  %v10229_v7 = vpop.permute.xlu0 %4644 }
 0x705   :  { %v4663_v40 = vadd.f32 %v4659_v36, %v4623_v23  ;;  %v5204_v36 = vmul.f32 %v10266_v22, %v10247_v33 }
 0x706   :  { %1815 = vrot.lane.b32.xlu0 %v1811_v1, %s7342_s25  ;;  %1913 = vrot.lane.b32.xlu1 %v1908_v37, %s7341_s23  ;;  %v10275_v1 = vstv %s6834_s28  ;;  %s6875_s28 = sld [smem:[#allocation5 + $0x9c]] }
 0x707   :  { %v1893_v20 = vmul.f32 %v10275_v1, %v9403_v35 }
 0x708   :  { %v4715_v52 = vpop.permute.xlu1 %4714  ;;  %v10240_v43 = vpop.permute.xlu0 %1635 }
 0x709   :  { %12086 = vst [vmem:[#allocation40_spill] sm:$0xff] %v10240_v43  ;;  %v4719_v12 = vadd.f32 %v4715_v52, %v4663_v40  ;;  %v5053_v40 = vmul.f32 %v10275_v1, %v10172_v24  ;;  %v1964_v52 = vmul.f32 %v10158_v54, %v9409_v51 }
 0x70a   :  { %5016 = vrot.lane.b32.xlu0 %v5012_v8, %s7342_s25  ;;  %4976 = vrot.lane.b32.xlu1 %v4971_v4, %s7342_s25  ;;  %v10283_v8 = vld [vmem:[#allocation4 + $0x30] sm:$0xff] }
 0x70b   :  { %v4761_v9 = vadd.f32 %v4759_v18, %v4719_v12  ;;  %v10290_v12 = vstv %s6794_s3  ;;  %v5205_v54 = vmul.f32 %v10266_v22, %v10283_v8  ;;  %s6871_s3 = sld [smem:[#allocation5 + $0x9b]] }
 0x70c   :  { %v10255_v10 = vpop.permute.xlu1 %1499  ;;  %v10257_v39 = vpop.permute.xlu0 %1637 }
 0x70d   :  { %12087 = vst [vmem:[#allocation16_spill] sm:$0xff] %v10255_v10  ;;  %12088 = vst [vmem:[#allocation22_spill] sm:$0xff] %v10257_v39  ;;  %v4941_v10 = vstv %s10402_s14  ;;  %s10738_s14 = sld [smem:[#allocation5 + $0xb0]] }
 0x70e   :  { %5264 = vrot.lane.b32.xlu0 %v5260_v0, %s7342_s25  ;;  %1967 = vrot.lane.b32.xlu1 %v1963_v32, %s7342_s25  ;;  %v2045_v32 = vmul.f32 %v10266_v22, %v9423_v42 }
 0x710   :  { %v4795_v50 = vpop.permute.xlu1 %4794  ;;  %v10268_v49 = vpop.permute.xlu0 %1483 }
 0x711   :  { %v4800_v4 = vadd.f32 %v4795_v50, %v10148_v48 }
 0x712   :  { %4810 = vrot.lane.b32.xlu0 %v4805_v47, %s7341_s23  ;;  %5208 = vrot.lane.b32.xlu1 %v5204_v36, %s7341_s23  ;;  %v10298_v47 = vstv %s6819_s5  ;;  %v4614_v36 = vmul.f32 %v10290_v12, %v10025_v5  ;;  %s10575_s5 = sld [smem:[#allocation5 + $0xad]] }
 0x713   :  { %12089 = vst [vmem:[#allocation21_spill] sm:$0xff] %v10298_v47  ;;  %v4896_v50 = vmul.f32 %v10298_v47, %v10087_v38 }
 0x714   :  { %v4797_v37 = vpop.permute.xlu1 %4796  ;;  %v10277_v23 = vpop.permute.xlu0 %4684 }
 0x716   :  { %5058 = vrot.lane.b32.xlu0 %v5053_v40, %s7341_s23  ;;  %1969 = vrot.lane.b32.xlu1 %v1964_v52, %s7342_s25  ;;  %v4801_v40 = vadd.f32 %v4797_v37, %v4761_v9  ;;  %v10306_v52 = vstv %s6838_s29  ;;  %v4615_v9 = vmul.f32 %v10290_v12, %v10042_v44  ;;  %s6858_s29 = sld [smem:[#allocation5 + $0x7d]] }
 0x718   :  { %v4851_v18 = vpop.permute.xlu1 %4850  ;;  %v10292_v0 = vpop.permute.xlu0 %1485 }
 0x719   :  { %v4856_v48 = vadd.f32 %v4851_v18, %v4800_v4  ;;  %v5108_v4 = vmul.f32 %v10306_v52, %v10154_v62  ;;  %v4804_v18 = vmul.f32 %v4803_v27, %v10054_v2 }
 0x71a   :  { %2049 = vrot.lane.b32.xlu0 %v2045_v32, %s7341_s23  ;;  %5210 = vrot.lane.b32.xlu1 %v5205_v54, %s7341_s23  ;;  %v4616_v32 = vadd.f32 %v4614_v36, %v10310_v25  ;;  %v4897_v54 = vmul.f32 %v10298_v47, %v10100_v56 }
 0x71b   :  { %v10308_v63 = vadd.f32 %v4896_v50, %v4856_v48  ;;  %v4859_v50 = vstv %s10288_s7  ;;  %s6862_s7 = sld [smem:[#allocation5 + $0x7e]] }
 0x71c   :  { %v4853_v39 = vpop.permute.xlu1 %4852  ;;  %v10312_v15 = vpop.permute.xlu0 %4686  ;;  %v4648_v48 = vadd.f32 %v10221_v29, %v4616_v32  ;;  %v4752_v29 = vmul.f32 %v10335_v46, %v10054_v2 }
 0x71d   :  { %v4857_v37 = vadd.f32 %v4853_v39, %v4801_v40  ;;  %v4861_v39 = vmul.f32 %v4859_v50, %v10060_v14  ;;  %v5052_v40 = vmul.f32 %v10275_v1, %v10154_v62 }
 0x71e   :  { %5112 = vrot.lane.b32.xlu0 %v5108_v4, %s7342_s25  ;;  %4808 = vrot.lane.b32.xlu1 %v4804_v18, %s7341_s23  ;;  %v4617_v4 = vadd.f32 %v4615_v9, %v10310_v25  ;;  %v1812_v9 = vmul.f32 %v10182_v17, %v9389_v34  ;;  %v5109_v34 = vmul.f32 %v10306_v52, %v10172_v24 }
 0x71f   :  { %v10328_v43 = vadd.f32 %v4897_v54, %v4857_v37 }
 0x720   :  { %v4699_v27 = vpop.permute.xlu1 %4698  ;;  %v10330_v36 = vpop.permute.xlu0 %1539  ;;  %v4649_v18 = vadd.f32 %v10229_v7, %v4617_v4  ;;  %v12091_v4 = vstv %s10217_s24  ;;  %s10530_s24 = sld [smem:[#allocation5 + $0xdb]] }
 0x721   :  { %v4704_v47 = vadd.f32 %v4699_v27, %v4648_v48  ;;  %v5093_v27 = vstv %s10320_s9  ;;  %s10665_s9 = sld [smem:[#allocation5 + $0xce]] }
 0x722   :  { %4866 = vrot.lane.b32.xlu0 %v4861_v39, %s7342_s25  ;;  %5056 = vrot.lane.b32.xlu1 %v5052_v40, %s7341_s23  ;;  %v4753_v39 = vmul.f32 %v10335_v46, %v10060_v14  ;;  %v5094_v17 = vmul.f32 %v5093_v27, %v10154_v62 }
 0x723   :  { %v10343_v32 = vadd.f32 %v4752_v29, %v4704_v47  ;;  %v5013_v29 = vmul.f32 %v12091_v4, %v10100_v56  ;;  %v5095_v4 = vmul.f32 %v5093_v27, %v10172_v24  ;;  %v2046_v27 = vmul.f32 %v10266_v22, %v9429_v55 }
 0x724   :  { %v4701_v37 = vpop.permute.xlu1 %4700  ;;  %v10345_v54 = vpop.permute.xlu0 %4780 }
 0x725   :  { %v4705_v48 = vadd.f32 %v4701_v37, %v4649_v18  ;;  %v1894_v37 = vmul.f32 %v10275_v1, %v9409_v51  ;;  %v4860_v1 = vmul.f32 %v4859_v50, %v10054_v2 }
 0x726   :  { %1897 = vrot.lane.b32.xlu0 %v1893_v20, %s7341_s23  ;;  %1817 = vrot.lane.b32.xlu1 %v1812_v9, %s7342_s25  ;;  %v5261_v9 = vmul.f32 %v10253_v16, %v10283_v8 }
 0x727   :  { %v10358_v7 = vadd.f32 %v4753_v39, %v4705_v48  ;;  %v4631_v48 = vstv %s10354_s10  ;;  %s6855_s10 = sld [smem:[#allocation5 + $0x97]] }
 0x728   :  { %v10360_v47 = vpop.permute.xlu1 %1691  ;;  %v10362_v40 = vpop.permute.xlu0 %1541 }
 0x729   :  { %12090 = vst [vmem:[#allocation41_spill] sm:$0xff] %v10360_v47  ;;  %v4609_v47 = vstv %s10368_s11  ;;  %s10708_s11 = sld [smem:[#allocation5 + $0xa9]] }
 0x72a   :  { %5098 = vrot.lane.b32.xlu0 %v5094_v17, %s7341_s23  ;;  %5018 = vrot.lane.b32.xlu1 %v5013_v29, %s7342_s25  ;;  %v4632_v29 = vmul.f32 %v4631_v48, %v10025_v5  ;;  %v4769_v5 = vstv %s10383_s13  ;;  %s6842_s13 = sld [smem:[#allocation5 + $0x79]] }
 0x72c   :  { %v4933_v20 = vpop.permute.xlu1 %4932  ;;  %v10372_v18 = vpop.permute.xlu0 %4782  ;;  %v4634_v50 = vadd.f32 %v4632_v29, %v4609_v47  ;;  %v4633_v29 = vmul.f32 %v4631_v48, %v10042_v44  ;;  %v2101_v48 = vmul.f32 %v10253_v16, %v9423_v42 }
 0x72e   :  { %1899 = vrot.lane.b32.xlu0 %v1894_v37, %s7341_s23  ;;  %5266 = vrot.lane.b32.xlu1 %v5261_v9, %s7342_s25 }
 0x730   :  { %v10385_v39 = vpop.permute.xlu1 %1693  ;;  %v10387_v17 = vpop.permute.xlu0 %1773 }
 0x731   :  { %12092 = vst [vmem:[#allocation69_spill] sm:$0xff] %v10385_v39  ;;  %12093 = vst [vmem:[#allocation62_spill] sm:$0xff] %v10387_v17  ;;  %v1949_v17 = vmul.f32 %v10306_v52, %v9403_v35  ;;  %v11742_v39 = vstv %s10378_s12  ;;  %v10422_v35 = vstv %s6863_s1  ;;  %s6887_s1 = sld [smem:[#allocation5 + $0x9f]] }
 0x732   :  { %5100 = vrot.lane.b32.xlu0 %v5095_v4, %s7341_s23  ;;  %4864 = vrot.lane.b32.xlu1 %v4860_v1, %s7342_s25  ;;  %v4690_v4 = vadd.f32 %v10277_v23, %v4634_v50  ;;  %v5150_v22 = vmul.f32 %v11742_v39, %v10154_v62  ;;  %v4938_v23 = vadd.f32 %v4933_v20, %v10308_v63  ;;  %v10436_v20 = vstv %s6859_s4  ;;  %s6870_s4 = sld [smem:[#allocation5 + $0x80]] }
 0x734   :  { %v4935_v37 = vpop.permute.xlu1 %4934  ;;  %v10395_v9 = vpop.permute.xlu0 %1775 }
 0x735   :  { %12094 = vst [vmem:[#allocation39_spill] sm:$0xff] %v10395_v9 }
 0x736   :  { %1953 = vrot.lane.b32.xlu0 %v1949_v17, %s7342_s25  ;;  %2051 = vrot.lane.b32.xlu1 %v2046_v27, %s7341_s23  ;;  %v4770_v17 = vmul.f32 %v4769_v5, %v10054_v2  ;;  %v10417_v27 = vld [vmem:[#allocation4 + $0x29] sm:$0xff] }
 0x737   :  { %v5398_v2 = vmul.f32 %v10422_v35, %v10417_v27 }
 0x738   :  { %v4741_v1 = vpop.permute.xlu1 %4740  ;;  %v10408_v9 = vpop.permute.xlu0 %1621 }
 0x739   :  { %v4746_v45 = vadd.f32 %v4741_v1, %v4690_v4  ;;  %v10428_v4 = vstv %s6831_s16  ;;  %v4635_v1 = vadd.f32 %v4633_v29, %v4609_v47  ;;  %v4943_v47 = vmul.f32 %v4941_v10, %v10100_v56  ;;  %s6883_s16 = sld [smem:[#allocation5 + $0x9e]] }
 0x73a   :  { %5114 = vrot.lane.b32.xlu1 %v5109_v34, %s7342_s25  ;;  %5154 = vrot.lane.b32.xlu0 %v5150_v22, %s7342_s25  ;;  %12095 = vst [vmem:[#allocation38_spill] sm:$0xff] %v10428_v4  ;;  %v5034_v63 = vmul.f32 %v10428_v4, %v10154_v62 }
 0x73b   :  { %v4772_v50 = vadd.f32 %v4770_v17, %v4746_v45  ;;  %v4691_v45 = vadd.f32 %v10312_v15, %v4635_v1  ;;  %v4939_v15 = vadd.f32 %v4935_v37, %v10328_v43  ;;  %v5035_v43 = vmul.f32 %v10428_v4, %v10172_v24 }
 0x73c   :  { %v4989_v59 = vpop.permute.xlu1 %4988  ;;  %v4823_v39 = vpop.permute.xlu0 %4822  ;;  %v4786_v37 = vadd.f32 %v10345_v54, %v10343_v32  ;;  %v11747_v32 = vstv %s10448_s17  ;;  %v4787_v54 = vadd.f32 %v10372_v18, %v10358_v7 }
 0x73d   :  { %v4994_v34 = vadd.f32 %v4989_v59, %v4938_v23  ;;  %v5342_v59 = vmul.f32 %v10436_v20, %v10417_v27  ;;  %v4771_v23 = vmul.f32 %v4769_v5, %v10060_v14  ;;  %v4908_v7 = vmul.f32 %v11747_v32, %v10087_v38 }
 0x73e   :  { %2105 = vrot.lane.b32.xlu1 %v2101_v48, %s7342_s25  ;;  %5402 = vrot.lane.b32.xlu0 %v5398_v2, %s7342_s25  ;;  %v10453_v2 = vstv %s6846_s15  ;;  %s10787_s15 = sld [smem:[#allocation5 + $0xca]] }
 0x73f   :  { %v10438_v22 = vadd.f32 %v5034_v63, %v4994_v34  ;;  %v2102_v63 = vmul.f32 %v10253_v16, %v9429_v55  ;;  %v5191_v5 = vmul.f32 %v10453_v2, %v10283_v8  ;;  %v2032_v32 = vmul.f32 %v10453_v2, %v9429_v55 }
 0x740   :  { %v4743_v17 = vpop.permute.xlu1 %4742  ;;  %v10440_v6 = vpop.permute.xlu0 %1623 }
 0x741   :  { %12096 = vst [vmem:[#allocation31_spill] sm:$0xff] %v10440_v6  ;;  %v4747_v29 = vadd.f32 %v4743_v17, %v4691_v45  ;;  %v10463_v17 = vld [vmem:[#allocation4 + $0x31] sm:$0xff] }
 0x742   :  { %5346 = vrot.lane.b32.xlu1 %v5342_v59, %s7341_s23  ;;  %4948 = vrot.lane.b32.xlu0 %v4943_v47, %s7341_s23 }
 0x743   :  { %v10451_v48 = vadd.f32 %v4771_v23, %v4747_v29  ;;  %v5343_v29 = vmul.f32 %v10436_v20, %v10463_v17  ;;  %v2183_v23 = vmul.f32 %v10436_v20, %v12054_v28 }
 0x744   :  { %v4991_v1 = vpop.permute.xlu1 %4990  ;;  %v10455_v34 = vpop.permute.xlu0 %4824 }
 0x745   :  { %v4995_v45 = vadd.f32 %v4991_v1, %v4939_v15  ;;  %v10479_v15 = vstv %s6818_s0  ;;  %s6874_s0 = sld [smem:[#allocation5 + $0x81]] }
 0x746   :  { %2107 = vrot.lane.b32.xlu1 %v2102_v63, %s7342_s25  ;;  %5196 = vrot.lane.b32.xlu0 %v5191_v5, %s7341_s23  ;;  %12097 = vst [vmem:[#allocation46_spill] sm:$0xff] %v10479_v15  ;;  %v4890_v63 = vmul.f32 %v10479_v15, %v10087_v38  ;;  %v4828_v5 = vadd.f32 %v4823_v39, %v4772_v50 }
 0x747   :  { %v10471_v16 = vadd.f32 %v5035_v43, %v4995_v45  ;;  %v10488_v45 = vstv %s6850_s18  ;;  %v5190_v50 = vmul.f32 %v10453_v2, %v10247_v33  ;;  %s10831_s18 = sld [smem:[#allocation5 + $0xd1]] }
 0x748   :  { %v4837_v59 = vpop.permute.xlu1 %4836  ;;  %v10473_v47 = vpop.permute.xlu0 %1677 }
 0x749   :  { %v4842_v1 = vadd.f32 %v4837_v59, %v4786_v37  ;;  %v4942_v37 = vmul.f32 %v4941_v10, %v10087_v38  ;;  %v5246_v59 = vmul.f32 %v10488_v45, %v10247_v33 }
 0x74a   :  { %5348 = vrot.lane.b32.xlu1 %v5343_v29, %s7341_s23  ;;  %2187 = vrot.lane.b32.xlu0 %v2183_v23, %s7341_s23  ;;  %v4997_v29 = vstv %s10461_s19  ;;  %v4891_v23 = vmul.f32 %v10479_v15, %v10100_v56  ;;  %s6867_s19 = sld [smem:[#allocation5 + $0x9a]] }
 0x74b   :  { %v10490_v43 = vadd.f32 %v4890_v63, %v4842_v1  ;;  %v2031_v63 = vmul.f32 %v10453_v2, %v9423_v42 }
 0x74c   :  { %v4839_v4 = vpop.permute.xlu1 %4838  ;;  %v4879_v6 = vpop.permute.xlu0 %4878 }
 0x74d   :  { %v4843_v30 = vadd.f32 %v4839_v4, %v4787_v54  ;;  %v4884_v3 = vadd.f32 %v4879_v6, %v4828_v5  ;;  %v4999_v4 = vmul.f32 %v4997_v29, %v10100_v56  ;;  %v5231_v5 = vstv %s10498_s20  ;;  %s10880_s20 = sld [smem:[#allocation5 + $0xac]] }
 0x74e   :  { %4946 = vrot.lane.b32.xlu1 %v4942_v37, %s7341_s23  ;;  %5250 = vrot.lane.b32.xlu0 %v5246_v59, %s7342_s25  ;;  %v10526_v37 = vstv %s6843_s22  ;;  %v5233_v2 = vmul.f32 %v5231_v5, %v10283_v8  ;;  %s10882_s22 = sld [smem:[#allocation5 + $0xd2]] }
 0x74f   :  { %v10505_v10 = vadd.f32 %v4891_v23, %v4843_v30  ;;  %v10507_v18 = vadd.f32 %v4908_v7, %v4884_v3  ;;  %v1950_v3 = vmul.f32 %v10306_v52, %v9409_v51  ;;  %12099 = vst [vmem:[#allocation51_spill] sm:$0xff] %v10526_v37  ;;  %v5172_v23 = vmul.f32 %v10526_v37, %v10247_v33 }
 0x750   :  { %v10509_v39 = vpop.permute.xlu1 %1829  ;;  %v5127_v6 = vpop.permute.xlu0 %5126  ;;  %v4763_v51 = vstv %s10551_s26  ;;  %s10902_s26 = sld [smem:[#allocation5 + $0xb3]] }
 0x751   :  { %12098 = vst [vmem:[#allocation64_spill] sm:$0xff] %v10509_v39  ;;  %v2087_v39 = vmul.f32 %v10488_v45, %v9423_v42  ;;  %v5079_v42 = vstv %s10575_s5  ;;  %s10982_s5 = sld [smem:[#allocation5 + $0xb4]] }
 0x752   :  { %5194 = vrot.lane.b32.xlu1 %v5190_v50, %s7341_s23  ;;  %5004 = vrot.lane.b32.xlu0 %v4999_v4, %s7342_s25  ;;  %v12101_v50 = vstv %s10378_s12  ;;  %v5232_v4 = vmul.f32 %v5231_v5, %v10247_v33  ;;  %v11750_v5 = vstv %s10554_s27  ;;  %s10716_s12 = sld [smem:[#allocation5 + $0xcf]] }
 0x754   :  { %v5071_v1 = vpop.permute.xlu1 %5070  ;;  %v4673_v30 = vpop.permute.xlu0 %4672 }
 0x755   :  { %v5076_v54 = vadd.f32 %v5071_v1, %v10438_v22  ;;  %v5151_v22 = vmul.f32 %v12101_v50, %v10172_v24 }
 0x756   :  { %1955 = vrot.lane.b32.xlu1 %v1950_v3, %s7342_s25  ;;  %2035 = vrot.lane.b32.xlu0 %v2031_v63, %s7341_s23 }
 0x757   :  { %v5132_v59 = vadd.f32 %v5127_v6, %v5076_v54  ;;  %v4625_v6 = vstv %s10516_s21  ;;  %v5399_v54 = vmul.f32 %v10422_v35, %v10463_v17  ;;  %s6854_s21 = sld [smem:[#allocation5 + $0x7c]] }
 0x758   :  { %v10532_v52 = vpop.permute.xlu1 %1831  ;;  %v10534_v7 = vpop.permute.xlu0 %4920  ;;  %v4627_v50 = vmul.f32 %v4625_v6, %v10042_v44 }
 0x759   :  { %12100 = vst [vmem:[#allocation49_spill] sm:$0xff] %v10532_v52  ;;  %v10540_v1 = vadd.f32 %v5172_v23, %v5132_v59  ;;  %v4607_v59 = vstv %s10530_s24  ;;  %s6899_s24 = sld [smem:[#allocation5 + $0xa2]] }
 0x75a   :  { %5156 = vrot.lane.b32.xlu1 %v5151_v22, %s7342_s25  ;;  %5236 = vrot.lane.b32.xlu0 %v5232_v4, %s7341_s23  ;;  %v4998_v4 = vmul.f32 %v4997_v29, %v10087_v38  ;;  %v4629_v52 = vadd.f32 %v4627_v50, %v4607_v59  ;;  %v4765_v50 = vmul.f32 %v4763_v51, %v10060_v14 }
 0x75b   :  { %v5247_v14 = vmul.f32 %v10488_v45, %v10283_v8 }
 0x75c   :  { %v5073_v3 = vpop.permute.xlu1 %5072  ;;  %v10545_v63 = vpop.permute.xlu0 %1911  ;;  %v4677_v44 = vadd.f32 %v4673_v30, %v4629_v52  ;;  %v10573_v30 = vstv %s6830_s30  ;;  %s6882_s30 = sld [smem:[#allocation5 + $0x83]] }
 0x75d   :  { %12102 = vst [vmem:[#allocation61_spill] sm:$0xff] %v10545_v63 }
 0x75e   :  { %5404 = vrot.lane.b32.xlu1 %v5399_v54, %s7342_s25  ;;  %2037 = vrot.lane.b32.xlu0 %v2032_v32, %s7341_s23  ;;  %v2184_v32 = vmul.f32 %v10436_v20, %v12059_v13 }
 0x760   :  { %v4671_v23 = vpop.permute.xlu1 %4670  ;;  %v4975_v22 = vpop.permute.xlu0 %4974 }
 0x762   :  { %5002 = vrot.lane.b32.xlu1 %v4998_v4, %s7342_s25  ;;  %5238 = vrot.lane.b32.xlu0 %v5233_v2, %s7341_s23  ;;  %v5028_v4 = vmul.f32 %v10573_v30, %v10154_v62 }
 0x764   :  { %v4919_v54 = vpop.permute.xlu1 %4918  ;;  %v4729_v63 = vpop.permute.xlu0 %4728 }
 0x765   :  { %v4924_v38 = vadd.f32 %v4919_v54, %v10490_v43  ;;  %v4733_v29 = vadd.f32 %v4729_v63, %v4677_v44  ;;  %v4829_v44 = vadd.f32 %v10455_v34, %v10451_v48  ;;  %v10598_v54 = vstv %s6875_s28  ;;  %s10959_s28 = sld [smem:[#allocation5 + $0x84]] }
 0x766   :  { %2189 = vrot.lane.b32.xlu1 %v2184_v32, %s7341_s23  ;;  %2091 = vrot.lane.b32.xlu0 %v2087_v39, %s7342_s25  ;;  %v5288_v39 = vmul.f32 %v11750_v5, %v10247_v33  ;;  %v5077_v48 = vadd.f32 %v5073_v3, %v10471_v16  ;;  %v10610_v34 = vstv %s6871_s3  ;;  %v10626_v3 = vstv %s6858_s29  ;;  %s10967_s3 = sld [smem:[#allocation5 + $0xcd]]  ;;  %s11031_s29 = sld [smem:[#allocation5 + $0xd4]] }
 0x767   :  { %v4980_v52 = vadd.f32 %v4975_v22, %v4924_v38  ;;  %v10577_v20 = vadd.f32 %v4765_v50, %v4733_v29  ;;  %v10590_v22 = vld [vmem:[#allocation4 + $0x47] sm:$0xff]  ;;  %v2239_v29 = vmul.f32 %v10422_v35, %v12054_v28 }
 0x768   :  { %v10581_v43 = vpop.permute.xlu1 %1679  ;;  %v10583_v63 = vpop.permute.xlu0 %1759  ;;  %12105 = vst [vmem:[#allocation15_spill] sm:$0xff] %v10590_v22  ;;  %v5536_v50 = vmul.f32 %v10598_v54, %v10590_v22 }
 0x769   :  { %12103 = vst [vmem:[#allocation52_spill] sm:$0xff] %v10581_v43  ;;  %12104 = vst [vmem:[#allocation42_spill] sm:$0xff] %v10583_v63  ;;  %v10592_v2 = vadd.f32 %v5028_v4, %v4980_v52  ;;  %v7284_v52 = vld [vmem:[#allocation4 + $0x7] sm:$0xff] }
 0x76a   :  { %5252 = vrot.lane.b32.xlu1 %v5247_v14, %s7342_s25  ;;  %5292 = vrot.lane.b32.xlu0 %v5288_v39, %s7342_s25  ;;  %v4626_v4 = vmul.f32 %v7284_v52, %v4625_v6  ;;  %v12106_v39 = vstv %s10448_s17  ;;  %v5480_v6 = vmul.f32 %v10610_v34, %v10590_v22  ;;  %s10806_s17 = sld [smem:[#allocation5 + $0xb1]] }
 0x76b   :  { %v4909_v5 = vmul.f32 %v12106_v39, %v10100_v56  ;;  %v7285_v39 = vld [vmem:[#allocation4 + $0x8] sm:$0xff] }
 0x76c   :  { %v4881_v32 = vpop.permute.xlu1 %4880  ;;  %v4961_v38 = vpop.permute.xlu0 %4960  ;;  %v4628_v56 = vadd.f32 %v4626_v4, %v4607_v59  ;;  %v2240_v59 = vmul.f32 %v10422_v35, %v12059_v13 }
 0x76d   :  { %v4885_v14 = vadd.f32 %v4881_v32, %v4829_v44  ;;  %v5081_v44 = vmul.f32 %v5079_v42, %v10172_v24 }
 0x76e   :  { %2243 = vrot.lane.b32.xlu1 %v2239_v29, %s7342_s25  ;;  %5540 = vrot.lane.b32.xlu0 %v5536_v50, %s7342_s25  ;;  %v5173_v29 = vmul.f32 %v10526_v37, %v10283_v8  ;;  %v4676_v16 = vadd.f32 %v4671_v23, %v4628_v56  ;;  %v4764_v23 = vmul.f32 %v7285_v39, %v4763_v51  ;;  %v11755_v51 = vstv %s10624_s6 }
 0x76f   :  { %v10613_v43 = vadd.f32 %v4909_v5, %v4885_v14  ;;  %v10636_v14 = vld [vmem:[#allocation4 + $0x4f] sm:$0xff]  ;;  %v2321_v56 = vmul.f32 %v10610_v34, %v12061_v61 }
 0x770   :  { %v5129_v63 = vpop.permute.xlu1 %5128  ;;  %v10615_v15 = vpop.permute.xlu0 %1761 }
 0x771   :  { %v5133_v32 = vadd.f32 %v5129_v63, %v5077_v48  ;;  %v5329_v63 = vmul.f32 %v10626_v3, %v10463_v17 }
 0x772   :  { %5484 = vrot.lane.b32.xlu1 %v5480_v6, %s7341_s23  ;;  %5086 = vrot.lane.b32.xlu0 %v5081_v44, %s7341_s23  ;;  %v5481_v44 = vmul.f32 %v10610_v34, %v10636_v14 }
 0x773   :  { %v10628_v5 = vadd.f32 %v5173_v29, %v5133_v32  ;;  %v4925_v32 = vadd.f32 %v10534_v7, %v10505_v10  ;;  %v4966_v29 = vadd.f32 %v4961_v38, %v10507_v18  ;;  %v5046_v10 = vmul.f32 %v11755_v51, %v10154_v62 }
 0x774   :  { %v4727_v50 = vpop.permute.xlu1 %4726  ;;  %v10630_v52 = vpop.permute.xlu0 %4962 }
 0x775   :  { %v4732_v4 = vadd.f32 %v4727_v50, %v4676_v16  ;;  %v10658_v16 = vstv %s6862_s7  ;;  %s11106_s7 = sld [smem:[#allocation5 + $0x7f]] }
 0x776   :  { %2245 = vrot.lane.b32.xlu1 %v2240_v59, %s7342_s25  ;;  %5334 = vrot.lane.b32.xlu0 %v5329_v63, %s7341_s23  ;;  %v5080_v63 = vmul.f32 %v5079_v42, %v10154_v62  ;;  %v5135_v42 = vstv %s10640_s8  ;;  %s11126_s8 = sld [smem:[#allocation5 + $0xd5]] }
 0x777   :  { %v10642_v48 = vadd.f32 %v4764_v23, %v4732_v4  ;;  %v5384_v4 = vmul.f32 %v10658_v16, %v10417_v27 }
 0x778   :  { %v10644_v6 = vpop.permute.xlu1 %1913  ;;  %v10646_v35 = vpop.permute.xlu0 %1815 }
 0x779   :  { %12107 = vst [vmem:[#allocation14_spill] sm:$0xff] %v10644_v6 }
 0x77a   :  { %5486 = vrot.lane.b32.xlu1 %v5481_v44, %s7341_s23  ;;  %2325 = vrot.lane.b32.xlu0 %v2321_v56, %s7341_s23  ;;  %v5029_v44 = vmul.f32 %v10573_v30, %v10172_v24 }
 0x77c   :  { %v4977_v50 = vpop.permute.xlu1 %4976  ;;  %v5017_v59 = vpop.permute.xlu0 %5016 }
 0x77d   :  { %v4981_v39 = vadd.f32 %v4977_v50, %v4925_v32  ;;  %v5022_v23 = vadd.f32 %v5017_v59, %v4966_v29  ;;  %v5328_v32 = vmul.f32 %v10626_v3, %v10417_v27  ;;  %v5137_v29 = vmul.f32 %v5135_v42, %v10172_v24 }
 0x77e   :  { %5084 = vrot.lane.b32.xlu1 %v5080_v63, %s7341_s23  ;;  %5388 = vrot.lane.b32.xlu0 %v5384_v4, %s7342_s25  ;;  %v2088_v63 = vmul.f32 %v10488_v45, %v9429_v55  ;;  %v2169_v4 = vmul.f32 %v10626_v3, %v12054_v28  ;;  %v12111_v45 = vstv %s10554_s27  ;;  %s6895_s27 = sld [smem:[#allocation5 + $0xa1]] }
 0x77f   :  { %v10673_v18 = vadd.f32 %v5029_v44, %v4981_v39  ;;  %v10675_v7 = vadd.f32 %v5046_v10, %v5022_v23  ;;  %v5369_v23 = vstv %s10665_s9  ;;  %v10692_v44 = vstv %s6855_s10  ;;  %s11134_s9 = sld [smem:[#allocation5 + $0xaf]] }
 0x780   :  { %v10677_v38 = vpop.permute.xlu1 %1967  ;;  %v5265_v56 = vpop.permute.xlu0 %5264  ;;  %12109 = vst [vmem:[#allocation11_spill] sm:$0xff] %v10692_v44  ;;  %v5289_v6 = vmul.f32 %v12111_v45, %v10283_v8  ;;  %v5371_v45 = vmul.f32 %v5369_v23, %v10463_v17  ;;  %s11197_s10 = sld [smem:[#allocation5 + $0xb7]] }
 0x781   :  { %12108 = vst [vmem:[#allocation55_spill] sm:$0xff] %v10677_v38 }
 0x782   :  { %5332 = vrot.lane.b32.xlu1 %v5328_v32, %s7341_s23  ;;  %5142 = vrot.lane.b32.xlu0 %v5137_v29, %s7342_s25  ;;  %v5310_v32 = vmul.f32 %v10692_v44, %v10417_v27 }
 0x784   :  { %v5209_v50 = vpop.permute.xlu1 %5208  ;;  %v4811_v59 = vpop.permute.xlu0 %4810 }
 0x785   :  { %v5214_v39 = vadd.f32 %v5209_v50, %v10540_v1  ;;  %v5370_v1 = vmul.f32 %v5369_v23, %v10417_v27  ;;  %v11756_v23 = vstv %s10716_s12 }
 0x786   :  { %2093 = vrot.lane.b32.xlu1 %v2088_v63, %s7342_s25  ;;  %2173 = vrot.lane.b32.xlu0 %v2169_v4, %s7341_s23  ;;  %v5537_v4 = vmul.f32 %v10598_v54, %v10636_v14 }
 0x787   :  { %v5270_v10 = vadd.f32 %v5265_v56, %v5214_v39  ;;  %v2170_v39 = vmul.f32 %v10626_v3, %v12059_v13  ;;  %v11757_v3 = vstv %s10708_s11 }
 0x788   :  { %v10696_v29 = vpop.permute.xlu1 %1969  ;;  %v10698_v51 = vpop.permute.xlu0 %5058 }
 0x789   :  { %12110 = vst [vmem:[#allocation45_spill] sm:$0xff] %v10696_v29  ;;  %v10704_v50 = vadd.f32 %v5310_v32, %v5270_v10  ;;  %v5136_v32 = vmul.f32 %v5135_v42, %v10154_v62 }
 0x78a   :  { %5294 = vrot.lane.b32.xlu1 %v5289_v6, %s7342_s25  ;;  %5374 = vrot.lane.b32.xlu0 %v5370_v1, %s7341_s23  ;;  %v4815_v1 = vadd.f32 %v4811_v59, %v10577_v20  ;;  %v10736_v20 = vstv %s6842_s13  ;;  %s11275_s13 = sld [smem:[#allocation5 + $0xd0]] }
 0x78c   :  { %v5211_v56 = vpop.permute.xlu1 %5210  ;;  %v10710_v63 = vpop.permute.xlu0 %2049 }
 0x78d   :  { %12112 = vst [vmem:[#allocation44_spill] sm:$0xff] %v10710_v63  ;;  %v2225_v63 = vmul.f32 %v10658_v16, %v12054_v28 }
 0x78e   :  { %5542 = vrot.lane.b32.xlu1 %v5537_v4, %s7342_s25  ;;  %2175 = vrot.lane.b32.xlu0 %v2170_v39, %s7341_s23  ;;  %v2322_v39 = vmul.f32 %v10610_v34, %v12062_v53 }
 0x790   :  { %v4809_v6 = vpop.permute.xlu1 %4808  ;;  %v5113_v10 = vpop.permute.xlu0 %5112 }
 0x792   :  { %5140 = vrot.lane.b32.xlu1 %v5136_v32, %s7342_s25  ;;  %5376 = vrot.lane.b32.xlu0 %v5371_v45, %s7341_s23  ;;  %v7286_v32 = vld [vmem:[#allocation4 + $0x11] sm:$0xff] }
 0x793   :  { %v4903_v45 = vmul.f32 %v7286_v32, %v11757_v3  ;;  %v12113_v3 = vstv %s10624_s6  ;;  %s11043_s6 = sld [smem:[#allocation5 + $0x9d]] }
 0x794   :  { %v5057_v4 = vpop.permute.xlu1 %5056  ;;  %v4867_v29 = vpop.permute.xlu0 %4866 }
 0x795   :  { %v5062_v62 = vadd.f32 %v5057_v4, %v10592_v2  ;;  %v4871_v42 = vadd.f32 %v4867_v29, %v4815_v1  ;;  %v5166_v2 = vmul.f32 %v10736_v20, %v10247_v33  ;;  %v5385_v4 = vmul.f32 %v10658_v16, %v10463_v17 }
 0x796   :  { %2327 = vrot.lane.b32.xlu1 %v2322_v39, %s7341_s23  ;;  %2229 = vrot.lane.b32.xlu0 %v2225_v63, %s7342_s25  ;;  %v5426_v63 = vmul.f32 %v11756_v23, %v10417_v27  ;;  %v2377_v23 = vmul.f32 %v10598_v54, %v12061_v61 }
 0x797   :  { %v5118_v59 = vadd.f32 %v5113_v10, %v5062_v62  ;;  %v10740_v34 = vadd.f32 %v4903_v45, %v4871_v42  ;;  %v10753_v10 = vld [vmem:[#allocation4 + $0x48] sm:$0xff]  ;;  %v4967_v62 = vadd.f32 %v10630_v52, %v10613_v43  ;;  %v10761_v42 = vstv %s6887_s1  ;;  %s11286_s1 = sld [smem:[#allocation5 + $0x87]] }
 0x798   :  { %v10744_v29 = vpop.permute.xlu1 %1817  ;;  %v10746_v1 = vpop.permute.xlu0 %1897  ;;  %v5215_v43 = vadd.f32 %v5211_v56, %v10628_v5  ;;  %v10773_v52 = vstv %s6883_s16  ;;  %v4814_v5 = vadd.f32 %v4809_v6, %v10642_v48  ;;  %v10790_v56 = vstv %s6870_s4  ;;  %s11317_s16 = sld [smem:[#allocation5 + $0xd8]]  ;;  %s11346_s4 = sld [smem:[#allocation5 + $0xb9]] }
 0x799   :  { %v10755_v39 = vadd.f32 %v5166_v2, %v5118_v59  ;;  %v5674_v59 = vmul.f32 %v10761_v42, %v10753_v10  ;;  %v12115_v48 = vstv %s10708_s11  ;;  %s11244_s11 = sld [smem:[#allocation5 + $0x86]] }
 0x79a   :  { %5390 = vrot.lane.b32.xlu1 %v5385_v4, %s7342_s25  ;;  %5430 = vrot.lane.b32.xlu0 %v5426_v63, %s7342_s25  ;;  %v5047_v4 = vmul.f32 %v12113_v3, %v10172_v24  ;;  %v5217_v63 = vstv %s10738_s14  ;;  %v5311_v3 = vmul.f32 %v10692_v44, %v10463_v17  ;;  %s6891_s14 = sld [smem:[#allocation5 + $0xa0]] }
 0x79c   :  { %v5019_v32 = vpop.permute.xlu1 %5018  ;;  %v5099_v45 = vpop.permute.xlu0 %5098 }
 0x79d   :  { %v5023_v2 = vadd.f32 %v5019_v32, %v4967_v62  ;;  %v5618_v62 = vmul.f32 %v10773_v52, %v10753_v10  ;;  %v5219_v32 = vmul.f32 %v5217_v63, %v10283_v8 }
 0x79e   :  { %2381 = vrot.lane.b32.xlu1 %v2377_v23, %s7342_s25  ;;  %5678 = vrot.lane.b32.xlu0 %v5674_v59, %s7342_s25 }
 0x79f   :  { %v10776_v37 = vadd.f32 %v5047_v4, %v5023_v2  ;;  %v5467_v4 = vmul.f32 %v10790_v56, %v10636_v14 }
 0x7a0   :  { %v5267_v38 = vpop.permute.xlu1 %5266  ;;  %v10778_v28 = vpop.permute.xlu0 %1899 }
 0x7a1   :  { %12114 = vst [vmem:[#allocation36_spill] sm:$0xff] %v10778_v28  ;;  %v5271_v24 = vadd.f32 %v5267_v38, %v5215_v43  ;;  %v2378_v38 = vmul.f32 %v10598_v54, %v12062_v53 }
 0x7a2   :  { %5622 = vrot.lane.b32.xlu1 %v5618_v62, %s7341_s23  ;;  %5224 = vrot.lane.b32.xlu0 %v5219_v32, %s7341_s23  ;;  %v10800_v62 = vld [vmem:[#allocation4 + $0x50] sm:$0xff] }
 0x7a3   :  { %v10792_v23 = vadd.f32 %v5311_v3, %v5271_v24  ;;  %v7287_v32 = vld [vmem:[#allocation4 + $0x9] sm:$0xff] }
 0x7a4   :  { %v4865_v59 = vpop.permute.xlu1 %4864  ;;  %v10794_v2 = vpop.permute.xlu0 %5100  ;;  %v4902_v6 = vmul.f32 %v7287_v32, %v12115_v48  ;;  %v10824_v32 = vstv %s6874_s0  ;;  %s11368_s0 = sld [smem:[#allocation5 + $0xd7]] }
 0x7a5   :  { %v4870_v43 = vadd.f32 %v4865_v59, %v4814_v5  ;;  %v5619_v5 = vmul.f32 %v10773_v52, %v10800_v62  ;;  %v2459_v59 = vmul.f32 %v10773_v52, %v12063_v60  ;;  %v5522_v44 = vmul.f32 %v10824_v32, %v10590_v22 }
 0x7a6   :  { %2383 = vrot.lane.b32.xlu1 %v2378_v38, %s7342_s25  ;;  %5472 = vrot.lane.b32.xlu0 %v5467_v4, %s7341_s23  ;;  %v11763_v38 = vstv %s10787_s15  ;;  %v5063_v4 = vadd.f32 %v10698_v51, %v10673_v18  ;;  %v5273_v18 = vstv %s10806_s17  ;;  %s11370_s17 = sld [smem:[#allocation5 + $0xbc]] }
 0x7a7   :  { %v10808_v24 = vadd.f32 %v4902_v6, %v4870_v43  ;;  %v5104_v43 = vadd.f32 %v5099_v45, %v10675_v7  ;;  %v5184_v51 = vmul.f32 %v11763_v38, %v10247_v33 }
 0x7a8   :  { %v10810_v3 = vpop.permute.xlu1 %2051  ;;  %v10812_v54 = vpop.permute.xlu0 %1953 }
 0x7a9   :  { %12116 = vst [vmem:[#allocation18_spill] sm:$0xff] %v10810_v3  ;;  %v5218_v3 = vmul.f32 %v5217_v63, %v10247_v33 }
 0x7aa   :  { %5624 = vrot.lane.b32.xlu1 %v5619_v5, %s7341_s23  ;;  %2463 = vrot.lane.b32.xlu0 %v2459_v59, %s7341_s23  ;;  %v5167_v59 = vmul.f32 %v10736_v20, %v10283_v8 }
 0x7ac   :  { %v5115_v48 = vpop.permute.xlu1 %5114  ;;  %v5155_v6 = vpop.permute.xlu0 %5154 }
 0x7ad   :  { %v5119_v28 = vadd.f32 %v5115_v48, %v5063_v4  ;;  %v5160_v5 = vadd.f32 %v5155_v6, %v5104_v43  ;;  %v5466_v43 = vmul.f32 %v10790_v56, %v10590_v22  ;;  %v5275_v48 = vmul.f32 %v5273_v18, %v10283_v8 }
 0x7ae   :  { %5222 = vrot.lane.b32.xlu1 %v5218_v3, %s7341_s23  ;;  %5526 = vrot.lane.b32.xlu0 %v5522_v44, %s7342_s25  ;;  %v2307_v3 = vmul.f32 %v10790_v56, %v12061_v61  ;;  %v10858_v8 = vstv %s6867_s19  ;;  %s11395_s19 = sld [smem:[#allocation5 + $0xb2]] }
 0x7af   :  { %v10839_v7 = vadd.f32 %v5167_v59, %v5119_v28  ;;  %v10841_v45 = vadd.f32 %v5184_v51, %v5160_v5  ;;  %v2226_v28 = vmul.f32 %v10658_v16, %v12059_v13  ;;  %v5507_v5 = vstv %s10831_s18  ;;  %s11389_s18 = sld [smem:[#allocation5 + $0xbd]] }
 0x7b0   :  { %v10843_v63 = vpop.permute.xlu1 %2105  ;;  %v5403_v4 = vpop.permute.xlu0 %5402  ;;  %v5448_v51 = vmul.f32 %v10858_v8, %v10590_v22  ;;  %v12119_v16 = vstv %s10716_s12  ;;  %s11250_s12 = sld [smem:[#allocation5 + $0xb6]] }
 0x7b1   :  { %12117 = vst [vmem:[#allocation48_spill] sm:$0xff] %v10843_v63  ;;  %v5427_v38 = vmul.f32 %v12119_v16, %v10463_v17  ;;  %v11766_v63 = vstv %s10880_s20 }
 0x7b2   :  { %5470 = vrot.lane.b32.xlu1 %v5466_v43, %s7341_s23  ;;  %5280 = vrot.lane.b32.xlu0 %v5275_v48, %s7342_s25 }
 0x7b4   :  { %v5347_v33 = vpop.permute.xlu1 %5346  ;;  %v4949_v44 = vpop.permute.xlu0 %4948 }
 0x7b5   :  { %v5352_v6 = vadd.f32 %v5347_v33, %v10704_v50  ;;  %v5508_v50 = vmul.f32 %v5507_v5, %v10590_v22 }
 0x7b6   :  { %2231 = vrot.lane.b32.xlu1 %v2226_v28, %s7342_s25  ;;  %2311 = vrot.lane.b32.xlu0 %v2307_v3, %s7341_s23  ;;  %v5675_v3 = vmul.f32 %v10761_v42, %v10800_v62 }
 0x7b7   :  { %v5408_v59 = vadd.f32 %v5403_v4, %v5352_v6  ;;  %v2308_v6 = vmul.f32 %v10790_v56, %v12062_v53  ;;  %v5509_v56 = vmul.f32 %v5507_v5, %v10636_v14 }
 0x7b8   :  { %v10862_v43 = vpop.permute.xlu1 %2107  ;;  %v10864_v48 = vpop.permute.xlu0 %5196 }
 0x7b9   :  { %12118 = vst [vmem:[#allocation32_spill] sm:$0xff] %v10862_v43  ;;  %v10870_v33 = vadd.f32 %v5448_v51, %v5408_v59  ;;  %v10888_v51 = vld [vmem:[#allocation4 + $0x28] sm:$0xff]  ;;  %v2460_v43 = vmul.f32 %v10773_v52, %v12064_v11 }
 0x7ba   :  { %5432 = vrot.lane.b32.xlu1 %v5427_v38, %s7342_s25  ;;  %5512 = vrot.lane.b32.xlu0 %v5508_v50, %s7341_s23  ;;  %12121 = vst [vmem:[#allocation47_spill] sm:$0xff] %v10888_v51  ;;  %v5274_v16 = vmul.f32 %v10888_v51, %v5273_v18  ;;  %v4953_v50 = vadd.f32 %v4949_v44, %v10740_v34  ;;  %v11765_v51 = vstv %s10882_s22  ;;  %v10908_v44 = vstv %s6854_s21  ;;  %s11513_s21 = sld [smem:[#allocation5 + $0xd6]] }
 0x7bc   :  { %v5349_v28 = vpop.permute.xlu1 %5348  ;;  %v10874_v4 = vpop.permute.xlu0 %2187 }
 0x7bd   :  { %12120 = vst [vmem:[#allocation63_spill] sm:$0xff] %v10874_v4  ;;  %v2363_v4 = vmul.f32 %v10824_v32, %v12061_v61  ;;  %v12126_v61 = vstv %s10787_s15  ;;  %s11355_s15 = sld [smem:[#allocation5 + $0xba]] }
 0x7be   :  { %5680 = vrot.lane.b32.xlu1 %v5675_v3, %s7342_s25  ;;  %2313 = vrot.lane.b32.xlu0 %v2308_v6, %s7341_s23 }
 0x7c0   :  { %v10886_v38 = vpop.permute.xlu1 %4946  ;;  %v5251_v59 = vpop.permute.xlu0 %5250 }
 0x7c2   :  { %5278 = vrot.lane.b32.xlu1 %v5274_v16, %s7342_s25  ;;  %5514 = vrot.lane.b32.xlu0 %v5509_v56, %s7341_s23  ;;  %v7289_v16 = vld [vmem:[#allocation4 + $0x2f] sm:$0xff] }
 0x7c3   :  { %v5041_v34 = vmul.f32 %v7289_v16, %v11766_v63  ;;  %v10933_v16 = vstv %s6899_s24  ;;  %v2515_v63 = vmul.f32 %v10761_v42, %v12063_v60  ;;  %s11540_s24 = sld [smem:[#allocation5 + $0xb8]] }
 0x7c4   :  { %v5195_v3 = vpop.permute.xlu1 %5194  ;;  %v5005_v6 = vpop.permute.xlu0 %5004 }
 0x7c5   :  { %v5200_v18 = vadd.f32 %v5195_v3, %v10755_v39  ;;  %v5009_v5 = vadd.f32 %v5005_v6, %v4953_v50  ;;  %v5304_v39 = vmul.f32 %v10908_v44, %v10417_v27  ;;  %v5523_v6 = vmul.f32 %v10824_v32, %v10636_v14 }
 0x7c6   :  { %2465 = vrot.lane.b32.xlu1 %v2460_v43, %s7341_s23  ;;  %2367 = vrot.lane.b32.xlu0 %v2363_v4, %s7342_s25  ;;  %v5564_v43 = vmul.f32 %v11765_v51, %v10590_v22  ;;  %v10923_v4 = vld [vmem:[#allocation4 + $0x49] sm:$0xff]  ;;  %v10949_v22 = vstv %s6895_s27  ;;  %s7347_s27 = smov [#allocation8]  }
 0x7c7   :  { %v5256_v52 = vadd.f32 %v5251_v59, %v5200_v18  ;;  %v10910_v56 = vadd.f32 %v5041_v34, %v5009_v5  ;;  %12123 = vst [vmem:[#allocation57_spill] sm:$0xff] %v10923_v4  ;;  %v1455_v18 = vmul.f32 %v10290_v12, %v12080_v21  ;;  %v5105_v5 = vadd.f32 %v10794_v2, %v10776_v37 }
 0x7c8   :  { %v10914_v50 = vpop.permute.xlu1 %1955  ;;  %v10916_v3 = vpop.permute.xlu0 %2035  ;;  %v5353_v2 = vadd.f32 %v5349_v28, %v10792_v23  ;;  %v5449_v23 = vmul.f32 %v10858_v8, %v10636_v14 }
 0x7c9   :  { %12122 = vst [vmem:[#allocation17_spill] sm:$0xff] %v10914_v50  ;;  %v10925_v59 = vadd.f32 %v5304_v39, %v5256_v52  ;;  %v5812_v52 = vmul.f32 %v10933_v16, %v10923_v4  ;;  %v1457_v37 = vadd.f32 %v10310_v25, %v1455_v18 }
 0x7ca   :  { %5528 = vrot.lane.b32.xlu1 %v5523_v6, %s7342_s25  ;;  %5568 = vrot.lane.b32.xlu0 %v5564_v43, %s7342_s25  ;;  %v5355_v6 = vstv %s10902_s26  ;;  %v10940_v43 = vld [vmem:[#allocation4 + $0x30] sm:$0xff]  ;;  %s11575_s26 = sld [smem:[#allocation5 + $0xbb]] }
 0x7cb   :  { %12124 = vst [vmem:[#allocation54_spill] sm:$0xff] %v10925_v59  ;;  %12125 = vst [vmem:[#allocation58_spill] sm:$0xff] %v10940_v43  ;;  %v5185_v13 = vmul.f32 %v10940_v43, %v12126_v61  ;;  %v5357_v61 = vmul.f32 %v5355_v6, %v10463_v17 }
 0x7cc   :  { %v5157_v34 = vpop.permute.xlu1 %5156  ;;  %v5237_v51 = vpop.permute.xlu0 %5236 }
 0x7cd   :  { %v5161_v39 = vadd.f32 %v5157_v34, %v5105_v5  ;;  %v5756_v34 = vmul.f32 %v10949_v22, %v10923_v4 }
 0x7ce   :  { %2519 = vrot.lane.b32.xlu1 %v2515_v63, %s7342_s25  ;;  %5816 = vrot.lane.b32.xlu0 %v5812_v52, %s7342_s25  ;;  %v1489_v63 = vadd.f32 %v10268_v49, %v1457_v37  ;;  %v4952_v49 = vadd.f32 %v10886_v38, %v10808_v24  ;;  %v1593_v24 = vmul.f32 %v10335_v46, %v9363_v57 }
 0x7cf   :  { %v10951_v59 = vadd.f32 %v5185_v13, %v5161_v39  ;;  %v1456_v13 = vmul.f32 %v10290_v12, %v9358_v31  ;;  %v2516_v12 = vmul.f32 %v10761_v42, %v12064_v11 }
 0x7d0   :  { %v5405_v50 = vpop.permute.xlu1 %5404  ;;  %v10953_v5 = vpop.permute.xlu0 %2037  ;;  %v1545_v28 = vadd.f32 %v10330_v36, %v1489_v63  ;;  %v1461_v36 = vmul.f32 %v10120_v58, %v12080_v21 }
 0x7d1   :  { %v5409_v43 = vadd.f32 %v5405_v50, %v5353_v2  ;;  %v10972_v50 = vstv %s6882_s30  ;;  %v7291_v2 = vld [vmem:[#allocation4 + $0x27] sm:$0xff]  ;;  %v1458_v42 = vadd.f32 %v10310_v25, %v1456_v13  ;;  %v2597_v25 = vmul.f32 %v10949_v22, %v12065_v26  ;;  %s6404_s30 = sshll.u32 %s7347_s27, 4  ;;  %s6405_s30 = int_to_ptr.vmem [resolvable:$true] %s6404_s30 }
 0x7d2   :  { %5760 = vrot.lane.b32.xlu1 %v5756_v34, %s7341_s23  ;;  %5362 = vrot.lane.b32.xlu0 %v5357_v61, %s7341_s23  ;;  %v5605_v37 = vmul.f32 %v10972_v50, %v10800_v62  ;;  %v12127_v34 = vstv %s10880_s20  ;;  %v1595_v63 = vadd.f32 %v1593_v24, %v1545_v28  ;;  %v1463_v13 = vadd.f32 %v10131_v19, %v1461_v36  ;;  %s6878_s20 = sld [smem:[#allocation5 + $0x82]]  ;;  %p7317_p6 = scmp.lt.s32.totalorder %s6405_s30, %s6405_s30 }
 0x7d3   :  { %v10974_v18 = vadd.f32 %v5449_v23, %v5409_v43  ;;  %v10988_v43 = vld [vmem:[#allocation4 + $0x51] sm:$0xff]  ;;  %v5040_v61 = vmul.f32 %v7291_v2, %v12127_v34  ;;  %v1490_v21 = vadd.f32 %v10292_v0, %v1458_v42  ;;  %v11009_v28 = vstv %s10959_s28  ;;  %s7312_s28 = scalar_lea.vmem %s6405_s30, 1024 }
 0x7d4   :  { %v5003_v52 = vpop.permute.xlu1 %5002  ;;  %v10976_v39 = vpop.permute.xlu0 %5238  ;;  %v1462_v0 = vmul.f32 %v10120_v58, %v9358_v31  ;;  %v1594_v24 = vmul.f32 %v10335_v46, %v9369_v41  ;;  %v12129_v2 = vld [vmem:[#allocation46_spill] sm:$0xff]  ;;  %v5242_v31 = vadd.f32 %v5237_v51, %v10841_v45  ;;  %v5356_v46 = vmul.f32 %v5355_v6, %v10417_v27  ;;  %v12132_v51 = vld [vmem:[#allocation28_spill] sm:$0xff]  ;;  %p7313_p5 = scmp.ne.s32.totalorder %s6405_s30, %s7312_s28  ;;  %p7318_p7 = scmp.lt.s32.totalorder %s7312_s28, %s7312_s28 }
 0x7d5   :  { %v5008_v38 = vadd.f32 %v5003_v52, %v4952_v49  ;;  %v5757_v52 = vmul.f32 %v10949_v22, %v10988_v43  ;;  %v5660_v42 = vmul.f32 %v11009_v28, %v10753_v10  ;;  %v1503_v6 = vadd.f32 %v12132_v51, %v1463_v13 }
 0x7d6   :  { %2521 = vrot.lane.b32.xlu1 %v2516_v12, %s7342_s25  ;;  %5610 = vrot.lane.b32.xlu0 %v5605_v37, %s7341_s23  ;;  %v1627_v12 = vadd.f32 %v10408_v9, %v1595_v63  ;;  %v1546_v37 = vadd.f32 %v10362_v40, %v1490_v21  ;;  %v12128_v9 = vld [vmem:[#allocation59_spill] sm:$0xff]  ;;  %v11775_v63 = vstv %s10982_s5  ;;  %v5305_v21 = vmul.f32 %v10908_v44, %v10463_v17  ;;  %p7319_p8 = por %p7318_p7, %p7317_p6 }
 0x7d7   :  { %v10995_v23 = vadd.f32 %v5040_v61, %v5008_v38  ;;  %v11774_v38 = vstv %s10967_s3  ;;  %v1731_v34 = vmul.f32 %v12129_v2, %v12128_v9  ;;  %v5201_v61 = vadd.f32 %v10864_v48, %v10839_v7  ;;  %v12130_v48 = vld [vmem:[#allocation13_spill] sm:$0xff] }
 0x7d8   :  { %v10998_v4 = vpop.permute.xlu1 %2189  ;;  %v11000_v49 = vpop.permute.xlu0 %2091  ;;  %v1683_v36 = vadd.f32 %v10473_v47, %v1627_v12  ;;  %v5322_v7 = vmul.f32 %v11774_v38, %v10417_v27  ;;  %v11037_v45 = vmul.u32 2, %v12130_v48  ;;  %v1596_v12 = vadd.f32 %v1594_v24, %v1546_v37  ;;  %v12134_v38 = vld [vmem:[#allocation16_spill] sm:$0xff]  ;;  %v12135_v24 = vld [vmem:[#allocation31_spill] sm:$0xff]  ;;  %p7320_p9 = pnand %p7319_p8, %p7313_p5 }
 0x7d9   :  { %v5413_v37 = vmul.f32 %v11775_v63, %v10463_v17  ;;  %v2364_v63 = vmul.f32 %v10824_v32, %v12062_v53  ;;  %v12149_v32 = vld [vmem:[#allocation40_spill] sm:$0xff] }
 0x7da   :  { %5762 = vrot.lane.b32.xlu1 %v5757_v52, %s7341_s23  ;;  %2601 = vrot.lane.b32.xlu0 %v2597_v25, %s7341_s23  ;;  %12131 = vst [vmem:[#allocation19_spill] sm:$0xff] %v11037_v45  ;;  %v1464_v25 = vadd.f32 %v10131_v19, %v1462_v0  ;;  %v11048_v27 = vadd.s32 1, %v11037_v45  ;;  %v5604_v0 = vmul.f32 %v10972_v50, %v10753_v10  ;;  %v12163_v45 = vstv %s10982_s5 }
 0x7dc   :  { %v5253_v58 = vpop.permute.xlu1 %5252  ;;  %v5293_v40 = vpop.permute.xlu0 %5292  ;;  %v1504_v13 = vadd.f32 %v12134_v38, %v1464_v25  ;;  %v12139_v38 = vld [vmem:[#allocation34_spill] sm:$0xff] }
 0x7dd   :  { %v5257_v47 = vadd.f32 %v5253_v58, %v5201_v61  ;;  %v5298_v52 = vadd.f32 %v5293_v40, %v5242_v31  ;;  %v1733_v61 = vadd.f32 %v1731_v34, %v1683_v36  ;;  %v12133_v40 = vld [vmem:[#allocation50_spill] sm:$0xff]  ;;  %v1628_v36 = vadd.f32 %v12135_v24, %v1596_v12 }
 0x7de   :  { %5360 = vrot.lane.b32.xlu1 %v5356_v46, %s7341_s23  ;;  %5664 = vrot.lane.b32.xlu0 %v5660_v42, %s7342_s25  ;;  %v1559_v48 = vadd.f32 %v12133_v40, %v1503_v6  ;;  %v12136_v34 = vld [vmem:[#allocation42_spill] sm:$0xff]  ;;  %v12137_v42 = vld [vmem:[#allocation29_spill] sm:$0xff]  ;;  %v12143_v6 = vld [vmem:[#allocation52_spill] sm:$0xff] }
 0x7df   :  { %v5307_v31 = vadd.f32 %v5305_v21, %v5257_v47  ;;  %v11045_v58 = vadd.f32 %v5322_v7, %v5298_v52  ;;  %v1765_v46 = vadd.f32 %v12136_v34, %v1733_v61  ;;  %vm90_vm13 = vcmp.eq.s32.totalorder %v12137_v42, %v11048_v27  ;;  %v12138_v21 = vld [vmem:[#allocation27_spill] sm:$0xff]  ;;  %v12144_v61 = vld [vmem:[#allocation60_spill] sm:$0xff] }
 0x7e0   :  { %v11052_v51 = vpop.permute.xlu1 %2243  ;;  %v5541_v19 = vpop.permute.xlu0 %5540  ;;  %vm91_vm14 = vcmp.eq.s32.totalorder %v12138_v21, %v11048_v27  ;;  %v1599_v47 = vmul.f32 %v12139_v38, %v9363_v57  ;;  %v12140_v52 = vmov 0.0   ;;  %v1684_v25 = vadd.f32 %v12143_v6, %v1628_v36 }
 0x7e1   :  { %v11070_v7 = vsel %vm90_vm13, 1.0, %v12140_v52  ;;  %v11073_v17 = vsel %vm91_vm14, 1.0, %v12140_v52  ;;  %v1821_v12 = vadd.f32 %v10646_v35, %v1765_v46  ;;  %v1869_v40 = vmul.f32 %v10573_v30, %v12144_v61  ;;  %v12146_v35 = vld [vmem:[#allocation70_spill] sm:$0xff] }
 0x7e2   :  { %5608 = vrot.lane.b32.xlu1 %v5604_v0, %s7341_s23  ;;  %5418 = vrot.lane.b32.xlu0 %v5413_v37, %s7342_s25  ;;  %12141 = vst [vmem:[#allocation37_spill] sm:$0xff] %v11070_v7  ;;  %12142 = vst [vmem:[#allocation66_spill] sm:$0xff] %v11073_v17  ;;  %v1601_v57 = vadd.f32 %v1599_v47, %v1559_v48  ;;  %v12145_v0 = vld [vmem:[#allocation23_spill] sm:$0xff]  ;;  %v2445_v36 = vmul.f32 %v10972_v50, %v12063_v60  ;;  %v12147_v47 = vmov 1.0|1.0  }
 0x7e3   :  { %7022 = vmatprep.mubr.msk.f32.mxu1 %vm2717_vm12, %v11070_v7  ;;  %v1560_v37 = vadd.f32 %v12145_v0, %v1504_v13  ;;  %v1732_v46 = vmul.f32 %v12129_v2, %v12146_v35  ;;  %v1871_v2 = vadd.f32 %v1869_v40, %v1821_v12  ;;  %v12152_v13 = vstv %s10882_s22  ;;  %s11458_s22 = sld [smem:[#allocation5 + $0xd3]] }
 0x7e4   :  { %v5485_v24 = vpop.permute.xlu1 %5484  ;;  %v5087_v34 = vpop.permute.xlu0 %5086  ;;  %7023 = vmatmul.mubr.msk.f32.vlgmr.msra.gmra.mrb[2].mxu1 %vm2717_vm12, %v11073_v17  ;;  %v1641_v7 = vadd.f32 %v12149_v32, %v1601_v57  ;;  %v1600_v17 = vmul.f32 %v12139_v38, %v9369_v41  ;;  %v12151_v41 = vld [vmem:[#allocation41_spill] sm:$0xff]  ;;  %v5565_v21 = vmul.f32 %v12152_v13, %v10636_v14 }
 0x7e5   :  { %v5490_v6 = vadd.f32 %v5485_v24, %v10870_v33  ;;  %v11092_v48 = vadd.f32 %v5087_v34, %v10910_v56  ;;  %7113 = vmatpush3.bf16.msk.msra.mxu1 %vm9639_vm10, %v12147_v47  ;;  %v11104_v33 = vstv %s11043_s6  ;;  %v1734_v56 = vadd.f32 %v1732_v46, %v1684_v25 }
 0x7e6   :  { %2369 = vrot.lane.b32.xlu1 %v2364_v63, %s7342_s25  ;;  %2449 = vrot.lane.b32.xlu0 %v2445_v36, %s7341_s23  ;;  %v5586_v34 = vmul.f32 %v11104_v33, %v10753_v10  ;;  %v1602_v32 = vadd.f32 %v1600_v17, %v1560_v37  ;;  %v1697_v38 = vadd.f32 %v12151_v41, %v1641_v7  ;;  %v12153_v25 = vstv %s11031_s29  ;;  %v12154_v7 = vld [vmem:[#allocation21_spill] sm:$0xff] }
 0x7e7   :  { %v5546_v24 = vadd.f32 %v5541_v19, %v5490_v6  ;;  %7115 = vmatprep.subr.msk.bf16.mxu1 %vm9645_vm11, %v12147_v47  ;;  %v5646_v12 = vmul.f32 %v12153_v25, %v10753_v10  ;;  %v1766_v19 = vadd.f32 %v10615_v15, %v1734_v56  ;;  %v1903_v40 = vadd.f32 %v10746_v1, %v1871_v2 }
 0x7e8   :  { %v11114_v63 = vpop.permute.xlu1 %2245  ;;  %v5335_v36 = vpop.permute.xlu0 %5334  ;;  %v1737_v37 = vmul.f32 %v12154_v7, %v12128_v9  ;;  %v5813_v9 = vmul.f32 %v10933_v16, %v10988_v43 }
 0x7e9   :  { %v11124_v46 = vadd.f32 %v5335_v36, %v5307_v31  ;;  %v11128_v17 = vadd.f32 %v5586_v34, %v5546_v24  ;;  %v1822_v15 = vadd.f32 %v10744_v29, %v1766_v19  ;;  %v1959_v1 = vadd.f32 %v10812_v54, %v1903_v40  ;;  %v12155_v31 = vld [vmem:[#allocation22_spill] sm:$0xff]  ;;  %v12157_v34 = vld [vmem:[#allocation72_spill] sm:$0xff]  ;;  %v12158_v36 = vld [vmem:[#allocation73_spill] sm:$0xff] }
 0x7ea   :  { %5570 = vrot.lane.b32.xlu1 %v5565_v21, %s7342_s25  ;;  %5650 = vrot.lane.b32.xlu0 %v5646_v12, %s7341_s23  ;;  %v1642_v6 = vadd.f32 %v12155_v31, %v1602_v32  ;;  %v1739_v13 = vadd.f32 %v1737_v37, %v1697_v38  ;;  %v12156_v21 = vld [vmem:[#allocation26_spill] sm:$0xff]  ;;  %v1870_v41 = vmul.f32 %v10573_v30, %v12157_v34  ;;  %v12159_v54 = vld [vmem:[#allocation69_spill] sm:$0xff]  ;;  %v11158_v40 = vstv %s11106_s7 }
 0x7eb   :  { %v2654_v24 = vmul.f32 %v10933_v16, %v12156_v21  ;;  %v2007_v29 = vmul.f32 %v10736_v20, %v12158_v36  ;;  %v12160_v38 = vld [vmem:[#allocation62_spill] sm:$0xff]  ;;  %v1738_v30 = vmul.f32 %v12154_v7, %v12146_v35  ;;  %v2598_v35 = vmul.f32 %v10949_v22, %v12156_v21  ;;  %v12164_v7 = vld [vmem:[#allocation36_spill] sm:$0xff]  ;;  %v12167_v22 = vld [vmem:[#allocation17_spill] sm:$0xff] }
 0x7ec   :  { %v11139_v56 = vpop.permute.xlu1 %5486  ;;  %v11141_v2 = vpop.permute.xlu0 %2325  ;;  %v1698_v32 = vadd.f32 %v12159_v54, %v1642_v6  ;;  %v1779_v25 = vadd.f32 %v12160_v38, %v1739_v13  ;;  %v12161_v12 = vld [vmem:[#allocation38_spill] sm:$0xff]  ;;  %v1872_v37 = vadd.f32 %v1870_v41, %v1822_v15  ;;  %v2501_v6 = vmul.f32 %v11009_v28, %v12063_v60  ;;  %v12162_v13 = vld [vmem:[#allocation64_spill] sm:$0xff] }
 0x7ed   :  { %v1875_v19 = vmul.f32 %v12161_v12, %v12144_v61  ;;  %v2009_v31 = vadd.f32 %v2007_v29, %v1959_v1  ;;  %v2008_v61 = vmul.f32 %v10736_v20, %v9429_v55  ;;  %v5701_v29 = vstv %s11126_s8 }
 0x7ee   :  { %5818 = vrot.lane.b32.xlu1 %v5813_v9, %s7342_s25  ;;  %2659 = vrot.lane.b32.xlu0 %v2654_v24, %s7342_s25  ;;  %v1835_v54 = vadd.f32 %v12162_v13, %v1779_v25  ;;  %v11167_v24 = vld [vmem:[#allocation4 + $0x29] sm:$0xff]  ;;  %v1904_v15 = vadd.f32 %v12164_v7, %v1872_v37  ;;  %v1740_v20 = vadd.f32 %v1738_v30, %v1698_v32  ;;  %v11780_v25 = vstv %s11134_s9  ;;  %v12169_v32 = vld [vmem:[#allocation58_spill] sm:$0xff] }
 0x7ef   :  { %v5412_v0 = vmul.f32 %v11167_v24, %v12163_v45  ;;  %v2041_v1 = vadd.f32 %v10916_v3, %v2009_v31  ;;  %v11184_v13 = vadd.s32 16, %v12137_v42  ;;  %v11187_v45 = vadd.s32 24, %v12137_v42  ;;  %v12168_v31 = vld [vmem:[#allocation74_spill] sm:$0xff] }
 0x7f0   :  { %v5085_v9 = vpop.permute.xlu1 %5084  ;;  %v5389_v38 = vpop.permute.xlu0 %5388  ;;  %v1960_v37 = vadd.f32 %v12167_v22, %v1904_v15  ;;  %v5179_v30 = vmul.f32 %v12169_v32, %v11780_v25  ;;  %v5702_v7 = vmul.f32 %v5701_v29, %v10753_v10  ;;  %v12172_v25 = vld [vmem:[#allocation61_spill] sm:$0xff] }
 0x7f1   :  { %v11177_v41 = vadd.f32 %v5085_v9, %v10995_v23  ;;  %12165 = vst [vmem:[#allocation25_spill] sm:$0xff] %v11184_v13  ;;  %12166 = vst [vmem:[#allocation68_spill] sm:$0xff] %v11187_v45  ;;  %v2097_v3 = vadd.f32 %v11000_v49, %v2041_v1  ;;  %v2145_v23 = vmul.f32 %v10908_v44, %v12168_v31  ;;  %v12170_v49 = vld [vmem:[#allocation54_spill] sm:$0xff] }
 0x7f2   :  { %5416 = vrot.lane.b32.xlu1 %v5412_v0, %s7342_s25  ;;  %2505 = vrot.lane.b32.xlu0 %v2501_v6, %s7342_s25  ;;  %v1877_v0 = vadd.f32 %v1875_v19, %v1835_v54  ;;  %vm92_vm15 = vcmp.eq.s32.totalorder %v11184_v13, %v11048_v27  ;;  %vm93_vm0 = vcmp.eq.s32.totalorder %v11187_v45, %v11048_v27  ;;  %v12171_v54 = vld [vmem:[#allocation39_spill] sm:$0xff]  ;;  %v12174_v45 = vld [vmem:[#allocation49_spill] sm:$0xff] }
 0x7f3   :  { %v11206_v22 = vsel %vm92_vm15, 1.0, %v12140_v52  ;;  %v11209_v19 = vsel %vm93_vm0, 1.0, %v12140_v52  ;;  %v1780_v32 = vadd.f32 %v12171_v54, %v1740_v20  ;;  %v12173_v13 = vld [vmem:[#allocation15_spill] sm:$0xff] }
 0x7f4   :  { %v5333_v9 = vpop.permute.xlu1 %5332  ;;  %v5143_v6 = vpop.permute.xlu0 %5142  ;;  %v1917_v42 = vadd.f32 %v12172_v25, %v1877_v0  ;;  %v5442_v27 = vmul.f32 %v11158_v40, %v12173_v13  ;;  %7025 = vmatprep.mubr.msk.f32.mxu1 %vm2717_vm12, %v11206_v22  ;;  %v2502_v25 = vmul.f32 %v11009_v28, %v12064_v11  ;;  %v2653_v0 = vmul.f32 %v10933_v16, %v12065_v26 }
 0x7f5   :  { %v5338_v15 = vadd.f32 %v5333_v9, %v12170_v49  ;;  %v5147_v1 = vadd.f32 %v5143_v6, %v11092_v48  ;;  %v2010_v9 = vadd.f32 %v2008_v61, %v1960_v37  ;;  %v2147_v48 = vadd.f32 %v2145_v23, %v2097_v3  ;;  %7026 = vmatmul.mubr.msk.f32.gmra.mrb[4].mxu1 %vm2717_vm12, %v11209_v19  ;;  %v12175_v61 = vld [vmem:[#allocation55_spill] sm:$0xff] }
 0x7f6   :  { %2603 = vrot.lane.b32.xlu1 %v2598_v35, %s7341_s23  ;;  %5706 = vrot.lane.b32.xlu0 %v5702_v7, %s7342_s25  ;;  %v1836_v52 = vadd.f32 %v12174_v45, %v1780_v32  ;;  %v5661_v35 = vmul.f32 %v11009_v28, %v10800_v62  ;;  %v1876_v45 = vmul.f32 %v12161_v12, %v12157_v34  ;;  %v12176_v28 = vld [vmem:[#allocation51_spill] sm:$0xff]  ;;  %v12178_v16 = vstv %s10967_s3 }
 0x7f7   :  { %v5394_v49 = vadd.f32 %v5389_v38, %v5338_v15  ;;  %v11217_v6 = vadd.f32 %v5179_v30, %v5147_v1  ;;  %v1973_v38 = vadd.f32 %v12175_v61, %v1917_v42  ;;  %v2042_v37 = vadd.f32 %v10953_v5, %v2010_v9  ;;  %v12177_v1 = vld [vmem:[#allocation24_spill] sm:$0xff] }
 0x7f8   :  { %v2094_v20 = vpop.permute.xlu1 %2093  ;;  %v2174_v54 = vpop.permute.xlu0 %2173  ;;  %v2013_v30 = vmul.f32 %v12176_v28, %v12158_v36  ;;  %v5243_v42 = vadd.f32 %v10976_v39, %v10951_v59  ;;  %v1878_v7 = vadd.f32 %v1876_v45, %v1836_v52  ;;  %v5703_v12 = vmul.f32 %v5701_v29, %v10800_v62  ;;  %v11255_v39 = vld [vmem:[#allocation4 + $0x31] sm:$0xff] }
 0x7f9   :  { %v11230_v3 = vadd.f32 %v2174_v54, %v2147_v48  ;;  %v11232_v23 = vadd.f32 %v5442_v27, %v5394_v49  ;;  %v2098_v5 = vadd.f32 %v2094_v20, %v2042_v37  ;;  %v2146_v32 = vmul.f32 %v10908_v44, %v12177_v1  ;;  %v12179_v49 = vld [vmem:[#allocation14_spill] sm:$0xff]  ;;  %v12180_v44 = vld [vmem:[#allocation44_spill] sm:$0xff]  ;;  %v12181_v45 = vld [vmem:[#allocation45_spill] sm:$0xff] }
 0x7fa   :  { %5666 = vrot.lane.b32.xlu1 %v5661_v35, %s7342_s25  ;;  %2507 = vrot.lane.b32.xlu0 %v2502_v25, %s7342_s25  ;;  %v5549_v27 = vstv %s11197_s10  ;;  %v2015_v36 = vadd.f32 %v2013_v30, %v1973_v38  ;;  %v5323_v52 = vmul.f32 %v11255_v39, %v12178_v16  ;;  %v1918_v48 = vadd.f32 %v12179_v49, %v1878_v7  ;;  %v12186_v49 = vld [vmem:[#allocation47_spill] sm:$0xff]  ;;  %v12197_v57 = vld [vmem:[#allocation25_spill] sm:$0xff] }
 0x7fb   :  { %v5491_v20 = vadd.f32 %v11139_v56, %v10974_v18  ;;  %v2148_v54 = vadd.f32 %v2146_v32, %v2098_v5  ;;  %v2446_v61 = vmul.f32 %v10972_v50, %v12064_v11  ;;  %v5550_v38 = vmul.f32 %v5549_v27, %v12173_v13  ;;  %v12183_v13 = vld [vmem:[#allocation11_spill] sm:$0xff] }
 0x7fc   :  { %v5295_v15 = vpop.permute.xlu1 %5294  ;;  %v5375_v34 = vpop.permute.xlu0 %5374  ;;  %v2055_v29 = vadd.f32 %v12180_v44, %v2015_v36  ;;  %v5587_v37 = vmul.f32 %v11104_v33, %v10800_v62  ;;  %v1974_v30 = vadd.f32 %v12181_v45, %v1918_v48  ;;  %v2014_v50 = vmul.f32 %v12176_v28, %v9429_v55 }
 0x7fd   :  { %v5299_v9 = vadd.f32 %v5295_v15, %v5243_v42  ;;  %v11253_v59 = vadd.f32 %v5375_v34, %v11045_v58  ;;  %v12182_v42 = vld [vmem:[#allocation48_spill] sm:$0xff]  ;;  %v2151_v5 = vmul.f32 %v12183_v13, %v12168_v31  ;;  %v11284_v7 = vstv %s11244_s11 }
 0x7fe   :  { %2657 = vrot.lane.b32.xlu1 %v2653_v0, %s7342_s25  ;;  %5708 = vrot.lane.b32.xlu0 %v5703_v12, %s7342_s25  ;;  %v2111_v0 = vadd.f32 %v12182_v42, %v2055_v29  ;;  %v12184_v32 = vstv %s11031_s29  ;;  %v5493_v16 = vstv %s11250_s12  ;;  %v2016_v28 = vadd.f32 %v2014_v50, %v1974_v30  ;;  %v12187_v29 = vld [vmem:[#allocation18_spill] sm:$0xff] }
 0x7ff   :  { %v5325_v58 = vadd.f32 %v5323_v52, %v5299_v9  ;;  %v5647_v36 = vmul.f32 %v12184_v32, %v10800_v62  ;;  %v5551_v9 = vmul.f32 %v5549_v27, %v10636_v14  ;;  %v12185_v52 = vstv %s11134_s9 }
 0x800   :  { %v5543_v35 = vpop.permute.xlu1 %5542  ;;  %v2176_v25 = vpop.permute.xlu0 %2175  ;;  %v5178_v55 = vmul.f32 %v12186_v49, %v12185_v52  ;;  %v2153_v48 = vadd.f32 %v2151_v5, %v2111_v0  ;;  %v5459_v42 = vstv %s11275_s13  ;;  %v2152_v0 = vmul.f32 %v12183_v13, %v12177_v1 }
 0x801   :  { %v5547_v18 = vadd.f32 %v5543_v35, %v5491_v20  ;;  %v11273_v56 = vadd.f32 %v2176_v25, %v2148_v54  ;;  %v2056_v20 = vadd.f32 %v12187_v29, %v2016_v28  ;;  %v12188_v54 = vld [vmem:[#allocation63_spill] sm:$0xff]  ;;  %v11327_v5 = vstv %s11286_s1 }
 0x802   :  { %2451 = vrot.lane.b32.xlu1 %v2446_v61, %s7341_s23  ;;  %5554 = vrot.lane.b32.xlu0 %v5550_v38, %s7342_s25  ;;  %v2193_v35 = vadd.f32 %v12188_v54, %v2153_v48  ;;  %v11307_v61 = vld [vmem:[#allocation4 + $0x47] sm:$0xff]  ;;  %v2584_v32 = vmul.f32 %v11284_v7, %v12156_v21 }
 0x803   :  { %v11288_v15 = vadd.f32 %v5587_v37, %v5547_v18  ;;  %v12189_v38 = vld [vmem:[#allocation32_spill] sm:$0xff]  ;;  %v12190_v18 = vld [vmem:[#allocation30_spill] sm:$0xff]  ;;  %v5460_v1 = vmul.f32 %v11307_v61, %v5459_v42 }
 0x804   :  { %v5141_v34 = vpop.permute.xlu1 %5140  ;;  %v5377_v12 = vpop.permute.xlu0 %5376  ;;  %v2112_v37 = vadd.f32 %v12189_v38, %v2056_v20  ;;  %v2249_v45 = vadd.f32 %v11052_v51, %v2193_v35  ;;  %v2289_v50 = vmul.f32 %v10858_v8, %v12190_v18 }
 0x805   :  { %v5146_v31 = vadd.f32 %v5141_v34, %v11177_v41  ;;  %v11299_v44 = vadd.f32 %v5377_v12, %v5325_v58  ;;  %v5494_v41 = vmul.f32 %v11307_v61, %v5493_v16  ;;  %v2583_v58 = vmul.f32 %v11284_v7, %v12065_v26 }
 0x806   :  { %5652 = vrot.lane.b32.xlu1 %v5647_v36, %s7341_s23  ;;  %5556 = vrot.lane.b32.xlu0 %v5551_v9, %s7342_s25  ;;  %v11333_v36 = vld [vmem:[#allocation4 + $0x4f] sm:$0xff]  ;;  %v2154_v13 = vadd.f32 %v2152_v0, %v2112_v37  ;;  %v2291_v52 = vadd.f32 %v2289_v50, %v2249_v45  ;;  %v5631_v50 = vstv %s11346_s4 }
 0x807   :  { %v11305_v14 = vadd.f32 %v5178_v55, %v5146_v31  ;;  %v5443_v9 = vmul.f32 %v11333_v36, %v11158_v40  ;;  %v5495_v54 = vmul.f32 %v11333_v36, %v5493_v16  ;;  %v5743_v16 = vmul.f32 %v10988_v43, %v11284_v7 }
 0x808   :  { %v2328_v27 = vpop.permute.xlu1 %2327  ;;  %v2230_v25 = vpop.permute.xlu0 %2229  ;;  %v2194_v28 = vadd.f32 %v10998_v4, %v2154_v13  ;;  %v2331_v48 = vadd.f32 %v11141_v2, %v2291_v52  ;;  %v2290_v4 = vmul.f32 %v10858_v8, %v12062_v53  ;;  %v11374_v8 = vstv %s6891_s14 }
 0x809   :  { %v11315_v30 = vadd.f32 %v2230_v25, %v11230_v3  ;;  %v12191_v3 = vld [vmem:[#allocation57_spill] sm:$0xff] }
 0x80a   :  { %5498 = vrot.lane.b32.xlu1 %v5494_v41, %s7341_s23  ;;  %2587 = vrot.lane.b32.xlu0 %v2583_v58, %s7341_s23  ;;  %v5742_v12 = vmul.f32 %v12191_v3, %v11284_v7  ;;  %v2250_v35 = vadd.f32 %v11114_v63, %v2194_v28  ;;  %v5839_v41 = vstv %s11317_s16  ;;  %v5799_v28 = vmul.f32 %v10988_v43, %v11327_v5 }
 0x80b   :  { %v5840_v63 = vmul.f32 %v5839_v41, %v12191_v3 }
 0x80c   :  { %v5391_v34 = vpop.permute.xlu1 %5390  ;;  %v5431_v51 = vpop.permute.xlu0 %5430  ;;  %v2292_v38 = vadd.f32 %v2290_v4, %v2250_v35 }
 0x80d   :  { %v5395_v49 = vadd.f32 %v5391_v34, %v11124_v46  ;;  %v5436_v55 = vadd.f32 %v5431_v51, %v11253_v59  ;;  %v2639_v59 = vmul.f32 %v11327_v5, %v12065_v26  ;;  %v5724_v34 = vmul.f32 %v11374_v8, %v12191_v3 }
 0x80e   :  { %5746 = vrot.lane.b32.xlu1 %v5742_v12, %s7341_s23  ;;  %2589 = vrot.lane.b32.xlu0 %v2584_v32, %s7341_s23  ;;  %v2332_v7 = vadd.f32 %v2328_v27, %v2292_v38  ;;  %v5633_v12 = vmul.f32 %v5631_v50, %v10800_v62  ;;  %v2427_v32 = vmul.f32 %v11104_v33, %v12063_v60 }
 0x80f   :  { %v5445_v31 = vadd.f32 %v5443_v9, %v5395_v49  ;;  %v11348_v29 = vadd.f32 %v5460_v1, %v5436_v55  ;;  %v5687_v1 = vstv %s11355_s15 }
 0x810   :  { %v2382_v20 = vpop.permute.xlu1 %2381  ;;  %v5679_v46 = vpop.permute.xlu0 %5678 }
 0x811   :  { %v2387_v25 = vadd.f32 %v2382_v20, %v2331_v48  ;;  %v5688_v48 = vmul.f32 %v5687_v1, %v10753_v10  ;;  %v5783_v20 = vstv %s11368_s0  ;;  %v5825_v10 = vstv %s11389_s18 }
 0x812   :  { %5500 = vrot.lane.b32.xlu1 %v5495_v54, %s7341_s23  ;;  %2643 = vrot.lane.b32.xlu0 %v2639_v59, %s7342_s25  ;;  %v5784_v35 = vmul.f32 %v5783_v20, %v12191_v3  ;;  %v5826_v38 = vmul.f32 %v5825_v10, %v12191_v3 }
 0x813   :  { %v2429_v52 = vadd.f32 %v2427_v32, %v2387_v25 }
 0x814   :  { %v5623_v2 = vpop.permute.xlu1 %5622  ;;  %v5225_v58 = vpop.permute.xlu0 %5224 }
 0x815   :  { %v5628_v37 = vadd.f32 %v5623_v2, %v11128_v17  ;;  %v5229_v45 = vadd.f32 %v5225_v58, %v11217_v6  ;;  %v5798_v6 = vmul.f32 %v12191_v3, %v11327_v5  ;;  %v5315_v2 = vstv %s11395_s19 }
 0x816   :  { %5748 = vrot.lane.b32.xlu1 %v5743_v16, %s7341_s23  ;;  %5844 = vrot.lane.b32.xlu0 %v5840_v63, %s7342_s25  ;;  %v5785_v63 = vmul.f32 %v5783_v20, %v10988_v43 }
 0x817   :  { %v5684_v0 = vadd.f32 %v5679_v46, %v5628_v37  ;;  %v5769_v46 = vstv %s11370_s17 }
 0x818   :  { %v2384_v17 = vpop.permute.xlu1 %2383  ;;  %v5473_v51 = vpop.permute.xlu0 %5472  ;;  %v5770_v25 = vmul.f32 %v5769_v46, %v12191_v3 }
 0x819   :  { %v11384_v9 = vadd.f32 %v2384_v17, %v2332_v7  ;;  %v11386_v27 = vadd.f32 %v5473_v51, %v5445_v31  ;;  %v11391_v13 = vadd.f32 %v5724_v34, %v5684_v0  ;;  %v2283_v0 = vmul.f32 %v11158_v40, %v12190_v18 }
 0x81a   :  { %5802 = vrot.lane.b32.xlu1 %v5798_v6, %s7342_s25  ;;  %5638 = vrot.lane.b32.xlu0 %v5633_v12, %s7341_s23  ;;  %v11427_v34 = vstv %s6878_s20  ;;  %v11430_v12 = vld [vmem:[#allocation4 + $0x48] sm:$0xff] }
 0x81b   :  { %v2285_v51 = vadd.f32 %v2283_v0, %v11315_v30 }
 0x81c   :  { %v5625_v49 = vpop.permute.xlu1 %5624  ;;  %v2464_v55 = vpop.permute.xlu0 %2463 }
 0x81d   :  { %v11402_v31 = vadd.f32 %v2464_v55, %v2429_v52 }
 0x81e   :  { %5804 = vrot.lane.b32.xlu1 %v5799_v28, %s7342_s25  ;;  %5692 = vrot.lane.b32.xlu0 %v5688_v48, %s7342_s25  ;;  %v2640_v48 = vmul.f32 %v11327_v5, %v12156_v21 }
 0x820   :  { %v5223_v54 = vpop.permute.xlu1 %5222  ;;  %v5527_v59 = vpop.permute.xlu0 %5526 }
 0x821   :  { %v5228_v4 = vadd.f32 %v5223_v54, %v11305_v14  ;;  %v5317_v14 = vmul.f32 %v11255_v39, %v5315_v2  ;;  %v5632_v39 = vmul.f32 %v11430_v12, %v5631_v50  ;;  %v2284_v50 = vmul.f32 %v11158_v40, %v12062_v53 }
 0x822   :  { %5788 = vrot.lane.b32.xlu1 %v5784_v35, %s7341_s23  ;;  %5774 = vrot.lane.b32.xlu0 %v5770_v25, %s7341_s23  ;;  %v5725_v53 = vmul.f32 %v11374_v8, %v10988_v43 }
 0x824   :  { %v5471_v58 = vpop.permute.xlu1 %5470  ;;  %v5281_v16 = vpop.permute.xlu0 %5280 }
 0x825   :  { %v5476_v37 = vadd.f32 %v5471_v58, %v11232_v23  ;;  %v5285_v7 = vadd.f32 %v5281_v16, %v5229_v45  ;;  %v5580_v23 = vmul.f32 %v11430_v12, %v11427_v34 }
 0x826   :  { %5790 = vrot.lane.b32.xlu1 %v5785_v63, %s7341_s23  ;;  %5830 = vrot.lane.b32.xlu0 %v5826_v38, %s7342_s25  ;;  %v5316_v38 = vmul.f32 %v11167_v24, %v5315_v2  ;;  %v11480_v2 = vld [vmem:[#allocation4 + $0x50] sm:$0xff] }
 0x827   :  { %v5532_v17 = vadd.f32 %v5527_v59, %v5476_v37  ;;  %v5319_v6 = vadd.f32 %v5317_v14, %v5285_v7  ;;  %v5629_v59 = vadd.f32 %v5625_v49, %v11288_v15  ;;  %v5771_v14 = vmul.f32 %v5769_v46, %v10988_v43 }
 0x828   :  { %v2232_v45 = vpop.permute.xlu1 %2231  ;;  %v2312_v18 = vpop.permute.xlu0 %2311 }
 0x829   :  { %v2236_v32 = vadd.f32 %v2232_v45, %v11273_v56  ;;  %v2317_v52 = vadd.f32 %v2312_v18, %v2285_v51  ;;  %v11436_v55 = vadd.f32 %v5580_v23, %v5532_v17  ;;  %v5461_v56 = vmul.f32 %v11333_v36, %v5459_v42 }
 0x82a   :  { %5636 = vrot.lane.b32.xlu1 %v5632_v39, %s7341_s23  ;;  %v5597_v51 = vstv %s11458_s22  ;;  %v5581_v45 = vmul.f32 %v11480_v2, %v11427_v34 }
 0x82b   :  { %v2286_v35 = vadd.f32 %v2284_v50, %v2236_v32  ;;  %v5598_v46 = vmul.f32 %v11430_v12, %v5597_v51 }
 0x82c   :  { %v5433_v30 = vpop.permute.xlu1 %5432  ;;  %v5513_v28 = vpop.permute.xlu0 %5512 }
 0x82d   :  { %v5437_v20 = vadd.f32 %v5433_v30, %v11299_v44  ;;  %v5518_v54 = vadd.f32 %v5513_v28, %v11348_v29  ;;  %v5841_v44 = vmul.f32 %v5839_v41, %v10988_v43  ;;  %v5689_v41 = vmul.f32 %v5687_v1, %v10800_v62 }
 0x82e   :  { %2645 = vrot.lane.b32.xlu1 %v2640_v48, %s7342_s25  ;;  %v5827_v1 = vmul.f32 %v5825_v10, %v10988_v43 }
 0x82f   :  { %v5463_v25 = vadd.f32 %v5461_v56, %v5437_v20 }
 0x830   :  { %v5681_v58 = vpop.permute.xlu1 %5680  ;;  %v2314_v16 = vpop.permute.xlu0 %2313 }
 0x831   :  { %v5685_v5 = vadd.f32 %v5681_v58, %v5629_v59  ;;  %v11453_v29 = vadd.f32 %v2314_v16, %v2286_v35 }
 0x832   :  { %5846 = vrot.lane.b32.xlu1 %v5841_v44, %s7342_s25 }
 0x833   :  { %v11460_v40 = vadd.f32 %v5725_v53, %v5685_v5 }
 0x834   :  { %v5279_v15 = vpop.permute.xlu1 %5278  ;;  %v5515_v42 = vpop.permute.xlu0 %5514 }
 0x835   :  { %v5284_v49 = vadd.f32 %v5279_v15, %v5228_v4  ;;  %v5519_v63 = vadd.f32 %v5515_v42, %v5463_v25 }
 0x836   :  { %5694 = vrot.lane.b32.xlu1 %v5689_v41, %s7342_s25 }
 0x837   :  { %v5318_v37 = vadd.f32 %v5316_v38, %v5284_v49 }
 0x838   :  { %v11467_v7 = vpop.permute.xlu1 %2465  ;;  %v2368_v0 = vpop.permute.xlu0 %2367 }
 0x839   :  { %v11472_v17 = vadd.f32 %v2368_v0, %v2317_v52 }
 0x83a   :  { %5776 = vrot.lane.b32.xlu1 %v5771_v14, %s7341_s23  ;;  %s11493_s23 = sld [smem:[#allocation5 + $0xb5]] }
 0x83c   :  { %v5529_v23 = vpop.permute.xlu1 %5528  ;;  %v5569_v62 = vpop.permute.xlu0 %5568 }
 0x83d   :  { %v5533_v24 = vadd.f32 %v5529_v23, %v11386_v27  ;;  %v5574_v4 = vadd.f32 %v5569_v62, %v5518_v54 }
 0x83e   :  { %5832 = vrot.lane.b32.xlu1 %v5827_v1, %s7342_s25  ;;  %s6636_s25 = sld [smem:[#allocation5 + $0x85]] }
 0x83f   :  { %v5583_v18 = vadd.f32 %v5581_v45, %v5533_v24  ;;  %v5600_v39 = vadd.f32 %v5598_v46, %v5574_v4  ;;  %v5599_v4 = vmul.f32 %v11480_v2, %v5597_v51 }
 0x840   :  { %v11486_v32 = vpop.permute.xlu1 %2519  ;;  %v5817_v52 = vpop.permute.xlu0 %5816 }
 0x844   :  { %v5761_v30 = vpop.permute.xlu1 %5760  ;;  %v5363_v28 = vpop.permute.xlu0 %5362  ;;  %v11498_v49 = vstv %s6636_s25 }
 0x845   :  { %v5766_v10 = vadd.f32 %v5761_v30, %v11391_v13  ;;  %v5367_v27 = vadd.f32 %v5363_v28, %v5319_v6  ;;  %v5453_v6 = vstv %s11493_s23  ;;  %v5718_v0 = vmul.f32 %v12191_v3, %v11498_v49 }
 0x846   :  { %v5455_v42 = vmul.f32 %v11333_v36, %v5453_v6  ;;  %v2428_v36 = vmul.f32 %v11104_v33, %v12064_v11 }
 0x847   :  { %v5822_v48 = vadd.f32 %v5817_v52, %v5766_v10 }
 0x848   :  { %v2522_v20 = vpop.permute.xlu1 %2521  ;;  %v5611_v54 = vpop.permute.xlu0 %5610  ;;  %v2430_v45 = vadd.f32 %v2428_v36, %v11384_v9  ;;  %v2566_v9 = vmul.f32 %v11374_v8, %v12156_v21 }
 0x849   :  { %v6904_v50 = vmul.f32 -1.442695, %v5822_v48  ;;  %v11489_v56 = vadd.f32 %v5611_v54, %v5583_v18 }
 0x84a   :  { %v2470_v28 = vadd.f32 %v11467_v7, %v2430_v45 }
 0x84b   :  { %7218 = vpow2.f32 %v6904_v50  ;;  %v5735_v50 = vstv %s11513_s21 }
 0x84c   :  { %v5763_v59 = vpop.permute.xlu1 %5762  ;;  %v11491_v35 = vpop.permute.xlu0 %2601  ;;  %v2526_v48 = vadd.f32 %v2522_v20, %v2470_v28  ;;  %v2525_v20 = vadd.f32 %v11486_v32, %v11402_v31  ;;  %v5719_v31 = vmul.f32 %v10988_v43, %v11498_v49 }
 0x84d   :  { %v5767_v46 = vadd.f32 %v5763_v59, %v11460_v40  ;;  %v5454_v40 = vmul.f32 %v11307_v61, %v5453_v6 }
 0x850   :  { %v5361_v25 = vpop.permute.xlu1 %5360  ;;  %v5665_v58 = vpop.permute.xlu0 %5664 }
 0x851   :  { %v5366_v16 = vadd.f32 %v5361_v25, %v5318_v37  ;;  %v2568_v25 = vadd.f32 %v2566_v9, %v2526_v48  ;;  %v5737_v48 = vmul.f32 %v5735_v50, %v10988_v43  ;;  %v5591_v9 = vstv %s11540_s24 }
 0x852   :  { %v2559_v43 = vmul.f32 %v11498_v49, %v12065_v26 }
 0x854   :  { %v5609_v44 = vpop.permute.xlu1 %5608  ;;  %v5419_v13 = vpop.permute.xlu0 %5418 }
 0x855   :  { %v7219_v5 = vpop.eup %7218  ;;  %v5614_v53 = vadd.f32 %v5609_v44, %v11436_v55  ;;  %v5423_v15 = vadd.f32 %v5419_v13, %v5367_v27 }
 0x856   :  { %v5870_v41 = vadd.f32 1.0, %v7219_v5 }
 0x857   :  { %v5670_v38 = vadd.f32 %v5665_v58, %v5614_v53  ;;  %v11502_v14 = vadd.f32 %v5455_v42, %v5423_v15  ;;  %v5736_v53 = vmul.f32 %v5735_v50, %v12191_v3  ;;  %v5592_v50 = vmul.f32 %v11430_v12, %v5591_v9 }
 0x858   :  { %7220 = vrcp.f32 %v5870_v41  ;;  %v11504_v37 = vpop.permute.xlu1 %2369  ;;  %v11506_v23 = vpop.permute.xlu0 %2449  ;;  %v5593_v12 = vmul.f32 %v11480_v2, %v5591_v9 }
 0x859   :  { %v11508_v62 = vadd.f32 %v5718_v0, %v5670_v38 }
 0x85c   :  { %v5571_v55 = vpop.permute.xlu1 %5570  ;;  %v5651_v1 = vpop.permute.xlu0 %5650 }
 0x85d   :  { %v5575_v24 = vadd.f32 %v5571_v55, %v5519_v63  ;;  %v5656_v59 = vadd.f32 %v5651_v1, %v5600_v39 }
 0x85f   :  { %v5601_v18 = vadd.f32 %v5599_v4, %v5575_v24 }
 0x860   :  { %v5819_v52 = vpop.permute.xlu1 %5818  ;;  %v2660_v30 = vpop.permute.xlu0 %2659 }
 0x861   :  { %v5823_v10 = vadd.f32 %v5819_v52, %v5767_v46 }
 0x862   :  { %v7221_v27 = vpop.eup %7220 }
 0x863   :  { %v6905_v54 = vmul.f32 -1.442695, %v5823_v10  ;;  %7042 = vmatprep.mubr.msk.f32.mxu1 %vm2717_vm12, %v7221_v27 }
 0x864   :  { %v5417_v33 = vpop.permute.xlu1 %5416  ;;  %v2506_v63 = vpop.permute.xlu0 %2505 }
 0x865   :  { %7222 = vpow2.f32 %v6905_v54  ;;  %v5422_v51 = vadd.f32 %v5417_v33, %v5366_v16  ;;  %v2565_v16 = vmul.f32 %v11374_v8, %v12065_v26 }
 0x867   :  { %v5456_v58 = vadd.f32 %v5454_v40, %v5422_v51  ;;  %v2567_v39 = vadd.f32 %v2565_v16, %v2525_v20 }
 0x868   :  { %v2604_v7 = vpop.permute.xlu1 %2603  ;;  %v5707_v44 = vpop.permute.xlu0 %5706 }
 0x869   :  { %v2608_v13 = vadd.f32 %v2604_v7, %v2568_v25  ;;  %v5712_v5 = vadd.f32 %v5707_v44, %v5656_v59  ;;  %v2607_v0 = vadd.f32 %v11491_v35, %v2567_v39 }
 0x86b   :  { %v2664_v15 = vadd.f32 %v2660_v30, %v2608_v13  ;;  %v11528_v42 = vadd.f32 %v5736_v53, %v5712_v5 }
 0x86c   :  { %v5667_v61 = vpop.permute.xlu1 %5666  ;;  %v11530_v6 = vpop.permute.xlu0 %2507 }
 0x86d   :  { %v6651_v41 = vmul.f32 -1.442695, %v2664_v15  ;;  %v5671_v38 = vadd.f32 %v5667_v61, %v11489_v56  ;;  %v2421_v56 = vmul.f32 %v11427_v34, %v12063_v60 }
 0x86f   :  { %v7223_v32 = vpop.eup %7222  ;;  %v11536_v3 = vadd.f32 %v5719_v31, %v5671_v38  ;;  %7224 = vpow2.f32 %v6651_v41  ;;  %v2423_v52 = vadd.f32 %v2421_v56, %v11472_v17 }
 0x870   :  { %v5871_v55 = vadd.f32 1.0, %v7223_v32  ;;  %v2658_v8 = vpop.permute.xlu1 %2657  ;;  %v5709_v1 = vpop.permute.xlu0 %5708 }
 0x871   :  { %v2663_v36 = vadd.f32 %v2658_v8, %v2607_v0  ;;  %v2455_v10 = vadd.f32 %v11506_v23, %v2423_v52 }
 0x872   :  { %7226 = vrcp.f32 %v5871_v55 }
 0x873   :  { %v6650_v24 = vmul.f32 -1.442695, %v2663_v36  ;;  %v2511_v40 = vadd.f32 %v2506_v63, %v2455_v10  ;;  %v2422_v36 = vmul.f32 %v11427_v34, %v12064_v11 }
 0x874   :  { %v11538_v4 = vpop.permute.xlu1 %2451  ;;  %v5555_v45 = vpop.permute.xlu0 %5554 }
 0x875   :  { %7228 = vpow2.f32 %v6650_v24  ;;  %v2561_v44 = vadd.f32 %v2559_v43, %v2511_v40 }
 0x878   :  { %v5653_v35 = vpop.permute.xlu1 %5652  ;;  %v5557_v46 = vpop.permute.xlu0 %5556 }
 0x879   :  { %v5657_v30 = vadd.f32 %v5653_v35, %v5601_v18  ;;  %v7225_v28 = vpop.eup %7224 }
 0x87a   :  { %v2712_v18 = vadd.f32 1.0, %v7225_v28 }
 0x87b   :  { %v5713_v27 = vadd.f32 %v5709_v1, %v5657_v30 }
 0x87c   :  { %v7227_v54 = vpop.eup %7226  ;;  %v5499_v33 = vpop.permute.xlu1 %5498 }
 0x87d   :  { %v2588_v51 = vpop.permute.xlu0 %2587  ;;  %v5504_v59 = vadd.f32 %v5499_v33, %v5456_v58  ;;  %7043 = vmatmul.mubr.msk.f32.vlgmr.msra.gmra.mrb[6].mxu1 %vm2717_vm12, %v7227_v54  ;;  %v11549_v60 = vadd.f32 %v5737_v48, %v5713_v27  ;;  %v2560_v48 = vmul.f32 %v11498_v49, %v12156_v21  ;;  %v5729_v33 = vstv %s11575_s26 }
 0x87e   :  { %7117 = vmatpush3.bf16.msk.msra.mxu1 %vm9645_vm11, %v12147_v47  ;;  %v2593_v13 = vadd.f32 %v2588_v51, %v2561_v44 }
 0x87f   :  { %v7229_v17 = vpop.eup %7228  ;;  %v5560_v23 = vadd.f32 %v5555_v45, %v5504_v59  ;;  %7119 = vmatprep.subr.msk.bf16.mxu1 %vm9639_vm10, %v12147_v47 }
 0x880   :  { %v2711_v63 = vadd.f32 1.0, %v7229_v17  ;;  %v5747_v58 = vpop.permute.xlu1 %5746  ;;  %v7298_v17 = vld [vmem:[#allocation4 + $0x49] sm:$0xff] }
 0x881   :  { %v2590_v7 = vpop.permute.xlu0 %2589  ;;  %v5594_v20 = vadd.f32 %v5592_v50, %v5560_v23  ;;  %v5752_v38 = vadd.f32 %v5747_v58, %v11508_v62 }
 0x882   :  { %7230 = vrcp.f32 %v2711_v63 }
 0x883   :  { %7232 = vrcp.f32 %v2712_v18  ;;  %v5730_v18 = vmul.f32 %v7298_v17, %v5729_v33 }
 0x884   :  { %v5501_v5 = vpop.permute.xlu1 %5500 }
 0x885   :  { %v2644_v53 = vpop.permute.xlu0 %2643  ;;  %v5505_v16 = vadd.f32 %v5501_v5, %v11502_v14  ;;  %v2374_v14 = vadd.f32 %v11504_v37, %v11453_v29 }
 0x886   :  { %v2649_v15 = vadd.f32 %v2644_v53, %v2593_v13 }
 0x887   :  { %v5561_v26 = vadd.f32 %v5557_v46, %v5505_v16  ;;  %v2424_v35 = vadd.f32 %v2422_v36, %v2374_v14 }
 0x888   :  { %v6648_v61 = vmul.f32 -1.442695, %v2649_v15  ;;  %v5749_v39 = vpop.permute.xlu1 %5748 }
 0x889   :  { %v11562_v41 = vadd.f32 %v5593_v12, %v5561_v26  ;;  %v5845_v32 = vpop.permute.xlu0 %5844  ;;  %v5753_v2 = vadd.f32 %v5749_v39, %v11536_v3  ;;  %v2456_v29 = vadd.f32 %v11538_v4, %v2424_v35 }
 0x88a   :  { %7234 = vpow2.f32 %v6648_v61 }
 0x88b   :  { %v2512_v34 = vadd.f32 %v11530_v6, %v2456_v29 }
 0x88c   :  { %v7231_v31 = vpop.eup %7230  ;;  %v5803_v0 = vpop.permute.xlu1 %5802 }
 0x88d   :  { %v7233_v55 = vpop.eup %7232  ;;  %v5808_v8 = vadd.f32 %v5803_v0, %v5752_v38  ;;  %6994 = vmatprep.mubr.msk.f32.mxu0 %vm2717_vm12, %v7231_v31  ;;  %v5639_v45 = vpop.permute.xlu0 %5638  ;;  %v2562_v9 = vadd.f32 %v2560_v48, %v2512_v34  ;;  %v12195_v48 = vmov 0.0  }
 0x88e   :  { %6995 = vmatmul.mubr.msk.f32.vlgmr.msra.gmra.mrb[0].mxu0 %vm2717_vm12, %v7233_v55  ;;  %v5643_v15 = vadd.f32 %v5639_v45, %v11562_v41 }
 0x88f   :  { %v6902_v1 = vmul.f32 -1.442695, %v5808_v8  ;;  %7093 = vmatpush3.bf16.msk.msra.mxu0 %vm9645_vm11, %v12147_v47  ;;  %v2594_v59 = vadd.f32 %v2590_v7, %v2562_v9 }
 0x890   :  { %v5805_v62 = vpop.permute.xlu1 %5804 }
 0x891   :  { %7236 = vpow2.f32 %v6902_v1  ;;  %v5809_v24 = vadd.f32 %v5805_v62, %v5753_v2  ;;  %v5693_v28 = vpop.permute.xlu0 %5692 }
 0x893   :  { %v6903_v46 = vmul.f32 -1.442695, %v5809_v24 }
 0x894   :  { %v7235_v56 = vpop.eup %7234  ;;  %v5789_v30 = vpop.permute.xlu1 %5788 }
 0x895   :  { %v2699_v52 = vadd.f32 1.0, %v7235_v56  ;;  %7238 = vpow2.f32 %v6903_v46  ;;  %v5794_v37 = vadd.f32 %v5789_v30, %v11528_v42  ;;  %v5775_v40 = vpop.permute.xlu0 %5774 }
 0x897   :  { %7240 = vrcp.f32 %v2699_v52  ;;  %v5850_v3 = vadd.f32 %v5845_v32, %v5794_v37 }
 0x898   :  { %v5791_v11 = vpop.permute.xlu1 %5790 }
 0x899   :  { %v6916_v10 = vmul.f32 -1.442695, %v5850_v3  ;;  %v5795_v21 = vadd.f32 %v5791_v11, %v11549_v60  ;;  %v7299_v60 = vld [vmem:[#allocation4 + $0x51] sm:$0xff] }
 0x89a   :  { %v5731_v31 = vmul.f32 %v7299_v60, %v5729_v33 }
 0x89b   :  { %v7237_v27 = vpop.eup %7236  ;;  %7242 = vpow2.f32 %v6916_v10  ;;  %v12193_v10 = vld [vmem:[#allocation19_spill] sm:$0xff] }
 0x89c   :  { %v5858_v54 = vadd.f32 1.0, %v7237_v27  ;;  %v5637_v51 = vpop.permute.xlu1 %5636  ;;  %v12194_v27 = vld [vmem:[#allocation29_spill] sm:$0xff]  ;;  %vm79_vm3 = vcmp.eq.s32.totalorder %v12197_v57, %v12193_v10 }
 0x89d   :  { %v5642_v4 = vadd.f32 %v5637_v51, %v5594_v20  ;;  %v5831_v20 = vpop.permute.xlu0 %5830  ;;  %vm77_vm1 = vcmp.eq.s32.totalorder %v12194_v27, %v12193_v10  ;;  %v6422_v17 = vsel %vm79_vm3, 1.0, %v12195_v48 }
 0x89e   :  { %7244 = vrcp.f32 %v5858_v54  ;;  %v6420_v54 = vsel %vm77_vm1, 1.0, %v12195_v48 }
 0x89f   :  { %v7239_v42 = vpop.eup %7238  ;;  %v5698_v23 = vadd.f32 %v5693_v28, %v5642_v4 }
 0x8a0   :  { %v5859_v6 = vadd.f32 1.0, %v7239_v42  ;;  %v2646_v50 = vpop.permute.xlu1 %2645 }
 0x8a1   :  { %v7241_v43 = vpop.eup %7240  ;;  %v5732_v63 = vadd.f32 %v5730_v18, %v5698_v23  ;;  %v2650_v58 = vadd.f32 %v2646_v50, %v2594_v59  ;;  %v12198_v18 = vld [vmem:[#allocation68_spill] sm:$0xff] }
 0x8a2   :  { %7001 = vmatprep.mubr.msk.f32.mxu0 %vm2717_vm12, %v7241_v43  ;;  %7246 = vrcp.f32 %v5859_v6  ;;  %vm80_vm4 = vcmp.eq.s32.totalorder %v12198_v18, %v12193_v10  ;;  %v12199_v43 = vld [vmem:[#allocation37_spill] sm:$0xff] }
 0x8a3   :  { %v5780_v49 = vadd.f32 %v5775_v40, %v5732_v63  ;;  %v6649_v44 = vmul.f32 -1.442695, %v2650_v58  ;;  %v6423_v23 = vsel %vm80_vm4, 1.0, %v12195_v48  ;;  %v12200_v58 = vld [vmem:[#allocation66_spill] sm:$0xff] }
 0x8a4   :  { %v5847_v13 = vpop.permute.xlu1 %5846 }
 0x8a5   :  { %v7243_v5 = vpop.eup %7242  ;;  %v5836_v53 = vadd.f32 %v5831_v20, %v5780_v49  ;;  %7248 = vpow2.f32 %v6649_v44  ;;  %v5851_v7 = vadd.f32 %v5847_v13, %v5795_v21 }
 0x8a6   :  { %v6056_v16 = vadd.f32 1.0, %v7243_v5 }
 0x8a7   :  { %v6914_v26 = vmul.f32 -1.442695, %v5836_v53  ;;  %v6917_v61 = vmul.f32 -1.442695, %v5851_v7 }
 0x8a8   :  { %v7245_v12 = vpop.eup %7244  ;;  %7250 = vrcp.f32 %v6056_v16  ;;  %v5695_v39 = vpop.permute.xlu1 %5694 }
 0x8a9   :  { %7252 = vpow2.f32 %v6914_v26  ;;  %v5699_v38 = vadd.f32 %v5695_v39, %v5643_v15  ;;  %7049 = vmatprep.mubr.msk.f32.mxu1 %vm2717_vm12, %v7245_v12 }
 0x8aa   :  { %7254 = vpow2.f32 %v6917_v61 }
 0x8ab   :  { %v5733_v32 = vadd.f32 %v5731_v31, %v5699_v38 }
 0x8ac   :  { %v7247_v0 = vpop.eup %7246  ;;  %v5777_v55 = vpop.permute.xlu1 %5776 }
 0x8ad   :  { %7050 = vmatmul.mubr.msk.f32.vlgmr.msra.gmra.mrb[6].mxu1 %vm2717_vm12, %v7247_v0  ;;  %v5781_v8 = vadd.f32 %v5777_v55, %v5733_v32 }
 0x8ae   :  { %7121 = vmatpush3.bf16.msk.msra.mxu1 %vm9639_vm10, %v12147_v47 }
 0x8af   :  { %v7249_v41 = vpop.eup %7248  ;;  %7123 = vmatprep.subr.msk.bf16.mxu1 %vm9645_vm11, %v12147_v47 }
 0x8b0   :  { %v2700_v14 = vadd.f32 1.0, %v7249_v41  ;;  %v5833_v2 = vpop.permute.xlu1 %5832 }
 0x8b1   :  { %v5837_v1 = vadd.f32 %v5833_v2, %v5781_v8 }
 0x8b2   :  { %v7251_v62 = vpop.eup %7250  ;;  %7256 = vrcp.f32 %v2700_v14 }
 0x8b3   :  { %v7253_v36 = vpop.eup %7252  ;;  %v6915_v24 = vmul.f32 -1.442695, %v5837_v1  ;;  %7056 = vmatprep.mubr.msk.f32.mxu1 %vm2717_vm12, %v7251_v62 }
 0x8b4   :  { %v7255_v45 = vpop.eup %7254  ;;  %v6044_v56 = vadd.f32 1.0, %v7253_v36 }
 0x8b5   :  { %v6057_v35 = vadd.f32 1.0, %v7255_v45  ;;  %7258 = vpow2.f32 %v6915_v24 }
 0x8b6   :  { %7260 = vrcp.f32 %v6044_v56 }
 0x8b7   :  { %7262 = vrcp.f32 %v6057_v35  ;;  %v7024_v25 = vpop.f32.mrb[2].mxu1 }
 0x8b8   :  { %v3144_v46 = vpop.f32.mrb[3].mxu1 }
 0x8bc   :  { %v7257_v52 = vpop.eup %7256 }
 0x8bd   :  { %7002 = vmatmul.mubr.msk.f32.vlgmr.msra.gmra.mrb[0].mxu0 %vm2717_vm12, %v7257_v52 }
 0x8be   :  { %7032 = vmatprep.mubr.msk.f32.mxu0 %vm2717_vm12, %v6420_v54 }
 0x8bf   :  { %v7259_v30 = vpop.eup %7258 }
 0x8c0   :  { %v7261_v29 = vpop.eup %7260  ;;  %v6045_v37 = vadd.f32 1.0, %v7259_v30 }
 0x8c1   :  { %v7263_v3 = vpop.eup %7262 }
 0x8c2   :  { %7264 = vrcp.f32 %v6045_v37  ;;  %7057 = vmatmul.mubr.msk.f32.vlgmr.msra.gmra.mrb[8].mxu1 %vm2717_vm12, %v7263_v3 }
 0x8c3   :  { %7063 = vmatprep.mubr.msk.f32.mxu1 %vm2717_vm12, %v7261_v29  ;;  %7125 = vmatpush3.bf16.msk.msra.mxu1 %vm9645_vm11, %v12147_v47  ;;  %v12196_v47 = vld [vmem:[#allocation27_spill] sm:$0xff] }
 0x8c4   :  { %vm78_vm2 = vcmp.eq.s32.totalorder %v12196_v47, %v12193_v10 }
 0x8c5   :  { %v6421_v59 = vsel %vm78_vm2, 1.0, %v12195_v48 }
 0x8c8   :  { %v7027_v28 = vpop.f32.mrb[4].mxu1 }
 0x8c9   :  { %v3154_v34 = vpop.f32.mrb[5].mxu1 }
 0x8cc   :  { %v7265_v11 = vpop.eup %7264 }
 0x8cd   :  { %7064 = vmatmul.mubr.msk.f32.vlgmr.msra.gmra.mrb[8].mxu1 %vm2717_vm12, %v7265_v11 }
 0x980   :  { %v7051_v33 = vpop.f32.mrb[6].mxu1 }
 0x981   :  { %v6029_v51 = vpop.f32.mrb[7].mxu1 }
 0x982   :  { %v7130_v9 = vpack.c.bf16 %v7051_v33, %v6029_v51 }
 0x990   :  { %v7003_v4 = vpop.f32.mrb[0].mxu0 }
 0x991   :  { %v2871_v40 = vpop.f32.mrb[1].mxu0 }
 0x992   :  { %v7106_v42 = vpack.c.bf16 %v7003_v4, %v2871_v40 }
 0x994   :  { %7107 = vmatprep.subr.bf16.mxu0 %v7106_v42 }
 0x995   :  { %7109 = vmatpush3.bf16.msra.mxu0 %v7106_v42 }
 0x998   :  { %7033 = vmatmul.mubr.msk.f32.vlgmr.msra.gmra.mrb[2].mxu0 %vm2717_vm12, %v6421_v59 }
 0x999   :  { %7035 = vmatprep.mubr.msk.f32.mxu0 %vm2717_vm12, %v6422_v17 }
 0x99c   :  { %7036 = vmatmul.mubr.msk.f32.gmra.mrb[4].mxu0 %vm2717_vm12, %v6423_v23 }
 0x99d   :  { %7070 = vmatprep.mubr.msk.f32.mxu0 %vm2717_vm12, %v12199_v43 }
 0x9a0   :  { %v7065_v6 = vpop.f32.mrb[8].mxu1 }
 0x9a1   :  { %v6215_v50 = vpop.f32.mrb[9].mxu1 }
 0x9a2   :  { %v7126_v63 = vpack.c.bf16 %v7065_v6, %v6215_v50 }
 0x9a4   :  { %7127 = vmatprep.subr.bf16.mxu0 %v7126_v63 }
 0x9a5   :  { %7129 = vmatpush3.bf16.msra.mxu0 %v7126_v63 }
 0x9a6   :  { %7131 = vmatprep.subr.bf16.mxu0 %v7130_v9 }
 0x9a8   :  { %7071 = vmatmul.mubr.msk.f32.vlgmr.msra.gmra.mrb[6].mxu0 %vm2717_vm12, %v12200_v58 }
 0x9a9   :  { %7133 = vmatpush3.bf16.msra.mxu0 %v7130_v9  ;;  %7073 = vmatprep.mubr.msk.f32.mxu0 %vm2717_vm12, %v11206_v22 }
 0x9ac   :  { %7074 = vmatmul.mubr.msk.f32.gmra.mrb[8].mxu0 %vm2717_vm12, %v11209_v19 }
 0x9ad   :  { %7080 = vmatprep.mubr.msk.f32.mxu0 %vm2717_vm12, %v6420_v54 }
 0x9b0   :  { %7081 = vmatmul.mubr.msk.f32.vlgmr.msra.gmra.mrb[6].mxu0 %vm2717_vm12, %v6421_v59 }
 0x9b1   :  { %7083 = vmatprep.mubr.msk.f32.mxu0 %vm2717_vm12, %v6422_v17 }
 0x9b4   :  { %7084 = vmatmul.mubr.msk.f32.gmra.mrb[8].mxu0 %vm2717_vm12, %v6423_v23 }
 0xa6b   :  { %v7034_v21 = vpop.f32.mrb[2].mxu0 }
 0xa6c   :  { %v3247_v49 = vadd.f32 %v7034_v21, %v7024_v25  ;;  %v3241_v44 = vpop.f32.mrb[3].mxu0 }
 0xa6d   :  { %v3242_v20 = vadd.f32 %v3241_v44, %v3144_v46 }
 0xa6e   :  { %3262 = vst.msk [vmem:[#allocation8 + $0x8] sm:$0xff] %vm3260_vm5, %v3247_v49 }
 0xa6f   :  { %3261 = vst.msk [vmem:[#allocation8] sm:$0xff] %vm3260_vm5, %v3242_v20  ;;  %v7037_v22 = vpop.f32.mrb[4].mxu0 }
 0xa70   :  { %v3257_v13 = vadd.f32 %v7037_v22, %v7027_v28  ;;  %v3251_v19 = vpop.f32.mrb[5].mxu0 }
 0xa71   :  { %v3252_v5 = vadd.f32 %v3251_v19, %v3154_v34 }
 0xa72   :  { %3264 = vst.msk [vmem:[#allocation8 + $0x18] sm:$0xff] %vm3260_vm5, %v3257_v13 }
 0xa73   :  { %3263 = vst.msk [vmem:[#allocation8 + $0x10] sm:$0xff] %vm3260_vm5, %v3252_v5 }
 0xa83   :  { %v7082_v53 = vpop.f32.mrb[6].mxu0 }
 0xa84   :  { %6396 = vst.msk [vmem:[#allocation8 + $0x28] sm:$0xff] %vm3260_vm5, %v7082_v53  ;;  %v6375_v7 = vpop.f32.mrb[7].mxu0 }
 0xa85   :  { %6395 = vst.msk [vmem:[#allocation8 + $0x20] sm:$0xff] %vm3260_vm5, %v6375_v7 }
 0xa87   :  { %v7085_v16 = vpop.f32.mrb[8].mxu0 }
 0xa88   :  { %6398 = vst.msk [vmem:[#allocation8 + $0x38] sm:$0xff] %vm3260_vm5, %v7085_v16  ;;  %v6385_v15 = vpop.f32.mrb[9].mxu0 }
 0xa89   :  { %6397 = vst.msk [vmem:[#allocation8 + $0x30] sm:$0xff] %vm3260_vm5, %v6385_v15 }
 0xa8a   :  { %7323 = shalt.err (!%p7320_p9)
}
 0xa8b   :  { %s7324_s29 = scalar_lea.hbm %s11652_s2, 1024 }
 0xa8c   :  { %p7325_p10 = scmp.ne.s32.totalorder %s11652_s2, %s7324_s29  ;;  %p7328_p11 = scmp.lt.u32.totalorder %s7324_s29, %s11652_s2 }
 0xa8e   :  { %p7330_p12 = pnand %p7328_p11, %p7325_p10 }
 0xa90   :  { %7333 = shalt.err (!%p7330_p12)
}
 0xa91   :  { %s7348_s10 = smov 128   ;;  %s7349_s11 = smov 8  }
 0xa92   :  { %6410 = dma.vmem_to_hbm [thread:$0]  %s6405_s30, 1024, %s11652_s2, [#allocation6], %s7348_s10, %s7348_s10, %s7349_s11  }
 0xa93   :  { %7336 = dma.done.wait [#allocation6], 1024  }
 0xa94   :  { %7337 = vsyncadd [#allocation6], 4294966272 }
 0xa95   :  { %6414 = vsyncpa [#allocation6], 1 }
 0xa96   :  { %6415 = vsyncpa [#allocation7], 1 }

</bundles_post_ra>
